<compile_context>
chip_gen: v5e
topology: v5e:2x2
jax: 0.10.0
libtpu: 0.0.40
codegen_flags: <defaults>
</compile_context>

<pallas_src>
import math
import functools

import jax
import jax.numpy as jnp
from jax.experimental import pallas as pl
from jax.experimental.pallas import tpu as pltpu

_EPS_LN = 1e-6
_EPS_RMS = 1e-6


# ------------------------------------------------------------------ config / helpers
@functools.lru_cache(maxsize=None)
def _tpu_config():
    """Generation-derived VMEM limit and tile targets."""
    vmem_cap = None
    try:
        info = pltpu.get_tpu_info()
        vmem_cap = getattr(info, "vmem_capacity_bytes", None)
    except Exception:
        vmem_cap = None
    if vmem_cap is not None and vmem_cap >= 100 * 2**20:
        # v4 / v5e / v6e class (128 MiB VMEM): big tiles, ~100 MiB scoped limit.
        return dict(vmem_limit=min(100 * 2**20, int(vmem_cap * 0.8)),
                    tm=256, tn=1024, tn_mod=2048, tf=1024, tq=2048, tk=1024)
    if vmem_cap is not None:
        # v7x class (64 MiB per TC): tighter tiles, leave headroom for compiler scratch.
        return dict(vmem_limit=int(vmem_cap * 0.75),
                    tm=256, tn=512, tn_mod=1024, tf=512, tq=2048, tk=1024)
    # Unknown device: conservative, known-good defaults.
    return dict(vmem_limit=48 * 2**20,
                tm=256, tn=512, tn_mod=1024, tf=512, tq=2048, tk=1024)


def _cparams(sem, cfg):
    return pltpu.CompilerParams(dimension_semantics=sem,
                                vmem_limit_bytes=cfg["vmem_limit"])


def _tile_rows(n, target):
    """Largest divisor of n that is <= target and a multiple of 8 (else full n).
    TODO(synk): add a masked path for ragged n instead of falling back to the full axis."""
    if n <= target:
        return n
    for d in range(target, 0, -1):
        if n % d == 0 and d % 8 == 0:
            return d
    return n


def _tile_cols(n, target):
    """Largest divisor of n that is <= target and a multiple of 128 (else full n)."""
    if n <= target:
        return n
    for d in range(target, 0, -1):
        if n % d == 0 and d % 128 == 0:
            return d
    return n


def _gelu_tanh(x):
    c = 0.7978845608028654  # sqrt(2/pi)
    return 0.5 * x * (1.0 + jnp.tanh(c * (x + 0.044715 * x * x * x)))


def _layernorm_f32(x):
    mean = jnp.mean(x, axis=-1, keepdims=True)
    xc = x - mean
    var = jnp.mean(xc * xc, axis=-1, keepdims=True)
    return xc * jax.lax.rsqrt(var + _EPS_LN)


# ------------------------------------------------------------------ modulation: silu + linear
def _silu_linear_kernel(x_ref, w_ref, b_ref, o_ref):
    x = x_ref[...].astype(jnp.float32)
    xs = x * (1.0 / (1.0 + jnp.exp(-x)))                      # silu, f32 on VPU/EUP
    y = jnp.dot(xs.astype(w_ref.dtype), w_ref[...], preferred_element_type=jnp.float32)
    o_ref[...] = (y + b_ref[...].astype(jnp.float32)).astype(o_ref.dtype)


def modulation_pallas(vec, w, b, cfg):
    M, K = vec.shape
    N = w.shape[1]
    tn = _tile_cols(N, cfg["tn_mod"])
    return pl.pallas_call(
        _silu_linear_kernel,
        grid=(N // tn,),
        in_specs=[pl.BlockSpec((M, K), lambda j: (0, 0)),
                  pl.BlockSpec((K, tn), lambda j: (0, j)),
                  pl.BlockSpec((1, tn), lambda j: (0, j))],
        out_specs=pl.BlockSpec((M, tn), lambda j: (0, j)),
        out_shape=jax.ShapeDtypeStruct((M, N), vec.dtype),
        compiler_params=_cparams(("parallel",), cfg),
    )(vec, w, b.reshape(1, N))


# ------------------------------------------------------------------ fused LN1 + mod + QKV proj
# LayerNorm+modulation hoisted out of the column axis (computed once per row tile).
def _ln_mod_linear_kernel(x_ref, scale_ref, shift_ref, w_ref, b_ref, o_ref, xm_sc):
    @pl.when(pl.program_id(2) == 0)
    def _():
        x = x_ref[...].astype(jnp.float32)                    # (tm, H)
        xn = _layernorm_f32(x)
        xm = (1.0 + scale_ref[...].astype(jnp.float32)) * xn + shift_ref[...].astype(jnp.float32)
        xm_sc[...] = xm.astype(xm_sc.dtype)                   # weight (MXU) dtype

    y = jnp.dot(xm_sc[...], w_ref[...], preferred_element_type=jnp.float32)
    o_ref[...] = (y + b_ref[...].astype(jnp.float32)).astype(o_ref.dtype)


def ln_mod_qkv_pallas(x, scale, shift, w, b, out_dtype, cfg):
    B, L, H = x.shape
    N = w.shape[1]
    tm = _tile_rows(L, cfg["tm"])
    tn = _tile_cols(N, cfg["tn"])
    return pl.pallas_call(
        _ln_mod_linear_kernel,
        grid=(B, L // tm, N // tn),
        in_specs=[
            pl.BlockSpec((None, tm, H), lambda b_, i, j: (b_, i, 0)),
            pl.BlockSpec((None, 1, H), lambda b_, i, j: (b_, 0, 0)),
            pl.BlockSpec((None, 1, H), lambda b_, i, j: (b_, 0, 0)),
            pl.BlockSpec((H, tn), lambda b_, i, j: (0, j)),
            pl.BlockSpec((1, tn), lambda b_, i, j: (0, j)),
        ],
        out_specs=pl.BlockSpec((None, tm, tn), lambda b_, i, j: (b_, i, j)),
        out_shape=jax.ShapeDtypeStruct((B, L, N), out_dtype),
        scratch_shapes=[pltpu.VMEM((tm, H), w.dtype)],
        compiler_params=_cparams(("parallel", "parallel", "arbitrary"), cfg),
    )(x, scale.reshape(B, 1, H), shift.reshape(B, 1, H), w, b.reshape(1, N))


# ------------------------------------------------------------------ fused attention
# Flash-style online softmax over per-head column blocks of the joint (B, L, 3H) qkv
# tensor.  Prologue applies QK RMSNorm and RoPE (rotate-half via pltpu.roll); RMS scales
# and sm_scale are pre-folded into the (B, L, D) multiply tables pea_*/peb_*.
def _fused_attn_kernel(q_ref, k_ref, v_ref, peaq_ref, pebq_ref, peak_ref, pebk_ref,
                       o_ref, qn_sc, m_sc, l_sc, acc_sc):
    ki = pl.program_id(3)
    half = q_ref.shape[-1] // 2

    @pl.when(ki == 0)
    def _():
        q = q_ref[...].astype(jnp.float32)                    # (tq, D)
        rrms = jax.lax.rsqrt(jnp.mean(q * q, axis=-1, keepdims=True) + _EPS_RMS)
        qh = q * rrms
        qn = peaq_ref[...] * qh + pebq_ref[...] * pltpu.roll(qh, half, axis=1)
        qn_sc[...] = qn.astype(qn_sc.dtype)                   # narrow MXU operand
        m_sc[...] = jnp.full_like(m_sc, -jnp.inf)
        l_sc[...] = jnp.zeros_like(l_sc)
        acc_sc[...] = jnp.zeros_like(acc_sc)

    k = k_ref[...].astype(jnp.float32)                        # (tk, D)
    rrms_k = jax.lax.rsqrt(jnp.mean(k * k, axis=-1, keepdims=True) + _EPS_RMS)
    kh = k * rrms_k
    kn = (peak_ref[...] * kh + pebk_ref[...] * pltpu.roll(kh, half, axis=1)).astype(qn_sc.dtype)

    # contract last dims - no explicit transpose of K; input-dtype operands, f32 acc
    s = jax.lax.dot_general(qn_sc[...], kn, (((1,), (1,)), ((), ())),
                            preferred_element_type=jnp.float32)       # (tq, tk)
    m_prev = m_sc[...]
    m_new = jnp.maximum(m_prev, jnp.max(s, axis=-1, keepdims=True))
    alpha = jnp.exp(m_prev - m_new)
    p = jnp.exp(s - m_new)
    l_sc[...] = alpha * l_sc[...] + jnp.sum(p, axis=-1, keepdims=True)
    acc_sc[...] = alpha * acc_sc[...] + jnp.dot(
        p.astype(v_ref.dtype), v_ref[...], preferred_element_type=jnp.float32)
    m_sc[...] = m_new

    @pl.when(ki == pl.num_programs(3) - 1)
    def _():
        o_ref[...] = (acc_sc[...] * pl.reciprocal(l_sc[...], approx=True)).astype(o_ref.dtype)


def attention_fused_pallas(qkv, pea_q, peb_q, pea_k, peb_k, num_heads, out_dtype, cfg):
    """qkv: (B, L, 3H) with column order (K=3, heads, D); returns attn: (B, L, H)."""
    B, L, threeH = qkv.shape
    H = threeH // 3
    nH = num_heads
    D = H // nH
    if D % 128 != 0:
        raise ValueError("fused attention requires head_dim % 128 == 0 for lane-aligned "
                         f"per-head blocks, got head_dim={D}")
    tq = _tile_rows(L, cfg["tq"])
    tk = _tile_rows(L, cfg["tk"])
    pe_q_spec = pl.BlockSpec((None, tq, D), lambda b, h, qi, ki: (b, qi, 0))
    pe_k_spec = pl.BlockSpec((None, tk, D), lambda b, h, qi, ki: (b, ki, 0))
    return pl.pallas_call(
        _fused_attn_kernel,
        grid=(B, nH, L // tq, L // tk),
        in_specs=[
            pl.BlockSpec((None, tq, D), lambda b, h, qi, ki: (b, qi, h)),           # q
            pl.BlockSpec((None, tk, D), lambda b, h, qi, ki: (b, ki, nH + h)),      # k
            pl.BlockSpec((None, tk, D), lambda b, h, qi, ki: (b, ki, 2 * nH + h)),  # v
            pe_q_spec, pe_q_spec, pe_k_spec, pe_k_spec,
        ],
        out_specs=pl.BlockSpec((None, tq, D), lambda b, h, qi, ki: (b, qi, h)),
        out_shape=jax.ShapeDtypeStruct((B, L, H), out_dtype),
        scratch_shapes=[pltpu.VMEM((tq, D), qkv.dtype),       # normed+roped q (MXU dtype)
                        pltpu.VMEM((tq, 1), jnp.float32),     # m
                        pltpu.VMEM((tq, 1), jnp.float32),     # l
                        pltpu.VMEM((tq, D), jnp.float32)],    # acc
        compiler_params=_cparams(("parallel", "parallel", "parallel", "arbitrary"), cfg),
    )(qkv, qkv, qkv, pea_q, peb_q, pea_k, peb_k)


# ------------------------------------------------------------------ attn-out proj + gate + residual
def _proj_gate_res_kernel(x_ref, w_ref, b_ref, gate_ref, res_ref, o_ref):
    y = jnp.dot(x_ref[...].astype(w_ref.dtype), w_ref[...],
                preferred_element_type=jnp.float32)
    y = y + b_ref[...].astype(jnp.float32)
    o_ref[...] = (res_ref[...].astype(jnp.float32)
                  + gate_ref[...].astype(jnp.float32) * y).astype(o_ref.dtype)


def proj_gate_res_pallas(x, w, b, gate, res, out_dtype, cfg):
    B, L, K = x.shape
    N = w.shape[1]
    tm = _tile_rows(L, cfg["tm"])
    tn = _tile_cols(N, cfg["tn"])
    return pl.pallas_call(
        _proj_gate_res_kernel,
        grid=(B, L // tm, N // tn),
        in_specs=[
            pl.BlockSpec((None, tm, K), lambda b_, i, j: (b_, i, 0)),
            pl.BlockSpec((K, tn), lambda b_, i, j: (0, j)),
            pl.BlockSpec((1, tn), lambda b_, i, j: (0, j)),
            pl.BlockSpec((None, 1, tn), lambda b_, i, j: (b_, 0, j)),
            pl.BlockSpec((None, tm, tn), lambda b_, i, j: (b_, i, j)),
        ],
        out_specs=pl.BlockSpec((None, tm, tn), lambda b_, i, j: (b_, i, j)),
        out_shape=jax.ShapeDtypeStruct((B, L, N), out_dtype),
        compiler_params=_cparams(("parallel", "parallel", "parallel"), cfg),
    )(x, w, b.reshape(1, N), gate.reshape(B, 1, N), res)


# ------------------------------------------------------------------ fused LN2 + mod + MLP + gate + residual
# Reduction over mlp_hidden is tiled (f axis) with an f32 VMEM accumulator; LN+mod is
# hoisted out of the f axis into a VMEM scratch (computed once per row tile).
def _mlp_gate_res_kernel(x_ref, scale_ref, shift_ref, gate_ref,
                         w1_ref, b1_ref, w2_ref, b2_ref, o_ref, xm_sc, acc_sc):
    f = pl.program_id(2)

    @pl.when(f == 0)
    def _():
        x = x_ref[...].astype(jnp.float32)                    # (tm, H)
        xn = _layernorm_f32(x)
        xm = (1.0 + scale_ref[...].astype(jnp.float32)) * xn + shift_ref[...].astype(jnp.float32)
        xm_sc[...] = xm.astype(xm_sc.dtype)
        acc_sc[...] = jnp.zeros_like(acc_sc)

    h = jnp.dot(xm_sc[...], w1_ref[...], preferred_element_type=jnp.float32)
    h = _gelu_tanh(h + b1_ref[...].astype(jnp.float32))
    acc_sc[...] += jnp.dot(h.astype(w2_ref.dtype), w2_ref[...],
                           preferred_element_type=jnp.float32)

    @pl.when(f == pl.num_programs(2) - 1)
    def _():
        y = acc_sc[...] + b2_ref[...].astype(jnp.float32)
        o_ref[...] = (x_ref[...].astype(jnp.float32)
                      + gate_ref[...].astype(jnp.float32) * y).astype(o_ref.dtype)


def mlp_gate_res_pallas(x, scale, shift, gate, w1, b1, w2, b2, out_dtype, cfg):
    B, L, H = x.shape
    F = w1.shape[1]
    tm = _tile_rows(L, cfg["tm"])
    tf = _tile_cols(F, cfg["tf"])
    return pl.pallas_call(
        _mlp_gate_res_kernel,
        grid=(B, L // tm, F // tf),
        in_specs=[
            pl.BlockSpec((None, tm, H), lambda b_, i, f: (b_, i, 0)),
            pl.BlockSpec((None, 1, H), lambda b_, i, f: (b_, 0, 0)),
            pl.BlockSpec((None, 1, H), lambda b_, i, f: (b_, 0, 0)),
            pl.BlockSpec((None, 1, H), lambda b_, i, f: (b_, 0, 0)),
            pl.BlockSpec((H, tf), lambda b_, i, f: (0, f)),
            pl.BlockSpec((1, tf), lambda b_, i, f: (0, f)),
            pl.BlockSpec((tf, H), lambda b_, i, f: (f, 0)),
            pl.BlockSpec((1, H), lambda b_, i, f: (0, 0)),
        ],
        out_specs=pl.BlockSpec((None, tm, H), lambda b_, i, f: (b_, i, 0)),
        out_shape=jax.ShapeDtypeStruct((B, L, H), out_dtype),
        scratch_shapes=[pltpu.VMEM((tm, H), w1.dtype),
                        pltpu.VMEM((tm, H), jnp.float32)],
        compiler_params=_cparams(("parallel", "parallel", "arbitrary"), cfg),
    )(x, scale.reshape(B, 1, H), shift.reshape(B, 1, H), gate.reshape(B, 1, H),
      w1, b1.reshape(1, F), w2, b2.reshape(1, H))


# ------------------------------------------------------------------ RoPE layout plumbing (JAX glue)
def _split_half_perm(D):
    """new lane j (<D/2) <- old pair-interleaved lane 2j ; new lane D/2+j <- old 2j+1."""
    half = D // 2
    i = jnp.arange(half)
    return jnp.concatenate([2 * i, 2 * i + 1])


def _permute_qkv_columns(w, b, D):
    """Permute the q/k head-dim columns of a (H, 3H) qkv weight from pair-interleaved to
    split-half ("rotate-half") layout.  v columns untouched.  q.k^T and the attention
    output are invariant because q and k receive the same lane permutation."""
    N = w.shape[1]
    H = N // 3
    perm_d = _split_half_perm(D)
    col = jnp.arange(N)
    head_base = (col // D) * D
    within = col % D
    new_within = jnp.where(col < 2 * H, perm_d[within], within)
    src = head_base + new_within
    return w[:, src], b[src]


def _rope_scale_tables(pe, q_scale_txt, k_scale_txt, q_scale_img, k_scale_img,
                       L_txt, L_img, D, sm_scale, B):
    """Fold the per-stream QK RMSNorm scales, the RoPE 2x2 rotations and the softmax scale
    into four (B, L, D) multiply tables (split-half layout):
        roped(x) = pea * (x * rrms) + peb * roll(x * rrms, D//2)."""
    half = D // 2
    perm_d = _split_half_perm(D)
    L = L_txt + L_img
    rot = pe[:, 0].astype(jnp.float32)                               # (B, L, D//2, 2, 2)
    pe_a = jnp.concatenate([rot[..., 0, 0], rot[..., 1, 1]], axis=-1)  # (B, L, D)
    pe_b = jnp.concatenate([rot[..., 0, 1], rot[..., 1, 0]], axis=-1)  # (B, L, D)

    def per_row(scale_txt, scale_img):
        s_txt = jnp.broadcast_to(scale_txt[perm_d].astype(jnp.float32), (L_txt, D))
        s_img = jnp.broadcast_to(scale_img[perm_d].astype(jnp.float32), (L_img, D))
        return jnp.concatenate([s_txt, s_img], axis=0)[None]         # (1, L, D)

    sq = per_row(q_scale_txt, q_scale_img)
    sk = per_row(k_scale_txt, k_scale_img)
    roll_h = lambda a: jnp.roll(a, half, axis=-1)                    # D/2 roll: direction-agnostic
    pea_q = jnp.broadcast_to(pe_a * sq * sm_scale, (B, L, D))
    peb_q = jnp.broadcast_to(pe_b * roll_h(sq) * sm_scale, (B, L, D))
    pea_k = jnp.broadcast_to(pe_a * sk, (B, L, D))
    peb_k = jnp.broadcast_to(pe_b * roll_h(sk), (B, L, D))
    return pea_q, peb_q, pea_k, peb_k


# ------------------------------------------------------------------ Pallas forward
def image_stream_block_pallas(params, img, txt, pe, vec, num_heads, act_dtype=None):
    cfg = _tpu_config()
    p = params
    B, L_img, H = img.shape
    L_txt = txt.shape[1]
    nH = num_heads
    D = H // nH
    if act_dtype is None:
        act_dtype = img.dtype
    out_dtype = img.dtype
    sm_scale = 1.0 / math.sqrt(D)

    # Modulation: silu(vec) -> Linear(H, 6H) fused, chunk into (shift, scale, gate) x 2.
    img_mod = modulation_pallas(vec, p["img_mod_w"], p["img_mod_b"], cfg)
    txt_mod = modulation_pallas(vec, p["txt_mod_w"], p["txt_mod_b"], cfg)
    im_shift1, im_scale1, im_gate1, im_shift2, im_scale2, im_gate2 = jnp.split(img_mod, 6, axis=-1)
    tx_shift1, tx_scale1 = jnp.split(txt_mod, 6, axis=-1)[:2]

    # RoPE layout: split-half head-dim columns for q/k.
    # TODO(synk): hoist this weight-only permutation to checkpoint-load time.
    img_qkv_w, img_qkv_b = _permute_qkv_columns(p["img_qkv_w"], p["img_qkv_b"], D)
    txt_qkv_w, txt_qkv_b = _permute_qkv_columns(p["txt_qkv_w"], p["txt_qkv_b"], D)

    # Fused LN1 + modulation + QKV projection (LN hoisted out of the column axis).
    img_qkv = ln_mod_qkv_pallas(img, im_scale1, im_shift1, img_qkv_w, img_qkv_b, act_dtype, cfg)
    txt_qkv = ln_mod_qkv_pallas(txt, tx_scale1, tx_shift1, txt_qkv_w, txt_qkv_b, act_dtype, cfg)

    # Joint sequence, txt tokens first.
    # TODO(synk): the concat round-trips (B,L,3H) through HBM once; removable by aliasing
    # both QKV calls into one output buffer when L_txt is a multiple of the row tile.
    qkv = jnp.concatenate([txt_qkv, img_qkv], axis=1)                # (B, L, 3H)

    pea_q, peb_q, pea_k, peb_k = _rope_scale_tables(
        pe, p["txt_q_scale"], p["txt_k_scale"], p["img_q_scale"], p["img_k_scale"],
        L_txt, L_img, D, sm_scale, B)

    # Fused RMSNorm + RoPE + flash attention, output already in (B, L, H) layout.
    attn = attention_fused_pallas(qkv, pea_q, peb_q, pea_k, peb_k, nH, act_dtype, cfg)

    # TODO(synk): this txt-prefix slice is one extra (B, L_img, H) HBM copy; fold the
    # L_txt row offset into proj_gate_res's index_map when L_txt % tm == 0.
    img_attn = attn[:, L_txt:]

    # residual 1: img = img + gate1 * proj(img_attn)
    img1 = proj_gate_res_pallas(img_attn, p["img_proj_w"], p["img_proj_b"],
                                im_gate1, img, act_dtype, cfg)

    # residual 2: img = img + gate2 * MLP((1+scale2)*LN2(img) + shift2)
    img2 = mlp_gate_res_pallas(img1, im_scale2, im_shift2, im_gate2,
                               p["mlp_w1"], p["mlp_b1"], p["mlp_w2"], p["mlp_b2"],
                               out_dtype, cfg)
    return img2


# ------------------------------------------------------------------ pure-JAX reference
def image_stream_block_ref(params, img, txt, pe, vec, num_heads):
    p = params
    B, L_img, H = img.shape
    L_txt = txt.shape[1]
    L = L_txt + L_img
    nH = num_heads
    D = H // nH

    vec_act = jax.nn.silu(vec.astype(jnp.float32))
    img_mod = vec_act @ p["img_mod_w"].astype(jnp.float32) + p["img_mod_b"]
    txt_mod = vec_act @ p["txt_mod_w"].astype(jnp.float32) + p["txt_mod_b"]
    im_shift1, im_scale1, im_gate1, im_shift2, im_scale2, im_gate2 = jnp.split(img_mod, 6, axis=-1)
    tx_shift1, tx_scale1 = jnp.split(txt_mod, 6, axis=-1)[:2]

    def ln_mod(x, scale, shift):
        return (1.0 + scale[:, None, :]) * _layernorm_f32(x.astype(jnp.float32)) + shift[:, None, :]

    img_qkv = ln_mod(img, im_scale1, im_shift1) @ p["img_qkv_w"].astype(jnp.float32) + p["img_qkv_b"]
    txt_qkv = ln_mod(txt, tx_scale1, tx_shift1) @ p["txt_qkv_w"].astype(jnp.float32) + p["txt_qkv_b"]

    def split_heads(qkv, Lx):
        qkv = qkv.reshape(B, Lx, 3, nH, D).transpose(2, 0, 3, 1, 4)  # (3, B, nH, Lx, D)
        return qkv[0], qkv[1], qkv[2]

    iq, ik, iv = split_heads(img_qkv, L_img)
    tq_, tk_, tv_ = split_heads(txt_qkv, L_txt)

    def rms(x, scale):
        rrms = jax.lax.rsqrt(jnp.mean(x * x, axis=-1, keepdims=True) + _EPS_RMS)
        return x * rrms * scale

    iq, ik = rms(iq, p["img_q_scale"]), rms(ik, p["img_k_scale"])
    tq_, tk_ = rms(tq_, p["txt_q_scale"]), rms(tk_, p["txt_k_scale"])

    q = jnp.concatenate([tq_, iq], axis=2)
    k = jnp.concatenate([tk_, ik], axis=2)
    v = jnp.concatenate([tv_, iv], axis=2)

    def rope(x):  # pair-interleaved, matching flux apply_rope
        xs = x.reshape(B, nH, L, D // 2, 1, 2)
        out = pe[..., 0] * xs[..., 0] + pe[..., 1] * xs[..., 1]
        return out.reshape(B, nH, L, D)

    q, k = rope(q), rope(k)

    s = jnp.einsum("bhqd,bhkd->bhqk", q, k) / math.sqrt(D)
    pattn = jax.nn.softmax(s, axis=-1)
    attn = jnp.einsum("bhqk,bhkd->bhqd", pattn, v)
    attn = attn.transpose(0, 2, 1, 3).reshape(B, L, H)
    img_attn = attn[:, L_txt:]

    img1 = img + im_gate1[:, None, :] * (img_attn @ p["img_proj_w"].astype(jnp.float32)
                                         + p["img_proj_b"])
    xm2 = (1.0 + im_scale2[:, None, :]) * _layernorm_f32(img1) + im_shift2[:, None, :]
    h = _gelu_tanh(xm2 @ p["mlp_w1"].astype(jnp.float32) + p["mlp_b1"])
    y = h @ p["mlp_w2"].astype(jnp.float32) + p["mlp_b2"]
    return img1 + im_gate2[:, None, :] * y


# ------------------------------------------------------------------ RoPE pe builder (test input)
def build_rope_pe(B, L, head_dim, theta=10000.0):
    half = head_dim // 2
    pos = jnp.arange(L, dtype=jnp.float32)
    omega = 1.0 / (theta ** (jnp.arange(half, dtype=jnp.float32) * 2.0 / head_dim))
    ang = pos[:, None] * omega[None, :]
    cos, sin = jnp.cos(ang), jnp.sin(ang)
    rot = jnp.stack([jnp.stack([cos, -sin], axis=-1),
                     jnp.stack([sin, cos], axis=-1)], axis=-2)       # (L, half, 2, 2)
    return jnp.broadcast_to(rot[None, None], (B, 1, L, half, 2, 2)).astype(jnp.float32)


# ------------------------------------------------------------------ deterministic params
def init_params(key, hidden, num_heads, mlp_hidden, qkv_bias):
    D = hidden // num_heads
    ks = jax.random.split(key, 18)

    def w(k, shape, scale=0.02):
        return (scale * jax.random.normal(k, shape)).astype(jnp.float32)

    zeros = lambda shape: jnp.zeros(shape, jnp.float32)
    return dict(
        img_mod_w=w(ks[0], (hidden, 6 * hidden)),
        img_mod_b=w(ks[1], (6 * hidden,)),
        txt_mod_w=w(ks[2], (hidden, 6 * hidden)),
        txt_mod_b=w(ks[3], (6 * hidden,)),
        img_qkv_w=w(ks[4], (hidden, 3 * hidden)),
        img_qkv_b=w(ks[5], (3 * hidden,)) if qkv_bias else zeros((3 * hidden,)),
        txt_qkv_w=w(ks[6], (hidden, 3 * hidden)),
        txt_qkv_b=w(ks[7], (3 * hidden,)) if qkv_bias else zeros((3 * hidden,)),
        img_q_scale=1.0 + w(ks[8], (D,)),
        img_k_scale=1.0 + w(ks[9], (D,)),
        txt_q_scale=1.0 + w(ks[10], (D,)),
        txt_k_scale=1.0 + w(ks[11], (D,)),
        img_proj_w=w(ks[12], (hidden, hidden)),
        img_proj_b=w(ks[13], (hidden,)),
        mlp_w1=w(ks[14], (hidden, mlp_hidden)),
        mlp_b1=w(ks[15], (mlp_hidden,)),
        mlp_w2=w(ks[16], (mlp_hidden, hidden)),
        mlp_b2=w(ks[17], (hidden,)),
    )


# ------------------------------------------------------------------ main
if __name__ == "__main__":
    # Small but layout-consistent shapes: head_dim = 128 keeps per-head column blocks
    # lane-aligned (as at Flux sizes, where hidden=3072, heads=24, head_dim=128).
    hidden, num_heads, mlp_ratio = 256, 2, 4.0
    qkv_bias = True
    B, L_txt, L_img = 2, 8, 16
    head_dim = hidden // num_heads
    mlp_hidden = int(hidden * mlp_ratio)

    key = jax.random.PRNGKey(0)
    kp, kimg, ktxt, kvec = jax.random.split(key, 4)
    params = init_params(kp, hidden, num_heads, mlp_hidden, qkv_bias)

    img = jax.random.normal(kimg, (B, L_img, hidden), jnp.float32)
    txt = jax.random.normal(ktxt, (B, L_txt, hidden), jnp.float32)
    vec = jax.random.normal(kvec, (B, hidden), jnp.float32)
    pe = build_rope_pe(B, L_txt + L_img, head_dim)

    fwd_pallas = jax.jit(functools.partial(image_stream_block_pallas, num_heads=num_heads))
    fwd_ref = jax.jit(functools.partial(image_stream_block_ref, num_heads=num_heads))

    out = jax.block_until_ready(fwd_pallas(params, img, txt, pe, vec))
    ref = jax.block_until_ready(fwd_ref(params, img, txt, pe, vec))

    assert out.shape == (B, L_img, hidden), out.shape
    max_err = float(jnp.max(jnp.abs(out - ref)))
    assert max_err < 2e-3, f"f32 mismatch vs reference: {max_err}"

    # bf16 weights + bf16 inter-kernel activations: the MXU/HBM performance path.
    params_bf16 = {k: (v.astype(jnp.bfloat16) if v.ndim == 2 else v) for k, v in params.items()}
    fwd_bf16 = jax.jit(functools.partial(image_stream_block_pallas, num_heads=num_heads,
                                         act_dtype=jnp.bfloat16))
    out_bf16 = jax.block_until_ready(fwd_bf16(params_bf16, img, txt, pe, vec))
    max_err_bf16 = float(jnp.max(jnp.abs(out_bf16.astype(jnp.float32) - ref)))
    assert max_err_bf16 < 1e-1, f"bf16 mismatch vs reference: {max_err_bf16}"

    print("KERNEL_OK")
</pallas_src>

<mosaic_0001>
module attributes {stable_mosaic.version = 11 : i64} {
  func.func @_silu_linear_kernel(%arg0: i32, %arg1: memref<2x256xf32, #tpu.memory_space<vmem>>, %arg2: memref<256x768xf32, #tpu.memory_space<vmem>>, %arg3: memref<1x768xf32, #tpu.memory_space<vmem>>, %arg4: memref<2x768xf32, #tpu.memory_space<vmem>>) attributes {dimension_semantics = [#tpu.dimension_semantics<parallel>], iteration_bounds = array<i64: 2>, scalar_prefetch = 0 : i64, scratch_operands = 0 : i64, tpu.core_type = #tpu.core_type<tc>, window_params = [{pipeline_mode = #tpu.pipeline_mode<synchronous>, transform_indices = @transform_0, window_bounds = array<i64: 2, 256>}, {transform_indices = @transform_1, window_bounds = array<i64: 256, 768>}, {transform_indices = @transform_2, window_bounds = array<i64: 1, 768>}, {transform_indices = @transform_3, window_bounds = array<i64: 2, 768>}]} {
    %c0 = arith.constant 0 : index
    %c0_0 = arith.constant 0 : index
    %0 = vector.load %arg1[%c0, %c0_0] : memref<2x256xf32, #tpu.memory_space<vmem>>, vector<2x256xf32>
    %cst = arith.constant 0.000000e+00 : f32
    %1 = vector.broadcast %cst : f32 to vector<2x256xf32>
    %2 = arith.subf %1, %0 : vector<2x256xf32>
    %3 = math.exp %2 : vector<2x256xf32>
    %cst_1 = arith.constant 1.000000e+00 : f32
    %4 = vector.broadcast %cst_1 : f32 to vector<2x256xf32>
    %5 = arith.addf %4, %3 : vector<2x256xf32>
    %cst_2 = arith.constant 1.000000e+00 : f32
    %6 = vector.broadcast %cst_2 : f32 to vector<2x256xf32>
    %7 = arith.divf %6, %5 : vector<2x256xf32>
    %8 = arith.mulf %0, %7 : vector<2x256xf32>
    %c0_3 = arith.constant 0 : index
    %c0_4 = arith.constant 0 : index
    %9 = vector.load %arg2[%c0_3, %c0_4] : memref<256x768xf32, #tpu.memory_space<vmem>>, vector<256x768xf32>
    %cst_5 = arith.constant dense<0.000000e+00> : vector<2x768xf32>
    %10 = tpu.matmul %8, %9, %cst_5 {dimension_numbers = #tpu.dot_dimension_numbers<[1], [0], [0], [1], [0, 0, 1, 1], [], []>} : vector<2x256xf32>, vector<256x768xf32>, vector<2x768xf32> -> vector<2x768xf32>
    %c0_6 = arith.constant 0 : index
    %c0_7 = arith.constant 0 : index
    %11 = vector.load %arg3[%c0_6, %c0_7] : memref<1x768xf32, #tpu.memory_space<vmem>>, vector<1x768xf32>
    %12 = vector.broadcast %11 : vector<1x768xf32> to vector<2x768xf32>
    %13 = arith.addf %10, %12 : vector<2x768xf32>
    %c0_8 = arith.constant 0 : index
    %c0_9 = arith.constant 0 : index
    %14 = vector.load %arg4[%c0_8, %c0_9] : memref<2x768xf32, #tpu.memory_space<vmem>>, vector<2x768xf32>
    tpu.vector_store %arg4[%c0_8, %c0_9], %13 {strides = array<i32>} : memref<2x768xf32, #tpu.memory_space<vmem>>, vector<2x768xf32>,
    return
  }
  func.func @transform_0(%arg0: i32) -> (i32, i32) {
    %c0_i32 = arith.constant 0 : i32
    %c0_i32_0 = arith.constant 0 : i32
    %c0_i32_1 = arith.constant 0 : i32
    return %c0_i32, %c0_i32_0 : i32, i32
  }
  func.func @transform_1(%arg0: i32) -> (i32, i32) {
    %c0_i32 = arith.constant 0 : i32
    %c0_i32_0 = arith.constant 0 : i32
    return %c0_i32, %arg0 : i32, i32
  }
  func.func @transform_2(%arg0: i32) -> (i32, i32) {
    %c0_i32 = arith.constant 0 : i32
    %c0_i32_0 = arith.constant 0 : i32
    return %c0_i32, %arg0 : i32, i32
  }
  func.func @transform_3(%arg0: i32) -> (i32, i32) {
    %c0_i32 = arith.constant 0 : i32
    %c0_i32_0 = arith.constant 0 : i32
    return %c0_i32, %arg0 : i32, i32
  }
}

module attributes {stable_mosaic.version = 11 : i64} {
  func.func @_ln_mod_linear_kernel(%arg0: i32, %arg1: i32, %arg2: i32, %arg3: memref<1x16x256xf32, #tpu.memory_space<vmem>>, %arg4: memref<1x1x256xf32, #tpu.memory_space<vmem>>, %arg5: memref<1x1x256xf32, #tpu.memory_space<vmem>>, %arg6: memref<256x384xf32, #tpu.memory_space<vmem>>, %arg7: memref<1x384xf32, #tpu.memory_space<vmem>>, %arg8: memref<1x16x384xf32, #tpu.memory_space<vmem>>, %arg9: memref<16x256xf32, #tpu.memory_space<vmem>>) attributes {dimension_semantics = [#tpu.dimension_semantics<parallel>, #tpu.dimension_semantics<parallel>, #tpu.dimension_semantics<arbitrary>], iteration_bounds = array<i64: 2, 1, 2>, scalar_prefetch = 0 : i64, scratch_operands = 1 : i64, tpu.core_type = #tpu.core_type<tc>, window_params = [{transform_indices = @transform_0, window_bounds = array<i64: 1, 16, 256>}, {transform_indices = @transform_1, window_bounds = array<i64: 1, 1, 256>}, {transform_indices = @transform_2, window_bounds = array<i64: 1, 1, 256>}, {transform_indices = @transform_3, window_bounds = array<i64: 256, 384>}, {transform_indices = @transform_4, window_bounds = array<i64: 1, 384>}, {transform_indices = @transform_5, window_bounds = array<i64: 1, 16, 384>}]} {
    %c0_i32 = arith.constant 0 : i32
    %0 = arith.cmpi eq, %arg2, %c0_i32 : i32
    %1 = arith.extui %0 : i1 to i32
    %c0_i32_0 = arith.constant 0 : i32
    %2 = arith.cmpi ne, %1, %c0_i32_0 : i32
    scf.if %2 {
      %c0_9 = arith.constant 0 : index
      %c0_10 = arith.constant 0 : index
      %c0_11 = arith.constant 0 : index
      %12 = vector.load %arg3[%c0_9, %c0_10, %c0_11] : memref<1x16x256xf32, #tpu.memory_space<vmem>>, vector<1x16x256xf32>
      %13 = vector.shape_cast %12 : vector<1x16x256xf32> to vector<16x256xf32>
      %cst_12 = arith.constant dense<0.000000e+00> : vector<16xf32>
      %14 = vector.multi_reduction <add>, %13, %cst_12 [1] : vector<16x256xf32> to vector<16xf32>
      %15 = vector.shape_cast %14 : vector<16xf32> to vector<16x1xf32>
      %cst_13 = arith.constant 2.560000e+02 : f32
      %16 = vector.broadcast %cst_13 : f32 to vector<16x1xf32>
      %17 = arith.divf %15, %16 : vector<16x1xf32>
      %18 = vector.broadcast %17 : vector<16x1xf32> to vector<16x256xf32>
      %19 = arith.subf %13, %18 : vector<16x256xf32>
      %20 = arith.mulf %19, %19 : vector<16x256xf32>
      %cst_14 = arith.constant dense<0.000000e+00> : vector<16xf32>
      %21 = vector.multi_reduction <add>, %20, %cst_14 [1] : vector<16x256xf32> to vector<16xf32>
      %22 = vector.shape_cast %21 : vector<16xf32> to vector<16x1xf32>
      %cst_15 = arith.constant 2.560000e+02 : f32
      %23 = vector.broadcast %cst_15 : f32 to vector<16x1xf32>
      %24 = arith.divf %22, %23 : vector<16x1xf32>
      %cst_16 = arith.constant 9.99999997E-7 : f32
      %25 = vector.broadcast %cst_16 : f32 to vector<16x1xf32>
      %26 = arith.addf %24, %25 : vector<16x1xf32>
      %27 = math.rsqrt %26 : vector<16x1xf32>
      %28 = vector.broadcast %27 : vector<16x1xf32> to vector<16x256xf32>
      %29 = arith.mulf %19, %28 : vector<16x256xf32>
      %c0_17 = arith.constant 0 : index
      %c0_18 = arith.constant 0 : index
      %c0_19 = arith.constant 0 : index
      %30 = vector.load %arg4[%c0_17, %c0_18, %c0_19] : memref<1x1x256xf32, #tpu.memory_space<vmem>>, vector<1x1x256xf32>
      %31 = vector.shape_cast %30 : vector<1x1x256xf32> to vector<1x256xf32>
      %cst_20 = arith.constant 1.000000e+00 : f32
      %32 = vector.broadcast %cst_20 : f32 to vector<1x256xf32>
      %33 = arith.addf %32, %31 : vector<1x256xf32>
      %34 = vector.broadcast %33 : vector<1x256xf32> to vector<16x256xf32>
      %35 = arith.mulf %34, %29 : vector<16x256xf32>
      %c0_21 = arith.constant 0 : index
      %c0_22 = arith.constant 0 : index
      %c0_23 = arith.constant 0 : index
      %36 = vector.load %arg5[%c0_21, %c0_22, %c0_23] : memref<1x1x256xf32, #tpu.memory_space<vmem>>, vector<1x1x256xf32>
      %37 = vector.shape_cast %36 : vector<1x1x256xf32> to vector<1x256xf32>
      %38 = vector.broadcast %37 : vector<1x256xf32> to vector<16x256xf32>
      %39 = arith.addf %35, %38 : vector<16x256xf32>
      %c0_24 = arith.constant 0 : index
      %c0_25 = arith.constant 0 : index
      %40 = vector.load %arg9[%c0_24, %c0_25] : memref<16x256xf32, #tpu.memory_space<vmem>>, vector<16x256xf32>
      tpu.vector_store %arg9[%c0_24, %c0_25], %39 {strides = array<i32>} : memref<16x256xf32, #tpu.memory_space<vmem>>, vector<16x256xf32>,
    } else {
    }
    %c0 = arith.constant 0 : index
    %c0_1 = arith.constant 0 : index
    %3 = vector.load %arg9[%c0, %c0_1] : memref<16x256xf32, #tpu.memory_space<vmem>>, vector<16x256xf32>
    %c0_2 = arith.constant 0 : index
    %c0_3 = arith.constant 0 : index
    %4 = vector.load %arg6[%c0_2, %c0_3] : memref<256x384xf32, #tpu.memory_space<vmem>>, vector<256x384xf32>
    %cst = arith.constant dense<0.000000e+00> : vector<16x384xf32>
    %5 = tpu.matmul %3, %4, %cst {dimension_numbers = #tpu.dot_dimension_numbers<[1], [0], [0], [1], [0, 0, 1, 1], [], []>} : vector<16x256xf32>, vector<256x384xf32>, vector<16x384xf32> -> vector<16x384xf32>
    %c0_4 = arith.constant 0 : index
    %c0_5 = arith.constant 0 : index
    %6 = vector.load %arg7[%c0_4, %c0_5] : memref<1x384xf32, #tpu.memory_space<vmem>>, vector<1x384xf32>
    %7 = vector.broadcast %6 : vector<1x384xf32> to vector<16x384xf32>
    %8 = arith.addf %5, %7 : vector<16x384xf32>
    %c0_6 = arith.constant 0 : index
    %c0_7 = arith.constant 0 : index
    %c0_8 = arith.constant 0 : index
    %9 = vector.load %arg8[%c0_6, %c0_7, %c0_8] : memref<1x16x384xf32, #tpu.memory_space<vmem>>, vector<1x16x384xf32>
    %10 = vector.shape_cast %9 : vector<1x16x384xf32> to vector<16x384xf32>
    %11 = vector.shape_cast %8 : vector<16x384xf32> to vector<1x16x384xf32>
    tpu.vector_store %arg8[%c0_6, %c0_7, %c0_8], %11 {strides = array<i32>} : memref<1x16x384xf32, #tpu.memory_space<vmem>>, vector<1x16x384xf32>,
    return
  }
  func.func @transform_0(%arg0: i32, %arg1: i32, %arg2: i32) -> (i32, i32, i32) {
    %c0_i32 = arith.constant 0 : i32
    %c0_i32_0 = arith.constant 0 : i32
    return %arg0, %arg1, %c0_i32 : i32, i32, i32
  }
  func.func @transform_1(%arg0: i32, %arg1: i32, %arg2: i32) -> (i32, i32, i32) {
    %c0_i32 = arith.constant 0 : i32
    %c0_i32_0 = arith.constant 0 : i32
    %c0_i32_1 = arith.constant 0 : i32
    return %arg0, %c0_i32, %c0_i32_0 : i32, i32, i32
  }
  func.func @transform_2(%arg0: i32, %arg1: i32, %arg2: i32) -> (i32, i32, i32) {
    %c0_i32 = arith.constant 0 : i32
    %c0_i32_0 = arith.constant 0 : i32
    %c0_i32_1 = arith.constant 0 : i32
    return %arg0, %c0_i32, %c0_i32_0 : i32, i32, i32
  }
  func.func @transform_3(%arg0: i32, %arg1: i32, %arg2: i32) -> (i32, i32) {
    %c0_i32 = arith.constant 0 : i32
    %c0_i32_0 = arith.constant 0 : i32
    return %c0_i32, %arg2 : i32, i32
  }
  func.func @transform_4(%arg0: i32, %arg1: i32, %arg2: i32) -> (i32, i32) {
    %c0_i32 = arith.constant 0 : i32
    %c0_i32_0 = arith.constant 0 : i32
    return %c0_i32, %arg2 : i32, i32
  }
  func.func @transform_5(%arg0: i32, %arg1: i32, %arg2: i32) -> (i32, i32, i32) {
    %c0_i32 = arith.constant 0 : i32
    return %arg0, %arg1, %arg2 : i32, i32, i32
  }
}

module attributes {stable_mosaic.version = 11 : i64} {
  func.func @_silu_linear_kernel(%arg0: i32, %arg1: memref<2x256xf32, #tpu.memory_space<vmem>>, %arg2: memref<256x768xf32, #tpu.memory_space<vmem>>, %arg3: memref<1x768xf32, #tpu.memory_space<vmem>>, %arg4: memref<2x768xf32, #tpu.memory_space<vmem>>) attributes {dimension_semantics = [#tpu.dimension_semantics<parallel>], iteration_bounds = array<i64: 2>, scalar_prefetch = 0 : i64, scratch_operands = 0 : i64, tpu.core_type = #tpu.core_type<tc>, window_params = [{pipeline_mode = #tpu.pipeline_mode<synchronous>, transform_indices = @transform_0, window_bounds = array<i64: 2, 256>}, {transform_indices = @transform_1, window_bounds = array<i64: 256, 768>}, {transform_indices = @transform_2, window_bounds = array<i64: 1, 768>}, {transform_indices = @transform_3, window_bounds = array<i64: 2, 768>}]} {
    %c0 = arith.constant 0 : index
    %c0_0 = arith.constant 0 : index
    %0 = vector.load %arg1[%c0, %c0_0] : memref<2x256xf32, #tpu.memory_space<vmem>>, vector<2x256xf32>
    %cst = arith.constant 0.000000e+00 : f32
    %1 = vector.broadcast %cst : f32 to vector<2x256xf32>
    %2 = arith.subf %1, %0 : vector<2x256xf32>
    %3 = math.exp %2 : vector<2x256xf32>
    %cst_1 = arith.constant 1.000000e+00 : f32
    %4 = vector.broadcast %cst_1 : f32 to vector<2x256xf32>
    %5 = arith.addf %4, %3 : vector<2x256xf32>
    %cst_2 = arith.constant 1.000000e+00 : f32
    %6 = vector.broadcast %cst_2 : f32 to vector<2x256xf32>
    %7 = arith.divf %6, %5 : vector<2x256xf32>
    %8 = arith.mulf %0, %7 : vector<2x256xf32>
    %c0_3 = arith.constant 0 : index
    %c0_4 = arith.constant 0 : index
    %9 = vector.load %arg2[%c0_3, %c0_4] : memref<256x768xf32, #tpu.memory_space<vmem>>, vector<256x768xf32>
    %cst_5 = arith.constant dense<0.000000e+00> : vector<2x768xf32>
    %10 = tpu.matmul %8, %9, %cst_5 {dimension_numbers = #tpu.dot_dimension_numbers<[1], [0], [0], [1], [0, 0, 1, 1], [], []>} : vector<2x256xf32>, vector<256x768xf32>, vector<2x768xf32> -> vector<2x768xf32>
    %c0_6 = arith.constant 0 : index
    %c0_7 = arith.constant 0 : index
    %11 = vector.load %arg3[%c0_6, %c0_7] : memref<1x768xf32, #tpu.memory_space<vmem>>, vector<1x768xf32>
    %12 = vector.broadcast %11 : vector<1x768xf32> to vector<2x768xf32>
    %13 = arith.addf %10, %12 : vector<2x768xf32>
    %c0_8 = arith.constant 0 : index
    %c0_9 = arith.constant 0 : index
    %14 = vector.load %arg4[%c0_8, %c0_9] : memref<2x768xf32, #tpu.memory_space<vmem>>, vector<2x768xf32>
    tpu.vector_store %arg4[%c0_8, %c0_9], %13 {strides = array<i32>} : memref<2x768xf32, #tpu.memory_space<vmem>>, vector<2x768xf32>,
    return
  }
  func.func @transform_0(%arg0: i32) -> (i32, i32) {
    %c0_i32 = arith.constant 0 : i32
    %c0_i32_0 = arith.constant 0 : i32
    %c0_i32_1 = arith.constant 0 : i32
    return %c0_i32, %c0_i32_0 : i32, i32
  }
  func.func @transform_1(%arg0: i32) -> (i32, i32) {
    %c0_i32 = arith.constant 0 : i32
    %c0_i32_0 = arith.constant 0 : i32
    return %c0_i32, %arg0 : i32, i32
  }
  func.func @transform_2(%arg0: i32) -> (i32, i32) {
    %c0_i32 = arith.constant 0 : i32
    %c0_i32_0 = arith.constant 0 : i32
    return %c0_i32, %arg0 : i32, i32
  }
  func.func @transform_3(%arg0: i32) -> (i32, i32) {
    %c0_i32 = arith.constant 0 : i32
    %c0_i32_0 = arith.constant 0 : i32
    return %c0_i32, %arg0 : i32, i32
  }
}

module attributes {stable_mosaic.version = 11 : i64} {
  func.func @_ln_mod_linear_kernel(%arg0: i32, %arg1: i32, %arg2: i32, %arg3: memref<1x8x256xf32, #tpu.memory_space<vmem>>, %arg4: memref<1x1x256xf32, #tpu.memory_space<vmem>>, %arg5: memref<1x1x256xf32, #tpu.memory_space<vmem>>, %arg6: memref<256x384xf32, #tpu.memory_space<vmem>>, %arg7: memref<1x384xf32, #tpu.memory_space<vmem>>, %arg8: memref<1x8x384xf32, #tpu.memory_space<vmem>>, %arg9: memref<8x256xf32, #tpu.memory_space<vmem>>) attributes {dimension_semantics = [#tpu.dimension_semantics<parallel>, #tpu.dimension_semantics<parallel>, #tpu.dimension_semantics<arbitrary>], iteration_bounds = array<i64: 2, 1, 2>, scalar_prefetch = 0 : i64, scratch_operands = 1 : i64, tpu.core_type = #tpu.core_type<tc>, window_params = [{transform_indices = @transform_0, window_bounds = array<i64: 1, 8, 256>}, {transform_indices = @transform_1, window_bounds = array<i64: 1, 1, 256>}, {transform_indices = @transform_2, window_bounds = array<i64: 1, 1, 256>}, {transform_indices = @transform_3, window_bounds = array<i64: 256, 384>}, {transform_indices = @transform_4, window_bounds = array<i64: 1, 384>}, {transform_indices = @transform_5, window_bounds = array<i64: 1, 8, 384>}]} {
    %c0_i32 = arith.constant 0 : i32
    %0 = arith.cmpi eq, %arg2, %c0_i32 : i32
    %1 = arith.extui %0 : i1 to i32
    %c0_i32_0 = arith.constant 0 : i32
    %2 = arith.cmpi ne, %1, %c0_i32_0 : i32
    scf.if %2 {
      %c0_9 = arith.constant 0 : index
      %c0_10 = arith.constant 0 : index
      %c0_11 = arith.constant 0 : index
      %12 = vector.load %arg3[%c0_9, %c0_10, %c0_11] : memref<1x8x256xf32, #tpu.memory_space<vmem>>, vector<1x8x256xf32>
      %13 = vector.shape_cast %12 : vector<1x8x256xf32> to vector<8x256xf32>
      %cst_12 = arith.constant dense<0.000000e+00> : vector<8xf32>
      %14 = vector.multi_reduction <add>, %13, %cst_12 [1] : vector<8x256xf32> to vector<8xf32>
      %15 = vector.shape_cast %14 : vector<8xf32> to vector<8x1xf32>
      %cst_13 = arith.constant 2.560000e+02 : f32
      %16 = vector.broadcast %cst_13 : f32 to vector<8x1xf32>
      %17 = arith.divf %15, %16 : vector<8x1xf32>
      %18 = vector.broadcast %17 : vector<8x1xf32> to vector<8x256xf32>
      %19 = arith.subf %13, %18 : vector<8x256xf32>
      %20 = arith.mulf %19, %19 : vector<8x256xf32>
      %cst_14 = arith.constant dense<0.000000e+00> : vector<8xf32>
      %21 = vector.multi_reduction <add>, %20, %cst_14 [1] : vector<8x256xf32> to vector<8xf32>
      %22 = vector.shape_cast %21 : vector<8xf32> to vector<8x1xf32>
      %cst_15 = arith.constant 2.560000e+02 : f32
      %23 = vector.broadcast %cst_15 : f32 to vector<8x1xf32>
      %24 = arith.divf %22, %23 : vector<8x1xf32>
      %cst_16 = arith.constant 9.99999997E-7 : f32
      %25 = vector.broadcast %cst_16 : f32 to vector<8x1xf32>
      %26 = arith.addf %24, %25 : vector<8x1xf32>
      %27 = math.rsqrt %26 : vector<8x1xf32>
      %28 = vector.broadcast %27 : vector<8x1xf32> to vector<8x256xf32>
      %29 = arith.mulf %19, %28 : vector<8x256xf32>
      %c0_17 = arith.constant 0 : index
      %c0_18 = arith.constant 0 : index
      %c0_19 = arith.constant 0 : index
      %30 = vector.load %arg4[%c0_17, %c0_18, %c0_19] : memref<1x1x256xf32, #tpu.memory_space<vmem>>, vector<1x1x256xf32>
      %31 = vector.shape_cast %30 : vector<1x1x256xf32> to vector<1x256xf32>
      %cst_20 = arith.constant 1.000000e+00 : f32
      %32 = vector.broadcast %cst_20 : f32 to vector<1x256xf32>
      %33 = arith.addf %32, %31 : vector<1x256xf32>
      %34 = vector.broadcast %33 : vector<1x256xf32> to vector<8x256xf32>
      %35 = arith.mulf %34, %29 : vector<8x256xf32>
      %c0_21 = arith.constant 0 : index
      %c0_22 = arith.constant 0 : index
      %c0_23 = arith.constant 0 : index
      %36 = vector.load %arg5[%c0_21, %c0_22, %c0_23] : memref<1x1x256xf32, #tpu.memory_space<vmem>>, vector<1x1x256xf32>
      %37 = vector.shape_cast %36 : vector<1x1x256xf32> to vector<1x256xf32>
      %38 = vector.broadcast %37 : vector<1x256xf32> to vector<8x256xf32>
      %39 = arith.addf %35, %38 : vector<8x256xf32>
      %c0_24 = arith.constant 0 : index
      %c0_25 = arith.constant 0 : index
      %40 = vector.load %arg9[%c0_24, %c0_25] : memref<8x256xf32, #tpu.memory_space<vmem>>, vector<8x256xf32>
      tpu.vector_store %arg9[%c0_24, %c0_25], %39 {strides = array<i32>} : memref<8x256xf32, #tpu.memory_space<vmem>>, vector<8x256xf32>,
    } else {
    }
    %c0 = arith.constant 0 : index
    %c0_1 = arith.constant 0 : index
    %3 = vector.load %arg9[%c0, %c0_1] : memref<8x256xf32, #tpu.memory_space<vmem>>, vector<8x256xf32>
    %c0_2 = arith.constant 0 : index
    %c0_3 = arith.constant 0 : index
    %4 = vector.load %arg6[%c0_2, %c0_3] : memref<256x384xf32, #tpu.memory_space<vmem>>, vector<256x384xf32>
    %cst = arith.constant dense<0.000000e+00> : vector<8x384xf32>
    %5 = tpu.matmul %3, %4, %cst {dimension_numbers = #tpu.dot_dimension_numbers<[1], [0], [0], [1], [0, 0, 1, 1], [], []>} : vector<8x256xf32>, vector<256x384xf32>, vector<8x384xf32> -> vector<8x384xf32>
    %c0_4 = arith.constant 0 : index
    %c0_5 = arith.constant 0 : index
    %6 = vector.load %arg7[%c0_4, %c0_5] : memref<1x384xf32, #tpu.memory_space<vmem>>, vector<1x384xf32>
    %7 = vector.broadcast %6 : vector<1x384xf32> to vector<8x384xf32>
    %8 = arith.addf %5, %7 : vector<8x384xf32>
    %c0_6 = arith.constant 0 : index
    %c0_7 = arith.constant 0 : index
    %c0_8 = arith.constant 0 : index
    %9 = vector.load %arg8[%c0_6, %c0_7, %c0_8] : memref<1x8x384xf32, #tpu.memory_space<vmem>>, vector<1x8x384xf32>
    %10 = vector.shape_cast %9 : vector<1x8x384xf32> to vector<8x384xf32>
    %11 = vector.shape_cast %8 : vector<8x384xf32> to vector<1x8x384xf32>
    tpu.vector_store %arg8[%c0_6, %c0_7, %c0_8], %11 {strides = array<i32>} : memref<1x8x384xf32, #tpu.memory_space<vmem>>, vector<1x8x384xf32>,
    return
  }
  func.func @transform_0(%arg0: i32, %arg1: i32, %arg2: i32) -> (i32, i32, i32) {
    %c0_i32 = arith.constant 0 : i32
    %c0_i32_0 = arith.constant 0 : i32
    return %arg0, %arg1, %c0_i32 : i32, i32, i32
  }
  func.func @transform_1(%arg0: i32, %arg1: i32, %arg2: i32) -> (i32, i32, i32) {
    %c0_i32 = arith.constant 0 : i32
    %c0_i32_0 = arith.constant 0 : i32
    %c0_i32_1 = arith.constant 0 : i32
    return %arg0, %c0_i32, %c0_i32_0 : i32, i32, i32
  }
  func.func @transform_2(%arg0: i32, %arg1: i32, %arg2: i32) -> (i32, i32, i32) {
    %c0_i32 = arith.constant 0 : i32
    %c0_i32_0 = arith.constant 0 : i32
    %c0_i32_1 = arith.constant 0 : i32
    return %arg0, %c0_i32, %c0_i32_0 : i32, i32, i32
  }
  func.func @transform_3(%arg0: i32, %arg1: i32, %arg2: i32) -> (i32, i32) {
    %c0_i32 = arith.constant 0 : i32
    %c0_i32_0 = arith.constant 0 : i32
    return %c0_i32, %arg2 : i32, i32
  }
  func.func @transform_4(%arg0: i32, %arg1: i32, %arg2: i32) -> (i32, i32) {
    %c0_i32 = arith.constant 0 : i32
    %c0_i32_0 = arith.constant 0 : i32
    return %c0_i32, %arg2 : i32, i32
  }
  func.func @transform_5(%arg0: i32, %arg1: i32, %arg2: i32) -> (i32, i32, i32) {
    %c0_i32 = arith.constant 0 : i32
    return %arg0, %arg1, %arg2 : i32, i32, i32
  }
}

module attributes {stable_mosaic.version = 11 : i64} {
  func.func @_fused_attn_kernel(%arg0: i32, %arg1: i32, %arg2: i32, %arg3: i32, %arg4: memref<1x24x128xf32, #tpu.memory_space<vmem>>, %arg5: memref<1x24x128xf32, #tpu.memory_space<vmem>>, %arg6: memref<1x24x128xf32, #tpu.memory_space<vmem>>, %arg7: memref<1x24x128xf32, #tpu.memory_space<vmem>>, %arg8: memref<1x24x128xf32, #tpu.memory_space<vmem>>, %arg9: memref<1x24x128xf32, #tpu.memory_space<vmem>>, %arg10: memref<1x24x128xf32, #tpu.memory_space<vmem>>, %arg11: memref<1x24x128xf32, #tpu.memory_space<vmem>>, %arg12: memref<24x128xf32, #tpu.memory_space<vmem>>, %arg13: memref<24x1xf32, #tpu.memory_space<vmem>>, %arg14: memref<24x1xf32, #tpu.memory_space<vmem>>, %arg15: memref<24x128xf32, #tpu.memory_space<vmem>>) attributes {dimension_semantics = [#tpu.dimension_semantics<parallel>, #tpu.dimension_semantics<parallel>, #tpu.dimension_semantics<parallel>, #tpu.dimension_semantics<arbitrary>], iteration_bounds = array<i64: 2, 2, 1, 1>, scalar_prefetch = 0 : i64, scratch_operands = 4 : i64, tpu.core_type = #tpu.core_type<tc>, window_params = [{transform_indices = @transform_0, window_bounds = array<i64: 1, 24, 128>}, {transform_indices = @transform_1, window_bounds = array<i64: 1, 24, 128>}, {transform_indices = @transform_2, window_bounds = array<i64: 1, 24, 128>}, {transform_indices = @transform_3, window_bounds = array<i64: 1, 24, 128>}, {transform_indices = @transform_4, window_bounds = array<i64: 1, 24, 128>}, {transform_indices = @transform_5, window_bounds = array<i64: 1, 24, 128>}, {transform_indices = @transform_6, window_bounds = array<i64: 1, 24, 128>}, {transform_indices = @transform_7, window_bounds = array<i64: 1, 24, 128>}]} {
    %c0_i32 = arith.constant 0 : i32
    %0 = arith.cmpi eq, %arg3, %c0_i32 : i32
    %1 = arith.extui %0 : i1 to i32
    %c0_i32_0 = arith.constant 0 : i32
    %2 = arith.cmpi ne, %1, %c0_i32_0 : i32
    scf.if %2 {
      %c0_34 = arith.constant 0 : index
      %c0_35 = arith.constant 0 : index
      %c0_36 = arith.constant 0 : index
      %52 = vector.load %arg4[%c0_34, %c0_35, %c0_36] : memref<1x24x128xf32, #tpu.memory_space<vmem>>, vector<1x24x128xf32>
      %53 = vector.shape_cast %52 : vector<1x24x128xf32> to vector<24x128xf32>
      %54 = arith.mulf %53, %53 : vector<24x128xf32>
      %cst_37 = arith.constant dense<0.000000e+00> : vector<24xf32>
      %55 = vector.multi_reduction <add>, %54, %cst_37 [1] : vector<24x128xf32> to vector<24xf32>
      %56 = vector.shape_cast %55 : vector<24xf32> to vector<24x1xf32>
      %cst_38 = arith.constant 1.280000e+02 : f32
      %57 = vector.broadcast %cst_38 : f32 to vector<24x1xf32>
      %58 = arith.divf %56, %57 : vector<24x1xf32>
      %cst_39 = arith.constant 9.99999997E-7 : f32
      %59 = vector.broadcast %cst_39 : f32 to vector<24x1xf32>
      %60 = arith.addf %58, %59 : vector<24x1xf32>
      %61 = math.rsqrt %60 : vector<24x1xf32>
      %62 = vector.broadcast %61 : vector<24x1xf32> to vector<24x128xf32>
      %63 = arith.mulf %53, %62 : vector<24x128xf32>
      %c0_40 = arith.constant 0 : index
      %c0_41 = arith.constant 0 : index
      %c0_42 = arith.constant 0 : index
      %64 = vector.load %arg7[%c0_40, %c0_41, %c0_42] : memref<1x24x128xf32, #tpu.memory_space<vmem>>, vector<1x24x128xf32>
      %65 = vector.shape_cast %64 : vector<1x24x128xf32> to vector<24x128xf32>
      %66 = arith.mulf %65, %63 : vector<24x128xf32>
      %c0_43 = arith.constant 0 : index
      %c0_44 = arith.constant 0 : index
      %c0_45 = arith.constant 0 : index
      %67 = vector.load %arg8[%c0_43, %c0_44, %c0_45] : memref<1x24x128xf32, #tpu.memory_space<vmem>>, vector<1x24x128xf32>
      %68 = vector.shape_cast %67 : vector<1x24x128xf32> to vector<24x128xf32>
      %c64_i32_46 = arith.constant 64 : i32
      %69 = tpu.dynamic_rotate %63 by %c64_i32_46 dim 1 : vector<24x128xf32>, i32 -> vector<24x128xf32>
      %70 = arith.mulf %68, %69 : vector<24x128xf32>
      %71 = arith.addf %66, %70 : vector<24x128xf32>
      %c0_47 = arith.constant 0 : index
      %c0_48 = arith.constant 0 : index
      %72 = vector.load %arg12[%c0_47, %c0_48] : memref<24x128xf32, #tpu.memory_space<vmem>>, vector<24x128xf32>
      tpu.vector_store %arg12[%c0_47, %c0_48], %71 {strides = array<i32>} : memref<24x128xf32, #tpu.memory_space<vmem>>, vector<24x128xf32>,
      %cst_49 = arith.constant 0xFF800000 : f32
      %73 = vector.broadcast %cst_49 : f32 to vector<24x1xf32>
      %c0_50 = arith.constant 0 : index
      %c0_51 = arith.constant 0 : index
      %74 = vector.load %arg13[%c0_50, %c0_51] : memref<24x1xf32, #tpu.memory_space<vmem>>, vector<24x1xf32>
      tpu.vector_store %arg13[%c0_50, %c0_51], %73 {strides = array<i32>} : memref<24x1xf32, #tpu.memory_space<vmem>>, vector<24x1xf32>,
      %cst_52 = arith.constant 0.000000e+00 : f32
      %75 = vector.broadcast %cst_52 : f32 to vector<24x1xf32>
      %c0_53 = arith.constant 0 : index
      %c0_54 = arith.constant 0 : index
      %76 = vector.load %arg14[%c0_53, %c0_54] : memref<24x1xf32, #tpu.memory_space<vmem>>, vector<24x1xf32>
      tpu.vector_store %arg14[%c0_53, %c0_54], %75 {strides = array<i32>} : memref<24x1xf32, #tpu.memory_space<vmem>>, vector<24x1xf32>,
      %cst_55 = arith.constant 0.000000e+00 : f32
      %77 = vector.broadcast %cst_55 : f32 to vector<24x128xf32>
      %c0_56 = arith.constant 0 : index
      %c0_57 = arith.constant 0 : index
      %78 = vector.load %arg15[%c0_56, %c0_57] : memref<24x128xf32, #tpu.memory_space<vmem>>, vector<24x128xf32>
      tpu.vector_store %arg15[%c0_56, %c0_57], %77 {strides = array<i32>} : memref<24x128xf32, #tpu.memory_space<vmem>>, vector<24x128xf32>,
    } else {
    }
    %c0 = arith.constant 0 : index
    %c0_1 = arith.constant 0 : index
    %c0_2 = arith.constant 0 : index
    %3 = vector.load %arg5[%c0, %c0_1, %c0_2] : memref<1x24x128xf32, #tpu.memory_space<vmem>>, vector<1x24x128xf32>
    %4 = vector.shape_cast %3 : vector<1x24x128xf32> to vector<24x128xf32>
    %5 = arith.mulf %4, %4 : vector<24x128xf32>
    %cst = arith.constant dense<0.000000e+00> : vector<24xf32>
    %6 = vector.multi_reduction <add>, %5, %cst [1] : vector<24x128xf32> to vector<24xf32>
    %7 = vector.shape_cast %6 : vector<24xf32> to vector<24x1xf32>
    %cst_3 = arith.constant 1.280000e+02 : f32
    %8 = vector.broadcast %cst_3 : f32 to vector<24x1xf32>
    %9 = arith.divf %7, %8 : vector<24x1xf32>
    %cst_4 = arith.constant 9.99999997E-7 : f32
    %10 = vector.broadcast %cst_4 : f32 to vector<24x1xf32>
    %11 = arith.addf %9, %10 : vector<24x1xf32>
    %12 = math.rsqrt %11 : vector<24x1xf32>
    %13 = vector.broadcast %12 : vector<24x1xf32> to vector<24x128xf32>
    %14 = arith.mulf %4, %13 : vector<24x128xf32>
    %c0_5 = arith.constant 0 : index
    %c0_6 = arith.constant 0 : index
    %c0_7 = arith.constant 0 : index
    %15 = vector.load %arg9[%c0_5, %c0_6, %c0_7] : memref<1x24x128xf32, #tpu.memory_space<vmem>>, vector<1x24x128xf32>
    %16 = vector.shape_cast %15 : vector<1x24x128xf32> to vector<24x128xf32>
    %17 = arith.mulf %16, %14 : vector<24x128xf32>
    %c0_8 = arith.constant 0 : index
    %c0_9 = arith.constant 0 : index
    %c0_10 = arith.constant 0 : index
    %18 = vector.load %arg10[%c0_8, %c0_9, %c0_10] : memref<1x24x128xf32, #tpu.memory_space<vmem>>, vector<1x24x128xf32>
    %19 = vector.shape_cast %18 : vector<1x24x128xf32> to vector<24x128xf32>
    %c64_i32 = arith.constant 64 : i32
    %20 = tpu.dynamic_rotate %14 by %c64_i32 dim 1 : vector<24x128xf32>, i32 -> vector<24x128xf32>
    %21 = arith.mulf %19, %20 : vector<24x128xf32>
    %22 = arith.addf %17, %21 : vector<24x128xf32>
    %c0_11 = arith.constant 0 : index
    %c0_12 = arith.constant 0 : index
    %23 = vector.load %arg12[%c0_11, %c0_12] : memref<24x128xf32, #tpu.memory_space<vmem>>, vector<24x128xf32>
    %cst_13 = arith.constant dense<0.000000e+00> : vector<24x24xf32>
    %24 = tpu.matmul %23, %22, %cst_13 {dimension_numbers = #tpu.dot_dimension_numbers<[1], [1], [0], [0], [0, 0, 1, 0], [], []>} : vector<24x128xf32>, vector<24x128xf32>, vector<24x24xf32> -> vector<24x24xf32>
    %c0_14 = arith.constant 0 : index
    %c0_15 = arith.constant 0 : index
    %25 = vector.load %arg13[%c0_14, %c0_15] : memref<24x1xf32, #tpu.memory_space<vmem>>, vector<24x1xf32>
    %cst_16 = arith.constant dense<0xFF800000> : vector<24xf32>
    %26 = vector.multi_reduction <maximumf>, %24, %cst_16 [1] : vector<24x24xf32> to vector<24xf32>
    %27 = vector.shape_cast %26 : vector<24xf32> to vector<24x1xf32>
    %28 = arith.maximumf %25, %27 : vector<24x1xf32>
    %29 = arith.subf %25, %28 : vector<24x1xf32>
    %30 = math.exp %29 : vector<24x1xf32>
    %31 = vector.broadcast %28 : vector<24x1xf32> to vector<24x24xf32>
    %32 = arith.subf %24, %31 : vector<24x24xf32>
    %33 = math.exp %32 : vector<24x24xf32>
    %c0_17 = arith.constant 0 : index
    %c0_18 = arith.constant 0 : index
    %34 = vector.load %arg14[%c0_17, %c0_18] : memref<24x1xf32, #tpu.memory_space<vmem>>, vector<24x1xf32>
    %35 = arith.mulf %30, %34 : vector<24x1xf32>
    %cst_19 = arith.constant dense<0.000000e+00> : vector<24xf32>
    %36 = vector.multi_reduction <add>, %33, %cst_19 [1] : vector<24x24xf32> to vector<24xf32>
    %37 = vector.shape_cast %36 : vector<24xf32> to vector<24x1xf32>
    %38 = arith.addf %35, %37 : vector<24x1xf32>
    %c0_20 = arith.constant 0 : index
    %c0_21 = arith.constant 0 : index
    %39 = vector.load %arg14[%c0_20, %c0_21] : memref<24x1xf32, #tpu.memory_space<vmem>>, vector<24x1xf32>
    tpu.vector_store %arg14[%c0_20, %c0_21], %38 {strides = array<i32>} : memref<24x1xf32, #tpu.memory_space<vmem>>, vector<24x1xf32>,
    %c0_22 = arith.constant 0 : index
    %c0_23 = arith.constant 0 : index
    %40 = vector.load %arg15[%c0_22, %c0_23] : memref<24x128xf32, #tpu.memory_space<vmem>>, vector<24x128xf32>
    %41 = vector.broadcast %30 : vector<24x1xf32> to vector<24x128xf32>
    %42 = arith.mulf %41, %40 : vector<24x128xf32>
    %c0_24 = arith.constant 0 : index
    %c0_25 = arith.constant 0 : index
    %c0_26 = arith.constant 0 : index
    %43 = vector.load %arg6[%c0_24, %c0_25, %c0_26] : memref<1x24x128xf32, #tpu.memory_space<vmem>>, vector<1x24x128xf32>
    %44 = vector.shape_cast %43 : vector<1x24x128xf32> to vector<24x128xf32>
    %cst_27 = arith.constant dense<0.000000e+00> : vector<24x128xf32>
    %45 = tpu.matmul %33, %44, %cst_27 {dimension_numbers = #tpu.dot_dimension_numbers<[1], [0], [0], [1], [0, 0, 1, 1], [], []>} : vector<24x24xf32>, vector<24x128xf32>, vector<24x128xf32> -> vector<24x128xf32>
    %46 = arith.addf %42, %45 : vector<24x128xf32>
    %c0_28 = arith.constant 0 : index
    %c0_29 = arith.constant 0 : index
    %47 = vector.load %arg15[%c0_28, %c0_29] : memref<24x128xf32, #tpu.memory_space<vmem>>, vector<24x128xf32>
    tpu.vector_store %arg15[%c0_28, %c0_29], %46 {strides = array<i32>} : memref<24x128xf32, #tpu.memory_space<vmem>>, vector<24x128xf32>,
    %c0_30 = arith.constant 0 : index
    %c0_31 = arith.constant 0 : index
    %48 = vector.load %arg13[%c0_30, %c0_31] : memref<24x1xf32, #tpu.memory_space<vmem>>, vector<24x1xf32>
    tpu.vector_store %arg13[%c0_30, %c0_31], %28 {strides = array<i32>} : memref<24x1xf32, #tpu.memory_space<vmem>>, vector<24x1xf32>,
    %c0_i32_32 = arith.constant 0 : i32
    %49 = arith.cmpi eq, %arg3, %c0_i32_32 : i32
    %50 = arith.extui %49 : i1 to i32
    %c0_i32_33 = arith.constant 0 : i32
    %51 = arith.cmpi ne, %50, %c0_i32_33 : i32
    scf.if %51 {
      %c0_34 = arith.constant 0 : index
      %c0_35 = arith.constant 0 : index
      %52 = vector.load %arg15[%c0_34, %c0_35] : memref<24x128xf32, #tpu.memory_space<vmem>>, vector<24x128xf32>
      %c0_36 = arith.constant 0 : index
      %c0_37 = arith.constant 0 : index
      %53 = vector.load %arg14[%c0_36, %c0_37] : memref<24x1xf32, #tpu.memory_space<vmem>>, vector<24x1xf32>
      %54 = tpu.reciprocal %53 {approx = true} : vector<24x1xf32> -> vector<24x1xf32>
      %55 = vector.broadcast %54 : vector<24x1xf32> to vector<24x128xf32>
      %56 = arith.mulf %52, %55 : vector<24x128xf32>
      %c0_38 = arith.constant 0 : index
      %c0_39 = arith.constant 0 : index
      %c0_40 = arith.constant 0 : index
      %57 = vector.load %arg11[%c0_38, %c0_39, %c0_40] : memref<1x24x128xf32, #tpu.memory_space<vmem>>, vector<1x24x128xf32>
      %58 = vector.shape_cast %57 : vector<1x24x128xf32> to vector<24x128xf32>
      %59 = vector.shape_cast %56 : vector<24x128xf32> to vector<1x24x128xf32>
      tpu.vector_store %arg11[%c0_38, %c0_39, %c0_40], %59 {strides = array<i32>} : memref<1x24x128xf32, #tpu.memory_space<vmem>>, vector<1x24x128xf32>,
    } else {
    }
    return
  }
  func.func @transform_0(%arg0: i32, %arg1: i32, %arg2: i32, %arg3: i32) -> (i32, i32, i32) {
    %c0_i32 = arith.constant 0 : i32
    return %arg0, %arg2, %arg1 : i32, i32, i32
  }
  func.func @transform_1(%arg0: i32, %arg1: i32, %arg2: i32, %arg3: i32) -> (i32, i32, i32) {
    %c2_i32 = arith.constant 2 : i32
    %0 = arith.addi %c2_i32, %arg1 : i32
    %c0_i32 = arith.constant 0 : i32
    return %arg0, %arg3, %0 : i32, i32, i32
  }
  func.func @transform_2(%arg0: i32, %arg1: i32, %arg2: i32, %arg3: i32) -> (i32, i32, i32) {
    %c4_i32 = arith.constant 4 : i32
    %0 = arith.addi %c4_i32, %arg1 : i32
    %c0_i32 = arith.constant 0 : i32
    return %arg0, %arg3, %0 : i32, i32, i32
  }
  func.func @transform_3(%arg0: i32, %arg1: i32, %arg2: i32, %arg3: i32) -> (i32, i32, i32) {
    %c0_i32 = arith.constant 0 : i32
    %c0_i32_0 = arith.constant 0 : i32
    return %arg0, %arg2, %c0_i32 : i32, i32, i32
  }
  func.func @transform_4(%arg0: i32, %arg1: i32, %arg2: i32, %arg3: i32) -> (i32, i32, i32) {
    %c0_i32 = arith.constant 0 : i32
    %c0_i32_0 = arith.constant 0 : i32
    return %arg0, %arg2, %c0_i32 : i32, i32, i32
  }
  func.func @transform_5(%arg0: i32, %arg1: i32, %arg2: i32, %arg3: i32) -> (i32, i32, i32) {
    %c0_i32 = arith.constant 0 : i32
    %c0_i32_0 = arith.constant 0 : i32
    return %arg0, %arg3, %c0_i32 : i32, i32, i32
  }
  func.func @transform_6(%arg0: i32, %arg1: i32, %arg2: i32, %arg3: i32) -> (i32, i32, i32) {
    %c0_i32 = arith.constant 0 : i32
    %c0_i32_0 = arith.constant 0 : i32
    return %arg0, %arg3, %c0_i32 : i32, i32, i32
  }
  func.func @transform_7(%arg0: i32, %arg1: i32, %arg2: i32, %arg3: i32) -> (i32, i32, i32) {
    %c0_i32 = arith.constant 0 : i32
    return %arg0, %arg2, %arg1 : i32, i32, i32
  }
}

module attributes {stable_mosaic.version = 11 : i64} {
  func.func @_proj_gate_res_kernel(%arg0: i32, %arg1: i32, %arg2: i32, %arg3: memref<1x16x256xf32, #tpu.memory_space<vmem>>, %arg4: memref<256x256xf32, #tpu.memory_space<vmem>>, %arg5: memref<1x256xf32, #tpu.memory_space<vmem>>, %arg6: memref<1x1x256xf32, #tpu.memory_space<vmem>>, %arg7: memref<1x16x256xf32, #tpu.memory_space<vmem>>, %arg8: memref<1x16x256xf32, #tpu.memory_space<vmem>>) attributes {dimension_semantics = [#tpu.dimension_semantics<parallel>, #tpu.dimension_semantics<parallel>, #tpu.dimension_semantics<parallel>], iteration_bounds = array<i64: 2, 1, 1>, scalar_prefetch = 0 : i64, scratch_operands = 0 : i64, tpu.core_type = #tpu.core_type<tc>, window_params = [{transform_indices = @transform_0, window_bounds = array<i64: 1, 16, 256>}, {transform_indices = @transform_1, window_bounds = array<i64: 256, 256>}, {transform_indices = @transform_2, window_bounds = array<i64: 1, 256>}, {transform_indices = @transform_3, window_bounds = array<i64: 1, 1, 256>}, {transform_indices = @transform_4, window_bounds = array<i64: 1, 16, 256>}, {transform_indices = @transform_5, window_bounds = array<i64: 1, 16, 256>}]} {
    %c0 = arith.constant 0 : index
    %c0_0 = arith.constant 0 : index
    %c0_1 = arith.constant 0 : index
    %0 = vector.load %arg3[%c0, %c0_0, %c0_1] : memref<1x16x256xf32, #tpu.memory_space<vmem>>, vector<1x16x256xf32>
    %1 = vector.shape_cast %0 : vector<1x16x256xf32> to vector<16x256xf32>
    %c0_2 = arith.constant 0 : index
    %c0_3 = arith.constant 0 : index
    %2 = vector.load %arg4[%c0_2, %c0_3] : memref<256x256xf32, #tpu.memory_space<vmem>>, vector<256x256xf32>
    %cst = arith.constant dense<0.000000e+00> : vector<16x256xf32>
    %3 = tpu.matmul %1, %2, %cst {dimension_numbers = #tpu.dot_dimension_numbers<[1], [0], [0], [1], [0, 0, 1, 1], [], []>} : vector<16x256xf32>, vector<256x256xf32>, vector<16x256xf32> -> vector<16x256xf32>
    %c0_4 = arith.constant 0 : index
    %c0_5 = arith.constant 0 : index
    %4 = vector.load %arg5[%c0_4, %c0_5] : memref<1x256xf32, #tpu.memory_space<vmem>>, vector<1x256xf32>
    %5 = vector.broadcast %4 : vector<1x256xf32> to vector<16x256xf32>
    %6 = arith.addf %3, %5 : vector<16x256xf32>
    %c0_6 = arith.constant 0 : index
    %c0_7 = arith.constant 0 : index
    %c0_8 = arith.constant 0 : index
    %7 = vector.load %arg7[%c0_6, %c0_7, %c0_8] : memref<1x16x256xf32, #tpu.memory_space<vmem>>, vector<1x16x256xf32>
    %8 = vector.shape_cast %7 : vector<1x16x256xf32> to vector<16x256xf32>
    %c0_9 = arith.constant 0 : index
    %c0_10 = arith.constant 0 : index
    %c0_11 = arith.constant 0 : index
    %9 = vector.load %arg6[%c0_9, %c0_10, %c0_11] : memref<1x1x256xf32, #tpu.memory_space<vmem>>, vector<1x1x256xf32>
    %10 = vector.shape_cast %9 : vector<1x1x256xf32> to vector<1x256xf32>
    %11 = vector.broadcast %10 : vector<1x256xf32> to vector<16x256xf32>
    %12 = arith.mulf %11, %6 : vector<16x256xf32>
    %13 = arith.addf %8, %12 : vector<16x256xf32>
    %c0_12 = arith.constant 0 : index
    %c0_13 = arith.constant 0 : index
    %c0_14 = arith.constant 0 : index
    %14 = vector.load %arg8[%c0_12, %c0_13, %c0_14] : memref<1x16x256xf32, #tpu.memory_space<vmem>>, vector<1x16x256xf32>
    %15 = vector.shape_cast %14 : vector<1x16x256xf32> to vector<16x256xf32>
    %16 = vector.shape_cast %13 : vector<16x256xf32> to vector<1x16x256xf32>
    tpu.vector_store %arg8[%c0_12, %c0_13, %c0_14], %16 {strides = array<i32>} : memref<1x16x256xf32, #tpu.memory_space<vmem>>, vector<1x16x256xf32>,
    return
  }
  func.func @transform_0(%arg0: i32, %arg1: i32, %arg2: i32) -> (i32, i32, i32) {
    %c0_i32 = arith.constant 0 : i32
    %c0_i32_0 = arith.constant 0 : i32
    return %arg0, %arg1, %c0_i32 : i32, i32, i32
  }
  func.func @transform_1(%arg0: i32, %arg1: i32, %arg2: i32) -> (i32, i32) {
    %c0_i32 = arith.constant 0 : i32
    %c0_i32_0 = arith.constant 0 : i32
    return %c0_i32, %arg2 : i32, i32
  }
  func.func @transform_2(%arg0: i32, %arg1: i32, %arg2: i32) -> (i32, i32) {
    %c0_i32 = arith.constant 0 : i32
    %c0_i32_0 = arith.constant 0 : i32
    return %c0_i32, %arg2 : i32, i32
  }
  func.func @transform_3(%arg0: i32, %arg1: i32, %arg2: i32) -> (i32, i32, i32) {
    %c0_i32 = arith.constant 0 : i32
    %c0_i32_0 = arith.constant 0 : i32
    return %arg0, %c0_i32, %arg2 : i32, i32, i32
  }
  func.func @transform_4(%arg0: i32, %arg1: i32, %arg2: i32) -> (i32, i32, i32) {
    %c0_i32 = arith.constant 0 : i32
    return %arg0, %arg1, %arg2 : i32, i32, i32
  }
  func.func @transform_5(%arg0: i32, %arg1: i32, %arg2: i32) -> (i32, i32, i32) {
    %c0_i32 = arith.constant 0 : i32
    return %arg0, %arg1, %arg2 : i32, i32, i32
  }
}

module attributes {stable_mosaic.version = 11 : i64} {
  func.func @_mlp_gate_res_kernel(%arg0: i32, %arg1: i32, %arg2: i32, %arg3: memref<1x16x256xf32, #tpu.memory_space<vmem>>, %arg4: memref<1x1x256xf32, #tpu.memory_space<vmem>>, %arg5: memref<1x1x256xf32, #tpu.memory_space<vmem>>, %arg6: memref<1x1x256xf32, #tpu.memory_space<vmem>>, %arg7: memref<256x512xf32, #tpu.memory_space<vmem>>, %arg8: memref<1x512xf32, #tpu.memory_space<vmem>>, %arg9: memref<512x256xf32, #tpu.memory_space<vmem>>, %arg10: memref<1x256xf32, #tpu.memory_space<vmem>>, %arg11: memref<1x16x256xf32, #tpu.memory_space<vmem>>, %arg12: memref<16x256xf32, #tpu.memory_space<vmem>>, %arg13: memref<16x256xf32, #tpu.memory_space<vmem>>) attributes {dimension_semantics = [#tpu.dimension_semantics<parallel>, #tpu.dimension_semantics<parallel>, #tpu.dimension_semantics<arbitrary>], iteration_bounds = array<i64: 2, 1, 2>, scalar_prefetch = 0 : i64, scratch_operands = 2 : i64, tpu.core_type = #tpu.core_type<tc>, window_params = [{transform_indices = @transform_0, window_bounds = array<i64: 1, 16, 256>}, {transform_indices = @transform_1, window_bounds = array<i64: 1, 1, 256>}, {transform_indices = @transform_2, window_bounds = array<i64: 1, 1, 256>}, {transform_indices = @transform_3, window_bounds = array<i64: 1, 1, 256>}, {transform_indices = @transform_4, window_bounds = array<i64: 256, 512>}, {transform_indices = @transform_5, window_bounds = array<i64: 1, 512>}, {transform_indices = @transform_6, window_bounds = array<i64: 512, 256>}, {pipeline_mode = #tpu.pipeline_mode<synchronous>, transform_indices = @transform_7, window_bounds = array<i64: 1, 256>}, {transform_indices = @transform_8, window_bounds = array<i64: 1, 16, 256>}]} {
    %c0_i32 = arith.constant 0 : i32
    %0 = arith.cmpi eq, %arg2, %c0_i32 : i32
    %1 = arith.extui %0 : i1 to i32
    %c0_i32_0 = arith.constant 0 : i32
    %2 = arith.cmpi ne, %1, %c0_i32_0 : i32
    scf.if %2 {
      %c0_18 = arith.constant 0 : index
      %c0_19 = arith.constant 0 : index
      %c0_20 = arith.constant 0 : index
      %30 = vector.load %arg3[%c0_18, %c0_19, %c0_20] : memref<1x16x256xf32, #tpu.memory_space<vmem>>, vector<1x16x256xf32>
      %31 = vector.shape_cast %30 : vector<1x16x256xf32> to vector<16x256xf32>
      %cst_21 = arith.constant dense<0.000000e+00> : vector<16xf32>
      %32 = vector.multi_reduction <add>, %31, %cst_21 [1] : vector<16x256xf32> to vector<16xf32>
      %33 = vector.shape_cast %32 : vector<16xf32> to vector<16x1xf32>
      %cst_22 = arith.constant 2.560000e+02 : f32
      %34 = vector.broadcast %cst_22 : f32 to vector<16x1xf32>
      %35 = arith.divf %33, %34 : vector<16x1xf32>
      %36 = vector.broadcast %35 : vector<16x1xf32> to vector<16x256xf32>
      %37 = arith.subf %31, %36 : vector<16x256xf32>
      %38 = arith.mulf %37, %37 : vector<16x256xf32>
      %cst_23 = arith.constant dense<0.000000e+00> : vector<16xf32>
      %39 = vector.multi_reduction <add>, %38, %cst_23 [1] : vector<16x256xf32> to vector<16xf32>
      %40 = vector.shape_cast %39 : vector<16xf32> to vector<16x1xf32>
      %cst_24 = arith.constant 2.560000e+02 : f32
      %41 = vector.broadcast %cst_24 : f32 to vector<16x1xf32>
      %42 = arith.divf %40, %41 : vector<16x1xf32>
      %cst_25 = arith.constant 9.99999997E-7 : f32
      %43 = vector.broadcast %cst_25 : f32 to vector<16x1xf32>
      %44 = arith.addf %42, %43 : vector<16x1xf32>
      %45 = math.rsqrt %44 : vector<16x1xf32>
      %46 = vector.broadcast %45 : vector<16x1xf32> to vector<16x256xf32>
      %47 = arith.mulf %37, %46 : vector<16x256xf32>
      %c0_26 = arith.constant 0 : index
      %c0_27 = arith.constant 0 : index
      %c0_28 = arith.constant 0 : index
      %48 = vector.load %arg4[%c0_26, %c0_27, %c0_28] : memref<1x1x256xf32, #tpu.memory_space<vmem>>, vector<1x1x256xf32>
      %49 = vector.shape_cast %48 : vector<1x1x256xf32> to vector<1x256xf32>
      %cst_29 = arith.constant 1.000000e+00 : f32
      %50 = vector.broadcast %cst_29 : f32 to vector<1x256xf32>
      %51 = arith.addf %50, %49 : vector<1x256xf32>
      %52 = vector.broadcast %51 : vector<1x256xf32> to vector<16x256xf32>
      %53 = arith.mulf %52, %47 : vector<16x256xf32>
      %c0_30 = arith.constant 0 : index
      %c0_31 = arith.constant 0 : index
      %c0_32 = arith.constant 0 : index
      %54 = vector.load %arg5[%c0_30, %c0_31, %c0_32] : memref<1x1x256xf32, #tpu.memory_space<vmem>>, vector<1x1x256xf32>
      %55 = vector.shape_cast %54 : vector<1x1x256xf32> to vector<1x256xf32>
      %56 = vector.broadcast %55 : vector<1x256xf32> to vector<16x256xf32>
      %57 = arith.addf %53, %56 : vector<16x256xf32>
      %c0_33 = arith.constant 0 : index
      %c0_34 = arith.constant 0 : index
      %58 = vector.load %arg12[%c0_33, %c0_34] : memref<16x256xf32, #tpu.memory_space<vmem>>, vector<16x256xf32>
      tpu.vector_store %arg12[%c0_33, %c0_34], %57 {strides = array<i32>} : memref<16x256xf32, #tpu.memory_space<vmem>>, vector<16x256xf32>,
      %cst_35 = arith.constant 0.000000e+00 : f32
      %59 = vector.broadcast %cst_35 : f32 to vector<16x256xf32>
      %c0_36 = arith.constant 0 : index
      %c0_37 = arith.constant 0 : index
      %60 = vector.load %arg13[%c0_36, %c0_37] : memref<16x256xf32, #tpu.memory_space<vmem>>, vector<16x256xf32>
      tpu.vector_store %arg13[%c0_36, %c0_37], %59 {strides = array<i32>} : memref<16x256xf32, #tpu.memory_space<vmem>>, vector<16x256xf32>,
    } else {
    }
    %c0 = arith.constant 0 : index
    %c0_1 = arith.constant 0 : index
    %3 = vector.load %arg12[%c0, %c0_1] : memref<16x256xf32, #tpu.memory_space<vmem>>, vector<16x256xf32>
    %c0_2 = arith.constant 0 : index
    %c0_3 = arith.constant 0 : index
    %4 = vector.load %arg7[%c0_2, %c0_3] : memref<256x512xf32, #tpu.memory_space<vmem>>, vector<256x512xf32>
    %cst = arith.constant dense<0.000000e+00> : vector<16x512xf32>
    %5 = tpu.matmul %3, %4, %cst {dimension_numbers = #tpu.dot_dimension_numbers<[1], [0], [0], [1], [0, 0, 1, 1], [], []>} : vector<16x256xf32>, vector<256x512xf32>, vector<16x512xf32> -> vector<16x512xf32>
    %c0_4 = arith.constant 0 : index
    %c0_5 = arith.constant 0 : index
    %6 = vector.load %arg8[%c0_4, %c0_5] : memref<1x512xf32, #tpu.memory_space<vmem>>, vector<1x512xf32>
    %7 = vector.broadcast %6 : vector<1x512xf32> to vector<16x512xf32>
    %8 = arith.addf %5, %7 : vector<16x512xf32>
    %cst_6 = arith.constant 5.000000e-01 : f32
    %9 = vector.broadcast %cst_6 : f32 to vector<16x512xf32>
    %10 = arith.mulf %9, %8 : vector<16x512xf32>
    %cst_7 = arith.constant 4.471500e-02 : f32
    %11 = vector.broadcast %cst_7 : f32 to vector<16x512xf32>
    %12 = arith.mulf %11, %8 : vector<16x512xf32>
    %13 = arith.mulf %12, %8 : vector<16x512xf32>
    %14 = arith.mulf %13, %8 : vector<16x512xf32>
    %15 = arith.addf %8, %14 : vector<16x512xf32>
    %cst_8 = arith.constant 0.797884583 : f32
    %16 = vector.broadcast %cst_8 : f32 to vector<16x512xf32>
    %17 = arith.mulf %16, %15 : vector<16x512xf32>
    %18 = math.tanh %17 : vector<16x512xf32>
    %cst_9 = arith.constant 1.000000e+00 : f32
    %19 = vector.broadcast %cst_9 : f32 to vector<16x512xf32>
    %20 = arith.addf %19, %18 : vector<16x512xf32>
    %21 = arith.mulf %10, %20 : vector<16x512xf32>
    %c0_10 = arith.constant 0 : index
    %c0_11 = arith.constant 0 : index
    %22 = vector.load %arg13[%c0_10, %c0_11] : memref<16x256xf32, #tpu.memory_space<vmem>>, vector<16x256xf32>
    %c0_12 = arith.constant 0 : index
    %c0_13 = arith.constant 0 : index
    %23 = vector.load %arg9[%c0_12, %c0_13] : memref<512x256xf32, #tpu.memory_space<vmem>>, vector<512x256xf32>
    %cst_14 = arith.constant dense<0.000000e+00> : vector<16x256xf32>
    %24 = tpu.matmul %21, %23, %cst_14 {dimension_numbers = #tpu.dot_dimension_numbers<[1], [0], [0], [1], [0, 0, 1, 1], [], []>} : vector<16x512xf32>, vector<512x256xf32>, vector<16x256xf32> -> vector<16x256xf32>
    %25 = arith.addf %22, %24 : vector<16x256xf32>
    %c0_15 = arith.constant 0 : index
    %c0_16 = arith.constant 0 : index
    %26 = vector.load %arg13[%c0_15, %c0_16] : memref<16x256xf32, #tpu.memory_space<vmem>>, vector<16x256xf32>
    tpu.vector_store %arg13[%c0_15, %c0_16], %25 {strides = array<i32>} : memref<16x256xf32, #tpu.memory_space<vmem>>, vector<16x256xf32>,
    %c1_i32 = arith.constant 1 : i32
    %27 = arith.cmpi eq, %arg2, %c1_i32 : i32
    %28 = arith.extui %27 : i1 to i32
    %c0_i32_17 = arith.constant 0 : i32
    %29 = arith.cmpi ne, %28, %c0_i32_17 : i32
    scf.if %29 {
      %c0_18 = arith.constant 0 : index
      %c0_19 = arith.constant 0 : index
      %30 = vector.load %arg13[%c0_18, %c0_19] : memref<16x256xf32, #tpu.memory_space<vmem>>, vector<16x256xf32>
      %c0_20 = arith.constant 0 : index
      %c0_21 = arith.constant 0 : index
      %31 = vector.load %arg10[%c0_20, %c0_21] : memref<1x256xf32, #tpu.memory_space<vmem>>, vector<1x256xf32>
      %32 = vector.broadcast %31 : vector<1x256xf32> to vector<16x256xf32>
      %33 = arith.addf %30, %32 : vector<16x256xf32>
      %c0_22 = arith.constant 0 : index
      %c0_23 = arith.constant 0 : index
      %c0_24 = arith.constant 0 : index
      %34 = vector.load %arg3[%c0_22, %c0_23, %c0_24] : memref<1x16x256xf32, #tpu.memory_space<vmem>>, vector<1x16x256xf32>
      %35 = vector.shape_cast %34 : vector<1x16x256xf32> to vector<16x256xf32>
      %c0_25 = arith.constant 0 : index
      %c0_26 = arith.constant 0 : index
      %c0_27 = arith.constant 0 : index
      %36 = vector.load %arg6[%c0_25, %c0_26, %c0_27] : memref<1x1x256xf32, #tpu.memory_space<vmem>>, vector<1x1x256xf32>
      %37 = vector.shape_cast %36 : vector<1x1x256xf32> to vector<1x256xf32>
      %38 = vector.broadcast %37 : vector<1x256xf32> to vector<16x256xf32>
      %39 = arith.mulf %38, %33 : vector<16x256xf32>
      %40 = arith.addf %35, %39 : vector<16x256xf32>
      %c0_28 = arith.constant 0 : index
      %c0_29 = arith.constant 0 : index
      %c0_30 = arith.constant 0 : index
      %41 = vector.load %arg11[%c0_28, %c0_29, %c0_30] : memref<1x16x256xf32, #tpu.memory_space<vmem>>, vector<1x16x256xf32>
      %42 = vector.shape_cast %41 : vector<1x16x256xf32> to vector<16x256xf32>
      %43 = vector.shape_cast %40 : vector<16x256xf32> to vector<1x16x256xf32>
      tpu.vector_store %arg11[%c0_28, %c0_29, %c0_30], %43 {strides = array<i32>} : memref<1x16x256xf32, #tpu.memory_space<vmem>>, vector<1x16x256xf32>,
    } else {
    }
    return
  }
  func.func @transform_0(%arg0: i32, %arg1: i32, %arg2: i32) -> (i32, i32, i32) {
    %c0_i32 = arith.constant 0 : i32
    %c0_i32_0 = arith.constant 0 : i32
    return %arg0, %arg1, %c0_i32 : i32, i32, i32
  }
  func.func @transform_1(%arg0: i32, %arg1: i32, %arg2: i32) -> (i32, i32, i32) {
    %c0_i32 = arith.constant 0 : i32
    %c0_i32_0 = arith.constant 0 : i32
    %c0_i32_1 = arith.constant 0 : i32
    return %arg0, %c0_i32, %c0_i32_0 : i32, i32, i32
  }
  func.func @transform_2(%arg0: i32, %arg1: i32, %arg2: i32) -> (i32, i32, i32) {
    %c0_i32 = arith.constant 0 : i32
    %c0_i32_0 = arith.constant 0 : i32
    %c0_i32_1 = arith.constant 0 : i32
    return %arg0, %c0_i32, %c0_i32_0 : i32, i32, i32
  }
  func.func @transform_3(%arg0: i32, %arg1: i32, %arg2: i32) -> (i32, i32, i32) {
    %c0_i32 = arith.constant 0 : i32
    %c0_i32_0 = arith.constant 0 : i32
    %c0_i32_1 = arith.constant 0 : i32
    return %arg0, %c0_i32, %c0_i32_0 : i32, i32, i32
  }
  func.func @transform_4(%arg0: i32, %arg1: i32, %arg2: i32) -> (i32, i32) {
    %c0_i32 = arith.constant 0 : i32
    %c0_i32_0 = arith.constant 0 : i32
    return %c0_i32, %arg2 : i32, i32
  }
  func.func @transform_5(%arg0: i32, %arg1: i32, %arg2: i32) -> (i32, i32) {
    %c0_i32 = arith.constant 0 : i32
    %c0_i32_0 = arith.constant 0 : i32
    return %c0_i32, %arg2 : i32, i32
  }
  func.func @transform_6(%arg0: i32, %arg1: i32, %arg2: i32) -> (i32, i32) {
    %c0_i32 = arith.constant 0 : i32
    %c0_i32_0 = arith.constant 0 : i32
    return %arg2, %c0_i32 : i32, i32
  }
  func.func @transform_7(%arg0: i32, %arg1: i32, %arg2: i32) -> (i32, i32) {
    %c0_i32 = arith.constant 0 : i32
    %c0_i32_0 = arith.constant 0 : i32
    %c0_i32_1 = arith.constant 0 : i32
    return %c0_i32, %c0_i32_0 : i32, i32
  }
  func.func @transform_8(%arg0: i32, %arg1: i32, %arg2: i32) -> (i32, i32, i32) {
    %c0_i32 = arith.constant 0 : i32
    %c0_i32_0 = arith.constant 0 : i32
    return %arg0, %arg1, %c0_i32 : i32, i32, i32
  }
}

</mosaic_0001>

<bundles_post_ra>
// kernel: image_stream_block_pallas.7
= control target key start
LH: loop header
LB: loop body
LE: loop exit
PB: predicated region body
PF: predicated region fallthrough
CT: control target
= control target key end

     0   :  { %8 = vsyncpa [#allocation3], 0  ;;  %s1357_s0 = inlined_call_operand.hbm [shape: f32[2,256], index: 0, kind: input, shape index: {}]   ;;  %s1358_s1 = inlined_call_operand.hbm [shape: f32[256,1536], index: 1, kind: input, shape index: {}]   ;;  %s1359_s2 = inlined_call_operand.vmem [shape: f32[1,1536], index: 2, kind: input, shape index: {}]   ;;  %s1360_s3 = inlined_call_operand.vmem [shape: f32[2,1536], index: 3, kind: output, shape index: {}]  }
   0x1   :  { %9 = vsyncpa [#allocation5], 0 }
   0x2   :  { %11 = vsyncpa [#allocation5 + $0x1], 0  ;;  %s1006_s12 = smov 0   ;;  %s1008_s13 = smov 0  }
   0x3   :  { %s1010_s14 = smov 0   ;;  %s1012_s15 = smov 0  }
   0x4 LB: > { %s811_s16 = sadd.s32 4294967295, %s980_s15   ;;  %s1026_s17 = sadd.s32 1, %s980_s15   ;;  %s980_s15 = sphi %s1012_s15, %s1371_s15   ;;  %s976_s14 = sphi %s1010_s14, %s1370_s14   ;;  %s972_s13 = sphi %s1008_s13, %s1369_s13   ;;  %s968_s12 = sphi %s1006_s12, %s1368_s12  }
   0x5   : > { %s42_s18 = ssub.s32 %s980_s15, %s1026_s17  ;;  %s45_s19 = sadd.s32 1, %s976_s14 }
   0x6   : > { %p43_p0 = scmp.eq.s32.totalorder %s42_s18, 0  ;;  %p52_p1 = scmp.ne.s32.totalorder %s976_s14, %s972_s13 }
   0x7   : > { %p53_p2 = scmp.eq.s32.totalorder %s980_s15, 0  ;;  %p58_p3 = scmp.ne.s32.totalorder %s972_s13, %s968_s12 }
   0x8   : > { %s1036_s20 = scalar_select %p43_p0, %s976_s14, %s45_s19  }
   0x9   : > { %p1038_p4 = por %p53_p2, %p52_p1  ;;  %p1044_p5 = scmp.eq.s32.totalorder %s811_s16, 0 }
   0xa   : > { %p813_p6 = scmp.ge.s32.totalorder %s980_s15, 1  ;;  %p121_p7 = scmp.lt.s32.totalorder %s980_s15, 3 }
   0xb   : > { %p1052_p8 = por %p1044_p5, %p58_p3  ;;  %s133_s27 = sshll.u32 %s1357_s0, 4  ;;  %s134_s27 = int_to_ptr.hbm [resolvable:$true] %s133_s27 }
   0xc   : > { %p1056_p9 = pnand %p813_p6, %p121_p7  ;;  %s982_s28 = smov [#allocation2]  }
   0xd   : > { %s135_s29 = sshll.u32 %s982_s28, 4  ;;  %p840_p12 = scmp.lt.s32.totalorder %s980_s15, 2  ;;  %s136_s29 = int_to_ptr.vmem [resolvable:$true] %s135_s29 }
   0xe   : > { %p831_p10 = pneg %p1056_p9  ;;  %s146_s30 = sand.u32 1, %s976_s14  }
   0xf   : > { %s822_s4 = smul.u32 48, %s980_s15  ;;  %p1072_p13 = pnand %p840_p12, %p1038_p4 }
  0x10   : > { %p832_p11 = pnand %p831_p10, %p1044_p5  ;;  %s823_s6 = smul.u32 1536, %s146_s30 }
  0x11   : > { %s155_s9 = scalar_lea.hbm %s1358_s1, %s822_s4  ;;  %s147_s18 = scalar_lea.sflag [#allocation5], %s146_s30 }
  0x12   : > { %834 = dma.hbm_to_vmem [thread:$0]  (!%p832_p11), %s134_s27, 64, %s136_s29, [#allocation3]  }
  0x13   : > { %s156_s10 = sshll.u32 %s155_s9, 4  ;;  %s150_s11 = scalar_lea.vmem [#allocation4], %s823_s6  ;;  %s157_s10 = int_to_ptr.hbm [resolvable:$true] %s156_s10 }
  0x14   : > { %s158_s12 = sshll.u32 %s150_s11, 4  ;;  %s912_s19 = sshra.s32 %s157_s10, 4  ;;  %s159_s12 = int_to_ptr.vmem [resolvable:$true] %s158_s12  ;;  %s913_s19 = int_to_ptr.hbm [resolvable:$true] %s912_s19 }
  0x15   : > { %s914_s21 = scalar_lea.hbm %s913_s19, 1536  ;;  %p916_p1 = pneg %p1072_p13 }
  0x16   : > { %p915_p0 = scmp.ne.s32.totalorder %s913_s19, %s914_s21  ;;  %s919_s27 = scalar_lea.hbm %s1358_s1, 3072 }
  0x17   : > { %p920_p4 = scmp.lt.s32.totalorder %s913_s19, %s1358_s1  ;;  %p921_p6 = scmp.lt.s32.totalorder %s919_s27, %s914_s21 }
  0x18   : > { %p917_p2 = pnand %p916_p1, %p915_p0 }
  0x19   : > { %p922_p7 = por %p921_p6, %p920_p4 }
  0x1a   : > { %p918_p3 = pneg %p917_p2 }
  0x1c   : > { %p923_p10 = pnand %p922_p7, %p918_p3 }
  0x1e   : > { %926 = shalt.err (!%p923_p10)
}
  0x1f   : > { %s983_s30 = smov 1536   ;;  %s984_s4 = smov 768  }
  0x20   : > { %s985_s6 = smov 48   ;;  %178 = sbr.rel (%p1056_p9) target bundleno = 283 (0x11b), region = 32 }
  0x21   : > { %838 = dma.hbm_to_vmem [thread:$0]  (!%p1072_p13), %s157_s10, 24576, %s159_s12, %s147_s18, %s983_s30, %s984_s4, %s985_s6  }
  0x25   : > { %959 = dma.done.wait (%p1044_p5), [#allocation3], 64  }
  0x26   : > { %961 = vsyncadd (%p1044_p5), [#allocation3], 4294967232  ;;  %s185_s7 = sand.u32 1, %s972_s13  }
  0x27   : > { %s824_s8 = smul.u32 1536, %s185_s7  ;;  %s186_s9 = scalar_lea.sflag [#allocation5], %s185_s7 }
  0x29   : > { %s1096_s11 = scalar_lea.vmem [#allocation4], %s824_s8 }
  0x2a   : > { %963 = dma.done.wait (%p1052_p8), %s186_s9, 24576  }
  0x2b   : > { %965 = vsyncadd (%p1052_p8), %s186_s9, 4294942720  ;;  %v341_v0 = vld [vmem:[%s1096_s11 + $0x2d8] sm:$0xff]  ;;  %v335_v1 = vld [vmem:[%s1096_s11 + $0x2a8] sm:$0xff]  ;;  %s218_s22 = smul.u32 6, %s811_s16  ;;  %vm712_vm4 = vcmask 1041408   ;;  %vm714_vm5 = vcmask 1045508  }
  0x2c   : > { %v437_v2 = vld [vmem:[%s1096_s11 + $0x5d8] sm:$0xff]  ;;  %502 = vmatpush.msra.mxu2 %v341_v0  ;;  %v431_v3 = vld [vmem:[%s1096_s11 + $0x5a8] sm:$0xff]  ;;  %v340_v4 = vld [vmem:[%s1096_s11 + $0x2d0] sm:$0xff]  ;;  %vm716_vm6 = vcmask 1043456  }
  0x2d   : > { %522 = vmatpush.msra.mxu3 %v437_v2  ;;  %v329_v5 = vld [vmem:[%s1096_s11 + $0x278] sm:$0xff]  ;;  %462 = vmatpush.msra.mxu0 %v340_v4  ;;  %v334_v7 = vld [vmem:[%s1096_s11 + $0x2a0] sm:$0xff]  ;;  %v323_v8 = vld [vmem:[%s1096_s11 + $0x248] sm:$0xff]  ;;  %p219_p5 = scmp.lt.s32.totalorder %s218_s22, 11 }
  0x2e   : > { %v425_v6 = vld [vmem:[%s1096_s11 + $0x578] sm:$0xff]  ;;  %503 = vmatpush.msra.mxu2 %v335_v1  ;;  %v436_v9 = vld [vmem:[%s1096_s11 + $0x5d0] sm:$0xff]  ;;  %v419_v10 = vld [vmem:[%s1096_s11 + $0x548] sm:$0xff] }
  0x2f   : > { %523 = vmatpush.msra.mxu3 %v431_v3  ;;  %463 = vmatpush.msra.mxu0 %v334_v7  ;;  %v328_v11 = vld [vmem:[%s1096_s11 + $0x270] sm:$0xff]  ;;  %v430_v12 = vld [vmem:[%s1096_s11 + $0x5a0] sm:$0xff]  ;;  %v317_v15 = vld [vmem:[%s1096_s11 + $0x218] sm:$0xff]  ;;  %s1373_s22 = smov (!%p219_p5, %s218_s22), 11 }
  0x30   : > { %482 = vmatpush.msra.mxu1 %v436_v9  ;;  %504 = vmatpush.msra.mxu2 %v329_v5  ;;  %v322_v13 = vld [vmem:[%s1096_s11 + $0x240] sm:$0xff]  ;;  %v424_v14 = vld [vmem:[%s1096_s11 + $0x570] sm:$0xff]  ;;  %v413_v16 = vld [vmem:[%s1096_s11 + $0x518] sm:$0xff]  ;;  %s221_s5 = scalar_lea.vmem %s1359_s2, %s1373_s22  ;;  %s819_s15 = sshll.u32 %s1373_s22, 1 }
  0x31   : > { %524 = vmatpush.msra.mxu3 %v425_v6  ;;  %464 = vmatpush.msra.mxu0 %v328_v11  ;;  %v316_v17 = vld [vmem:[%s1096_s11 + $0x210] sm:$0xff]  ;;  %v418_v18 = vld [vmem:[%s1096_s11 + $0x540] sm:$0xff]  ;;  %v311_v19 = vld [vmem:[%s1096_s11 + $0x1e8] sm:$0xff]  ;;  %s227_s12 = scalar_lea.vmem %s1360_s3, %s819_s15 }
  0x32   : > { %483 = vmatpush.msra.mxu1 %v430_v12  ;;  %505 = vmatpush.msra.mxu2 %v323_v8  ;;  %v407_v20 = vld [vmem:[%s1096_s11 + $0x4e8] sm:$0xff]  ;;  %v310_v21 = vld [vmem:[%s1096_s11 + $0x1e0] sm:$0xff]  ;;  %v412_v22 = vld [vmem:[%s1096_s11 + $0x510] sm:$0xff] }
  0x33   : > { %525 = vmatpush.msra.mxu3 %v419_v10  ;;  %465 = vmatpush.msra.mxu0 %v322_v13  ;;  %v305_v23 = vld [vmem:[%s1096_s11 + $0x1b8] sm:$0xff]  ;;  %v304_v25 = vld [vmem:[%s1096_s11 + $0x1b0] sm:$0xff]  ;;  %v406_v26 = vld [vmem:[%s1096_s11 + $0x4e0] sm:$0xff] }
  0x34   : > { %484 = vmatpush.msra.mxu1 %v424_v14  ;;  %506 = vmatpush.msra.mxu2 %v317_v15  ;;  %v401_v24 = vld [vmem:[%s1096_s11 + $0x4b8] sm:$0xff]  ;;  %v299_v27 = vld [vmem:[%s1096_s11 + $0x188] sm:$0xff]  ;;  %v298_v29 = vld [vmem:[%s1096_s11 + $0x180] sm:$0xff] }
  0x35   : > { %526 = vmatpush.msra.mxu3 %v413_v16  ;;  %466 = vmatpush.msra.mxu0 %v316_v17  ;;  %v395_v28 = vld [vmem:[%s1096_s11 + $0x488] sm:$0xff]  ;;  %v400_v30 = vld [vmem:[%s1096_s11 + $0x4b0] sm:$0xff]  ;;  %v293_v31 = vld [vmem:[%s1096_s11 + $0x158] sm:$0xff] }
  0x36   : > { %485 = vmatpush.msra.mxu1 %v418_v18  ;;  %507 = vmatpush.msra.mxu2 %v311_v19  ;;  %v389_v32 = vld [vmem:[%s1096_s11 + $0x458] sm:$0xff]  ;;  %v292_v33 = vld [vmem:[%s1096_s11 + $0x150] sm:$0xff]  ;;  %v394_v34 = vld [vmem:[%s1096_s11 + $0x480] sm:$0xff] }
  0x37   : > { %527 = vmatpush.msra.mxu3 %v407_v20  ;;  %467 = vmatpush.msra.mxu0 %v310_v21  ;;  %v287_v35 = vld [vmem:[%s1096_s11 + $0x128] sm:$0xff]  ;;  %v286_v37 = vld [vmem:[%s1096_s11 + $0x120] sm:$0xff]  ;;  %v388_v38 = vld [vmem:[%s1096_s11 + $0x450] sm:$0xff] }
  0x38   : > { %486 = vmatpush.msra.mxu1 %v412_v22  ;;  %508 = vmatpush.msra.mxu2 %v305_v23  ;;  %v383_v36 = vld [vmem:[%s1096_s11 + $0x428] sm:$0xff]  ;;  %v281_v39 = vld [vmem:[%s1096_s11 + $0xf8] sm:$0xff]  ;;  %v280_v41 = vld [vmem:[%s1096_s11 + $0xf0] sm:$0xff] }
  0x39   : > { %528 = vmatpush.msra.mxu3 %v401_v24  ;;  %468 = vmatpush.msra.mxu0 %v304_v25  ;;  %v377_v40 = vld [vmem:[%s1096_s11 + $0x3f8] sm:$0xff]  ;;  %v382_v42 = vld [vmem:[%s1096_s11 + $0x420] sm:$0xff]  ;;  %v275_v43 = vld [vmem:[%s1096_s11 + $0xc8] sm:$0xff] }
  0x3a   : > { %487 = vmatpush.msra.mxu1 %v406_v26  ;;  %509 = vmatpush.msra.mxu2 %v299_v27  ;;  %v371_v44 = vld [vmem:[%s1096_s11 + $0x3c8] sm:$0xff]  ;;  %v274_v45 = vld [vmem:[%s1096_s11 + $0xc0] sm:$0xff]  ;;  %v376_v46 = vld [vmem:[%s1096_s11 + $0x3f0] sm:$0xff] }
  0x3b   : > { %529 = vmatpush.msra.mxu3 %v395_v28  ;;  %469 = vmatpush.msra.mxu0 %v298_v29  ;;  %v269_v47 = vld [vmem:[%s1096_s11 + $0x98] sm:$0xff]  ;;  %v268_v49 = vld [vmem:[%s1096_s11 + $0x90] sm:$0xff]  ;;  %v370_v50 = vld [vmem:[%s1096_s11 + $0x3c0] sm:$0xff] }
  0x3c   : > { %488 = vmatpush.msra.mxu1 %v400_v30  ;;  %510 = vmatpush.msra.mxu2 %v293_v31  ;;  %v365_v48 = vld [vmem:[%s1096_s11 + $0x398] sm:$0xff]  ;;  %v263_v51 = vld [vmem:[%s1096_s11 + $0x68] sm:$0xff]  ;;  %v262_v53 = vld [vmem:[%s1096_s11 + $0x60] sm:$0xff] }
  0x3d   : > { %530 = vmatpush.msra.mxu3 %v389_v32  ;;  %470 = vmatpush.msra.mxu0 %v292_v33  ;;  %v359_v52 = vld [vmem:[%s1096_s11 + $0x368] sm:$0xff]  ;;  %v364_v54 = vld [vmem:[%s1096_s11 + $0x390] sm:$0xff]  ;;  %v257_v55 = vld [vmem:[%s1096_s11 + $0x38] sm:$0xff] }
  0x3e   : > { %489 = vmatpush.msra.mxu1 %v394_v34  ;;  %511 = vmatpush.msra.mxu2 %v287_v35  ;;  %v353_v56 = vld [vmem:[%s1096_s11 + $0x338] sm:$0xff]  ;;  %v256_v57 = vld [vmem:[%s1096_s11 + $0x30] sm:$0xff]  ;;  %v358_v58 = vld [vmem:[%s1096_s11 + $0x360] sm:$0xff] }
  0x3f   : > { %531 = vmatpush.msra.mxu3 %v383_v36  ;;  %471 = vmatpush.msra.mxu0 %v286_v37  ;;  %v251_v59 = vld [vmem:[%s1096_s11 + $0x8] sm:$0xff]  ;;  %v250_v63 = vld [vmem:[%s1096_s11] sm:$0xff]  ;;  %v352_v0 = vld [vmem:[%s1096_s11 + $0x330] sm:$0xff] }
  0x40   : > { %490 = vmatpush.msra.mxu1 %v388_v38  ;;  %512 = vmatpush.msra.mxu2 %v281_v39  ;;  %v347_v60 = vld [vmem:[%s1096_s11 + $0x308] sm:$0xff]  ;;  %v337_v1 = vld [vmem:[%s1096_s11 + $0x2b8] sm:$0xff]  ;;  %v342_v3 = vld [vmem:[%s1096_s11 + $0x2e0] sm:$0xff] }
  0x41   : > { %532 = vmatpush.msra.mxu3 %v377_v40  ;;  %472 = vmatpush.msra.mxu0 %v280_v41  ;;  %v343_v61 = vld [vmem:[%s1096_s11 + $0x2e8] sm:$0xff]  ;;  %v433_v2 = vld [vmem:[%s1096_s11 + $0x5b8] sm:$0xff]  ;;  %v346_v4 = vld [vmem:[%s1096_s11 + $0x300] sm:$0xff] }
  0x42   : > { %491 = vmatpush.msra.mxu1 %v382_v42  ;;  %513 = vmatpush.msra.mxu2 %v275_v43  ;;  %v439_v62 = vld [vmem:[%s1096_s11 + $0x5e8] sm:$0xff]  ;;  %v336_v7 = vld [vmem:[%s1096_s11 + $0x2b0] sm:$0xff]  ;;  %v438_v8 = vld [vmem:[%s1096_s11 + $0x5e0] sm:$0xff] }
  0x43   : > { %533 = vmatpush.msra.mxu3 %v371_v44  ;;  %473 = vmatpush.msra.mxu0 %v274_v45  ;;  %v331_v5 = vld [vmem:[%s1096_s11 + $0x288] sm:$0xff]  ;;  %v1175_v9 = vld [vmem:[#allocation2] sm:$0xf]  ;;  %v330_v13 = vld [vmem:[%s1096_s11 + $0x280] sm:$0xff] }
  0x44   : > { %492 = vmatpush.msra.mxu1 %v376_v46  ;;  %514 = vmatpush.msra.mxu2 %v269_v47  ;;  %v427_v6 = vld [vmem:[%s1096_s11 + $0x588] sm:$0xff]  ;;  %v325_v10 = vld [vmem:[%s1096_s11 + $0x258] sm:$0xff]  ;;  %v230_v12 = vsub.f32 0.0, %v1175_v9  ;;  %v432_v14 = vld [vmem:[%s1096_s11 + $0x5b0] sm:$0xff] }
  0x45   : > { %534 = vmatpush.msra.mxu3 %v365_v48  ;;  %474 = vmatpush.msra.mxu0 %v268_v49  ;;  %v421_v11 = vld [vmem:[%s1096_s11 + $0x558] sm:$0xff]  ;;  %v319_v15 = vld [vmem:[%s1096_s11 + $0x228] sm:$0xff]  ;;  %v324_v18 = vld [vmem:[%s1096_s11 + $0x250] sm:$0xff] }
  0x46   : > { %493 = vmatpush.msra.mxu1 %v370_v50  ;;  %515 = vmatpush.msra.mxu2 %v263_v51  ;;  %v415_v16 = vld [vmem:[%s1096_s11 + $0x528] sm:$0xff]  ;;  %v231_v17 = vmul.f32 1.442695, %v230_v12  ;;  %v426_v19 = vld [vmem:[%s1096_s11 + $0x580] sm:$0xff]  ;;  %v313_v20 = vld [vmem:[%s1096_s11 + $0x1f8] sm:$0xff] }
  0x47   : > { %535 = vmatpush.msra.mxu3 %v359_v52  ;;  %475 = vmatpush.msra.mxu0 %v262_v53  ;;  %v409_v21 = vld [vmem:[%s1096_s11 + $0x4f8] sm:$0xff]  ;;  %v318_v22 = vld [vmem:[%s1096_s11 + $0x220] sm:$0xff]  ;;  %v420_v23 = vld [vmem:[%s1096_s11 + $0x550] sm:$0xff] }
  0x48   : > { %494 = vmatpush.msra.mxu1 %v364_v54  ;;  %516 = vmatpush.msra.mxu2 %v257_v55  ;;  %878 = vpow2.f32 %v231_v17  ;;  %v307_v24 = vld [vmem:[%s1096_s11 + $0x1c8] sm:$0xff]  ;;  %v312_v26 = vld [vmem:[%s1096_s11 + $0x1f0] sm:$0xff]  ;;  %v414_v27 = vld [vmem:[%s1096_s11 + $0x520] sm:$0xff] }
  0x49   : > { %536 = vmatpush.msra.mxu3 %v353_v56  ;;  %476 = vmatpush.msra.mxu0 %v256_v57  ;;  %v403_v25 = vld [vmem:[%s1096_s11 + $0x4c8] sm:$0xff]  ;;  %v301_v28 = vld [vmem:[%s1096_s11 + $0x198] sm:$0xff]  ;;  %v306_v30 = vld [vmem:[%s1096_s11 + $0x1c0] sm:$0xff] }
  0x4a   : > { %495 = vmatpush.msra.mxu1 %v358_v58  ;;  %517 = vmatpush.msra.mxu2 %v251_v59  ;;  %v397_v29 = vld [vmem:[%s1096_s11 + $0x498] sm:$0xff]  ;;  %v408_v31 = vld [vmem:[%s1096_s11 + $0x4f0] sm:$0xff]  ;;  %v295_v33 = vld [vmem:[%s1096_s11 + $0x168] sm:$0xff] }
  0x4b   : > { %537 = vmatpush.msra.mxu3 %v347_v60  ;;  %477 = vmatpush.msra.mxu0 %v250_v63  ;;  %v391_v34 = vld [vmem:[%s1096_s11 + $0x468] sm:$0xff]  ;;  %v300_v35 = vld [vmem:[%s1096_s11 + $0x190] sm:$0xff]  ;;  %v402_v36 = vld [vmem:[%s1096_s11 + $0x4c0] sm:$0xff] }
  0x4c   : > { %582 = vmatpush.msrb.mxu2 %v343_v61  ;;  %496 = vmatpush.msra.mxu1 %v352_v0  ;;  %v289_v38 = vld [vmem:[%s1096_s11 + $0x138] sm:$0xff]  ;;  %v294_v40 = vld [vmem:[%s1096_s11 + $0x160] sm:$0xff]  ;;  %v396_v41 = vld [vmem:[%s1096_s11 + $0x490] sm:$0xff] }
  0x4d   : > { %602 = vmatpush.msrb.mxu3 %v439_v62  ;;  %542 = vmatpush.msrb.mxu0 %v342_v3  ;;  %v385_v39 = vld [vmem:[%s1096_s11 + $0x438] sm:$0xff]  ;;  %v283_v42 = vld [vmem:[%s1096_s11 + $0x108] sm:$0xff]  ;;  %v288_v44 = vld [vmem:[%s1096_s11 + $0x130] sm:$0xff] }
  0x4e   : > { %583 = vmatpush.msrb.mxu2 %v337_v1  ;;  %497 = vmatpush.msra.mxu1 %v346_v4  ;;  %v879_v32 = vpop.eup %878  ;;  %v379_v43 = vld [vmem:[%s1096_s11 + $0x408] sm:$0xff]  ;;  %v390_v45 = vld [vmem:[%s1096_s11 + $0x460] sm:$0xff]  ;;  %v277_v46 = vld [vmem:[%s1096_s11 + $0xd8] sm:$0xff] }
  0x4f   : > { %603 = vmatpush.msrb.mxu3 %v433_v2  ;;  %543 = vmatpush.msrb.mxu0 %v336_v7  ;;  %v1202_v37 = vadd.f32 1.0, %v879_v32  ;;  %v373_v47 = vld [vmem:[%s1096_s11 + $0x3d8] sm:$0xff]  ;;  %v282_v48 = vld [vmem:[%s1096_s11 + $0x100] sm:$0xff]  ;;  %v384_v49 = vld [vmem:[%s1096_s11 + $0x430] sm:$0xff] }
  0x50   : > { %584 = vmatpush.msrb.mxu2 %v331_v5  ;;  %562 = vmatpush.msrb.mxu1 %v438_v8  ;;  %v271_v50 = vld [vmem:[%s1096_s11 + $0xa8] sm:$0xff]  ;;  %v276_v53 = vld [vmem:[%s1096_s11 + $0xd0] sm:$0xff]  ;;  %v378_v54 = vld [vmem:[%s1096_s11 + $0x400] sm:$0xff] }
  0x51   : > { %604 = vmatpush.msrb.mxu3 %v427_v6  ;;  %544 = vmatpush.msrb.mxu0 %v330_v13  ;;  %880 = vrcp.f32 %v1202_v37  ;;  %v367_v51 = vld [vmem:[%s1096_s11 + $0x3a8] sm:$0xff]  ;;  %v265_v56 = vld [vmem:[%s1096_s11 + $0x78] sm:$0xff]  ;;  %v245_v58 = vand.u32 2147483648, %v1202_v37  ;;  %v270_v59 = vld [vmem:[%s1096_s11 + $0xa0] sm:$0xff]  ;;  %vm239_vm0 = vweird.f32 %v1202_v37  ;;  %v243_v62 = vand.u32 2147483647, %v1202_v37 }
  0x52   : > { %585 = vmatpush.msrb.mxu2 %v325_v10  ;;  %563 = vmatpush.msrb.mxu1 %v432_v14  ;;  %v361_v57 = vld [vmem:[%s1096_s11 + $0x378] sm:$0xff]  ;;  %v372_v60 = vld [vmem:[%s1096_s11 + $0x3d0] sm:$0xff]  ;;  %v259_v63 = vld [vmem:[%s1096_s11 + $0x48] sm:$0xff] }
  0x53   : > { %605 = vmatpush.msrb.mxu3 %v421_v11  ;;  %545 = vmatpush.msrb.mxu0 %v324_v18  ;;  %v355_v0 = vld [vmem:[%s1096_s11 + $0x348] sm:$0xff]  ;;  %v264_v1 = vld [vmem:[%s1096_s11 + $0x70] sm:$0xff]  ;;  %v366_v2 = vld [vmem:[%s1096_s11 + $0x3a0] sm:$0xff]  ;;  %v246_v7 = vor.u32 1.1754944e-38, %v245_v58  ;;  %vm244_vm3 = vcmp.eq.f32.partialorder %v243_v62, 8.507059e+37 }
  0x54   : > { %586 = vmatpush.msrb.mxu2 %v319_v15  ;;  %564 = vmatpush.msrb.mxu1 %v426_v19  ;;  %v253_v4 = vld [vmem:[%s1096_s11 + $0x18] sm:$0xff]  ;;  %v258_v8 = vld [vmem:[%s1096_s11 + $0x40] sm:$0xff]  ;;  %v360_v10 = vld [vmem:[%s1096_s11 + $0x370] sm:$0xff] }
  0x55   : > { %606 = vmatpush.msrb.mxu3 %v415_v16  ;;  %546 = vmatpush.msrb.mxu0 %v318_v22  ;;  %v349_v5 = vld [vmem:[%s1096_s11 + $0x318] sm:$0xff]  ;;  %v252_v12 = vld [vmem:[%s1096_s11 + $0x10] sm:$0xff]  ;;  %v354_v13 = vld [vmem:[%s1096_s11 + $0x340] sm:$0xff] }
  0x56   : > { %587 = vmatpush.msrb.mxu2 %v313_v20  ;;  %565 = vmatpush.msrb.mxu1 %v420_v23  ;;  %v348_v16 = vld [vmem:[%s1096_s11 + $0x310] sm:$0xff]  ;;  %v345_v18 = vld [vmem:[%s1096_s11 + $0x2f8] sm:$0xff]  ;;  %v339_v23 = vld [vmem:[%s1096_s11 + $0x2c8] sm:$0xff] }
  0x57   : > { %607 = vmatpush.msrb.mxu3 %v409_v21  ;;  %547 = vmatpush.msrb.mxu0 %v312_v26  ;;  %v881_v52 = vpop.eup %880  ;;  %v441_v19 = vld [vmem:[%s1096_s11 + $0x5f8] sm:$0xff]  ;;  %v440_v22 = vld [vmem:[%s1096_s11 + $0x5f0] sm:$0xff]  ;;  %v434_v26 = vld [vmem:[%s1096_s11 + $0x5c0] sm:$0xff] }
  0x58   : > { %588 = vmatpush.msrb.mxu2 %v307_v24  ;;  %566 = vmatpush.msrb.mxu1 %v414_v27  ;;  %v235_v55 = vmul.f32 %v881_v52, %v1202_v37  ;;  %vm240_vm1 = vweird.f32 %v881_v52  ;;  %v435_v24 = vld [vmem:[%s1096_s11 + $0x5c8] sm:$0xff]  ;;  %v333_v27 = vld [vmem:[%s1096_s11 + $0x298] sm:$0xff]  ;;  %v290_v58 = vld [vmem:[%s1096_s11 + $0x140] sm:$0xff] }
  0x59   : > { %608 = vmatpush.msrb.mxu3 %v403_v25  ;;  %548 = vmatpush.msrb.mxu0 %v306_v30  ;;  %vm1238_vm2 = vmor %vm239_vm0, %vm240_vm1  ;;  %v338_v25 = vld [vmem:[%s1096_s11 + $0x2c0] sm:$0xff]  ;;  %v428_v30 = vld [vmem:[%s1096_s11 + $0x590] sm:$0xff] }
  0x5a   : > { %589 = vmatpush.msrb.mxu2 %v301_v28  ;;  %567 = vmatpush.msrb.mxu1 %v408_v31  ;;  %v236_v61 = vsub.f32 1.0, %v235_v55  ;;  %v429_v28 = vld [vmem:[%s1096_s11 + $0x598] sm:$0xff]  ;;  %v327_v31 = vld [vmem:[%s1096_s11 + $0x268] sm:$0xff]  ;;  %v284_v62 = vld [vmem:[%s1096_s11 + $0x110] sm:$0xff] }
  0x5b   : > { %609 = vmatpush.msrb.mxu3 %v397_v29  ;;  %549 = vmatpush.msrb.mxu0 %v300_v35  ;;  %v332_v29 = vld [vmem:[%s1096_s11 + $0x290] sm:$0xff]  ;;  %v423_v32 = vld [vmem:[%s1096_s11 + $0x568] sm:$0xff]  ;;  %v417_v35 = vld [vmem:[%s1096_s11 + $0x538] sm:$0xff] }
  0x5c   : > { %590 = vmatpush.msrb.mxu2 %v295_v33  ;;  %568 = vmatpush.msrb.mxu1 %v402_v36  ;;  %v237_v3 = vmul.f32 %v881_v52, %v236_v61  ;;  %v321_v33 = vld [vmem:[%s1096_s11 + $0x238] sm:$0xff]  ;;  %v422_v36 = vld [vmem:[%s1096_s11 + $0x560] sm:$0xff]  ;;  %v315_v37 = vld [vmem:[%s1096_s11 + $0x208] sm:$0xff] }
  0x5d   : > { %610 = vmatpush.msrb.mxu3 %v391_v34  ;;  %550 = vmatpush.msrb.mxu0 %v294_v40  ;;  %v326_v34 = vld [vmem:[%s1096_s11 + $0x260] sm:$0xff]  ;;  %v416_v40 = vld [vmem:[%s1096_s11 + $0x530] sm:$0xff]  ;;  %v387_v55 = vld [vmem:[%s1096_s11 + $0x448] sm:$0xff] }
  0x5e   : > { %591 = vmatpush.msrb.mxu2 %v289_v38  ;;  %569 = vmatpush.msrb.mxu1 %v396_v41  ;;  %v238_v11 = vadd.f32 %v881_v52, %v237_v3  ;;  %v320_v38 = vld [vmem:[%s1096_s11 + $0x230] sm:$0xff]  ;;  %v309_v41 = vld [vmem:[%s1096_s11 + $0x1d8] sm:$0xff]  ;;  %v279_v61 = vld [vmem:[%s1096_s11 + $0xe8] sm:$0xff] }
  0x5f   : > { %611 = vmatpush.msrb.mxu3 %v385_v39  ;;  %551 = vmatpush.msrb.mxu0 %v288_v44  ;;  %v411_v39 = vld [vmem:[%s1096_s11 + $0x508] sm:$0xff]  ;;  %v410_v44 = vld [vmem:[%s1096_s11 + $0x500] sm:$0xff]  ;;  %v369_v3 = vld [vmem:[%s1096_s11 + $0x3b8] sm:$0xff] }
  0x60   : > { %592 = vmatpush.msrb.mxu2 %v283_v42  ;;  %570 = vmatpush.msrb.mxu1 %v390_v45  ;;  %v242_v14 = vsel %vm1238_vm2, %v881_v52, %v238_v11  ;;  %v314_v42 = vld [vmem:[%s1096_s11 + $0x200] sm:$0xff]  ;;  %v303_v45 = vld [vmem:[%s1096_s11 + $0x1a8] sm:$0xff]  ;;  %v272_v6 = vld [vmem:[%s1096_s11 + $0xb0] sm:$0xff] }
  0x61   : > { %612 = vmatpush.msrb.mxu3 %v379_v43  ;;  %552 = vmatpush.msrb.mxu0 %v282_v48  ;;  %v247_v15 = vsel %vm244_vm3, %v246_v7, %v242_v14  ;;  %v405_v43 = vld [vmem:[%s1096_s11 + $0x4d8] sm:$0xff]  ;;  %v404_v48 = vld [vmem:[%s1096_s11 + $0x4d0] sm:$0xff]  ;;  %v398_v52 = vld [vmem:[%s1096_s11 + $0x4a0] sm:$0xff] }
  0x62   : > { %593 = vmatpush.msrb.mxu2 %v277_v46  ;;  %571 = vmatpush.msrb.mxu1 %v384_v49  ;;  %v249_v17 = vmul.f32 %v247_v15, %v1175_v9  ;;  %v344_v9 = vld [vmem:[%s1096_s11 + $0x2f0] sm:$0xff]  ;;  %v297_v49 = vld [vmem:[%s1096_s11 + $0x178] sm:$0xff]  ;;  %v363_v7 = vld [vmem:[%s1096_s11 + $0x388] sm:$0xff] }
  0x63   : > { %613 = vmatpush.msrb.mxu3 %v373_v47  ;;  %553 = vmatpush.msrb.mxu0 %v276_v53  ;;  %v308_v46 = vld [vmem:[%s1096_s11 + $0x1d0] sm:$0xff]  ;;  %v399_v47 = vld [vmem:[%s1096_s11 + $0x4a8] sm:$0xff]  ;;  %v266_v11 = vld [vmem:[%s1096_s11 + $0x80] sm:$0xff] }
  0x64   : > { %594 = vmatpush.msrb.mxu2 %v271_v50  ;;  %572 = vmatpush.msrb.mxu1 %v378_v54  ;;  %457 = vst [vmem:[#allocation1] ss:$4 sm:$0xff] %v249_v17  ;;  %v302_v50 = vld [vmem:[%s1096_s11 + $0x1a0] sm:$0xff]  ;;  %v291_v53 = vld [vmem:[%s1096_s11 + $0x148] sm:$0xff]  ;;  %v296_v54 = vld [vmem:[%s1096_s11 + $0x170] sm:$0xff] }
  0x65   : > { %614 = vmatpush.msrb.mxu3 %v367_v51  ;;  %554 = vmatpush.msrb.mxu0 %v270_v59  ;;  %v393_v51 = vld [vmem:[%s1096_s11 + $0x478] sm:$0xff]  ;;  %v255_v14 = vld [vmem:[%s1096_s11 + $0x28] sm:$0xff]  ;;  %v260_v15 = vld [vmem:[%s1096_s11 + $0x50] sm:$0xff] }
  0x66   : > { %595 = vmatpush.msrb.mxu2 %v265_v56  ;;  %573 = vmatpush.msrb.mxu1 %v372_v60  ;;  %v392_v56 = vld [vmem:[%s1096_s11 + $0x470] sm:$0xff]  ;;  %v381_v59 = vld [vmem:[%s1096_s11 + $0x418] sm:$0xff]  ;;  %v386_v60 = vld [vmem:[%s1096_s11 + $0x440] sm:$0xff] }
  0x67   : > { %615 = vmatpush.msrb.mxu3 %v361_v57  ;;  %555 = vmatpush.msrb.mxu0 %v264_v1  ;;  %v285_v57 = vld [vmem:[%s1096_s11 + $0x118] sm:$0xff]  ;;  %v254_v17 = vld [vmem:[%s1096_s11 + $0x20] sm:$0xff] }
  0x68   : > { %596 = vmatpush.msrb.mxu2 %v259_v63  ;;  %574 = vmatpush.msrb.mxu1 %v366_v2  ;;  %v375_v63 = vld [vmem:[%s1096_s11 + $0x3e8] sm:$0xff]  ;;  %v273_v1 = vld [vmem:[%s1096_s11 + $0xb8] sm:$0xff]  ;;  %v278_v2 = vld [vmem:[%s1096_s11 + $0xe0] sm:$0xff] }
  0x69   : > { %616 = vmatpush.msrb.mxu3 %v355_v0  ;;  %556 = vmatpush.msrb.mxu0 %v258_v8  ;;  %v380_v0 = vld [vmem:[%s1096_s11 + $0x410] sm:$0xff] }
  0x6a   : > { %597 = vmatpush.msrb.mxu2 %v253_v4  ;;  %575 = vmatpush.msrb.mxu1 %v360_v10  ;;  %v374_v4 = vld [vmem:[%s1096_s11 + $0x3e0] sm:$0xff]  ;;  %v368_v8 = vld [vmem:[%s1096_s11 + $0x3b0] sm:$0xff]  ;;  %v261_v10 = vld [vmem:[%s1096_s11 + $0x58] sm:$0xff] }
  0x6b   : > { %617 = vmatpush.msrb.mxu3 %v349_v5  ;;  %557 = vmatpush.msrb.mxu0 %v252_v12  ;;  %v1252_v20 = vld.sshfl [vmem:[#allocation1] sm:$0xff pattern:$0x73625140]  ;;  %v1254_v21 = vld.sshfl [vmem:[#allocation1 + $0x8] sm:$0xff pattern:$0x73625140] }
  0x6c   : > { %576 = vmatpush.msrb.mxu1 %v354_v13  ;;  %518 = vmatmul.f32.vlgmr.msra.gmra.mxu2 %v1252_v20  ;;  %v267_v5 = vld [vmem:[%s1096_s11 + $0x88] sm:$0xff]  ;;  %v357_v12 = vld [vmem:[%s1096_s11 + $0x358] sm:$0xff]  ;;  %v362_v13 = vld [vmem:[%s1096_s11 + $0x380] sm:$0xff] }
  0x6d   : > { %538 = vmatmul.f32.vlgmr.msra.gmra.mxu3 %v1254_v21  ;;  %478 = vmatmul.f32.vlgmr.msra.gmra.mxu0 %v1252_v20 }
  0x6e   : > { %577 = vmatpush.msrb.mxu1 %v348_v16  ;;  %662 = vmatpush.msra.mxu2 %v345_v18  ;;  %v351_v16 = vld [vmem:[%s1096_s11 + $0x328] sm:$0xff]  ;;  %v356_v18 = vld [vmem:[%s1096_s11 + $0x350] sm:$0xff] }
  0x6f   : > { %498 = vmatmul.f32.vlgmr.msra.gmra.mxu1 %v1254_v21  ;;  %682 = vmatpush.msra.mxu3 %v441_v19  ;;  %v350_v19 = vld [vmem:[%s1096_s11 + $0x320] sm:$0xff] }
  0x70   : > { %622 = vmatpush.msra.mxu0 %v344_v9  ;;  %642 = vmatpush.msra.mxu1 %v440_v22  ;;  %v442_v9 = vld [vmem:[%s221_s5] sm:$0x3f] }
  0x71   : > { %663 = vmatpush.msra.mxu2 %v339_v23  ;;  %683 = vmatpush.msra.mxu3 %v435_v24  ;;  %v445_v24 = vperm.slane %v442_v9, 1 }
  0x72   : > { %623 = vmatpush.msra.mxu0 %v338_v25  ;;  %643 = vmatpush.msra.mxu1 %v434_v26 }
  0x73   : > { %664 = vmatpush.msra.mxu2 %v333_v27  ;;  %684 = vmatpush.msra.mxu3 %v429_v28  ;;  %v444_v27 = vperm.slane %v442_v9, 0 }
  0x74   : > { %624 = vmatpush.msra.mxu0 %v332_v29  ;;  %644 = vmatpush.msra.mxu1 %v428_v30 }
  0x75   : > { %598 = vmatmul.f32.vlgmr.msrb.gmra.mxu2 %v1252_v20  ;;  %618 = vmatmul.f32.vlgmr.msrb.gmra.mxu3 %v1254_v21 }
  0x76   : > { %558 = vmatmul.f32.vlgmr.msrb.gmra.mxu0 %v1252_v20  ;;  %665 = vmatpush.msra.mxu2 %v327_v31 }
  0x77   : > { %578 = vmatmul.f32.vlgmr.msrb.gmra.mxu1 %v1254_v21  ;;  %685 = vmatpush.msra.mxu3 %v423_v32 }
  0x78   : > { %666 = vmatpush.msra.mxu2 %v321_v33  ;;  %625 = vmatpush.msra.mxu0 %v326_v34  ;;  %v447_v33 = vperm.slane %v442_v9, 3 }
  0x79   : > { %686 = vmatpush.msra.mxu3 %v417_v35  ;;  %645 = vmatpush.msra.mxu1 %v422_v36 }
  0x7a   : > { %667 = vmatpush.msra.mxu2 %v315_v37  ;;  %626 = vmatpush.msra.mxu0 %v320_v38 }
  0x7b   : > { %687 = vmatpush.msra.mxu3 %v411_v39  ;;  %646 = vmatpush.msra.mxu1 %v416_v40 }
  0x7c   : > { %668 = vmatpush.msra.mxu2 %v309_v41  ;;  %627 = vmatpush.msra.mxu0 %v314_v42 }
  0x7d   : > { %688 = vmatpush.msra.mxu3 %v405_v43  ;;  %647 = vmatpush.msra.mxu1 %v410_v44 }
  0x7e   : > { %669 = vmatpush.msra.mxu2 %v303_v45  ;;  %628 = vmatpush.msra.mxu0 %v308_v46  ;;  %v448_v46 = vperm.slane %v442_v9, 4 }
  0x7f   : > { %689 = vmatpush.msra.mxu3 %v399_v47  ;;  %648 = vmatpush.msra.mxu1 %v404_v48  ;;  %v449_v48 = vperm.slane %v442_v9, 5 }
  0x80   : > { %670 = vmatpush.msra.mxu2 %v297_v49  ;;  %629 = vmatpush.msra.mxu0 %v302_v50 }
  0x81   : > { %690 = vmatpush.msra.mxu3 %v393_v51  ;;  %649 = vmatpush.msra.mxu1 %v398_v52 }
  0x82   : > { %671 = vmatpush.msra.mxu2 %v291_v53  ;;  %630 = vmatpush.msra.mxu0 %v296_v54 }
  0x83   : > { %691 = vmatpush.msra.mxu3 %v387_v55  ;;  %650 = vmatpush.msra.mxu1 %v392_v56 }
  0x84   : > { %672 = vmatpush.msra.mxu2 %v285_v57  ;;  %631 = vmatpush.msra.mxu0 %v290_v58 }
  0x85   : > { %692 = vmatpush.msra.mxu3 %v381_v59  ;;  %651 = vmatpush.msra.mxu1 %v386_v60 }
  0x86   : > { %673 = vmatpush.msra.mxu2 %v279_v61  ;;  %632 = vmatpush.msra.mxu0 %v284_v62 }
  0x87   : > { %693 = vmatpush.msra.mxu3 %v375_v63  ;;  %652 = vmatpush.msra.mxu1 %v380_v0 }
  0x88   : > { %674 = vmatpush.msra.mxu2 %v273_v1  ;;  %633 = vmatpush.msra.mxu0 %v278_v2 }
  0x89   : > { %694 = vmatpush.msra.mxu3 %v369_v3  ;;  %653 = vmatpush.msra.mxu1 %v374_v4 }
  0x8a   : > { %675 = vmatpush.msra.mxu2 %v267_v5  ;;  %634 = vmatpush.msra.mxu0 %v272_v6 }
  0x8b   : > { %695 = vmatpush.msra.mxu3 %v363_v7  ;;  %654 = vmatpush.msra.mxu1 %v368_v8 }
  0x8c   : > { %676 = vmatpush.msra.mxu2 %v261_v10  ;;  %635 = vmatpush.msra.mxu0 %v266_v11 }
  0x8d   : > { %696 = vmatpush.msra.mxu3 %v357_v12  ;;  %655 = vmatpush.msra.mxu1 %v362_v13 }
  0x8e   : > { %677 = vmatpush.msra.mxu2 %v255_v14  ;;  %636 = vmatpush.msra.mxu0 %v260_v15 }
  0x8f   : > { %678 = vmatmul.f32.vlgmr.msra.gmra.mxu2 %v1252_v20  ;;  %697 = vmatpush.msra.mxu3 %v351_v16 }
  0x90   : > { %698 = vmatmul.f32.vlgmr.msra.gmra.mxu3 %v1254_v21  ;;  %637 = vmatpush.msra.mxu0 %v254_v17 }
  0x91   : > { %656 = vmatpush.msra.mxu1 %v356_v18  ;;  %638 = vmatmul.f32.vlgmr.msra.gmra.mxu0 %v1252_v20  ;;  %v446_v20 = vperm.slane %v442_v9, 2 }
  0x93   : > { %657 = vmatpush.msra.mxu1 %v350_v19 }
  0x94   : > { %658 = vmatmul.f32.vlgmr.msra.gmra.mxu1 %v1254_v21 }
  0xea   : > { %v479_v22 = vpop.f32.mrf.mxu0 }
  0xeb   : > { %v480_v31 = vadd.f32 %v479_v22, %v444_v27 }
  0xec   : > { %v499_v23 = vpop.f32.mrf.mxu1 }
  0xed   : > { %v500_v37 = vadd.f32 %v499_v23, %v480_v31 }
  0xef   : > { %v519_v25 = vpop.f32.mrf.mxu2 }
  0xf0   : > { %v539_v26 = vpop.f32.mrf.mxu3  ;;  %v520_v28 = vadd.f32 %v519_v25, %v445_v24 }
  0xf2   : > { %v540_v32 = vadd.f32 %v539_v26, %v520_v28 }
  0xf3   : > { %v559_v21 = vpop.f32.mrf.mxu0 }
  0xf4   : > { %v560_v29 = vadd.f32 %v559_v21, %v446_v20  ;;  %v579_v30 = vpop.f32.mrf.mxu1  ;;  %v708_v38 = vrot.slane %v540_v32, 6 }
  0xf6   : > { %v580_v34 = vadd.f32 %v579_v30, %v560_v29  ;;  %v713_v42 = vsel %vm712_vm4, %v500_v37, %v708_v38 }
  0xf8   : > { %v599_v35 = vpop.f32.mrf.mxu2  ;;  %v619_v36 = vpop.f32.mrf.mxu3  ;;  %v709_v40 = vrot.slane %v580_v34, 4 }
  0xf9   : > { %v600_v39 = vadd.f32 %v599_v35, %v447_v33 }
  0xfb   : > { %v620_v41 = vadd.f32 %v619_v36, %v600_v39 }
  0xfd   : > { %v710_v43 = vrot.slane %v620_v41, 2 }
  0xff   : > { %v715_v44 = vsel %vm714_vm5, %v709_v40, %v710_v43 }
 0x100   : > { %v717_v45 = vsel %vm716_vm6, %v713_v42, %v715_v44 }
 0x101   : > { %721 = vst [vmem:[%s227_s12] sm:$0xff] %v717_v45 }
 0x10e   : > { %v639_v47 = vpop.f32.mrf.mxu0 }
 0x10f   : > { %v640_v49 = vadd.f32 %v639_v47, %v448_v46 }
 0x111   : > { %v659_v51 = vpop.f32.mrf.mxu1 }
 0x112   : > { %v679_v50 = vpop.f32.mrf.mxu2  ;;  %v660_v55 = vadd.f32 %v659_v51, %v640_v49 }
 0x113   : > { %v680_v52 = vadd.f32 %v679_v50, %v449_v48  ;;  %v699_v53 = vpop.f32.mrf.mxu3 }
 0x115   : > { %v700_v54 = vadd.f32 %v699_v53, %v680_v52 }
 0x117   : > { %v711_v56 = vrot.slane %v700_v54, 6 }
 0x119   : > { %v718_v57 = vsel %vm712_vm4, %v660_v55, %v711_v56 }
 0x11a   : > { %722 = vst [vmem:[%s227_s12 + $0x8] sm:$0xf] %v718_v57 }
 0x11b PF: > { %p14_p8 = scmp.ge.s32.totalorder %s1026_s17, 4   ;;  %s1368_s12 = smov %s972_s13 }
 0x11c   : > { %s1369_s13 = smov %s976_s14  ;;  %s1370_s14 = smov %s1036_s20 }
 0x11d   : > { %s1371_s15 = smov %s1026_s17  ;;  %16 = sbr.rel (!%p14_p8) target bundleno = 4 (0x4), region = 80 }
 0x122   :  { %745 = vsyncpa [#allocation3], 1 }
 0x123   :  { %747 = vsyncpa [#allocation3 + $0x1], 1 }
 0x124   :  { %748 = vsyncpa [#allocation5], 1 }
 0x125   :  { %750 = vsyncpa [#allocation5 + $0x1], 1 }

// kernel: image_stream_block_pallas.9
= control target key start
LH: loop header
LB: loop body
LE: loop exit
PB: predicated region body
PF: predicated region fallthrough
CT: control target
= control target key end

     0   :  { %s1765_s0 = inlined_call_operand.vmem [shape: f32[2,16,256], index: 0, kind: input, shape index: {}]   ;;  %s1766_s1 = inlined_call_operand.vmem [shape: f32[2,1,256], index: 1, kind: input, shape index: {}]   ;;  %s1767_s2 = inlined_call_operand.vmem [shape: f32[2,1,256], index: 2, kind: input, shape index: {}]   ;;  %s1768_s3 = inlined_call_operand.vmem [shape: f32[256,768], index: 3, kind: input, shape index: {}]   ;;  %s1769_s4 = inlined_call_operand.vmem [shape: f32[1,768], index: 4, kind: input, shape index: {}]   ;;  %s1770_s5 = inlined_call_operand.vmem [shape: f32[2,16,768], index: 5, kind: output, shape index: {}]  }
   0x1   :  { %1775 = sst [smem:[#allocation10_spill]] %s1768_s3 }
   0x2   :  { %s1295_s18 = smov 0   ;;  %s1297_s19 = smov 0  }
   0x3   :  { %s1299_s20 = smov 0   ;;  %s1301_s21 = smov 0  }
   0x4   :  { %s1303_s22 = smov 0   ;;  %s1305_s23 = smov 0  }
   0x5   :  { %s1307_s24 = smov 0   ;;  %s1309_s25 = smov 0  }
   0x6   :  { %s1311_s26 = smov 0  }
   0x7 LB: > { %1776 = sst [smem:[#allocation5_spill]] %s1254_s24  ;;  %s1061_s27 = sadd.s32 4294967295, %s1262_s26   ;;  %s1262_s26 = sphi %s1311_s26, %s15_s26   ;;  %s1258_s25 = sphi %s1309_s25, %s1787_s25   ;;  %s1254_s24 = sphi %s1307_s24, %s1786_s24   ;;  %s1250_s23 = sphi %s1305_s23, %s1792_s23   ;;  %s1246_s22 = sphi %s1303_s22, %s1784_s22   ;;  %s1242_s21 = sphi %s1301_s21, %s1791_s21   ;;  %s1238_s20 = sphi %s1299_s20, %s1790_s20   ;;  %s1234_s19 = sphi %s1297_s19, %s1789_s19   ;;  %s1230_s18 = sphi %s1295_s18, %s1788_s18  }
   0x8   : > { %1777 = sst [smem:[#allocation6_spill]] %s1258_s25  ;;  %s27_s28 = sadd.s32 1, %s1254_s24 }
   0x9   : > { %p28_p0 = scmp.ge.s32.totalorder %s27_s28, 2  ;;  %s34_s29 = sadd.s32 1, %s1258_s25 }
   0xa   : > { %s121_s30 = sadd.s32 1, %s1242_s21  ;;  %p128_p1 = scmp.ne.s32.totalorder %s1242_s21, %s1238_s20 }
   0xb   : > { %s1794_s28 = smov (%p28_p0, %s27_s28), 0  ;;  %s1796_s29 = smov (!%p28_p0, %s34_s29), %s1258_s25 }
   0xc   : > { %1778 = sst [smem:[#allocation7_spill]] %s1794_s28  ;;  %s118_s6 = ssub.s32 %s1254_s24, %s1794_s28 }
   0xd   : > { %p129_p2 = scmp.eq.s32.totalorder %s1262_s26, 0  ;;  %p36_p3 = scmp.ge.s32.totalorder %s1796_s29, 2 }
   0xe   : > { %p119_p4 = scmp.eq.s32.totalorder %s118_s6, 0  ;;  %s177_s7 = sadd.s32 1, %s1234_s19 }
   0xf   : > { %p130_p5 = por %p129_p2, %p128_p1  ;;  %s1798_s29 = smov (%p36_p3, %s1796_s29), 0 }
  0x10   : > { %1779 = sst [smem:[#allocation8_spill]] %s1798_s29  ;;  %s170_s9 = ssub.s32 %s1258_s25, %s1798_s29 }
  0x11   : > { %s1356_s8 = scalar_select %p119_p4, %s1242_s21, %s121_s30  }
  0x12   : > { %p187_p6 = scmp.ne.s32.totalorder %s1234_s19, %s1230_s18  ;;  %s174_s10 = sor.u32 %s170_s9, %s118_s6 }
  0x13   : > { %1780 = sst [smem:[#allocation9_spill]] %s1356_s8  ;;  %p188_p7 = scmp.eq.s32.totalorder %s1061_s27, 3 }
  0x14   : > { %p175_p8 = scmp.eq.s32.totalorder %s174_s10, 0  ;;  %p1064_p10 = scmp.ge.s32.totalorder %s1262_s26, 4 }
  0x15   : > { %p1362_p9 = por %p188_p7, %p187_p6 }
  0x16   : > { %s1367_s12 = scalar_select %p175_p8, %s1234_s19, %s177_s7  }
  0x17   : > { %210 = sbr.rel (%p1064_p10) target bundleno = 133 (0x85), region = 16 }
  0x1c   : > { %241 = sbr.rel (!%p130_p5) target bundleno = 133 (0x85), region = 32  ;;  %s243_s13 = sand.u32 (%p130_p5), 1, %s1242_s21  }
  0x1d   : > { %s1075_s14 = smul.u32 (%p130_p5), 24, %s1254_s24  ;;  %s1782_s3 = sld [smem:[#allocation10_spill]] (%p130_p5) }
  0x1e   : > { %s1109_s15 = smul.u32 (%p130_p5), 768, %s243_s13 }
  0x20   : > { %s1380_s30 = scalar_lea.vmem (%p130_p5), [#allocation3], %s1109_s15 }
  0x23   : > { %s1375_s27 = scalar_lea.vmem %s1782_s3, %s1075_s14 }
  0x24   : > { %v261_v0 = vld [vmem:[%s1375_s27] sm:$0xff]  ;;  %v263_v1 = vld [vmem:[%s1375_s27 + $0x8] sm:$0xff]  ;;  %v265_v2 = vld [vmem:[%s1375_s27 + $0x10] sm:$0xff] }
  0x25   : > { %262 = vst [vmem:[%s1380_s30] sm:$0xff] %v261_v0  ;;  %v267_v3 = vld [vmem:[%s1375_s27 + $0x30] sm:$0xff]  ;;  %v269_v4 = vld [vmem:[%s1375_s27 + $0x38] sm:$0xff]  ;;  %v271_v5 = vld [vmem:[%s1375_s27 + $0x40] sm:$0xff] }
  0x26   : > { %264 = vst [vmem:[%s1380_s30 + $0x8] sm:$0xff] %v263_v1  ;;  %v273_v6 = vld [vmem:[%s1375_s27 + $0x60] sm:$0xff]  ;;  %v275_v7 = vld [vmem:[%s1375_s27 + $0x68] sm:$0xff]  ;;  %v277_v8 = vld [vmem:[%s1375_s27 + $0x70] sm:$0xff] }
  0x27   : > { %266 = vst [vmem:[%s1380_s30 + $0x10] sm:$0xff] %v265_v2  ;;  %v279_v9 = vld [vmem:[%s1375_s27 + $0x90] sm:$0xff]  ;;  %v281_v10 = vld [vmem:[%s1375_s27 + $0x98] sm:$0xff]  ;;  %v283_v11 = vld [vmem:[%s1375_s27 + $0xa0] sm:$0xff] }
  0x28   : > { %268 = vst [vmem:[%s1380_s30 + $0x18] sm:$0xff] %v267_v3  ;;  %v285_v12 = vld [vmem:[%s1375_s27 + $0xc0] sm:$0xff]  ;;  %v287_v13 = vld [vmem:[%s1375_s27 + $0xc8] sm:$0xff]  ;;  %v289_v14 = vld [vmem:[%s1375_s27 + $0xd0] sm:$0xff] }
  0x29   : > { %270 = vst [vmem:[%s1380_s30 + $0x20] sm:$0xff] %v269_v4  ;;  %v291_v15 = vld [vmem:[%s1375_s27 + $0xf0] sm:$0xff]  ;;  %v293_v16 = vld [vmem:[%s1375_s27 + $0xf8] sm:$0xff]  ;;  %v295_v17 = vld [vmem:[%s1375_s27 + $0x100] sm:$0xff] }
  0x2a   : > { %272 = vst [vmem:[%s1380_s30 + $0x28] sm:$0xff] %v271_v5  ;;  %v297_v18 = vld [vmem:[%s1375_s27 + $0x120] sm:$0xff]  ;;  %v299_v19 = vld [vmem:[%s1375_s27 + $0x128] sm:$0xff]  ;;  %v301_v20 = vld [vmem:[%s1375_s27 + $0x130] sm:$0xff] }
  0x2b   : > { %274 = vst [vmem:[%s1380_s30 + $0x30] sm:$0xff] %v273_v6  ;;  %v303_v21 = vld [vmem:[%s1375_s27 + $0x150] sm:$0xff]  ;;  %v305_v22 = vld [vmem:[%s1375_s27 + $0x158] sm:$0xff]  ;;  %v307_v23 = vld [vmem:[%s1375_s27 + $0x160] sm:$0xff] }
  0x2c   : > { %276 = vst [vmem:[%s1380_s30 + $0x38] sm:$0xff] %v275_v7  ;;  %v309_v24 = vld [vmem:[%s1375_s27 + $0x180] sm:$0xff]  ;;  %v311_v25 = vld [vmem:[%s1375_s27 + $0x188] sm:$0xff]  ;;  %v313_v26 = vld [vmem:[%s1375_s27 + $0x190] sm:$0xff] }
  0x2d   : > { %278 = vst [vmem:[%s1380_s30 + $0x40] sm:$0xff] %v277_v8  ;;  %v315_v27 = vld [vmem:[%s1375_s27 + $0x1b0] sm:$0xff]  ;;  %v317_v28 = vld [vmem:[%s1375_s27 + $0x1b8] sm:$0xff]  ;;  %v319_v29 = vld [vmem:[%s1375_s27 + $0x1c0] sm:$0xff] }
  0x2e   : > { %280 = vst [vmem:[%s1380_s30 + $0x48] sm:$0xff] %v279_v9  ;;  %v321_v30 = vld [vmem:[%s1375_s27 + $0x1e0] sm:$0xff]  ;;  %v323_v31 = vld [vmem:[%s1375_s27 + $0x1e8] sm:$0xff]  ;;  %v325_v32 = vld [vmem:[%s1375_s27 + $0x1f0] sm:$0xff] }
  0x2f   : > { %282 = vst [vmem:[%s1380_s30 + $0x50] sm:$0xff] %v281_v10  ;;  %v327_v33 = vld [vmem:[%s1375_s27 + $0x210] sm:$0xff]  ;;  %v329_v34 = vld [vmem:[%s1375_s27 + $0x218] sm:$0xff]  ;;  %v331_v35 = vld [vmem:[%s1375_s27 + $0x220] sm:$0xff] }
  0x30   : > { %284 = vst [vmem:[%s1380_s30 + $0x58] sm:$0xff] %v283_v11  ;;  %v333_v36 = vld [vmem:[%s1375_s27 + $0x240] sm:$0xff]  ;;  %v335_v37 = vld [vmem:[%s1375_s27 + $0x248] sm:$0xff]  ;;  %v337_v38 = vld [vmem:[%s1375_s27 + $0x250] sm:$0xff] }
  0x31   : > { %286 = vst [vmem:[%s1380_s30 + $0x60] sm:$0xff] %v285_v12  ;;  %v339_v39 = vld [vmem:[%s1375_s27 + $0x270] sm:$0xff]  ;;  %v341_v40 = vld [vmem:[%s1375_s27 + $0x278] sm:$0xff]  ;;  %v343_v41 = vld [vmem:[%s1375_s27 + $0x280] sm:$0xff] }
  0x32   : > { %288 = vst [vmem:[%s1380_s30 + $0x68] sm:$0xff] %v287_v13  ;;  %v345_v42 = vld [vmem:[%s1375_s27 + $0x2a0] sm:$0xff]  ;;  %v347_v43 = vld [vmem:[%s1375_s27 + $0x2a8] sm:$0xff]  ;;  %v349_v44 = vld [vmem:[%s1375_s27 + $0x2b0] sm:$0xff] }
  0x33   : > { %290 = vst [vmem:[%s1380_s30 + $0x70] sm:$0xff] %v289_v14  ;;  %v351_v45 = vld [vmem:[%s1375_s27 + $0x2d0] sm:$0xff]  ;;  %v353_v46 = vld [vmem:[%s1375_s27 + $0x2d8] sm:$0xff]  ;;  %v355_v47 = vld [vmem:[%s1375_s27 + $0x2e0] sm:$0xff] }
  0x34   : > { %292 = vst [vmem:[%s1380_s30 + $0x78] sm:$0xff] %v291_v15  ;;  %v357_v48 = vld [vmem:[%s1375_s27 + $0x300] sm:$0xff]  ;;  %v359_v49 = vld [vmem:[%s1375_s27 + $0x308] sm:$0xff]  ;;  %v361_v50 = vld [vmem:[%s1375_s27 + $0x310] sm:$0xff] }
  0x35   : > { %294 = vst [vmem:[%s1380_s30 + $0x80] sm:$0xff] %v293_v16  ;;  %v363_v51 = vld [vmem:[%s1375_s27 + $0x330] sm:$0xff]  ;;  %v365_v52 = vld [vmem:[%s1375_s27 + $0x338] sm:$0xff]  ;;  %v367_v53 = vld [vmem:[%s1375_s27 + $0x340] sm:$0xff] }
  0x36   : > { %296 = vst [vmem:[%s1380_s30 + $0x88] sm:$0xff] %v295_v17  ;;  %v369_v54 = vld [vmem:[%s1375_s27 + $0x360] sm:$0xff]  ;;  %v371_v55 = vld [vmem:[%s1375_s27 + $0x368] sm:$0xff]  ;;  %v373_v56 = vld [vmem:[%s1375_s27 + $0x370] sm:$0xff] }
  0x37   : > { %298 = vst [vmem:[%s1380_s30 + $0x90] sm:$0xff] %v297_v18  ;;  %v375_v57 = vld [vmem:[%s1375_s27 + $0x390] sm:$0xff]  ;;  %v377_v58 = vld [vmem:[%s1375_s27 + $0x398] sm:$0xff]  ;;  %v379_v59 = vld [vmem:[%s1375_s27 + $0x3a0] sm:$0xff] }
  0x38   : > { %300 = vst [vmem:[%s1380_s30 + $0x98] sm:$0xff] %v299_v19  ;;  %v381_v60 = vld [vmem:[%s1375_s27 + $0x3c0] sm:$0xff]  ;;  %v383_v61 = vld [vmem:[%s1375_s27 + $0x3c8] sm:$0xff]  ;;  %v385_v62 = vld [vmem:[%s1375_s27 + $0x3d0] sm:$0xff] }
  0x39   : > { %302 = vst [vmem:[%s1380_s30 + $0xa0] sm:$0xff] %v301_v20  ;;  %v387_v63 = vld [vmem:[%s1375_s27 + $0x3f0] sm:$0xff]  ;;  %v389_v0 = vld [vmem:[%s1375_s27 + $0x3f8] sm:$0xff]  ;;  %v391_v1 = vld [vmem:[%s1375_s27 + $0x400] sm:$0xff] }
  0x3a   : > { %304 = vst [vmem:[%s1380_s30 + $0xa8] sm:$0xff] %v303_v21  ;;  %v393_v2 = vld [vmem:[%s1375_s27 + $0x420] sm:$0xff]  ;;  %v395_v3 = vld [vmem:[%s1375_s27 + $0x428] sm:$0xff]  ;;  %v397_v4 = vld [vmem:[%s1375_s27 + $0x430] sm:$0xff] }
  0x3b   : > { %306 = vst [vmem:[%s1380_s30 + $0xb0] sm:$0xff] %v305_v22  ;;  %v399_v5 = vld [vmem:[%s1375_s27 + $0x450] sm:$0xff]  ;;  %v401_v6 = vld [vmem:[%s1375_s27 + $0x458] sm:$0xff]  ;;  %v403_v7 = vld [vmem:[%s1375_s27 + $0x460] sm:$0xff] }
  0x3c   : > { %308 = vst [vmem:[%s1380_s30 + $0xb8] sm:$0xff] %v307_v23  ;;  %v405_v8 = vld [vmem:[%s1375_s27 + $0x480] sm:$0xff]  ;;  %v407_v9 = vld [vmem:[%s1375_s27 + $0x488] sm:$0xff]  ;;  %v409_v10 = vld [vmem:[%s1375_s27 + $0x490] sm:$0xff] }
  0x3d   : > { %310 = vst [vmem:[%s1380_s30 + $0xc0] sm:$0xff] %v309_v24  ;;  %v411_v11 = vld [vmem:[%s1375_s27 + $0x4b0] sm:$0xff]  ;;  %v413_v12 = vld [vmem:[%s1375_s27 + $0x4b8] sm:$0xff]  ;;  %v415_v13 = vld [vmem:[%s1375_s27 + $0x4c0] sm:$0xff] }
  0x3e   : > { %312 = vst [vmem:[%s1380_s30 + $0xc8] sm:$0xff] %v311_v25  ;;  %v417_v14 = vld [vmem:[%s1375_s27 + $0x4e0] sm:$0xff]  ;;  %v419_v15 = vld [vmem:[%s1375_s27 + $0x4e8] sm:$0xff]  ;;  %v421_v16 = vld [vmem:[%s1375_s27 + $0x4f0] sm:$0xff] }
  0x3f   : > { %314 = vst [vmem:[%s1380_s30 + $0xd0] sm:$0xff] %v313_v26  ;;  %v423_v17 = vld [vmem:[%s1375_s27 + $0x510] sm:$0xff]  ;;  %v425_v18 = vld [vmem:[%s1375_s27 + $0x518] sm:$0xff]  ;;  %v427_v19 = vld [vmem:[%s1375_s27 + $0x520] sm:$0xff] }
  0x40   : > { %316 = vst [vmem:[%s1380_s30 + $0xd8] sm:$0xff] %v315_v27  ;;  %v429_v20 = vld [vmem:[%s1375_s27 + $0x540] sm:$0xff]  ;;  %v431_v21 = vld [vmem:[%s1375_s27 + $0x548] sm:$0xff]  ;;  %v433_v22 = vld [vmem:[%s1375_s27 + $0x550] sm:$0xff] }
  0x41   : > { %318 = vst [vmem:[%s1380_s30 + $0xe0] sm:$0xff] %v317_v28  ;;  %v435_v23 = vld [vmem:[%s1375_s27 + $0x570] sm:$0xff]  ;;  %v437_v24 = vld [vmem:[%s1375_s27 + $0x578] sm:$0xff]  ;;  %v439_v25 = vld [vmem:[%s1375_s27 + $0x580] sm:$0xff] }
  0x42   : > { %320 = vst [vmem:[%s1380_s30 + $0xe8] sm:$0xff] %v319_v29  ;;  %v441_v26 = vld [vmem:[%s1375_s27 + $0x5a0] sm:$0xff]  ;;  %v443_v27 = vld [vmem:[%s1375_s27 + $0x5a8] sm:$0xff]  ;;  %v445_v28 = vld [vmem:[%s1375_s27 + $0x5b0] sm:$0xff] }
  0x43   : > { %322 = vst [vmem:[%s1380_s30 + $0xf0] sm:$0xff] %v321_v30  ;;  %v447_v29 = vld [vmem:[%s1375_s27 + $0x5d0] sm:$0xff]  ;;  %v449_v30 = vld [vmem:[%s1375_s27 + $0x5d8] sm:$0xff] }
  0x44   : > { %324 = vst [vmem:[%s1380_s30 + $0xf8] sm:$0xff] %v323_v31  ;;  %v451_v31 = vld [vmem:[%s1375_s27 + $0x5e0] sm:$0xff] }
  0x45   : > { %326 = vst [vmem:[%s1380_s30 + $0x100] sm:$0xff] %v325_v32 }
  0x46   : > { %328 = vst [vmem:[%s1380_s30 + $0x108] sm:$0xff] %v327_v33 }
  0x47   : > { %330 = vst [vmem:[%s1380_s30 + $0x110] sm:$0xff] %v329_v34 }
  0x48   : > { %332 = vst [vmem:[%s1380_s30 + $0x118] sm:$0xff] %v331_v35 }
  0x49   : > { %334 = vst [vmem:[%s1380_s30 + $0x120] sm:$0xff] %v333_v36 }
  0x4a   : > { %336 = vst [vmem:[%s1380_s30 + $0x128] sm:$0xff] %v335_v37 }
  0x4b   : > { %338 = vst [vmem:[%s1380_s30 + $0x130] sm:$0xff] %v337_v38 }
  0x4c   : > { %340 = vst [vmem:[%s1380_s30 + $0x138] sm:$0xff] %v339_v39 }
  0x4d   : > { %342 = vst [vmem:[%s1380_s30 + $0x140] sm:$0xff] %v341_v40 }
  0x4e   : > { %344 = vst [vmem:[%s1380_s30 + $0x148] sm:$0xff] %v343_v41 }
  0x4f   : > { %346 = vst [vmem:[%s1380_s30 + $0x150] sm:$0xff] %v345_v42 }
  0x50   : > { %348 = vst [vmem:[%s1380_s30 + $0x158] sm:$0xff] %v347_v43 }
  0x51   : > { %350 = vst [vmem:[%s1380_s30 + $0x160] sm:$0xff] %v349_v44 }
  0x52   : > { %352 = vst [vmem:[%s1380_s30 + $0x168] sm:$0xff] %v351_v45 }
  0x53   : > { %354 = vst [vmem:[%s1380_s30 + $0x170] sm:$0xff] %v353_v46 }
  0x54   : > { %356 = vst [vmem:[%s1380_s30 + $0x178] sm:$0xff] %v355_v47 }
  0x55   : > { %358 = vst [vmem:[%s1380_s30 + $0x180] sm:$0xff] %v357_v48 }
  0x56   : > { %360 = vst [vmem:[%s1380_s30 + $0x188] sm:$0xff] %v359_v49 }
  0x57   : > { %362 = vst [vmem:[%s1380_s30 + $0x190] sm:$0xff] %v361_v50 }
  0x58   : > { %364 = vst [vmem:[%s1380_s30 + $0x198] sm:$0xff] %v363_v51 }
  0x59   : > { %366 = vst [vmem:[%s1380_s30 + $0x1a0] sm:$0xff] %v365_v52 }
  0x5a   : > { %368 = vst [vmem:[%s1380_s30 + $0x1a8] sm:$0xff] %v367_v53 }
  0x5b   : > { %370 = vst [vmem:[%s1380_s30 + $0x1b0] sm:$0xff] %v369_v54 }
  0x5c   : > { %372 = vst [vmem:[%s1380_s30 + $0x1b8] sm:$0xff] %v371_v55 }
  0x5d   : > { %374 = vst [vmem:[%s1380_s30 + $0x1c0] sm:$0xff] %v373_v56 }
  0x5e   : > { %376 = vst [vmem:[%s1380_s30 + $0x1c8] sm:$0xff] %v375_v57 }
  0x5f   : > { %378 = vst [vmem:[%s1380_s30 + $0x1d0] sm:$0xff] %v377_v58 }
  0x60   : > { %380 = vst [vmem:[%s1380_s30 + $0x1d8] sm:$0xff] %v379_v59 }
  0x61   : > { %382 = vst [vmem:[%s1380_s30 + $0x1e0] sm:$0xff] %v381_v60 }
  0x62   : > { %384 = vst [vmem:[%s1380_s30 + $0x1e8] sm:$0xff] %v383_v61 }
  0x63   : > { %386 = vst [vmem:[%s1380_s30 + $0x1f0] sm:$0xff] %v385_v62 }
  0x64   : > { %388 = vst [vmem:[%s1380_s30 + $0x1f8] sm:$0xff] %v387_v63 }
  0x65   : > { %390 = vst [vmem:[%s1380_s30 + $0x200] sm:$0xff] %v389_v0 }
  0x66   : > { %392 = vst [vmem:[%s1380_s30 + $0x208] sm:$0xff] %v391_v1 }
  0x67   : > { %394 = vst [vmem:[%s1380_s30 + $0x210] sm:$0xff] %v393_v2 }
  0x68   : > { %396 = vst [vmem:[%s1380_s30 + $0x218] sm:$0xff] %v395_v3 }
  0x69   : > { %398 = vst [vmem:[%s1380_s30 + $0x220] sm:$0xff] %v397_v4 }
  0x6a   : > { %400 = vst [vmem:[%s1380_s30 + $0x228] sm:$0xff] %v399_v5 }
  0x6b   : > { %402 = vst [vmem:[%s1380_s30 + $0x230] sm:$0xff] %v401_v6 }
  0x6c   : > { %404 = vst [vmem:[%s1380_s30 + $0x238] sm:$0xff] %v403_v7 }
  0x6d   : > { %406 = vst [vmem:[%s1380_s30 + $0x240] sm:$0xff] %v405_v8 }
  0x6e   : > { %408 = vst [vmem:[%s1380_s30 + $0x248] sm:$0xff] %v407_v9 }
  0x6f   : > { %410 = vst [vmem:[%s1380_s30 + $0x250] sm:$0xff] %v409_v10 }
  0x70   : > { %412 = vst [vmem:[%s1380_s30 + $0x258] sm:$0xff] %v411_v11 }
  0x71   : > { %414 = vst [vmem:[%s1380_s30 + $0x260] sm:$0xff] %v413_v12 }
  0x72   : > { %416 = vst [vmem:[%s1380_s30 + $0x268] sm:$0xff] %v415_v13 }
  0x73   : > { %418 = vst [vmem:[%s1380_s30 + $0x270] sm:$0xff] %v417_v14 }
  0x74   : > { %420 = vst [vmem:[%s1380_s30 + $0x278] sm:$0xff] %v419_v15 }
  0x75   : > { %422 = vst [vmem:[%s1380_s30 + $0x280] sm:$0xff] %v421_v16 }
  0x76   : > { %424 = vst [vmem:[%s1380_s30 + $0x288] sm:$0xff] %v423_v17 }
  0x77   : > { %426 = vst [vmem:[%s1380_s30 + $0x290] sm:$0xff] %v425_v18 }
  0x78   : > { %428 = vst [vmem:[%s1380_s30 + $0x298] sm:$0xff] %v427_v19 }
  0x79   : > { %430 = vst [vmem:[%s1380_s30 + $0x2a0] sm:$0xff] %v429_v20 }
  0x7a   : > { %432 = vst [vmem:[%s1380_s30 + $0x2a8] sm:$0xff] %v431_v21 }
  0x7b   : > { %434 = vst [vmem:[%s1380_s30 + $0x2b0] sm:$0xff] %v433_v22 }
  0x7c   : > { %436 = vst [vmem:[%s1380_s30 + $0x2b8] sm:$0xff] %v435_v23 }
  0x7d   : > { %438 = vst [vmem:[%s1380_s30 + $0x2c0] sm:$0xff] %v437_v24 }
  0x7e   : > { %440 = vst [vmem:[%s1380_s30 + $0x2c8] sm:$0xff] %v439_v25 }
  0x7f   : > { %442 = vst [vmem:[%s1380_s30 + $0x2d0] sm:$0xff] %v441_v26 }
  0x80   : > { %444 = vst [vmem:[%s1380_s30 + $0x2d8] sm:$0xff] %v443_v27 }
  0x81   : > { %446 = vst [vmem:[%s1380_s30 + $0x2e0] sm:$0xff] %v445_v28 }
  0x82   : > { %448 = vst [vmem:[%s1380_s30 + $0x2e8] sm:$0xff] %v447_v29 }
  0x83   : > { %450 = vst [vmem:[%s1380_s30 + $0x2f0] sm:$0xff] %v449_v30 }
  0x84   : > { %452 = vst [vmem:[%s1380_s30 + $0x2f8] sm:$0xff] %v451_v31 }
  0x85 PF: > { %p1066_p11 = scmp.ge.s32.totalorder %s1262_s26, 1  ;;  %p465_p12 = scmp.lt.s32.totalorder %s1262_s26, 5 }
  0x87   : > { %p466_p13 = pnand %p1066_p11, %p465_p12 }
  0x88   : > { %s472_s6 = sand.u32 (!%p466_p13), 1, %s1238_s20   ;;  %s517_s7 = sand.u32 (!%p466_p13), 1, %s1230_s18  }
  0x89   : > { %469 = sbr.rel (%p466_p13) target bundleno = 646 (0x286), region = 59  ;;  %p521_p0 = scmp.lt.s32.totalorder (!%p466_p13), %s1250_s23, 1 }
  0x8a   : > { %s1110_s9 = smul.u32 (!%p466_p13), 768, %s472_s6  ;;  %p1071_p2 = scmp.ne.s32.totalorder (!%p466_p13), %s1246_s22, 0 }
  0x8b   : > { %s1111_s10 = smul.u32 (!%p466_p13), 48, %s517_s7 }
  0x8c   : > { %s1577_s13 = smul.u32 (!%p466_p13), 3, %s1246_s22  ;;  %s1601_s8 = scalar_lea.vmem (!%p466_p13), [#allocation3], %s1110_s9 }
  0x8e   : > { %s522_s14 = scalar_select %p521_p0, %s1250_s23, 1 }
  0x8f   : > { %p541_p1 = scmp.lt.s32.totalorder %s1577_s13, 5 }
  0x90   : > { %s1076_s15 = sshll.u32 %s522_s14, 5  ;;  %s1069_s16 = sshll.u32 %s522_s14, 1 }
  0x91   : > { %s529_s30 = scalar_lea.vmem %s1765_s0, %s1076_s15  ;;  %s1587_s20 = scalar_lea.vmem %s1766_s1, %s1069_s16 }
  0x92   : > { %s1592_s7 = scalar_lea.vmem %s1767_s2, %s1069_s16  ;;  %s1603_s15 = scalar_lea.vmem [#allocation4], %s1111_s10 }
  0x93   : > { %s1595_s28 = scalar_select %p541_p1, %s1577_s13, 5 }
  0x94   : > { %550 = sbr.rel (%p1071_p2) target bundleno = 434 (0x1b2), region = 67 }
  0x95   : > { %s543_s14 = scalar_lea.vmem %s1769_s4, %s1595_s28 }
  0x99   : > { %v551_v32 = vld [vmem:[%s529_s30] sm:$0xff]  ;;  %v552_v33 = vld [vmem:[%s529_s30 + $0x8] sm:$0xff]  ;;  %v553_v35 = vld [vmem:[%s529_s30 + $0x10] sm:$0xff]  ;;  %v1264_v38 = vmov 256.0  }
  0x9a   : > { %v555_v34 = vadd.f32 %v552_v33, %v551_v32  ;;  %v554_v36 = vld [vmem:[%s529_s30 + $0x18] sm:$0xff]  ;;  %1186 = vrcp.f32 %v1264_v38  ;;  %v612_v3 = vld [vmem:[%s1587_s20] sm:$0x3] }
  0x9b   : > { %v558_v37 = vadd.f32 %v554_v36, %v553_v35  ;;  %v613_v6 = vadd.f32 1.0, %v612_v3  ;;  %v623_v9 = vld [vmem:[%s1592_s7] sm:$0x3] }
  0x9c   : > { %556 = vadd.xlane.f32.xlu0 %v555_v34  ;;  %v625_v16 = vperm.slane %v623_v9, 0  ;;  %v626_v17 = vperm.slane %v623_v9, 1 }
  0x9d   : > { %v615_v12 = vperm.slane %v613_v6, 0  ;;  %v616_v13 = vperm.slane %v613_v6, 1 }
  0xa0   : > { %v1187_v39 = vpop.eup %1186 }
  0xa1   : > { %v562_v40 = vmul.f32 256.0, %v1187_v39  ;;  %vm566_vm0 = vweird.f32 %v1187_v39 }
  0xa3   : > { %v563_v41 = vsub.f32 1.0, %v562_v40 }
  0xa4   : > { %559 = vadd.xlane.f32.xlu0 %v558_v37 }
  0xa5   : > { %v564_v42 = vmul.f32 %v1187_v39, %v563_v41 }
  0xa7   : > { %v565_v43 = vadd.f32 %v1187_v39, %v564_v42 }
  0xa9   : > { %v567_v44 = vsel %vm566_vm0, %v1187_v39, %v565_v43 }
 0x10f   : > { %v557_v45 = vpop.xlane.xlu0 %556 }
 0x110   : > { %v568_v46 = vmul.f32 %v567_v44, %v557_v45 }
 0x112   : > { %v570_v47 = vsub.f32 %v551_v32, %v568_v46  ;;  %v571_v48 = vsub.f32 %v552_v33, %v568_v46 }
 0x114   : > { %v574_v49 = vmul.f32 %v570_v47, %v570_v47  ;;  %v575_v50 = vmul.f32 %v571_v48, %v571_v48 }
 0x116   : > { %v578_v51 = vadd.f32 %v575_v50, %v574_v49 }
 0x117   : > { %v560_v52 = vpop.xlane.xlu0 %559 }
 0x118   : > { %v569_v53 = vmul.f32 %v567_v44, %v560_v52  ;;  %579 = vadd.xlane.f32.xlu1 %v578_v51 }
 0x11a   : > { %v572_v54 = vsub.f32 %v553_v35, %v569_v53  ;;  %v573_v55 = vsub.f32 %v554_v36, %v569_v53 }
 0x11c   : > { %v576_v56 = vmul.f32 %v572_v54, %v572_v54  ;;  %v577_v57 = vmul.f32 %v573_v55, %v573_v55 }
 0x11e   : > { %v581_v58 = vadd.f32 %v577_v57, %v576_v56 }
 0x120   : > { %582 = vadd.xlane.f32.xlu1 %v581_v58 }
 0x18b   : > { %v580_v59 = vpop.xlane.xlu1 %579 }
 0x18c   : > { %v584_v60 = vmul.f32 %v580_v59, %v567_v44 }
 0x18e   : > { %v586_v61 = vadd.f32 1e-06, %v584_v60 }
 0x190   : > { %1188 = vrsqrt.f32 %v586_v61  ;;  %vm594_vm2 = vweird.f32 %v586_v61 }
 0x193   : > { %v583_v62 = vpop.xlane.xlu1 %582 }
 0x194   : > { %v585_v63 = vmul.f32 %v583_v62, %v567_v44 }
 0x196   : > { %v1189_v0 = vpop.eup %1188  ;;  %v587_v1 = vadd.f32 1e-06, %v585_v63 }
 0x197   : > { %v589_v2 = vmul.f32 %v1189_v0, %v586_v61  ;;  %vm595_vm1 = vweird.f32 %v1189_v0 }
 0x198   : > { %1190 = vrsqrt.f32 %v587_v1  ;;  %vm596_vm3 = vmor %vm594_vm2, %vm595_vm1  ;;  %vm604_vm5 = vweird.f32 %v587_v1 }
 0x199   : > { %v590_v4 = vmul.f32 %v1189_v0, %v589_v2 }
 0x19b   : > { %v591_v5 = vmul.f32 0.5, %v590_v4 }
 0x19d   : > { %v592_v7 = vsub.f32 1.5, %v591_v5 }
 0x19e   : > { %v1191_v8 = vpop.eup %1190 }
 0x19f   : > { %v593_v10 = vmul.f32 %v1189_v0, %v592_v7  ;;  %v599_v11 = vmul.f32 %v1191_v8, %v587_v1  ;;  %vm605_vm4 = vweird.f32 %v1191_v8 }
 0x1a0   : > { %vm606_vm6 = vmor %vm604_vm5, %vm605_vm4 }
 0x1a1   : > { %v597_v14 = vsel %vm596_vm3, %v1189_v0, %v593_v10  ;;  %v600_v15 = vmul.f32 %v1191_v8, %v599_v11 }
 0x1a2   : > { %v608_v18 = vmul.f32 %v597_v14, %v570_v47  ;;  %v609_v19 = vmul.f32 %v597_v14, %v571_v48 }
 0x1a3   : > { %v601_v20 = vmul.f32 0.5, %v600_v15 }
 0x1a4   : > { %v619_v21 = vmul.f32 %v615_v12, %v608_v18  ;;  %v620_v22 = vmul.f32 %v616_v13, %v609_v19 }
 0x1a5   : > { %v602_v23 = vsub.f32 1.5, %v601_v20 }
 0x1a6   : > { %v629_v24 = vadd.f32 %v625_v16, %v619_v21  ;;  %v630_v25 = vadd.f32 %v626_v17, %v620_v22 }
 0x1a7   : > { %v603_v26 = vmul.f32 %v1191_v8, %v602_v23 }
 0x1a8   : > { %633 = vst [vmem:[#allocation2 + $0x10] sm:$0xff] %v629_v24 }
 0x1a9   : > { %634 = vst [vmem:[#allocation2] sm:$0xff] %v630_v25  ;;  %v607_v27 = vsel %vm606_vm6, %v1191_v8, %v603_v26 }
 0x1aa   : > { %v610_v28 = vmul.f32 %v607_v27, %v572_v54  ;;  %v611_v29 = vmul.f32 %v607_v27, %v573_v55 }
 0x1ac   : > { %v621_v30 = vmul.f32 %v615_v12, %v610_v28  ;;  %v622_v31 = vmul.f32 %v616_v13, %v611_v29 }
 0x1ae   : > { %v631_v32 = vadd.f32 %v625_v16, %v621_v30  ;;  %v632_v33 = vadd.f32 %v626_v17, %v622_v31 }
 0x1b0   : > { %635 = vst [vmem:[#allocation2 + $0x18] sm:$0xff] %v631_v32 }
 0x1b1   : > { %636 = vst [vmem:[#allocation2 + $0x8] sm:$0xff] %v632_v33 }
 0x1b2 PF: > { %v687_v34 = vld [vmem:[%s1601_s8 + $0x170] sm:$0xff]  ;;  %v684_v35 = vld [vmem:[%s1601_s8 + $0x158] sm:$0xff]  ;;  %v686_v38 = vld [vmem:[%s1601_s8 + $0x168] sm:$0xff]  ;;  %s1112_s24 = smul.u32 (%p1362_p9), 12, %s1250_s23 }
 0x1b3   : > { %v735_v36 = vld [vmem:[%s1601_s8 + $0x2f0] sm:$0xff]  ;;  %791 = vmatpush.msra.mxu2 %v687_v34  ;;  %v732_v37 = vld [vmem:[%s1601_s8 + $0x2d8] sm:$0xff]  ;;  %v681_v39 = vld [vmem:[%s1601_s8 + $0x140] sm:$0xff]  ;;  %745 = vmatpush.msra.mxu0 %v686_v38 }
 0x1b4   : > { %814 = vmatpush.msra.mxu3 %v735_v36  ;;  %v729_v40 = vld [vmem:[%s1601_s8 + $0x2c0] sm:$0xff]  ;;  %v683_v41 = vld [vmem:[%s1601_s8 + $0x150] sm:$0xff]  ;;  %v678_v42 = vld [vmem:[%s1601_s8 + $0x128] sm:$0xff]  ;;  %s901_s25 = sadd.s32 (%p1362_p9), %s1112_s24, %s1577_s13 }
 0x1b5   : > { %792 = vmatpush.msra.mxu2 %v684_v35  ;;  %v734_v43 = vld [vmem:[%s1601_s8 + $0x2e8] sm:$0xff]  ;;  %746 = vmatpush.msra.mxu0 %v683_v41  ;;  %v680_v45 = vld [vmem:[%s1601_s8 + $0x138] sm:$0xff]  ;;  %v731_v46 = vld [vmem:[%s1601_s8 + $0x2d0] sm:$0xff]  ;;  %s1072_s28 = sshll.u32 (%p1362_p9), %s901_s25, 3 }
 0x1b6   : > { %815 = vmatpush.msra.mxu3 %v732_v37  ;;  %768 = vmatpush.msra.mxu1 %v734_v43  ;;  %v726_v44 = vld [vmem:[%s1601_s8 + $0x2a8] sm:$0xff]  ;;  %v677_v47 = vld [vmem:[%s1601_s8 + $0x120] sm:$0xff]  ;;  %v728_v48 = vld [vmem:[%s1601_s8 + $0x2b8] sm:$0xff]  ;;  %s903_s9 = scalar_lea.vmem (%p1362_p9), %s1770_s5, %s1072_s28 }
 0x1b7   : > { %793 = vmatpush.msra.mxu2 %v681_v39  ;;  %v675_v49 = vld [vmem:[%s1601_s8 + $0x110] sm:$0xff]  ;;  %747 = vmatpush.msra.mxu0 %v680_v45  ;;  %v674_v51 = vld [vmem:[%s1601_s8 + $0x108] sm:$0xff]  ;;  %v725_v52 = vld [vmem:[%s1601_s8 + $0x2a0] sm:$0xff] }
 0x1b8   : > { %816 = vmatpush.msra.mxu3 %v729_v40  ;;  %769 = vmatpush.msra.mxu1 %v731_v46  ;;  %v723_v50 = vld [vmem:[%s1601_s8 + $0x290] sm:$0xff]  ;;  %v672_v53 = vld [vmem:[%s1601_s8 + $0xf8] sm:$0xff]  ;;  %v722_v56 = vld [vmem:[%s1601_s8 + $0x288] sm:$0xff] }
 0x1b9   : > { %794 = vmatpush.msra.mxu2 %v678_v42  ;;  %748 = vmatpush.msra.mxu0 %v677_v47  ;;  %v720_v54 = vld [vmem:[%s1601_s8 + $0x278] sm:$0xff]  ;;  %v671_v55 = vld [vmem:[%s1601_s8 + $0xf0] sm:$0xff]  ;;  %v669_v57 = vld [vmem:[%s1601_s8 + $0xe0] sm:$0xff] }
 0x1ba   : > { %817 = vmatpush.msra.mxu3 %v726_v44  ;;  %770 = vmatpush.msra.mxu1 %v728_v48  ;;  %v717_v58 = vld [vmem:[%s1601_s8 + $0x260] sm:$0xff]  ;;  %v668_v59 = vld [vmem:[%s1601_s8 + $0xd8] sm:$0xff]  ;;  %v719_v60 = vld [vmem:[%s1601_s8 + $0x270] sm:$0xff] }
 0x1bb   : > { %795 = vmatpush.msra.mxu2 %v675_v49  ;;  %749 = vmatpush.msra.mxu0 %v674_v51  ;;  %v666_v61 = vld [vmem:[%s1601_s8 + $0xc8] sm:$0xff]  ;;  %v665_v63 = vld [vmem:[%s1601_s8 + $0xc0] sm:$0xff]  ;;  %v716_v0 = vld [vmem:[%s1601_s8 + $0x258] sm:$0xff] }
 0x1bc   : > { %818 = vmatpush.msra.mxu3 %v723_v50  ;;  %771 = vmatpush.msra.mxu1 %v725_v52  ;;  %v714_v62 = vld [vmem:[%s1601_s8 + $0x248] sm:$0xff]  ;;  %v663_v1 = vld [vmem:[%s1601_s8 + $0xb0] sm:$0xff]  ;;  %v713_v4 = vld [vmem:[%s1601_s8 + $0x240] sm:$0xff] }
 0x1bd   : > { %796 = vmatpush.msra.mxu2 %v672_v53  ;;  %750 = vmatpush.msra.mxu0 %v671_v55  ;;  %v711_v2 = vld [vmem:[%s1601_s8 + $0x230] sm:$0xff]  ;;  %v662_v3 = vld [vmem:[%s1601_s8 + $0xa8] sm:$0xff]  ;;  %v660_v5 = vld [vmem:[%s1601_s8 + $0x98] sm:$0xff] }
 0x1be   : > { %819 = vmatpush.msra.mxu3 %v720_v54  ;;  %772 = vmatpush.msra.mxu1 %v722_v56  ;;  %v708_v6 = vld [vmem:[%s1601_s8 + $0x218] sm:$0xff]  ;;  %v659_v7 = vld [vmem:[%s1601_s8 + $0x90] sm:$0xff]  ;;  %v710_v8 = vld [vmem:[%s1601_s8 + $0x228] sm:$0xff] }
 0x1bf   : > { %797 = vmatpush.msra.mxu2 %v669_v57  ;;  %751 = vmatpush.msra.mxu0 %v668_v59  ;;  %v657_v9 = vld [vmem:[%s1601_s8 + $0x80] sm:$0xff]  ;;  %v656_v11 = vld [vmem:[%s1601_s8 + $0x78] sm:$0xff]  ;;  %v707_v12 = vld [vmem:[%s1601_s8 + $0x210] sm:$0xff] }
 0x1c0   : > { %820 = vmatpush.msra.mxu3 %v717_v58  ;;  %773 = vmatpush.msra.mxu1 %v719_v60  ;;  %v705_v10 = vld [vmem:[%s1601_s8 + $0x200] sm:$0xff]  ;;  %v654_v13 = vld [vmem:[%s1601_s8 + $0x68] sm:$0xff]  ;;  %v704_v16 = vld [vmem:[%s1601_s8 + $0x1f8] sm:$0xff] }
 0x1c1   : > { %798 = vmatpush.msra.mxu2 %v666_v61  ;;  %752 = vmatpush.msra.mxu0 %v665_v63  ;;  %v702_v14 = vld [vmem:[%s1601_s8 + $0x1e8] sm:$0xff]  ;;  %v653_v15 = vld [vmem:[%s1601_s8 + $0x60] sm:$0xff]  ;;  %v651_v17 = vld [vmem:[%s1601_s8 + $0x50] sm:$0xff] }
 0x1c2   : > { %821 = vmatpush.msra.mxu3 %v714_v62  ;;  %774 = vmatpush.msra.mxu1 %v716_v0  ;;  %v699_v18 = vld [vmem:[%s1601_s8 + $0x1d0] sm:$0xff]  ;;  %v650_v19 = vld [vmem:[%s1601_s8 + $0x48] sm:$0xff]  ;;  %v701_v20 = vld [vmem:[%s1601_s8 + $0x1e0] sm:$0xff] }
 0x1c3   : > { %799 = vmatpush.msra.mxu2 %v663_v1  ;;  %753 = vmatpush.msra.mxu0 %v662_v3  ;;  %v648_v21 = vld [vmem:[%s1601_s8 + $0x38] sm:$0xff]  ;;  %v647_v23 = vld [vmem:[%s1601_s8 + $0x30] sm:$0xff]  ;;  %v698_v24 = vld [vmem:[%s1601_s8 + $0x1c8] sm:$0xff] }
 0x1c4   : > { %822 = vmatpush.msra.mxu3 %v711_v2  ;;  %775 = vmatpush.msra.mxu1 %v713_v4  ;;  %v696_v22 = vld [vmem:[%s1601_s8 + $0x1b8] sm:$0xff]  ;;  %v645_v25 = vld [vmem:[%s1601_s8 + $0x20] sm:$0xff]  ;;  %v695_v28 = vld [vmem:[%s1601_s8 + $0x1b0] sm:$0xff] }
 0x1c5   : > { %800 = vmatpush.msra.mxu2 %v660_v5  ;;  %754 = vmatpush.msra.mxu0 %v659_v7  ;;  %v693_v26 = vld [vmem:[%s1601_s8 + $0x1a0] sm:$0xff]  ;;  %v644_v27 = vld [vmem:[%s1601_s8 + $0x18] sm:$0xff]  ;;  %v642_v29 = vld [vmem:[%s1601_s8 + $0x8] sm:$0xff] }
 0x1c6   : > { %823 = vmatpush.msra.mxu3 %v708_v6  ;;  %776 = vmatpush.msra.mxu1 %v710_v8  ;;  %v690_v30 = vld [vmem:[%s1601_s8 + $0x188] sm:$0xff]  ;;  %v688_v31 = vld [vmem:[%s1601_s8 + $0x178] sm:$0xff]  ;;  %v641_v33 = vld [vmem:[%s1601_s8] sm:$0xff] }
 0x1c7   : > { %801 = vmatpush.msra.mxu2 %v657_v9  ;;  %755 = vmatpush.msra.mxu0 %v656_v11  ;;  %v736_v32 = vld [vmem:[%s1601_s8 + $0x2f8] sm:$0xff]  ;;  %v685_v35 = vld [vmem:[%s1601_s8 + $0x160] sm:$0xff]  ;;  %v682_v38 = vld [vmem:[%s1601_s8 + $0x148] sm:$0xff] }
 0x1c8   : > { %824 = vmatpush.msra.mxu3 %v705_v10  ;;  %777 = vmatpush.msra.mxu1 %v707_v12  ;;  %v692_v34 = vld [vmem:[%s1601_s8 + $0x198] sm:$0xff]  ;;  %v733_v36 = vld [vmem:[%s1601_s8 + $0x2e0] sm:$0xff]  ;;  %v730_v39 = vld [vmem:[%s1601_s8 + $0x2c8] sm:$0xff] }
 0x1c9   : > { %802 = vmatpush.msra.mxu2 %v654_v13  ;;  %756 = vmatpush.msra.mxu0 %v653_v15  ;;  %v689_v37 = vld [vmem:[%s1601_s8 + $0x180] sm:$0xff]  ;;  %v679_v40 = vld [vmem:[%s1601_s8 + $0x130] sm:$0xff]  ;;  %v676_v42 = vld [vmem:[%s1601_s8 + $0x118] sm:$0xff] }
 0x1ca   : > { %825 = vmatpush.msra.mxu3 %v702_v14  ;;  %778 = vmatpush.msra.mxu1 %v704_v16  ;;  %v727_v41 = vld [vmem:[%s1601_s8 + $0x2b0] sm:$0xff]  ;;  %v724_v43 = vld [vmem:[%s1601_s8 + $0x298] sm:$0xff]  ;;  %v673_v44 = vld [vmem:[%s1601_s8 + $0x100] sm:$0xff] }
 0x1cb   : > { %803 = vmatpush.msra.mxu2 %v651_v17  ;;  %757 = vmatpush.msra.mxu0 %v650_v19  ;;  %v721_v45 = vld [vmem:[%s1601_s8 + $0x280] sm:$0xff]  ;;  %v670_v46 = vld [vmem:[%s1601_s8 + $0xe8] sm:$0xff]  ;;  %v1686_v48 = vld [vmem:[#allocation2 + $0x10] sm:$0xff] }
 0x1cc   : > { %826 = vmatpush.msra.mxu3 %v699_v18  ;;  %779 = vmatpush.msra.mxu1 %v701_v20  ;;  %v718_v47 = vld [vmem:[%s1601_s8 + $0x268] sm:$0xff]  ;;  %v667_v49 = vld [vmem:[%s1601_s8 + $0xd0] sm:$0xff]  ;;  %v664_v51 = vld [vmem:[%s1601_s8 + $0xb8] sm:$0xff] }
 0x1cd   : > { %804 = vmatpush.msra.mxu2 %v648_v21  ;;  %758 = vmatpush.msra.mxu0 %v647_v23  ;;  %v715_v50 = vld [vmem:[%s1601_s8 + $0x250] sm:$0xff]  ;;  %v1692_v52 = vld [vmem:[#allocation2] sm:$0xff]  ;;  %v712_v53 = vld [vmem:[%s1601_s8 + $0x238] sm:$0xff] }
 0x1ce   : > { %827 = vmatpush.msra.mxu3 %v696_v22  ;;  %780 = vmatpush.msra.mxu1 %v698_v24  ;;  %v661_v54 = vld [vmem:[%s1601_s8 + $0xa0] sm:$0xff]  ;;  %v658_v56 = vld [vmem:[%s1601_s8 + $0x88] sm:$0xff]  ;;  %v655_v57 = vld [vmem:[%s1601_s8 + $0x70] sm:$0xff] }
 0x1cf   : > { %805 = vmatpush.msra.mxu2 %v645_v25  ;;  %759 = vmatpush.msra.mxu0 %v644_v27  ;;  %v709_v55 = vld [vmem:[%s1601_s8 + $0x220] sm:$0xff]  ;;  %v706_v58 = vld [vmem:[%s1601_s8 + $0x208] sm:$0xff]  ;;  %v639_v59 = vld [vmem:[#allocation2 + $0x18] sm:$0xff] }
 0x1d0   : > { %828 = vmatpush.msra.mxu3 %v693_v26  ;;  %781 = vmatpush.msra.mxu1 %v695_v28  ;;  %v652_v60 = vld [vmem:[%s1601_s8 + $0x58] sm:$0xff]  ;;  %v703_v61 = vld [vmem:[%s1601_s8 + $0x1f0] sm:$0xff]  ;;  %v640_v62 = vld [vmem:[#allocation2 + $0x8] sm:$0xff] }
 0x1d1   : > { %806 = vmatpush.msra.mxu2 %v642_v29  ;;  %760 = vmatpush.msra.mxu0 %v641_v33  ;;  %v649_v63 = vld [vmem:[%s1601_s8 + $0x40] sm:$0xff]  ;;  %v700_v0 = vld [vmem:[%s1601_s8 + $0x1d8] sm:$0xff]  ;;  %v646_v1 = vld [vmem:[%s1601_s8 + $0x28] sm:$0xff] }
 0x1d2   : > { %829 = vmatpush.msra.mxu3 %v690_v30  ;;  %782 = vmatpush.msra.mxu1 %v692_v34  ;;  %v697_v2 = vld [vmem:[%s1601_s8 + $0x1c0] sm:$0xff]  ;;  %v643_v3 = vld [vmem:[%s1601_s8 + $0x10] sm:$0xff]  ;;  %v694_v4 = vld [vmem:[%s1601_s8 + $0x1a8] sm:$0xff] }
 0x1d3   : > { %1077 = vmatpush.msrb.mxu2 %v688_v31  ;;  %837 = vmatpush.msrb.mxu0 %v688_v31  ;;  %v691_v5 = vld [vmem:[%s1601_s8 + $0x190] sm:$0xff]  ;;  %v737_v6 = vld [vmem:[%s543_s14] sm:$0x7] }
 0x1d4   : > { %1093 = vmatpush.msrb.mxu3 %v736_v32  ;;  %783 = vmatpush.msra.mxu1 %v689_v37  ;;  %v740_v7 = vperm.slane %v737_v6, 1  ;;  %v739_v8 = vperm.slane %v737_v6, 0  ;;  %v741_v25 = vperm.slane %v737_v6, 2 }
 0x1d5   : > { %1078 = vmatpush.msrb.mxu2 %v685_v35  ;;  %838 = vmatpush.msrb.mxu0 %v685_v35 }
 0x1d6   : > { %1094 = vmatpush.msrb.mxu3 %v733_v36  ;;  %860 = vmatpush.msrb.mxu1 %v736_v32 }
 0x1d7   : > { %1079 = vmatpush.msrb.mxu2 %v682_v38  ;;  %839 = vmatpush.msrb.mxu0 %v682_v38 }
 0x1d8   : > { %1095 = vmatpush.msrb.mxu3 %v730_v39  ;;  %861 = vmatpush.msrb.mxu1 %v733_v36 }
 0x1d9   : > { %1080 = vmatpush.msrb.mxu2 %v679_v40  ;;  %840 = vmatpush.msrb.mxu0 %v679_v40 }
 0x1da   : > { %1096 = vmatpush.msrb.mxu3 %v727_v41  ;;  %862 = vmatpush.msrb.mxu1 %v730_v39 }
 0x1db   : > { %1081 = vmatpush.msrb.mxu2 %v676_v42  ;;  %841 = vmatpush.msrb.mxu0 %v676_v42 }
 0x1dc   : > { %1097 = vmatpush.msrb.mxu3 %v724_v43  ;;  %863 = vmatpush.msrb.mxu1 %v727_v41 }
 0x1dd   : > { %1082 = vmatpush.msrb.mxu2 %v673_v44  ;;  %842 = vmatpush.msrb.mxu0 %v673_v44 }
 0x1de   : > { %1098 = vmatpush.msrb.mxu3 %v721_v45  ;;  %807 = vmatmul.f32.vlgmr.msra.gmra.mxu2 %v1686_v48 }
 0x1df   : > { %1083 = vmatpush.msrb.mxu2 %v670_v46  ;;  %864 = vmatpush.msrb.mxu1 %v724_v43 }
 0x1e0   : > { %1099 = vmatpush.msrb.mxu3 %v718_v47  ;;  %843 = vmatpush.msrb.mxu0 %v670_v46 }
 0x1e1   : > { %1084 = vmatpush.msrb.mxu2 %v667_v49  ;;  %830 = vmatmul.f32.vlgmr.msra.gmra.mxu3 %v1692_v52 }
 0x1e2   : > { %1100 = vmatpush.msrb.mxu3 %v715_v50  ;;  %865 = vmatpush.msrb.mxu1 %v721_v45 }
 0x1e3   : > { %1085 = vmatpush.msrb.mxu2 %v664_v51  ;;  %844 = vmatpush.msrb.mxu0 %v667_v49 }
 0x1e4   : > { %1101 = vmatpush.msrb.mxu3 %v712_v53  ;;  %866 = vmatpush.msrb.mxu1 %v718_v47 }
 0x1e5   : > { %1086 = vmatpush.msrb.mxu2 %v661_v54  ;;  %761 = vmatmul.f32.vlgmr.msra.gmra.mxu0 %v1686_v48 }
 0x1e6   : > { %1102 = vmatpush.msrb.mxu3 %v709_v55  ;;  %845 = vmatpush.msrb.mxu0 %v664_v51 }
 0x1e7   : > { %1087 = vmatpush.msrb.mxu2 %v658_v56  ;;  %867 = vmatpush.msrb.mxu1 %v715_v50 }
 0x1e8   : > { %1103 = vmatpush.msrb.mxu3 %v706_v58  ;;  %784 = vmatmul.f32.vlgmr.msra.gmra.mxu1 %v1692_v52 }
 0x1e9   : > { %1088 = vmatpush.msrb.mxu2 %v655_v57  ;;  %846 = vmatpush.msrb.mxu0 %v661_v54 }
 0x1ea   : > { %810 = vmatmul.f32.gmra.mxu2 %v639_v59  ;;  %868 = vmatpush.msrb.mxu1 %v712_v53 }
 0x1eb   : > { %1089 = vmatpush.msrb.mxu2 %v652_v60  ;;  %1104 = vmatpush.msrb.mxu3 %v703_v61 }
 0x1ec   : > { %833 = vmatmul.f32.gmra.mxu3 %v640_v62  ;;  %847 = vmatpush.msrb.mxu0 %v658_v56 }
 0x1ed   : > { %1090 = vmatpush.msrb.mxu2 %v649_v63  ;;  %869 = vmatpush.msrb.mxu1 %v709_v55 }
 0x1ee   : > { %1105 = vmatpush.msrb.mxu3 %v700_v0  ;;  %848 = vmatpush.msrb.mxu0 %v655_v57 }
 0x1ef   : > { %1091 = vmatpush.msrb.mxu2 %v646_v1  ;;  %870 = vmatpush.msrb.mxu1 %v706_v58 }
 0x1f0   : > { %1106 = vmatpush.msrb.mxu3 %v697_v2  ;;  %764 = vmatmul.f32.gmra.mxu0 %v639_v59 }
 0x1f1   : > { %849 = vmatpush.msrb.mxu0 %v652_v60  ;;  %1092 = vmatpush.msrb.mxu2 %v643_v3 }
 0x1f2   : > { %871 = vmatpush.msrb.mxu1 %v703_v61  ;;  %1107 = vmatpush.msrb.mxu3 %v694_v4 }
 0x1f3   : > { %787 = vmatmul.f32.gmra.mxu1 %v640_v62  ;;  %856 = vmatmul.f32.vlgmr.msrb.gmra.mxu2 %v639_v59 }
 0x1f4   : > { %850 = vmatpush.msrb.mxu0 %v649_v63  ;;  %872 = vmatpush.msrb.mxu1 %v700_v0 }
 0x1f5   : > { %1108 = vmatpush.msrb.mxu3 %v691_v5 }
 0x1f6   : > { %879 = vmatmul.f32.vlgmr.msrb.gmra.mxu3 %v640_v62  ;;  %851 = vmatpush.msrb.mxu0 %v646_v1 }
 0x1f7   : > { %873 = vmatpush.msrb.mxu1 %v697_v2 }
 0x1f8   : > { %852 = vmatpush.msrb.mxu0 %v643_v3 }
 0x1f9   : > { %874 = vmatpush.msrb.mxu1 %v694_v4  ;;  %853 = vmatmul.f32.vlgmr.msrb.gmra.mxu0 %v1686_v48 }
 0x1fb   : > { %875 = vmatpush.msrb.mxu1 %v691_v5 }
 0x1fc   : > { %876 = vmatmul.f32.vlgmr.msrb.gmra.mxu1 %v1692_v52 }
 0x261   : > { %v808_v9 = vpop.f32.mrf.mxu2 }
 0x262   : > { %v762_v10 = vpop.f32.mrf.mxu0  ;;  %v809_v11 = vadd.f32 %v808_v9, %v740_v7 }
 0x263   : > { %v763_v12 = vadd.f32 %v762_v10, %v739_v8 }
 0x264   : > { %v831_v13 = vpop.f32.mrf.mxu3 }
 0x265   : > { %v785_v14 = vpop.f32.mrf.mxu1  ;;  %v832_v15 = vadd.f32 %v831_v13, %v809_v11 }
 0x266   : > { %v786_v16 = vadd.f32 %v785_v14, %v763_v12 }
 0x267   : > { %884 = vst [vmem:[%s1603_s15 + $0x8] sm:$0xff] %v832_v15 }
 0x268   : > { %883 = vst [vmem:[%s1603_s15] sm:$0xff] %v786_v16 }
 0x26d   : > { %v811_v17 = vpop.f32.mrf.mxu2  ;;  %v765_v18 = vpop.f32.mrf.mxu0 }
 0x26e   : > { %v812_v19 = vadd.f32 %v811_v17, %v740_v7  ;;  %v766_v20 = vadd.f32 %v765_v18, %v739_v8  ;;  %v918_v35 = vld [vmem:[%s1603_s15 + $0x8] sm:$0xff] (%p1362_p9) }
 0x26f   : > { %v834_v21 = vpop.f32.mrf.mxu3  ;;  %v916_v34 = vld [vmem:[%s1603_s15] sm:$0xff] (%p1362_p9)  ;;  %919 = vst [vmem:[%s903_s9 + $0x8] sm:$0xff] (%p1362_p9), %v918_v35 }
 0x270   : > { %v788_v22 = vpop.f32.mrf.mxu1  ;;  %v835_v23 = vadd.f32 %v834_v21, %v812_v19  ;;  %917 = vst [vmem:[%s903_s9] sm:$0xff] (%p1362_p9), %v916_v34 }
 0x271   : > { %v789_v24 = vadd.f32 %v788_v22, %v766_v20 }
 0x272   : > { %887 = vst [vmem:[%s1603_s15 + $0x20] sm:$0xff] %v835_v23 }
 0x273   : > { %886 = vst [vmem:[%s1603_s15 + $0x18] sm:$0xff] %v789_v24 }
 0x276   : > { %v854_v26 = vpop.f32.mrf.mxu0  ;;  %v857_v27 = vpop.f32.mrf.mxu2 }
 0x277   : > { %v855_v28 = vadd.f32 %v854_v26, %v741_v25  ;;  %v858_v29 = vadd.f32 %v857_v27, %v741_v25 }
 0x279   : > { %v877_v30 = vpop.f32.mrf.mxu1  ;;  %v880_v31 = vpop.f32.mrf.mxu3  ;;  %895 = sbr.rel (!%p1362_p9) target bundleno = 646 (0x286), region = 71  ;;  %v924_v38 = vld [vmem:[%s1603_s15 + $0x20] sm:$0xff] (%p1362_p9) }
 0x27a   : > { %v878_v32 = vadd.f32 %v877_v30, %v855_v28  ;;  %v881_v33 = vadd.f32 %v880_v31, %v858_v29  ;;  %v922_v37 = vld [vmem:[%s1603_s15 + $0x18] sm:$0xff] (%p1362_p9)  ;;  %925 = vst [vmem:[%s903_s9 + $0x38] sm:$0xff] (%p1362_p9), %v924_v38 }
 0x27b   : > { %923 = vst [vmem:[%s903_s9 + $0x30] sm:$0xff] (%p1362_p9), %v922_v37 }
 0x27c   : > { %885 = vst [vmem:[%s1603_s15 + $0x10] sm:$0xff] %v878_v32 }
 0x27d   : > { %888 = vst [vmem:[%s1603_s15 + $0x28] sm:$0xff] %v881_v33 }
 0x283   : > { %v920_v36 = vld [vmem:[%s1603_s15 + $0x10] sm:$0xff] }
 0x284   : > { %921 = vst [vmem:[%s903_s9 + $0x10] sm:$0xff] %v920_v36  ;;  %v926_v39 = vld [vmem:[%s1603_s15 + $0x28] sm:$0xff] }
 0x285   : > { %927 = vst [vmem:[%s903_s9 + $0x40] sm:$0xff] %v926_v39 }
 0x286 PF: > { %s15_s26 = sadd.s32 1, %s1262_s26   ;;  %s1783_s23 = sld [smem:[#allocation9_spill]] }
 0x287   : > { %p12_p3 = scmp.ge.s32.totalorder %s15_s26, 6   ;;  %s1784_s22 = sld [smem:[#allocation5_spill]] }
 0x288   : > { %s1785_s11 = sld [smem:[#allocation6_spill]]  ;;  %s1788_s18 = smov %s1234_s19 }
 0x289   : > { %s1786_s24 = sld [smem:[#allocation7_spill]]  ;;  %s1789_s19 = smov %s1367_s12 }
 0x28a   : > { %s1787_s25 = sld [smem:[#allocation8_spill]]  ;;  %s1790_s20 = smov %s1242_s21 }
 0x28b   :  { %14 = sbr.rel (!%p12_p3) target bundleno = 7 (0x7), region = 137 }
 0x28c   : > { %s1791_s21 = smov %s1783_s23 }
 0x28e   : > { %s1792_s23 = smov %s1785_s11 }

// kernel: image_stream_block_pallas.8
= control target key start
LH: loop header
LB: loop body
LE: loop exit
PB: predicated region body
PF: predicated region fallthrough
CT: control target
= control target key end

     0   :  { %s1243_s12 = smov 0   ;;  %s1245_s13 = smov 0   ;;  %s1927_s0 = inlined_call_operand.vmem [shape: f32[2,256], index: 0, kind: input, shape index: {}]   ;;  %s1928_s1 = inlined_call_operand.vmem [shape: f32[256,1536], index: 1, kind: input, shape index: {}]   ;;  %s1929_s2 = inlined_call_operand.vmem [shape: f32[1,1536], index: 2, kind: input, shape index: {}]   ;;  %s1930_s3 = inlined_call_operand.vmem [shape: f32[2,1536], index: 3, kind: output, shape index: {}]  }
   0x1   :  { %s1247_s14 = smov 0  }
   0x2 LB: > { %s1159_s15 = sadd.s32 4294967295, %s1221_s14   ;;  %s1260_s16 = sadd.s32 1, %s1221_s14   ;;  %s1221_s14 = sphi %s1247_s14, %s1933_s14   ;;  %s1217_s13 = sphi %s1245_s13, %s1932_s13   ;;  %s1213_s12 = sphi %s1243_s12, %s1931_s12  }
   0x3   : > { %s38_s17 = ssub.s32 %s1221_s14, %s1260_s16  ;;  %s41_s18 = sadd.s32 1, %s1217_s13 }
   0x4   : > { %p39_p0 = scmp.eq.s32.totalorder %s38_s17, 0  ;;  %p48_p1 = scmp.ne.s32.totalorder %s1217_s13, %s1213_s12 }
   0x5   : > { %p49_p2 = scmp.eq.s32.totalorder %s1221_s14, 0  ;;  %p1162_p4 = scmp.ge.s32.totalorder %s1221_s14, 2 }
   0x6   : > { %s1269_s19 = scalar_select %p39_p0, %s1217_s13, %s41_s18  }
   0x7   : > { %p50_p3 = por %p49_p2, %p48_p1  ;;  %129 = sbr.rel (%p1162_p4) target bundleno = 209 (0xd1), region = 20 }
   0xc   : > { %132 = sbr.rel (!%p50_p3) target bundleno = 209 (0xd1), region = 24  ;;  %s134_s20 = sand.u32 (%p50_p3), 1, %s1217_s13  }
   0xd   : > { %s1168_s21 = smul.u32 (%p50_p3), 48, %s1221_s14 }
   0xe   : > { %s1169_s22 = smul.u32 (%p50_p3), 1536, %s134_s20 }
   0xf   : > { %s1277_s25 = scalar_lea.vmem (%p50_p3), %s1928_s1, %s1168_s21 }
  0x10   : > { %v152_v0 = vld [vmem:[%s1277_s25] sm:$0xff] (%p50_p3)  ;;  %v154_v1 = vld [vmem:[%s1277_s25 + $0x8] sm:$0xff] (%p50_p3)  ;;  %v156_v2 = vld [vmem:[%s1277_s25 + $0x10] sm:$0xff] (%p50_p3)  ;;  %s1282_s26 = scalar_lea.vmem (%p50_p3), [#allocation2], %s1169_s22 }
  0x11   : > { %153 = vst [vmem:[%s1282_s26] sm:$0xff] %v152_v0  ;;  %v158_v3 = vld [vmem:[%s1277_s25 + $0x18] sm:$0xff]  ;;  %v160_v4 = vld [vmem:[%s1277_s25 + $0x20] sm:$0xff]  ;;  %v162_v5 = vld [vmem:[%s1277_s25 + $0x28] sm:$0xff] }
  0x12   : > { %155 = vst [vmem:[%s1282_s26 + $0x8] sm:$0xff] %v154_v1  ;;  %v164_v6 = vld [vmem:[%s1277_s25 + $0x60] sm:$0xff]  ;;  %v166_v7 = vld [vmem:[%s1277_s25 + $0x68] sm:$0xff]  ;;  %v168_v8 = vld [vmem:[%s1277_s25 + $0x70] sm:$0xff] }
  0x13   : > { %157 = vst [vmem:[%s1282_s26 + $0x10] sm:$0xff] %v156_v2  ;;  %v170_v9 = vld [vmem:[%s1277_s25 + $0x78] sm:$0xff]  ;;  %v172_v10 = vld [vmem:[%s1277_s25 + $0x80] sm:$0xff]  ;;  %v174_v11 = vld [vmem:[%s1277_s25 + $0x88] sm:$0xff] }
  0x14   : > { %159 = vst [vmem:[%s1282_s26 + $0x18] sm:$0xff] %v158_v3  ;;  %v176_v12 = vld [vmem:[%s1277_s25 + $0xc0] sm:$0xff]  ;;  %v178_v13 = vld [vmem:[%s1277_s25 + $0xc8] sm:$0xff]  ;;  %v180_v14 = vld [vmem:[%s1277_s25 + $0xd0] sm:$0xff] }
  0x15   : > { %161 = vst [vmem:[%s1282_s26 + $0x20] sm:$0xff] %v160_v4  ;;  %v182_v15 = vld [vmem:[%s1277_s25 + $0xd8] sm:$0xff]  ;;  %v184_v16 = vld [vmem:[%s1277_s25 + $0xe0] sm:$0xff]  ;;  %v186_v17 = vld [vmem:[%s1277_s25 + $0xe8] sm:$0xff] }
  0x16   : > { %163 = vst [vmem:[%s1282_s26 + $0x28] sm:$0xff] %v162_v5  ;;  %v188_v18 = vld [vmem:[%s1277_s25 + $0x120] sm:$0xff]  ;;  %v190_v19 = vld [vmem:[%s1277_s25 + $0x128] sm:$0xff]  ;;  %v192_v20 = vld [vmem:[%s1277_s25 + $0x130] sm:$0xff] }
  0x17   : > { %165 = vst [vmem:[%s1282_s26 + $0x30] sm:$0xff] %v164_v6  ;;  %v194_v21 = vld [vmem:[%s1277_s25 + $0x138] sm:$0xff]  ;;  %v196_v22 = vld [vmem:[%s1277_s25 + $0x140] sm:$0xff]  ;;  %v198_v23 = vld [vmem:[%s1277_s25 + $0x148] sm:$0xff] }
  0x18   : > { %167 = vst [vmem:[%s1282_s26 + $0x38] sm:$0xff] %v166_v7  ;;  %v200_v24 = vld [vmem:[%s1277_s25 + $0x180] sm:$0xff]  ;;  %v202_v25 = vld [vmem:[%s1277_s25 + $0x188] sm:$0xff]  ;;  %v204_v26 = vld [vmem:[%s1277_s25 + $0x190] sm:$0xff] }
  0x19   : > { %169 = vst [vmem:[%s1282_s26 + $0x40] sm:$0xff] %v168_v8  ;;  %v206_v27 = vld [vmem:[%s1277_s25 + $0x198] sm:$0xff]  ;;  %v208_v28 = vld [vmem:[%s1277_s25 + $0x1a0] sm:$0xff]  ;;  %v210_v29 = vld [vmem:[%s1277_s25 + $0x1a8] sm:$0xff] }
  0x1a   : > { %171 = vst [vmem:[%s1282_s26 + $0x48] sm:$0xff] %v170_v9  ;;  %v212_v30 = vld [vmem:[%s1277_s25 + $0x1e0] sm:$0xff]  ;;  %v214_v31 = vld [vmem:[%s1277_s25 + $0x1e8] sm:$0xff]  ;;  %v216_v32 = vld [vmem:[%s1277_s25 + $0x1f0] sm:$0xff] }
  0x1b   : > { %173 = vst [vmem:[%s1282_s26 + $0x50] sm:$0xff] %v172_v10  ;;  %v218_v33 = vld [vmem:[%s1277_s25 + $0x1f8] sm:$0xff]  ;;  %v220_v34 = vld [vmem:[%s1277_s25 + $0x200] sm:$0xff]  ;;  %v222_v35 = vld [vmem:[%s1277_s25 + $0x208] sm:$0xff] }
  0x1c   : > { %175 = vst [vmem:[%s1282_s26 + $0x58] sm:$0xff] %v174_v11  ;;  %v224_v36 = vld [vmem:[%s1277_s25 + $0x240] sm:$0xff]  ;;  %v226_v37 = vld [vmem:[%s1277_s25 + $0x248] sm:$0xff]  ;;  %v228_v38 = vld [vmem:[%s1277_s25 + $0x250] sm:$0xff] }
  0x1d   : > { %177 = vst [vmem:[%s1282_s26 + $0x60] sm:$0xff] %v176_v12  ;;  %v230_v39 = vld [vmem:[%s1277_s25 + $0x258] sm:$0xff]  ;;  %v232_v40 = vld [vmem:[%s1277_s25 + $0x260] sm:$0xff]  ;;  %v234_v41 = vld [vmem:[%s1277_s25 + $0x268] sm:$0xff] }
  0x1e   : > { %179 = vst [vmem:[%s1282_s26 + $0x68] sm:$0xff] %v178_v13  ;;  %v236_v42 = vld [vmem:[%s1277_s25 + $0x2a0] sm:$0xff]  ;;  %v238_v43 = vld [vmem:[%s1277_s25 + $0x2a8] sm:$0xff]  ;;  %v240_v44 = vld [vmem:[%s1277_s25 + $0x2b0] sm:$0xff] }
  0x1f   : > { %181 = vst [vmem:[%s1282_s26 + $0x70] sm:$0xff] %v180_v14  ;;  %v242_v45 = vld [vmem:[%s1277_s25 + $0x2b8] sm:$0xff]  ;;  %v244_v46 = vld [vmem:[%s1277_s25 + $0x2c0] sm:$0xff]  ;;  %v246_v47 = vld [vmem:[%s1277_s25 + $0x2c8] sm:$0xff] }
  0x20   : > { %183 = vst [vmem:[%s1282_s26 + $0x78] sm:$0xff] %v182_v15  ;;  %v248_v48 = vld [vmem:[%s1277_s25 + $0x300] sm:$0xff]  ;;  %v250_v49 = vld [vmem:[%s1277_s25 + $0x308] sm:$0xff]  ;;  %v252_v50 = vld [vmem:[%s1277_s25 + $0x310] sm:$0xff] }
  0x21   : > { %185 = vst [vmem:[%s1282_s26 + $0x80] sm:$0xff] %v184_v16  ;;  %v254_v51 = vld [vmem:[%s1277_s25 + $0x318] sm:$0xff]  ;;  %v256_v52 = vld [vmem:[%s1277_s25 + $0x320] sm:$0xff]  ;;  %v258_v53 = vld [vmem:[%s1277_s25 + $0x328] sm:$0xff] }
  0x22   : > { %187 = vst [vmem:[%s1282_s26 + $0x88] sm:$0xff] %v186_v17  ;;  %v260_v54 = vld [vmem:[%s1277_s25 + $0x360] sm:$0xff]  ;;  %v262_v55 = vld [vmem:[%s1277_s25 + $0x368] sm:$0xff]  ;;  %v264_v56 = vld [vmem:[%s1277_s25 + $0x370] sm:$0xff] }
  0x23   : > { %189 = vst [vmem:[%s1282_s26 + $0x90] sm:$0xff] %v188_v18  ;;  %v266_v57 = vld [vmem:[%s1277_s25 + $0x378] sm:$0xff]  ;;  %v268_v58 = vld [vmem:[%s1277_s25 + $0x380] sm:$0xff]  ;;  %v270_v59 = vld [vmem:[%s1277_s25 + $0x388] sm:$0xff] }
  0x24   : > { %191 = vst [vmem:[%s1282_s26 + $0x98] sm:$0xff] %v190_v19  ;;  %v272_v60 = vld [vmem:[%s1277_s25 + $0x3c0] sm:$0xff]  ;;  %v274_v61 = vld [vmem:[%s1277_s25 + $0x3c8] sm:$0xff]  ;;  %v276_v62 = vld [vmem:[%s1277_s25 + $0x3d0] sm:$0xff] }
  0x25   : > { %193 = vst [vmem:[%s1282_s26 + $0xa0] sm:$0xff] %v192_v20  ;;  %v278_v63 = vld [vmem:[%s1277_s25 + $0x3d8] sm:$0xff]  ;;  %v280_v0 = vld [vmem:[%s1277_s25 + $0x3e0] sm:$0xff]  ;;  %v282_v1 = vld [vmem:[%s1277_s25 + $0x3e8] sm:$0xff] }
  0x26   : > { %195 = vst [vmem:[%s1282_s26 + $0xa8] sm:$0xff] %v194_v21  ;;  %v284_v2 = vld [vmem:[%s1277_s25 + $0x420] sm:$0xff]  ;;  %v286_v3 = vld [vmem:[%s1277_s25 + $0x428] sm:$0xff]  ;;  %v288_v4 = vld [vmem:[%s1277_s25 + $0x430] sm:$0xff] }
  0x27   : > { %197 = vst [vmem:[%s1282_s26 + $0xb0] sm:$0xff] %v196_v22  ;;  %v290_v5 = vld [vmem:[%s1277_s25 + $0x438] sm:$0xff]  ;;  %v292_v6 = vld [vmem:[%s1277_s25 + $0x440] sm:$0xff]  ;;  %v294_v7 = vld [vmem:[%s1277_s25 + $0x448] sm:$0xff] }
  0x28   : > { %199 = vst [vmem:[%s1282_s26 + $0xb8] sm:$0xff] %v198_v23  ;;  %v296_v8 = vld [vmem:[%s1277_s25 + $0x480] sm:$0xff]  ;;  %v298_v9 = vld [vmem:[%s1277_s25 + $0x488] sm:$0xff]  ;;  %v300_v10 = vld [vmem:[%s1277_s25 + $0x490] sm:$0xff] }
  0x29   : > { %201 = vst [vmem:[%s1282_s26 + $0xc0] sm:$0xff] %v200_v24  ;;  %v302_v11 = vld [vmem:[%s1277_s25 + $0x498] sm:$0xff]  ;;  %v304_v12 = vld [vmem:[%s1277_s25 + $0x4a0] sm:$0xff]  ;;  %v306_v13 = vld [vmem:[%s1277_s25 + $0x4a8] sm:$0xff] }
  0x2a   : > { %203 = vst [vmem:[%s1282_s26 + $0xc8] sm:$0xff] %v202_v25  ;;  %v308_v14 = vld [vmem:[%s1277_s25 + $0x4e0] sm:$0xff]  ;;  %v310_v15 = vld [vmem:[%s1277_s25 + $0x4e8] sm:$0xff]  ;;  %v312_v16 = vld [vmem:[%s1277_s25 + $0x4f0] sm:$0xff] }
  0x2b   : > { %205 = vst [vmem:[%s1282_s26 + $0xd0] sm:$0xff] %v204_v26  ;;  %v314_v17 = vld [vmem:[%s1277_s25 + $0x4f8] sm:$0xff]  ;;  %v316_v18 = vld [vmem:[%s1277_s25 + $0x500] sm:$0xff]  ;;  %v318_v19 = vld [vmem:[%s1277_s25 + $0x508] sm:$0xff] }
  0x2c   : > { %207 = vst [vmem:[%s1282_s26 + $0xd8] sm:$0xff] %v206_v27  ;;  %v320_v20 = vld [vmem:[%s1277_s25 + $0x540] sm:$0xff]  ;;  %v322_v21 = vld [vmem:[%s1277_s25 + $0x548] sm:$0xff]  ;;  %v324_v22 = vld [vmem:[%s1277_s25 + $0x550] sm:$0xff] }
  0x2d   : > { %209 = vst [vmem:[%s1282_s26 + $0xe0] sm:$0xff] %v208_v28  ;;  %v326_v23 = vld [vmem:[%s1277_s25 + $0x558] sm:$0xff]  ;;  %v328_v24 = vld [vmem:[%s1277_s25 + $0x560] sm:$0xff]  ;;  %v330_v25 = vld [vmem:[%s1277_s25 + $0x568] sm:$0xff] }
  0x2e   : > { %211 = vst [vmem:[%s1282_s26 + $0xe8] sm:$0xff] %v210_v29  ;;  %v332_v26 = vld [vmem:[%s1277_s25 + $0x5a0] sm:$0xff]  ;;  %v334_v27 = vld [vmem:[%s1277_s25 + $0x5a8] sm:$0xff]  ;;  %v336_v28 = vld [vmem:[%s1277_s25 + $0x5b0] sm:$0xff] }
  0x2f   : > { %213 = vst [vmem:[%s1282_s26 + $0xf0] sm:$0xff] %v212_v30  ;;  %v338_v29 = vld [vmem:[%s1277_s25 + $0x5b8] sm:$0xff]  ;;  %v340_v30 = vld [vmem:[%s1277_s25 + $0x5c0] sm:$0xff] }
  0x30   : > { %215 = vst [vmem:[%s1282_s26 + $0xf8] sm:$0xff] %v214_v31  ;;  %v342_v31 = vld [vmem:[%s1277_s25 + $0x5c8] sm:$0xff] }
  0x31   : > { %217 = vst [vmem:[%s1282_s26 + $0x100] sm:$0xff] %v216_v32  ;;  %v344_v32 = vld [vmem:[%s1277_s25 + $0x600] sm:$0xff] }
  0x32   : > { %219 = vst [vmem:[%s1282_s26 + $0x108] sm:$0xff] %v218_v33  ;;  %v346_v33 = vld [vmem:[%s1277_s25 + $0x608] sm:$0xff] }
  0x33   : > { %221 = vst [vmem:[%s1282_s26 + $0x110] sm:$0xff] %v220_v34  ;;  %v348_v34 = vld [vmem:[%s1277_s25 + $0x610] sm:$0xff] }
  0x34   : > { %223 = vst [vmem:[%s1282_s26 + $0x118] sm:$0xff] %v222_v35  ;;  %v350_v35 = vld [vmem:[%s1277_s25 + $0x618] sm:$0xff] }
  0x35   : > { %225 = vst [vmem:[%s1282_s26 + $0x120] sm:$0xff] %v224_v36  ;;  %v352_v36 = vld [vmem:[%s1277_s25 + $0x620] sm:$0xff] }
  0x36   : > { %227 = vst [vmem:[%s1282_s26 + $0x128] sm:$0xff] %v226_v37  ;;  %v354_v37 = vld [vmem:[%s1277_s25 + $0x628] sm:$0xff] }
  0x37   : > { %229 = vst [vmem:[%s1282_s26 + $0x130] sm:$0xff] %v228_v38  ;;  %v356_v38 = vld [vmem:[%s1277_s25 + $0x660] sm:$0xff] }
  0x38   : > { %231 = vst [vmem:[%s1282_s26 + $0x138] sm:$0xff] %v230_v39  ;;  %v358_v39 = vld [vmem:[%s1277_s25 + $0x668] sm:$0xff] }
  0x39   : > { %233 = vst [vmem:[%s1282_s26 + $0x140] sm:$0xff] %v232_v40  ;;  %v360_v40 = vld [vmem:[%s1277_s25 + $0x670] sm:$0xff] }
  0x3a   : > { %235 = vst [vmem:[%s1282_s26 + $0x148] sm:$0xff] %v234_v41  ;;  %v362_v41 = vld [vmem:[%s1277_s25 + $0x678] sm:$0xff] }
  0x3b   : > { %237 = vst [vmem:[%s1282_s26 + $0x150] sm:$0xff] %v236_v42  ;;  %v364_v42 = vld [vmem:[%s1277_s25 + $0x680] sm:$0xff] }
  0x3c   : > { %239 = vst [vmem:[%s1282_s26 + $0x158] sm:$0xff] %v238_v43  ;;  %v366_v43 = vld [vmem:[%s1277_s25 + $0x688] sm:$0xff] }
  0x3d   : > { %241 = vst [vmem:[%s1282_s26 + $0x160] sm:$0xff] %v240_v44  ;;  %v368_v44 = vld [vmem:[%s1277_s25 + $0x6c0] sm:$0xff] }
  0x3e   : > { %243 = vst [vmem:[%s1282_s26 + $0x168] sm:$0xff] %v242_v45  ;;  %v370_v45 = vld [vmem:[%s1277_s25 + $0x6c8] sm:$0xff] }
  0x3f   : > { %245 = vst [vmem:[%s1282_s26 + $0x170] sm:$0xff] %v244_v46  ;;  %v372_v46 = vld [vmem:[%s1277_s25 + $0x6d0] sm:$0xff] }
  0x40   : > { %247 = vst [vmem:[%s1282_s26 + $0x178] sm:$0xff] %v246_v47  ;;  %v374_v47 = vld [vmem:[%s1277_s25 + $0x6d8] sm:$0xff] }
  0x41   : > { %249 = vst [vmem:[%s1282_s26 + $0x180] sm:$0xff] %v248_v48  ;;  %v376_v48 = vld [vmem:[%s1277_s25 + $0x6e0] sm:$0xff] }
  0x42   : > { %251 = vst [vmem:[%s1282_s26 + $0x188] sm:$0xff] %v250_v49  ;;  %v378_v49 = vld [vmem:[%s1277_s25 + $0x6e8] sm:$0xff] }
  0x43   : > { %253 = vst [vmem:[%s1282_s26 + $0x190] sm:$0xff] %v252_v50  ;;  %v380_v50 = vld [vmem:[%s1277_s25 + $0x720] sm:$0xff] }
  0x44   : > { %255 = vst [vmem:[%s1282_s26 + $0x198] sm:$0xff] %v254_v51  ;;  %v382_v51 = vld [vmem:[%s1277_s25 + $0x728] sm:$0xff] }
  0x45   : > { %257 = vst [vmem:[%s1282_s26 + $0x1a0] sm:$0xff] %v256_v52  ;;  %v384_v52 = vld [vmem:[%s1277_s25 + $0x730] sm:$0xff] }
  0x46   : > { %259 = vst [vmem:[%s1282_s26 + $0x1a8] sm:$0xff] %v258_v53  ;;  %v386_v53 = vld [vmem:[%s1277_s25 + $0x738] sm:$0xff] }
  0x47   : > { %261 = vst [vmem:[%s1282_s26 + $0x1b0] sm:$0xff] %v260_v54  ;;  %v388_v54 = vld [vmem:[%s1277_s25 + $0x740] sm:$0xff] }
  0x48   : > { %263 = vst [vmem:[%s1282_s26 + $0x1b8] sm:$0xff] %v262_v55  ;;  %v390_v55 = vld [vmem:[%s1277_s25 + $0x748] sm:$0xff] }
  0x49   : > { %265 = vst [vmem:[%s1282_s26 + $0x1c0] sm:$0xff] %v264_v56  ;;  %v392_v56 = vld [vmem:[%s1277_s25 + $0x780] sm:$0xff] }
  0x4a   : > { %267 = vst [vmem:[%s1282_s26 + $0x1c8] sm:$0xff] %v266_v57  ;;  %v394_v57 = vld [vmem:[%s1277_s25 + $0x788] sm:$0xff] }
  0x4b   : > { %269 = vst [vmem:[%s1282_s26 + $0x1d0] sm:$0xff] %v268_v58  ;;  %v396_v58 = vld [vmem:[%s1277_s25 + $0x790] sm:$0xff] }
  0x4c   : > { %271 = vst [vmem:[%s1282_s26 + $0x1d8] sm:$0xff] %v270_v59  ;;  %v398_v59 = vld [vmem:[%s1277_s25 + $0x798] sm:$0xff] }
  0x4d   : > { %273 = vst [vmem:[%s1282_s26 + $0x1e0] sm:$0xff] %v272_v60  ;;  %v400_v60 = vld [vmem:[%s1277_s25 + $0x7a0] sm:$0xff] }
  0x4e   : > { %275 = vst [vmem:[%s1282_s26 + $0x1e8] sm:$0xff] %v274_v61  ;;  %v402_v61 = vld [vmem:[%s1277_s25 + $0x7a8] sm:$0xff] }
  0x4f   : > { %277 = vst [vmem:[%s1282_s26 + $0x1f0] sm:$0xff] %v276_v62  ;;  %v404_v62 = vld [vmem:[%s1277_s25 + $0x7e0] sm:$0xff] }
  0x50   : > { %279 = vst [vmem:[%s1282_s26 + $0x1f8] sm:$0xff] %v278_v63  ;;  %v406_v63 = vld [vmem:[%s1277_s25 + $0x7e8] sm:$0xff] }
  0x51   : > { %281 = vst [vmem:[%s1282_s26 + $0x200] sm:$0xff] %v280_v0  ;;  %v408_v0 = vld [vmem:[%s1277_s25 + $0x7f0] sm:$0xff] }
  0x52   : > { %283 = vst [vmem:[%s1282_s26 + $0x208] sm:$0xff] %v282_v1  ;;  %v410_v1 = vld [vmem:[%s1277_s25 + $0x7f8] sm:$0xff] }
  0x53   : > { %285 = vst [vmem:[%s1282_s26 + $0x210] sm:$0xff] %v284_v2  ;;  %v412_v2 = vld [vmem:[%s1277_s25 + $0x800] sm:$0xff] }
  0x54   : > { %287 = vst [vmem:[%s1282_s26 + $0x218] sm:$0xff] %v286_v3  ;;  %v414_v3 = vld [vmem:[%s1277_s25 + $0x808] sm:$0xff] }
  0x55   : > { %289 = vst [vmem:[%s1282_s26 + $0x220] sm:$0xff] %v288_v4  ;;  %v416_v4 = vld [vmem:[%s1277_s25 + $0x840] sm:$0xff] }
  0x56   : > { %291 = vst [vmem:[%s1282_s26 + $0x228] sm:$0xff] %v290_v5  ;;  %v418_v5 = vld [vmem:[%s1277_s25 + $0x848] sm:$0xff] }
  0x57   : > { %293 = vst [vmem:[%s1282_s26 + $0x230] sm:$0xff] %v292_v6  ;;  %v420_v6 = vld [vmem:[%s1277_s25 + $0x850] sm:$0xff] }
  0x58   : > { %295 = vst [vmem:[%s1282_s26 + $0x238] sm:$0xff] %v294_v7  ;;  %v422_v7 = vld [vmem:[%s1277_s25 + $0x858] sm:$0xff] }
  0x59   : > { %297 = vst [vmem:[%s1282_s26 + $0x240] sm:$0xff] %v296_v8  ;;  %v424_v8 = vld [vmem:[%s1277_s25 + $0x860] sm:$0xff] }
  0x5a   : > { %299 = vst [vmem:[%s1282_s26 + $0x248] sm:$0xff] %v298_v9  ;;  %v426_v9 = vld [vmem:[%s1277_s25 + $0x868] sm:$0xff] }
  0x5b   : > { %301 = vst [vmem:[%s1282_s26 + $0x250] sm:$0xff] %v300_v10  ;;  %v428_v10 = vld [vmem:[%s1277_s25 + $0x8a0] sm:$0xff] }
  0x5c   : > { %303 = vst [vmem:[%s1282_s26 + $0x258] sm:$0xff] %v302_v11  ;;  %v430_v11 = vld [vmem:[%s1277_s25 + $0x8a8] sm:$0xff] }
  0x5d   : > { %305 = vst [vmem:[%s1282_s26 + $0x260] sm:$0xff] %v304_v12  ;;  %v432_v12 = vld [vmem:[%s1277_s25 + $0x8b0] sm:$0xff] }
  0x5e   : > { %307 = vst [vmem:[%s1282_s26 + $0x268] sm:$0xff] %v306_v13  ;;  %v434_v13 = vld [vmem:[%s1277_s25 + $0x8b8] sm:$0xff] }
  0x5f   : > { %309 = vst [vmem:[%s1282_s26 + $0x270] sm:$0xff] %v308_v14  ;;  %v436_v14 = vld [vmem:[%s1277_s25 + $0x8c0] sm:$0xff] }
  0x60   : > { %311 = vst [vmem:[%s1282_s26 + $0x278] sm:$0xff] %v310_v15  ;;  %v438_v15 = vld [vmem:[%s1277_s25 + $0x8c8] sm:$0xff] }
  0x61   : > { %313 = vst [vmem:[%s1282_s26 + $0x280] sm:$0xff] %v312_v16  ;;  %v440_v16 = vld [vmem:[%s1277_s25 + $0x900] sm:$0xff] }
  0x62   : > { %315 = vst [vmem:[%s1282_s26 + $0x288] sm:$0xff] %v314_v17  ;;  %v442_v17 = vld [vmem:[%s1277_s25 + $0x908] sm:$0xff] }
  0x63   : > { %317 = vst [vmem:[%s1282_s26 + $0x290] sm:$0xff] %v316_v18  ;;  %v444_v18 = vld [vmem:[%s1277_s25 + $0x910] sm:$0xff] }
  0x64   : > { %319 = vst [vmem:[%s1282_s26 + $0x298] sm:$0xff] %v318_v19  ;;  %v446_v19 = vld [vmem:[%s1277_s25 + $0x918] sm:$0xff] }
  0x65   : > { %321 = vst [vmem:[%s1282_s26 + $0x2a0] sm:$0xff] %v320_v20  ;;  %v448_v20 = vld [vmem:[%s1277_s25 + $0x920] sm:$0xff] }
  0x66   : > { %323 = vst [vmem:[%s1282_s26 + $0x2a8] sm:$0xff] %v322_v21  ;;  %v450_v21 = vld [vmem:[%s1277_s25 + $0x928] sm:$0xff] }
  0x67   : > { %325 = vst [vmem:[%s1282_s26 + $0x2b0] sm:$0xff] %v324_v22  ;;  %v452_v22 = vld [vmem:[%s1277_s25 + $0x960] sm:$0xff] }
  0x68   : > { %327 = vst [vmem:[%s1282_s26 + $0x2b8] sm:$0xff] %v326_v23  ;;  %v454_v23 = vld [vmem:[%s1277_s25 + $0x968] sm:$0xff] }
  0x69   : > { %329 = vst [vmem:[%s1282_s26 + $0x2c0] sm:$0xff] %v328_v24  ;;  %v456_v24 = vld [vmem:[%s1277_s25 + $0x970] sm:$0xff] }
  0x6a   : > { %331 = vst [vmem:[%s1282_s26 + $0x2c8] sm:$0xff] %v330_v25  ;;  %v458_v25 = vld [vmem:[%s1277_s25 + $0x978] sm:$0xff] }
  0x6b   : > { %333 = vst [vmem:[%s1282_s26 + $0x2d0] sm:$0xff] %v332_v26  ;;  %v460_v26 = vld [vmem:[%s1277_s25 + $0x980] sm:$0xff] }
  0x6c   : > { %335 = vst [vmem:[%s1282_s26 + $0x2d8] sm:$0xff] %v334_v27  ;;  %v462_v27 = vld [vmem:[%s1277_s25 + $0x988] sm:$0xff] }
  0x6d   : > { %337 = vst [vmem:[%s1282_s26 + $0x2e0] sm:$0xff] %v336_v28  ;;  %v464_v28 = vld [vmem:[%s1277_s25 + $0x9c0] sm:$0xff] }
  0x6e   : > { %339 = vst [vmem:[%s1282_s26 + $0x2e8] sm:$0xff] %v338_v29  ;;  %v466_v29 = vld [vmem:[%s1277_s25 + $0x9c8] sm:$0xff] }
  0x6f   : > { %341 = vst [vmem:[%s1282_s26 + $0x2f0] sm:$0xff] %v340_v30  ;;  %v468_v30 = vld [vmem:[%s1277_s25 + $0x9d0] sm:$0xff] }
  0x70   : > { %343 = vst [vmem:[%s1282_s26 + $0x2f8] sm:$0xff] %v342_v31  ;;  %v470_v31 = vld [vmem:[%s1277_s25 + $0x9d8] sm:$0xff] }
  0x71   : > { %345 = vst [vmem:[%s1282_s26 + $0x300] sm:$0xff] %v344_v32  ;;  %v472_v32 = vld [vmem:[%s1277_s25 + $0x9e0] sm:$0xff] }
  0x72   : > { %347 = vst [vmem:[%s1282_s26 + $0x308] sm:$0xff] %v346_v33  ;;  %v474_v33 = vld [vmem:[%s1277_s25 + $0x9e8] sm:$0xff] }
  0x73   : > { %349 = vst [vmem:[%s1282_s26 + $0x310] sm:$0xff] %v348_v34  ;;  %v476_v34 = vld [vmem:[%s1277_s25 + $0xa20] sm:$0xff] }
  0x74   : > { %351 = vst [vmem:[%s1282_s26 + $0x318] sm:$0xff] %v350_v35  ;;  %v478_v35 = vld [vmem:[%s1277_s25 + $0xa28] sm:$0xff] }
  0x75   : > { %353 = vst [vmem:[%s1282_s26 + $0x320] sm:$0xff] %v352_v36  ;;  %v480_v36 = vld [vmem:[%s1277_s25 + $0xa30] sm:$0xff] }
  0x76   : > { %355 = vst [vmem:[%s1282_s26 + $0x328] sm:$0xff] %v354_v37  ;;  %v482_v37 = vld [vmem:[%s1277_s25 + $0xa38] sm:$0xff] }
  0x77   : > { %357 = vst [vmem:[%s1282_s26 + $0x330] sm:$0xff] %v356_v38  ;;  %v484_v38 = vld [vmem:[%s1277_s25 + $0xa40] sm:$0xff] }
  0x78   : > { %359 = vst [vmem:[%s1282_s26 + $0x338] sm:$0xff] %v358_v39  ;;  %v486_v39 = vld [vmem:[%s1277_s25 + $0xa48] sm:$0xff] }
  0x79   : > { %361 = vst [vmem:[%s1282_s26 + $0x340] sm:$0xff] %v360_v40  ;;  %v488_v40 = vld [vmem:[%s1277_s25 + $0xa80] sm:$0xff] }
  0x7a   : > { %363 = vst [vmem:[%s1282_s26 + $0x348] sm:$0xff] %v362_v41  ;;  %v490_v41 = vld [vmem:[%s1277_s25 + $0xa88] sm:$0xff] }
  0x7b   : > { %365 = vst [vmem:[%s1282_s26 + $0x350] sm:$0xff] %v364_v42  ;;  %v492_v42 = vld [vmem:[%s1277_s25 + $0xa90] sm:$0xff] }
  0x7c   : > { %367 = vst [vmem:[%s1282_s26 + $0x358] sm:$0xff] %v366_v43  ;;  %v494_v43 = vld [vmem:[%s1277_s25 + $0xa98] sm:$0xff] }
  0x7d   : > { %369 = vst [vmem:[%s1282_s26 + $0x360] sm:$0xff] %v368_v44  ;;  %v496_v44 = vld [vmem:[%s1277_s25 + $0xaa0] sm:$0xff] }
  0x7e   : > { %371 = vst [vmem:[%s1282_s26 + $0x368] sm:$0xff] %v370_v45  ;;  %v498_v45 = vld [vmem:[%s1277_s25 + $0xaa8] sm:$0xff] }
  0x7f   : > { %373 = vst [vmem:[%s1282_s26 + $0x370] sm:$0xff] %v372_v46  ;;  %v500_v46 = vld [vmem:[%s1277_s25 + $0xae0] sm:$0xff] }
  0x80   : > { %375 = vst [vmem:[%s1282_s26 + $0x378] sm:$0xff] %v374_v47  ;;  %v502_v47 = vld [vmem:[%s1277_s25 + $0xae8] sm:$0xff] }
  0x81   : > { %377 = vst [vmem:[%s1282_s26 + $0x380] sm:$0xff] %v376_v48  ;;  %v504_v48 = vld [vmem:[%s1277_s25 + $0xaf0] sm:$0xff] }
  0x82   : > { %379 = vst [vmem:[%s1282_s26 + $0x388] sm:$0xff] %v378_v49  ;;  %v506_v49 = vld [vmem:[%s1277_s25 + $0xaf8] sm:$0xff] }
  0x83   : > { %381 = vst [vmem:[%s1282_s26 + $0x390] sm:$0xff] %v380_v50  ;;  %v508_v50 = vld [vmem:[%s1277_s25 + $0xb00] sm:$0xff] }
  0x84   : > { %383 = vst [vmem:[%s1282_s26 + $0x398] sm:$0xff] %v382_v51  ;;  %v510_v51 = vld [vmem:[%s1277_s25 + $0xb08] sm:$0xff] }
  0x85   : > { %385 = vst [vmem:[%s1282_s26 + $0x3a0] sm:$0xff] %v384_v52  ;;  %v512_v52 = vld [vmem:[%s1277_s25 + $0xb40] sm:$0xff] }
  0x86   : > { %387 = vst [vmem:[%s1282_s26 + $0x3a8] sm:$0xff] %v386_v53  ;;  %v514_v53 = vld [vmem:[%s1277_s25 + $0xb48] sm:$0xff] }
  0x87   : > { %389 = vst [vmem:[%s1282_s26 + $0x3b0] sm:$0xff] %v388_v54  ;;  %v516_v54 = vld [vmem:[%s1277_s25 + $0xb50] sm:$0xff] }
  0x88   : > { %391 = vst [vmem:[%s1282_s26 + $0x3b8] sm:$0xff] %v390_v55  ;;  %v518_v55 = vld [vmem:[%s1277_s25 + $0xb58] sm:$0xff] }
  0x89   : > { %393 = vst [vmem:[%s1282_s26 + $0x3c0] sm:$0xff] %v392_v56  ;;  %v520_v56 = vld [vmem:[%s1277_s25 + $0xb60] sm:$0xff] }
  0x8a   : > { %395 = vst [vmem:[%s1282_s26 + $0x3c8] sm:$0xff] %v394_v57  ;;  %v522_v57 = vld [vmem:[%s1277_s25 + $0xb68] sm:$0xff] }
  0x8b   : > { %397 = vst [vmem:[%s1282_s26 + $0x3d0] sm:$0xff] %v396_v58  ;;  %v524_v58 = vld [vmem:[%s1277_s25 + $0xba0] sm:$0xff] }
  0x8c   : > { %399 = vst [vmem:[%s1282_s26 + $0x3d8] sm:$0xff] %v398_v59  ;;  %v526_v59 = vld [vmem:[%s1277_s25 + $0xba8] sm:$0xff] }
  0x8d   : > { %401 = vst [vmem:[%s1282_s26 + $0x3e0] sm:$0xff] %v400_v60  ;;  %v528_v60 = vld [vmem:[%s1277_s25 + $0xbb0] sm:$0xff] }
  0x8e   : > { %403 = vst [vmem:[%s1282_s26 + $0x3e8] sm:$0xff] %v402_v61  ;;  %v530_v61 = vld [vmem:[%s1277_s25 + $0xbb8] sm:$0xff] }
  0x8f   : > { %405 = vst [vmem:[%s1282_s26 + $0x3f0] sm:$0xff] %v404_v62  ;;  %v532_v62 = vld [vmem:[%s1277_s25 + $0xbc0] sm:$0xff] }
  0x90   : > { %407 = vst [vmem:[%s1282_s26 + $0x3f8] sm:$0xff] %v406_v63  ;;  %v534_v63 = vld [vmem:[%s1277_s25 + $0xbc8] sm:$0xff] }
  0x91   : > { %409 = vst [vmem:[%s1282_s26 + $0x400] sm:$0xff] %v408_v0 }
  0x92   : > { %411 = vst [vmem:[%s1282_s26 + $0x408] sm:$0xff] %v410_v1 }
  0x93   : > { %413 = vst [vmem:[%s1282_s26 + $0x410] sm:$0xff] %v412_v2 }
  0x94   : > { %415 = vst [vmem:[%s1282_s26 + $0x418] sm:$0xff] %v414_v3 }
  0x95   : > { %417 = vst [vmem:[%s1282_s26 + $0x420] sm:$0xff] %v416_v4 }
  0x96   : > { %419 = vst [vmem:[%s1282_s26 + $0x428] sm:$0xff] %v418_v5 }
  0x97   : > { %421 = vst [vmem:[%s1282_s26 + $0x430] sm:$0xff] %v420_v6 }
  0x98   : > { %423 = vst [vmem:[%s1282_s26 + $0x438] sm:$0xff] %v422_v7 }
  0x99   : > { %425 = vst [vmem:[%s1282_s26 + $0x440] sm:$0xff] %v424_v8 }
  0x9a   : > { %427 = vst [vmem:[%s1282_s26 + $0x448] sm:$0xff] %v426_v9 }
  0x9b   : > { %429 = vst [vmem:[%s1282_s26 + $0x450] sm:$0xff] %v428_v10 }
  0x9c   : > { %431 = vst [vmem:[%s1282_s26 + $0x458] sm:$0xff] %v430_v11 }
  0x9d   : > { %433 = vst [vmem:[%s1282_s26 + $0x460] sm:$0xff] %v432_v12 }
  0x9e   : > { %435 = vst [vmem:[%s1282_s26 + $0x468] sm:$0xff] %v434_v13 }
  0x9f   : > { %437 = vst [vmem:[%s1282_s26 + $0x470] sm:$0xff] %v436_v14 }
  0xa0   : > { %439 = vst [vmem:[%s1282_s26 + $0x478] sm:$0xff] %v438_v15 }
  0xa1   : > { %441 = vst [vmem:[%s1282_s26 + $0x480] sm:$0xff] %v440_v16 }
  0xa2   : > { %443 = vst [vmem:[%s1282_s26 + $0x488] sm:$0xff] %v442_v17 }
  0xa3   : > { %445 = vst [vmem:[%s1282_s26 + $0x490] sm:$0xff] %v444_v18 }
  0xa4   : > { %447 = vst [vmem:[%s1282_s26 + $0x498] sm:$0xff] %v446_v19 }
  0xa5   : > { %449 = vst [vmem:[%s1282_s26 + $0x4a0] sm:$0xff] %v448_v20 }
  0xa6   : > { %451 = vst [vmem:[%s1282_s26 + $0x4a8] sm:$0xff] %v450_v21 }
  0xa7   : > { %453 = vst [vmem:[%s1282_s26 + $0x4b0] sm:$0xff] %v452_v22 }
  0xa8   : > { %455 = vst [vmem:[%s1282_s26 + $0x4b8] sm:$0xff] %v454_v23 }
  0xa9   : > { %457 = vst [vmem:[%s1282_s26 + $0x4c0] sm:$0xff] %v456_v24 }
  0xaa   : > { %459 = vst [vmem:[%s1282_s26 + $0x4c8] sm:$0xff] %v458_v25 }
  0xab   : > { %461 = vst [vmem:[%s1282_s26 + $0x4d0] sm:$0xff] %v460_v26 }
  0xac   : > { %463 = vst [vmem:[%s1282_s26 + $0x4d8] sm:$0xff] %v462_v27 }
  0xad   : > { %465 = vst [vmem:[%s1282_s26 + $0x4e0] sm:$0xff] %v464_v28 }
  0xae   : > { %467 = vst [vmem:[%s1282_s26 + $0x4e8] sm:$0xff] %v466_v29 }
  0xaf   : > { %469 = vst [vmem:[%s1282_s26 + $0x4f0] sm:$0xff] %v468_v30 }
  0xb0   : > { %471 = vst [vmem:[%s1282_s26 + $0x4f8] sm:$0xff] %v470_v31 }
  0xb1   : > { %473 = vst [vmem:[%s1282_s26 + $0x500] sm:$0xff] %v472_v32 }
  0xb2   : > { %475 = vst [vmem:[%s1282_s26 + $0x508] sm:$0xff] %v474_v33 }
  0xb3   : > { %477 = vst [vmem:[%s1282_s26 + $0x510] sm:$0xff] %v476_v34 }
  0xb4   : > { %479 = vst [vmem:[%s1282_s26 + $0x518] sm:$0xff] %v478_v35 }
  0xb5   : > { %481 = vst [vmem:[%s1282_s26 + $0x520] sm:$0xff] %v480_v36 }
  0xb6   : > { %483 = vst [vmem:[%s1282_s26 + $0x528] sm:$0xff] %v482_v37 }
  0xb7   : > { %485 = vst [vmem:[%s1282_s26 + $0x530] sm:$0xff] %v484_v38 }
  0xb8   : > { %487 = vst [vmem:[%s1282_s26 + $0x538] sm:$0xff] %v486_v39 }
  0xb9   : > { %489 = vst [vmem:[%s1282_s26 + $0x540] sm:$0xff] %v488_v40 }
  0xba   : > { %491 = vst [vmem:[%s1282_s26 + $0x548] sm:$0xff] %v490_v41 }
  0xbb   : > { %493 = vst [vmem:[%s1282_s26 + $0x550] sm:$0xff] %v492_v42 }
  0xbc   : > { %495 = vst [vmem:[%s1282_s26 + $0x558] sm:$0xff] %v494_v43 }
  0xbd   : > { %497 = vst [vmem:[%s1282_s26 + $0x560] sm:$0xff] %v496_v44 }
  0xbe   : > { %499 = vst [vmem:[%s1282_s26 + $0x568] sm:$0xff] %v498_v45 }
  0xbf   : > { %501 = vst [vmem:[%s1282_s26 + $0x570] sm:$0xff] %v500_v46 }
  0xc0   : > { %503 = vst [vmem:[%s1282_s26 + $0x578] sm:$0xff] %v502_v47 }
  0xc1   : > { %505 = vst [vmem:[%s1282_s26 + $0x580] sm:$0xff] %v504_v48 }
  0xc2   : > { %507 = vst [vmem:[%s1282_s26 + $0x588] sm:$0xff] %v506_v49 }
  0xc3   : > { %509 = vst [vmem:[%s1282_s26 + $0x590] sm:$0xff] %v508_v50 }
  0xc4   : > { %511 = vst [vmem:[%s1282_s26 + $0x598] sm:$0xff] %v510_v51 }
  0xc5   : > { %513 = vst [vmem:[%s1282_s26 + $0x5a0] sm:$0xff] %v512_v52 }
  0xc6   : > { %515 = vst [vmem:[%s1282_s26 + $0x5a8] sm:$0xff] %v514_v53 }
  0xc7   : > { %517 = vst [vmem:[%s1282_s26 + $0x5b0] sm:$0xff] %v516_v54 }
  0xc8   : > { %519 = vst [vmem:[%s1282_s26 + $0x5b8] sm:$0xff] %v518_v55 }
  0xc9   : > { %521 = vst [vmem:[%s1282_s26 + $0x5c0] sm:$0xff] %v520_v56 }
  0xca   : > { %523 = vst [vmem:[%s1282_s26 + $0x5c8] sm:$0xff] %v522_v57 }
  0xcb   : > { %525 = vst [vmem:[%s1282_s26 + $0x5d0] sm:$0xff] %v524_v58 }
  0xcc   : > { %527 = vst [vmem:[%s1282_s26 + $0x5d8] sm:$0xff] %v526_v59 }
  0xcd   : > { %529 = vst [vmem:[%s1282_s26 + $0x5e0] sm:$0xff] %v528_v60 }
  0xce   : > { %531 = vst [vmem:[%s1282_s26 + $0x5e8] sm:$0xff] %v530_v61 }
  0xcf   : > { %533 = vst [vmem:[%s1282_s26 + $0x5f0] sm:$0xff] %v532_v62 }
  0xd0   : > { %535 = vst [vmem:[%s1282_s26 + $0x5f8] sm:$0xff] %v534_v63 }
  0xd1 PF: > { %p1164_p5 = scmp.ge.s32.totalorder %s1221_s14, 1  ;;  %p548_p6 = scmp.lt.s32.totalorder %s1221_s14, 3 }
  0xd3   : > { %p549_p7 = pnand %p1164_p5, %p548_p6 }
  0xd4   : > { %s555_s27 = sand.u32 (!%p549_p7), 1, %s1213_s12   ;;  %s583_s5 = smul.u32 (!%p549_p7), 6, %s1159_s15 }
  0xd5   : > { %552 = sbr.rel (%p549_p7) target bundleno = 455 (0x1c7), region = 51 }
  0xd6   : > { %s1170_s30 = smul.u32 (!%p549_p7), 1536, %s555_s27  ;;  %p584_p8 = scmp.lt.s32.totalorder (!%p549_p7), %s583_s5, 11 }
  0xd8   : > { %s1674_s4 = scalar_lea.vmem (!%p549_p7), [#allocation2], %s1170_s30 }
  0xda   : > { %v1671_v0 = vld [vmem:[%s1927_s0] sm:$0xf]  ;;  %v700_v4 = vld [vmem:[%s1674_s4 + $0x2a8] sm:$0xff]  ;;  %v705_v7 = vld [vmem:[%s1674_s4 + $0x2d0] sm:$0xff]  ;;  %s1935_s5 = smov (!%p584_p8, %s583_s5), 11  ;;  %vm1077_vm4 = vcmask 1041408  }
  0xdb   : > { %v595_v1 = vsub.f32 0.0, %v1671_v0  ;;  %v706_v3 = vld [vmem:[%s1674_s4 + $0x2d8] sm:$0xff]  ;;  %v796_v6 = vld [vmem:[%s1674_s4 + $0x5a8] sm:$0xff]  ;;  %827 = vmatpush.msra.mxu0 %v705_v7  ;;  %v699_v10 = vld [vmem:[%s1674_s4 + $0x2a0] sm:$0xff]  ;;  %s586_s8 = scalar_lea.vmem %s1929_s2, %s1935_s5  ;;  %s1165_s9 = sshll.u32 %s1935_s5, 1  ;;  %vm1079_vm5 = vcmask 1045508  }
  0xdc   : > { %v802_v5 = vld [vmem:[%s1674_s4 + $0x5d8] sm:$0xff]  ;;  %867 = vmatpush.msra.mxu2 %v706_v3  ;;  %v688_v11 = vld [vmem:[%s1674_s4 + $0x248] sm:$0xff]  ;;  %v801_v12 = vld [vmem:[%s1674_s4 + $0x5d0] sm:$0xff]  ;;  %vm1081_vm6 = vcmask 1043456   ;;  %s592_s12 = scalar_lea.vmem %s1930_s3, %s1165_s9 }
  0xdd   : > { %v596_v2 = vmul.f32 1.442695, %v595_v1  ;;  %887 = vmatpush.msra.mxu3 %v802_v5  ;;  %v694_v8 = vld [vmem:[%s1674_s4 + $0x278] sm:$0xff]  ;;  %828 = vmatpush.msra.mxu0 %v699_v10  ;;  %v784_v13 = vld [vmem:[%s1674_s4 + $0x548] sm:$0xff]  ;;  %v693_v14 = vld [vmem:[%s1674_s4 + $0x270] sm:$0xff] }
  0xde   : > { %v790_v9 = vld [vmem:[%s1674_s4 + $0x578] sm:$0xff]  ;;  %868 = vmatpush.msra.mxu2 %v700_v4  ;;  %847 = vmatpush.msra.mxu1 %v801_v12  ;;  %v795_v15 = vld [vmem:[%s1674_s4 + $0x5a0] sm:$0xff]  ;;  %v789_v17 = vld [vmem:[%s1674_s4 + $0x570] sm:$0xff] }
  0xdf   : > { %1195 = vpow2.f32 %v596_v2  ;;  %888 = vmatpush.msra.mxu3 %v796_v6  ;;  %v687_v16 = vld [vmem:[%s1674_s4 + $0x240] sm:$0xff]  ;;  %v682_v18 = vld [vmem:[%s1674_s4 + $0x218] sm:$0xff]  ;;  %829 = vmatpush.msra.mxu0 %v693_v14  ;;  %v681_v21 = vld [vmem:[%s1674_s4 + $0x210] sm:$0xff] }
  0xe0   : > { %869 = vmatpush.msra.mxu2 %v694_v8  ;;  %848 = vmatpush.msra.mxu1 %v795_v15  ;;  %v778_v19 = vld [vmem:[%s1674_s4 + $0x518] sm:$0xff]  ;;  %v783_v22 = vld [vmem:[%s1674_s4 + $0x540] sm:$0xff]  ;;  %v676_v23 = vld [vmem:[%s1674_s4 + $0x1e8] sm:$0xff] }
  0xe1   : > { %889 = vmatpush.msra.mxu3 %v790_v9  ;;  %830 = vmatpush.msra.mxu0 %v687_v16  ;;  %v772_v24 = vld [vmem:[%s1674_s4 + $0x4e8] sm:$0xff]  ;;  %v675_v26 = vld [vmem:[%s1674_s4 + $0x1e0] sm:$0xff]  ;;  %v777_v27 = vld [vmem:[%s1674_s4 + $0x510] sm:$0xff] }
  0xe2   : > { %870 = vmatpush.msra.mxu2 %v688_v11  ;;  %849 = vmatpush.msra.mxu1 %v789_v17  ;;  %v670_v28 = vld [vmem:[%s1674_s4 + $0x1b8] sm:$0xff]  ;;  %v669_v30 = vld [vmem:[%s1674_s4 + $0x1b0] sm:$0xff]  ;;  %v771_v31 = vld [vmem:[%s1674_s4 + $0x4e0] sm:$0xff] }
  0xe3   : > { %890 = vmatpush.msra.mxu3 %v784_v13  ;;  %831 = vmatpush.msra.mxu0 %v681_v21  ;;  %v766_v29 = vld [vmem:[%s1674_s4 + $0x4b8] sm:$0xff]  ;;  %v664_v32 = vld [vmem:[%s1674_s4 + $0x188] sm:$0xff]  ;;  %v663_v34 = vld [vmem:[%s1674_s4 + $0x180] sm:$0xff] }
  0xe4   : > { %871 = vmatpush.msra.mxu2 %v682_v18  ;;  %850 = vmatpush.msra.mxu1 %v783_v22  ;;  %v760_v33 = vld [vmem:[%s1674_s4 + $0x488] sm:$0xff]  ;;  %v765_v35 = vld [vmem:[%s1674_s4 + $0x4b0] sm:$0xff]  ;;  %v658_v36 = vld [vmem:[%s1674_s4 + $0x158] sm:$0xff] }
  0xe5   : > { %v1196_v20 = vpop.eup %1195  ;;  %891 = vmatpush.msra.mxu3 %v778_v19  ;;  %832 = vmatpush.msra.mxu0 %v675_v26  ;;  %v754_v37 = vld [vmem:[%s1674_s4 + $0x458] sm:$0xff]  ;;  %v657_v38 = vld [vmem:[%s1674_s4 + $0x150] sm:$0xff]  ;;  %v759_v39 = vld [vmem:[%s1674_s4 + $0x480] sm:$0xff] }
  0xe6   : > { %v1697_v25 = vadd.f32 1.0, %v1196_v20  ;;  %872 = vmatpush.msra.mxu2 %v676_v23  ;;  %851 = vmatpush.msra.mxu1 %v777_v27  ;;  %v652_v41 = vld [vmem:[%s1674_s4 + $0x128] sm:$0xff]  ;;  %v651_v43 = vld [vmem:[%s1674_s4 + $0x120] sm:$0xff]  ;;  %v753_v44 = vld [vmem:[%s1674_s4 + $0x450] sm:$0xff] }
  0xe7   : > { %892 = vmatpush.msra.mxu3 %v772_v24  ;;  %833 = vmatpush.msra.mxu0 %v669_v30  ;;  %v748_v42 = vld [vmem:[%s1674_s4 + $0x428] sm:$0xff]  ;;  %v646_v45 = vld [vmem:[%s1674_s4 + $0xf8] sm:$0xff]  ;;  %v645_v47 = vld [vmem:[%s1674_s4 + $0xf0] sm:$0xff] }
  0xe8   : > { %1197 = vrcp.f32 %v1697_v25  ;;  %873 = vmatpush.msra.mxu2 %v670_v28  ;;  %852 = vmatpush.msra.mxu1 %v771_v31  ;;  %v742_v46 = vld [vmem:[%s1674_s4 + $0x3f8] sm:$0xff]  ;;  %v747_v48 = vld [vmem:[%s1674_s4 + $0x420] sm:$0xff]  ;;  %v640_v50 = vld [vmem:[%s1674_s4 + $0xc8] sm:$0xff]  ;;  %v610_v7 = vand.u32 2147483648, %v1697_v25  ;;  %v608_v10 = vand.u32 2147483647, %v1697_v25  ;;  %vm604_vm0 = vweird.f32 %v1697_v25 }
  0xe9   : > { %893 = vmatpush.msra.mxu3 %v766_v29  ;;  %834 = vmatpush.msra.mxu0 %v663_v34  ;;  %v736_v51 = vld [vmem:[%s1674_s4 + $0x3c8] sm:$0xff]  ;;  %v639_v52 = vld [vmem:[%s1674_s4 + $0xc0] sm:$0xff]  ;;  %v741_v53 = vld [vmem:[%s1674_s4 + $0x3f0] sm:$0xff] }
  0xea   : > { %874 = vmatpush.msra.mxu2 %v664_v32  ;;  %853 = vmatpush.msra.mxu1 %v765_v35  ;;  %v634_v54 = vld [vmem:[%s1674_s4 + $0x98] sm:$0xff]  ;;  %v633_v56 = vld [vmem:[%s1674_s4 + $0x90] sm:$0xff]  ;;  %v735_v57 = vld [vmem:[%s1674_s4 + $0x3c0] sm:$0xff]  ;;  %v611_v18 = vor.u32 1.1754944e-38, %v610_v7  ;;  %vm609_vm2 = vcmp.eq.f32.partialorder %v608_v10, 8.507059e+37 }
  0xeb   : > { %894 = vmatpush.msra.mxu3 %v760_v33  ;;  %835 = vmatpush.msra.mxu0 %v657_v38  ;;  %v730_v55 = vld [vmem:[%s1674_s4 + $0x398] sm:$0xff]  ;;  %v628_v59 = vld [vmem:[%s1674_s4 + $0x68] sm:$0xff]  ;;  %v627_v61 = vld [vmem:[%s1674_s4 + $0x60] sm:$0xff] }
  0xec   : > { %875 = vmatpush.msra.mxu2 %v658_v36  ;;  %854 = vmatpush.msra.mxu1 %v759_v39  ;;  %v724_v60 = vld [vmem:[%s1674_s4 + $0x368] sm:$0xff]  ;;  %v729_v62 = vld [vmem:[%s1674_s4 + $0x390] sm:$0xff]  ;;  %v622_v63 = vld [vmem:[%s1674_s4 + $0x38] sm:$0xff] }
  0xed   : > { %895 = vmatpush.msra.mxu3 %v754_v37  ;;  %836 = vmatpush.msra.mxu0 %v651_v43  ;;  %v718_v1 = vld [vmem:[%s1674_s4 + $0x338] sm:$0xff]  ;;  %v621_v2 = vld [vmem:[%s1674_s4 + $0x30] sm:$0xff]  ;;  %v723_v3 = vld [vmem:[%s1674_s4 + $0x360] sm:$0xff] }
  0xee   : > { %v1714_v40 = vpop.eup %1197  ;;  %876 = vmatpush.msra.mxu2 %v652_v41  ;;  %855 = vmatpush.msra.mxu1 %v753_v44  ;;  %v616_v5 = vld [vmem:[%s1674_s4 + $0x8] sm:$0xff]  ;;  %v615_v11 = vld [vmem:[%s1674_s4] sm:$0xff]  ;;  %v717_v12 = vld [vmem:[%s1674_s4 + $0x330] sm:$0xff] }
  0xef   : > { %896 = vmatpush.msra.mxu3 %v748_v42  ;;  %v600_v49 = vmul.f32 %v1714_v40, %v1697_v25  ;;  %837 = vmatpush.msra.mxu0 %v645_v47  ;;  %v712_v6 = vld [vmem:[%s1674_s4 + $0x308] sm:$0xff]  ;;  %v702_v13 = vld [vmem:[%s1674_s4 + $0x2b8] sm:$0xff]  ;;  %vm605_vm1 = vweird.f32 %v1714_v40  ;;  %v707_v16 = vld [vmem:[%s1674_s4 + $0x2e0] sm:$0xff] }
  0xf0   : > { %877 = vmatpush.msra.mxu2 %v646_v45  ;;  %856 = vmatpush.msra.mxu1 %v747_v48  ;;  %v708_v8 = vld [vmem:[%s1674_s4 + $0x2e8] sm:$0xff]  ;;  %v798_v14 = vld [vmem:[%s1674_s4 + $0x5b8] sm:$0xff]  ;;  %v711_v17 = vld [vmem:[%s1674_s4 + $0x300] sm:$0xff] }
  0xf1   : > { %897 = vmatpush.msra.mxu3 %v742_v46  ;;  %v601_v58 = vsub.f32 1.0, %v600_v49  ;;  %838 = vmatpush.msra.mxu0 %v639_v52  ;;  %v804_v9 = vld [vmem:[%s1674_s4 + $0x5e8] sm:$0xff]  ;;  %v701_v21 = vld [vmem:[%s1674_s4 + $0x2b0] sm:$0xff]  ;;  %v803_v22 = vld [vmem:[%s1674_s4 + $0x5e0] sm:$0xff] }
  0xf2   : > { %878 = vmatpush.msra.mxu2 %v640_v50  ;;  %857 = vmatpush.msra.mxu1 %v741_v53  ;;  %v696_v19 = vld [vmem:[%s1674_s4 + $0x288] sm:$0xff]  ;;  %vm606_vm3 = vmor %vm604_vm0, %vm605_vm1  ;;  %v690_v23 = vld [vmem:[%s1674_s4 + $0x258] sm:$0xff] }
  0xf3   : > { %898 = vmatpush.msra.mxu3 %v736_v51  ;;  %839 = vmatpush.msra.mxu0 %v633_v56  ;;  %v602_v4 = vmul.f32 %v1714_v40, %v601_v58  ;;  %v792_v20 = vld [vmem:[%s1674_s4 + $0x588] sm:$0xff]  ;;  %v786_v24 = vld [vmem:[%s1674_s4 + $0x558] sm:$0xff]  ;;  %v695_v27 = vld [vmem:[%s1674_s4 + $0x280] sm:$0xff] }
  0xf4   : > { %879 = vmatpush.msra.mxu2 %v634_v54  ;;  %858 = vmatpush.msra.mxu1 %v735_v57  ;;  %v797_v28 = vld [vmem:[%s1674_s4 + $0x5b0] sm:$0xff]  ;;  %v684_v25 = vld [vmem:[%s1674_s4 + $0x228] sm:$0xff]  ;;  %v791_v33 = vld [vmem:[%s1674_s4 + $0x580] sm:$0xff] }
  0xf5   : > { %899 = vmatpush.msra.mxu3 %v730_v55  ;;  %840 = vmatpush.msra.mxu0 %v627_v61  ;;  %v603_v15 = vadd.f32 %v1714_v40, %v602_v4  ;;  %v780_v30 = vld [vmem:[%s1674_s4 + $0x528] sm:$0xff]  ;;  %v689_v32 = vld [vmem:[%s1674_s4 + $0x250] sm:$0xff]  ;;  %v678_v34 = vld [vmem:[%s1674_s4 + $0x1f8] sm:$0xff] }
  0xf6   : > { %880 = vmatpush.msra.mxu2 %v628_v59  ;;  %859 = vmatpush.msra.mxu1 %v729_v62  ;;  %v774_v35 = vld [vmem:[%s1674_s4 + $0x4f8] sm:$0xff]  ;;  %v683_v36 = vld [vmem:[%s1674_s4 + $0x220] sm:$0xff]  ;;  %v672_v37 = vld [vmem:[%s1674_s4 + $0x1c8] sm:$0xff] }
  0xf7   : > { %900 = vmatpush.msra.mxu3 %v724_v60  ;;  %841 = vmatpush.msra.mxu0 %v621_v2  ;;  %v607_v26 = vsel %vm606_vm3, %v1714_v40, %v603_v15  ;;  %v768_v38 = vld [vmem:[%s1674_s4 + $0x4c8] sm:$0xff]  ;;  %v677_v39 = vld [vmem:[%s1674_s4 + $0x1f0] sm:$0xff]  ;;  %v779_v40 = vld [vmem:[%s1674_s4 + $0x520] sm:$0xff] }
  0xf8   : > { %881 = vmatpush.msra.mxu2 %v622_v63  ;;  %860 = vmatpush.msra.mxu1 %v723_v3  ;;  %v612_v29 = vsel %vm609_vm2, %v611_v18, %v607_v26  ;;  %v666_v41 = vld [vmem:[%s1674_s4 + $0x198] sm:$0xff]  ;;  %v671_v43 = vld [vmem:[%s1674_s4 + $0x1c0] sm:$0xff]  ;;  %v773_v44 = vld [vmem:[%s1674_s4 + $0x4f0] sm:$0xff] }
  0xf9   : > { %901 = vmatpush.msra.mxu3 %v718_v1  ;;  %842 = vmatpush.msra.mxu0 %v615_v11  ;;  %v614_v31 = vmul.f32 %v612_v29, %v1671_v0  ;;  %v785_v0 = vld [vmem:[%s1674_s4 + $0x550] sm:$0xff]  ;;  %v762_v42 = vld [vmem:[%s1674_s4 + $0x498] sm:$0xff]  ;;  %v660_v45 = vld [vmem:[%s1674_s4 + $0x168] sm:$0xff] }
  0xfa   : > { %882 = vmatpush.msra.mxu2 %v616_v5  ;;  %861 = vmatpush.msra.mxu1 %v717_v12  ;;  %v756_v46 = vld [vmem:[%s1674_s4 + $0x468] sm:$0xff]  ;;  %v665_v47 = vld [vmem:[%s1674_s4 + $0x190] sm:$0xff]  ;;  %v767_v48 = vld [vmem:[%s1674_s4 + $0x4c0] sm:$0xff] }
  0xfb   : > { %902 = vmatpush.msra.mxu3 %v712_v6  ;;  %907 = vmatpush.msrb.mxu0 %v707_v16  ;;  %822 = vst [vmem:[#allocation1] ss:$4 sm:$0xff] %v614_v31  ;;  %v654_v49 = vld [vmem:[%s1674_s4 + $0x138] sm:$0xff]  ;;  %v659_v51 = vld [vmem:[%s1674_s4 + $0x160] sm:$0xff]  ;;  %v761_v52 = vld [vmem:[%s1674_s4 + $0x490] sm:$0xff] }
  0xfc   : > { %947 = vmatpush.msrb.mxu2 %v708_v8  ;;  %862 = vmatpush.msra.mxu1 %v711_v17  ;;  %v750_v50 = vld [vmem:[%s1674_s4 + $0x438] sm:$0xff]  ;;  %v648_v53 = vld [vmem:[%s1674_s4 + $0x108] sm:$0xff]  ;;  %v653_v56 = vld [vmem:[%s1674_s4 + $0x130] sm:$0xff] }
  0xfd   : > { %967 = vmatpush.msrb.mxu3 %v804_v9  ;;  %908 = vmatpush.msrb.mxu0 %v701_v21  ;;  %v744_v54 = vld [vmem:[%s1674_s4 + $0x408] sm:$0xff]  ;;  %v642_v57 = vld [vmem:[%s1674_s4 + $0xd8] sm:$0xff]  ;;  %v755_v58 = vld [vmem:[%s1674_s4 + $0x460] sm:$0xff] }
  0xfe   : > { %948 = vmatpush.msrb.mxu2 %v702_v13  ;;  %927 = vmatpush.msrb.mxu1 %v803_v22  ;;  %v738_v59 = vld [vmem:[%s1674_s4 + $0x3d8] sm:$0xff]  ;;  %v647_v60 = vld [vmem:[%s1674_s4 + $0x100] sm:$0xff]  ;;  %v636_v61 = vld [vmem:[%s1674_s4 + $0xa8] sm:$0xff] }
  0xff   : > { %968 = vmatpush.msrb.mxu3 %v798_v14  ;;  %909 = vmatpush.msrb.mxu0 %v695_v27  ;;  %v749_v63 = vld [vmem:[%s1674_s4 + $0x430] sm:$0xff]  ;;  %v732_v1 = vld [vmem:[%s1674_s4 + $0x3a8] sm:$0xff]  ;;  %v630_v2 = vld [vmem:[%s1674_s4 + $0x78] sm:$0xff] }
 0x100   : > { %949 = vmatpush.msrb.mxu2 %v696_v19  ;;  %928 = vmatpush.msrb.mxu1 %v797_v28  ;;  %v641_v3 = vld [vmem:[%s1674_s4 + $0xd0] sm:$0xff]  ;;  %v743_v4 = vld [vmem:[%s1674_s4 + $0x400] sm:$0xff]  ;;  %v726_v5 = vld [vmem:[%s1674_s4 + $0x378] sm:$0xff] }
 0x101   : > { %969 = vmatpush.msrb.mxu3 %v792_v20  ;;  %910 = vmatpush.msrb.mxu0 %v689_v32  ;;  %v624_v6 = vld [vmem:[%s1674_s4 + $0x48] sm:$0xff]  ;;  %v635_v7 = vld [vmem:[%s1674_s4 + $0xa0] sm:$0xff]  ;;  %v737_v8 = vld [vmem:[%s1674_s4 + $0x3d0] sm:$0xff] }
 0x102   : > { %950 = vmatpush.msrb.mxu2 %v690_v23  ;;  %929 = vmatpush.msrb.mxu1 %v791_v33  ;;  %v1798_v55 = vld.sshfl [vmem:[#allocation1] sm:$0xff pattern:$0x73625140]  ;;  %v1807_v62 = vld.sshfl [vmem:[#allocation1 + $0x8] sm:$0xff pattern:$0x73625140] }
 0x103   : > { %970 = vmatpush.msrb.mxu3 %v786_v24  ;;  %911 = vmatpush.msrb.mxu0 %v683_v36  ;;  %v618_v9 = vld [vmem:[%s1674_s4 + $0x18] sm:$0xff]  ;;  %v720_v10 = vld [vmem:[%s1674_s4 + $0x348] sm:$0xff]  ;;  %v629_v12 = vld [vmem:[%s1674_s4 + $0x70] sm:$0xff] }
 0x104   : > { %951 = vmatpush.msrb.mxu2 %v684_v25  ;;  %930 = vmatpush.msrb.mxu1 %v785_v0  ;;  %v710_v11 = vld [vmem:[%s1674_s4 + $0x2f8] sm:$0xff]  ;;  %v731_v13 = vld [vmem:[%s1674_s4 + $0x3a0] sm:$0xff]  ;;  %v704_v15 = vld [vmem:[%s1674_s4 + $0x2c8] sm:$0xff] }
 0x105   : > { %971 = vmatpush.msrb.mxu3 %v780_v30  ;;  %912 = vmatpush.msrb.mxu0 %v677_v39  ;;  %v714_v14 = vld [vmem:[%s1674_s4 + $0x318] sm:$0xff]  ;;  %v623_v17 = vld [vmem:[%s1674_s4 + $0x40] sm:$0xff]  ;;  %v725_v18 = vld [vmem:[%s1674_s4 + $0x370] sm:$0xff] }
 0x106   : > { %952 = vmatpush.msrb.mxu2 %v678_v34  ;;  %931 = vmatpush.msrb.mxu1 %v779_v40  ;;  %v806_v16 = vld [vmem:[%s1674_s4 + $0x5f8] sm:$0xff]  ;;  %v800_v20 = vld [vmem:[%s1674_s4 + $0x5c8] sm:$0xff]  ;;  %v617_v21 = vld [vmem:[%s1674_s4 + $0x10] sm:$0xff] }
 0x107   : > { %972 = vmatpush.msrb.mxu3 %v774_v35  ;;  %913 = vmatpush.msrb.mxu0 %v671_v43  ;;  %v698_v19 = vld [vmem:[%s1674_s4 + $0x298] sm:$0xff]  ;;  %v719_v22 = vld [vmem:[%s1674_s4 + $0x340] sm:$0xff]  ;;  %v692_v23 = vld [vmem:[%s1674_s4 + $0x268] sm:$0xff] }
 0x108   : > { %953 = vmatpush.msrb.mxu2 %v672_v37  ;;  %932 = vmatpush.msrb.mxu1 %v773_v44  ;;  %v794_v24 = vld [vmem:[%s1674_s4 + $0x598] sm:$0xff]  ;;  %v713_v26 = vld [vmem:[%s1674_s4 + $0x310] sm:$0xff]  ;;  %v788_v29 = vld [vmem:[%s1674_s4 + $0x568] sm:$0xff] }
 0x109   : > { %973 = vmatpush.msrb.mxu3 %v768_v38  ;;  %914 = vmatpush.msrb.mxu0 %v665_v47  ;;  %v709_v27 = vld [vmem:[%s1674_s4 + $0x2f0] sm:$0xff]  ;;  %v686_v28 = vld [vmem:[%s1674_s4 + $0x238] sm:$0xff]  ;;  %v703_v25 = vld [vmem:[%s1674_s4 + $0x2c0] sm:$0xff] }
 0x10a   : > { %954 = vmatpush.msrb.mxu2 %v666_v41  ;;  %933 = vmatpush.msrb.mxu1 %v767_v48  ;;  %v805_v30 = vld [vmem:[%s1674_s4 + $0x5f0] sm:$0xff]  ;;  %v680_v31 = vld [vmem:[%s1674_s4 + $0x208] sm:$0xff]  ;;  %v782_v32 = vld [vmem:[%s1674_s4 + $0x538] sm:$0xff] }
 0x10b   : > { %974 = vmatpush.msrb.mxu3 %v762_v42  ;;  %915 = vmatpush.msrb.mxu0 %v659_v51  ;;  %v697_v33 = vld [vmem:[%s1674_s4 + $0x290] sm:$0xff]  ;;  %v799_v34 = vld [vmem:[%s1674_s4 + $0x5c0] sm:$0xff]  ;;  %v674_v35 = vld [vmem:[%s1674_s4 + $0x1d8] sm:$0xff] }
 0x10c   : > { %955 = vmatpush.msrb.mxu2 %v660_v45  ;;  %934 = vmatpush.msrb.mxu1 %v761_v52  ;;  %v776_v36 = vld [vmem:[%s1674_s4 + $0x508] sm:$0xff]  ;;  %v691_v0 = vld [vmem:[%s1674_s4 + $0x260] sm:$0xff]  ;;  %v793_v37 = vld [vmem:[%s1674_s4 + $0x590] sm:$0xff] }
 0x10d   : > { %975 = vmatpush.msrb.mxu3 %v756_v46  ;;  %883 = vmatmul.f32.vlgmr.msra.gmra.mxu2 %v1798_v55  ;;  %v668_v38 = vld [vmem:[%s1674_s4 + $0x1a8] sm:$0xff]  ;;  %v770_v39 = vld [vmem:[%s1674_s4 + $0x4d8] sm:$0xff]  ;;  %v685_v40 = vld [vmem:[%s1674_s4 + $0x230] sm:$0xff] }
 0x10e   : > { %956 = vmatpush.msrb.mxu2 %v654_v49  ;;  %916 = vmatpush.msrb.mxu0 %v653_v56  ;;  %v787_v41 = vld [vmem:[%s1674_s4 + $0x560] sm:$0xff]  ;;  %v662_v42 = vld [vmem:[%s1674_s4 + $0x178] sm:$0xff]  ;;  %v764_v43 = vld [vmem:[%s1674_s4 + $0x4a8] sm:$0xff] }
 0x10f   : > { %976 = vmatpush.msrb.mxu3 %v750_v50  ;;  %935 = vmatpush.msrb.mxu1 %v755_v58  ;;  %v679_v44 = vld [vmem:[%s1674_s4 + $0x200] sm:$0xff]  ;;  %v781_v45 = vld [vmem:[%s1674_s4 + $0x530] sm:$0xff]  ;;  %v656_v46 = vld [vmem:[%s1674_s4 + $0x148] sm:$0xff] }
 0x110   : > { %957 = vmatpush.msrb.mxu2 %v648_v53  ;;  %917 = vmatpush.msrb.mxu0 %v647_v60  ;;  %v758_v47 = vld [vmem:[%s1674_s4 + $0x478] sm:$0xff]  ;;  %v673_v48 = vld [vmem:[%s1674_s4 + $0x1d0] sm:$0xff]  ;;  %v775_v49 = vld [vmem:[%s1674_s4 + $0x500] sm:$0xff] }
 0x111   : > { %977 = vmatpush.msrb.mxu3 %v744_v54  ;;  %936 = vmatpush.msrb.mxu1 %v749_v63  ;;  %v650_v50 = vld [vmem:[%s1674_s4 + $0x118] sm:$0xff]  ;;  %v752_v51 = vld [vmem:[%s1674_s4 + $0x448] sm:$0xff]  ;;  %v667_v52 = vld [vmem:[%s1674_s4 + $0x1a0] sm:$0xff] }
 0x112   : > { %958 = vmatpush.msrb.mxu2 %v642_v57  ;;  %903 = vmatmul.f32.vlgmr.msra.gmra.mxu3 %v1807_v62  ;;  %v769_v53 = vld [vmem:[%s1674_s4 + $0x4d0] sm:$0xff]  ;;  %v644_v54 = vld [vmem:[%s1674_s4 + $0xe8] sm:$0xff]  ;;  %v746_v56 = vld [vmem:[%s1674_s4 + $0x418] sm:$0xff] }
 0x113   : > { %978 = vmatpush.msrb.mxu3 %v738_v59  ;;  %918 = vmatpush.msrb.mxu0 %v641_v3  ;;  %v661_v57 = vld [vmem:[%s1674_s4 + $0x170] sm:$0xff]  ;;  %v763_v58 = vld [vmem:[%s1674_s4 + $0x4a0] sm:$0xff]  ;;  %v638_v59 = vld [vmem:[%s1674_s4 + $0xb8] sm:$0xff] }
 0x114   : > { %959 = vmatpush.msrb.mxu2 %v636_v61  ;;  %937 = vmatpush.msrb.mxu1 %v743_v4  ;;  %v740_v60 = vld [vmem:[%s1674_s4 + $0x3e8] sm:$0xff]  ;;  %v655_v61 = vld [vmem:[%s1674_s4 + $0x140] sm:$0xff]  ;;  %v757_v63 = vld [vmem:[%s1674_s4 + $0x470] sm:$0xff] }
 0x115   : > { %979 = vmatpush.msrb.mxu3 %v732_v1  ;;  %843 = vmatmul.f32.vlgmr.msra.gmra.mxu0 %v1798_v55  ;;  %v632_v1 = vld [vmem:[%s1674_s4 + $0x88] sm:$0xff]  ;;  %v649_v3 = vld [vmem:[%s1674_s4 + $0x110] sm:$0xff]  ;;  %v751_v4 = vld [vmem:[%s1674_s4 + $0x440] sm:$0xff] }
 0x116   : > { %960 = vmatpush.msrb.mxu2 %v630_v2  ;;  %919 = vmatpush.msrb.mxu0 %v635_v7  ;;  %v734_v2 = vld [vmem:[%s1674_s4 + $0x3b8] sm:$0xff]  ;;  %v643_v7 = vld [vmem:[%s1674_s4 + $0xe0] sm:$0xff] }
 0x117   : > { %980 = vmatpush.msrb.mxu3 %v726_v5  ;;  %938 = vmatpush.msrb.mxu1 %v737_v8  ;;  %v626_v5 = vld [vmem:[%s1674_s4 + $0x58] sm:$0xff]  ;;  %v745_v8 = vld [vmem:[%s1674_s4 + $0x410] sm:$0xff] }
 0x118   : > { %961 = vmatpush.msrb.mxu2 %v624_v6  ;;  %863 = vmatmul.f32.vlgmr.msra.gmra.mxu1 %v1807_v62  ;;  %v728_v6 = vld [vmem:[%s1674_s4 + $0x388] sm:$0xff] }
 0x119   : > { %981 = vmatpush.msrb.mxu3 %v720_v10  ;;  %920 = vmatpush.msrb.mxu0 %v629_v12  ;;  %v722_v10 = vld [vmem:[%s1674_s4 + $0x358] sm:$0xff]  ;;  %v739_v12 = vld [vmem:[%s1674_s4 + $0x3e0] sm:$0xff] }
 0x11a   : > { %962 = vmatpush.msrb.mxu2 %v618_v9  ;;  %939 = vmatpush.msrb.mxu1 %v731_v13  ;;  %v620_v9 = vld [vmem:[%s1674_s4 + $0x28] sm:$0xff] }
 0x11b   : > { %963 = vmatmul.f32.vlgmr.msrb.gmra.mxu2 %v1798_v55  ;;  %982 = vmatpush.msrb.mxu3 %v714_v14  ;;  %v716_v13 = vld [vmem:[%s1674_s4 + $0x328] sm:$0xff]  ;;  %v631_v14 = vld [vmem:[%s1674_s4 + $0x80] sm:$0xff] }
 0x11c   : > { %1027 = vmatpush.msra.mxu2 %v710_v11  ;;  %983 = vmatmul.f32.vlgmr.msrb.gmra.mxu3 %v1807_v62  ;;  %v637_v11 = vld [vmem:[%s1674_s4 + $0xb0] sm:$0xff] }
 0x11d   : > { %1047 = vmatpush.msra.mxu3 %v806_v16  ;;  %921 = vmatpush.msrb.mxu0 %v623_v17  ;;  %v625_v16 = vld [vmem:[%s1674_s4 + $0x50] sm:$0xff]  ;;  %v727_v17 = vld [vmem:[%s1674_s4 + $0x380] sm:$0xff] }
 0x11e   : > { %1028 = vmatpush.msra.mxu2 %v704_v15  ;;  %940 = vmatpush.msrb.mxu1 %v725_v18  ;;  %v733_v15 = vld [vmem:[%s1674_s4 + $0x3b0] sm:$0xff]  ;;  %v619_v18 = vld [vmem:[%s1674_s4 + $0x20] sm:$0xff] }
 0x11f   : > { %1048 = vmatpush.msra.mxu3 %v800_v20  ;;  %922 = vmatpush.msrb.mxu0 %v617_v21  ;;  %v715_v20 = vld [vmem:[%s1674_s4 + $0x320] sm:$0xff]  ;;  %v807_v21 = vld [vmem:[%s586_s8] sm:$0x3f] }
 0x120   : > { %1029 = vmatpush.msra.mxu2 %v698_v19  ;;  %941 = vmatpush.msrb.mxu1 %v719_v22  ;;  %v721_v19 = vld [vmem:[%s1674_s4 + $0x350] sm:$0xff] }
 0x121   : > { %923 = vmatmul.f32.vlgmr.msrb.gmra.mxu0 %v1798_v55  ;;  %1049 = vmatpush.msra.mxu3 %v794_v24  ;;  %v810_v24 = vperm.slane %v807_v21, 1 }
 0x122   : > { %1030 = vmatpush.msra.mxu2 %v692_v23  ;;  %942 = vmatpush.msrb.mxu1 %v713_v26 }
 0x123   : > { %987 = vmatpush.msra.mxu0 %v709_v27  ;;  %943 = vmatmul.f32.vlgmr.msrb.gmra.mxu1 %v1807_v62 }
 0x124   : > { %1031 = vmatpush.msra.mxu2 %v686_v28  ;;  %1050 = vmatpush.msra.mxu3 %v788_v29  ;;  %v811_v29 = vperm.slane %v807_v21, 2 }
 0x125   : > { %988 = vmatpush.msra.mxu0 %v703_v25  ;;  %1007 = vmatpush.msra.mxu1 %v805_v30 }
 0x126   : > { %1032 = vmatpush.msra.mxu2 %v680_v31  ;;  %1051 = vmatpush.msra.mxu3 %v782_v32 }
 0x127   : > { %989 = vmatpush.msra.mxu0 %v697_v33  ;;  %1008 = vmatpush.msra.mxu1 %v799_v34 }
 0x128   : > { %1033 = vmatpush.msra.mxu2 %v674_v35  ;;  %1052 = vmatpush.msra.mxu3 %v776_v36 }
 0x129   : > { %990 = vmatpush.msra.mxu0 %v691_v0  ;;  %1009 = vmatpush.msra.mxu1 %v793_v37 }
 0x12a   : > { %1034 = vmatpush.msra.mxu2 %v668_v38  ;;  %1053 = vmatpush.msra.mxu3 %v770_v39 }
 0x12b   : > { %991 = vmatpush.msra.mxu0 %v685_v40  ;;  %1010 = vmatpush.msra.mxu1 %v787_v41 }
 0x12c   : > { %1035 = vmatpush.msra.mxu2 %v662_v42  ;;  %1054 = vmatpush.msra.mxu3 %v764_v43 }
 0x12d   : > { %992 = vmatpush.msra.mxu0 %v679_v44  ;;  %1011 = vmatpush.msra.mxu1 %v781_v45  ;;  %v814_v45 = vperm.slane %v807_v21, 5 }
 0x12e   : > { %1036 = vmatpush.msra.mxu2 %v656_v46  ;;  %1055 = vmatpush.msra.mxu3 %v758_v47  ;;  %v813_v46 = vperm.slane %v807_v21, 4 }
 0x12f   : > { %993 = vmatpush.msra.mxu0 %v673_v48  ;;  %1012 = vmatpush.msra.mxu1 %v775_v49 }
 0x130   : > { %1037 = vmatpush.msra.mxu2 %v650_v50  ;;  %1056 = vmatpush.msra.mxu3 %v752_v51 }
 0x131   : > { %994 = vmatpush.msra.mxu0 %v667_v52  ;;  %1013 = vmatpush.msra.mxu1 %v769_v53 }
 0x132   : > { %1038 = vmatpush.msra.mxu2 %v644_v54  ;;  %1057 = vmatpush.msra.mxu3 %v746_v56 }
 0x133   : > { %995 = vmatpush.msra.mxu0 %v661_v57  ;;  %1014 = vmatpush.msra.mxu1 %v763_v58 }
 0x134   : > { %1039 = vmatpush.msra.mxu2 %v638_v59  ;;  %1058 = vmatpush.msra.mxu3 %v740_v60 }
 0x135   : > { %996 = vmatpush.msra.mxu0 %v655_v61  ;;  %1015 = vmatpush.msra.mxu1 %v757_v63 }
 0x136   : > { %1040 = vmatpush.msra.mxu2 %v632_v1  ;;  %1059 = vmatpush.msra.mxu3 %v734_v2 }
 0x137   : > { %997 = vmatpush.msra.mxu0 %v649_v3  ;;  %1016 = vmatpush.msra.mxu1 %v751_v4 }
 0x138   : > { %1041 = vmatpush.msra.mxu2 %v626_v5  ;;  %1060 = vmatpush.msra.mxu3 %v728_v6 }
 0x139   : > { %998 = vmatpush.msra.mxu0 %v643_v7  ;;  %1017 = vmatpush.msra.mxu1 %v745_v8 }
 0x13a   : > { %1042 = vmatpush.msra.mxu2 %v620_v9  ;;  %1061 = vmatpush.msra.mxu3 %v722_v10 }
 0x13b   : > { %1043 = vmatmul.f32.vlgmr.msra.gmra.mxu2 %v1798_v55  ;;  %999 = vmatpush.msra.mxu0 %v637_v11 }
 0x13c   : > { %1018 = vmatpush.msra.mxu1 %v739_v12  ;;  %1062 = vmatpush.msra.mxu3 %v716_v13 }
 0x13d   : > { %1063 = vmatmul.f32.vlgmr.msra.gmra.mxu3 %v1807_v62  ;;  %1000 = vmatpush.msra.mxu0 %v631_v14 }
 0x13e   : > { %1019 = vmatpush.msra.mxu1 %v733_v15 }
 0x13f   : > { %1001 = vmatpush.msra.mxu0 %v625_v16 }
 0x140   : > { %1020 = vmatpush.msra.mxu1 %v727_v17 }
 0x141   : > { %1002 = vmatpush.msra.mxu0 %v619_v18 }
 0x142   : > { %1021 = vmatpush.msra.mxu1 %v721_v19  ;;  %1003 = vmatmul.f32.vlgmr.msra.gmra.mxu0 %v1798_v55  ;;  %v809_v55 = vperm.slane %v807_v21, 0 }
 0x144   : > { %1022 = vmatpush.msra.mxu1 %v715_v20 }
 0x145   : > { %1023 = vmatmul.f32.vlgmr.msra.gmra.mxu1 %v1807_v62  ;;  %v812_v62 = vperm.slane %v807_v21, 3 }
 0x190   : > { %v884_v22 = vpop.f32.mrf.mxu2 }
 0x191   : > { %v885_v28 = vadd.f32 %v884_v22, %v810_v24 }
 0x192   : > { %v844_v23 = vpop.f32.mrf.mxu0 }
 0x193   : > { %v845_v25 = vadd.f32 %v844_v23, %v809_v55 }
 0x195   : > { %v904_v26 = vpop.f32.mrf.mxu3  ;;  %v864_v27 = vpop.f32.mrf.mxu1 }
 0x196   : > { %v905_v30 = vadd.f32 %v904_v26, %v885_v28  ;;  %v865_v35 = vadd.f32 %v864_v27, %v845_v25 }
 0x198   : > { %v1073_v36 = vrot.slane %v905_v30, 6 }
 0x19a   : > { %v1078_v41 = vsel %vm1077_vm4, %v865_v35, %v1073_v36 }
 0x19e   : > { %v964_v31 = vpop.f32.mrf.mxu2  ;;  %v924_v32 = vpop.f32.mrf.mxu0 }
 0x19f   : > { %v965_v33 = vadd.f32 %v964_v31, %v812_v62  ;;  %v925_v34 = vadd.f32 %v924_v32, %v811_v29  ;;  %v984_v0 = vpop.f32.mrf.mxu3 }
 0x1a0   : > { %v944_v37 = vpop.f32.mrf.mxu1 }
 0x1a1   : > { %v985_v38 = vadd.f32 %v984_v0, %v965_v33  ;;  %v945_v39 = vadd.f32 %v944_v37, %v925_v34 }
 0x1a3   : > { %v1075_v40 = vrot.slane %v985_v38, 2  ;;  %v1074_v42 = vrot.slane %v945_v39, 4 }
 0x1a5   : > { %v1080_v43 = vsel %vm1079_vm5, %v1074_v42, %v1075_v40 }
 0x1a6   : > { %v1082_v44 = vsel %vm1081_vm6, %v1078_v41, %v1080_v43 }
 0x1a7   : > { %1086 = vst [vmem:[%s592_s12] sm:$0xff] %v1082_v44 }
 0x1be   : > { %v1044_v47 = vpop.f32.mrf.mxu2 }
 0x1bf   : > { %v1045_v48 = vadd.f32 %v1044_v47, %v814_v45  ;;  %v1004_v49 = vpop.f32.mrf.mxu0 }
 0x1c0   : > { %v1005_v50 = vadd.f32 %v1004_v49, %v813_v46  ;;  %v1064_v51 = vpop.f32.mrf.mxu3 }
 0x1c1   : > { %v1065_v52 = vadd.f32 %v1064_v51, %v1045_v48 }
 0x1c2   : > { %v1024_v53 = vpop.f32.mrf.mxu1 }
 0x1c3   : > { %v1076_v54 = vrot.slane %v1065_v52, 6  ;;  %v1025_v56 = vadd.f32 %v1024_v53, %v1005_v50 }
 0x1c5   : > { %v1083_v57 = vsel %vm1077_vm4, %v1025_v56, %v1076_v54 }
 0x1c6   : > { %1087 = vst [vmem:[%s592_s12 + $0x8] sm:$0xf] %v1083_v57 }
 0x1c7 PF: > { %p10_p9 = scmp.ge.s32.totalorder %s1260_s16, 4   ;;  %s1931_s12 = smov %s1217_s13 }
 0x1c8   : > { %s1932_s13 = smov %s1269_s19  ;;  %s1933_s14 = smov %s1260_s16 }
 0x1c9   :  { %12 = sbr.rel (!%p10_p9) target bundleno = 2 (0x2), region = 93 }

// kernel: image_stream_block_pallas.10
= control target key start
LH: loop header
LB: loop body
LE: loop exit
PB: predicated region body
PF: predicated region fallthrough
CT: control target
= control target key end

     0   :  { %s1598_s0 = inlined_call_operand.vmem [shape: f32[2,8,256], index: 0, kind: input, shape index: {}]   ;;  %s1599_s1 = inlined_call_operand.vmem [shape: f32[2,1,256], index: 1, kind: input, shape index: {}]   ;;  %s1600_s2 = inlined_call_operand.vmem [shape: f32[2,1,256], index: 2, kind: input, shape index: {}]   ;;  %s1601_s3 = inlined_call_operand.vmem [shape: f32[256,768], index: 3, kind: input, shape index: {}]   ;;  %s1602_s4 = inlined_call_operand.vmem [shape: f32[1,768], index: 4, kind: input, shape index: {}]   ;;  %s1603_s5 = inlined_call_operand.vmem [shape: f32[2,8,768], index: 5, kind: output, shape index: {}]  }
   0x1   :  { %1604 = sst [smem:[#allocation4_spill]] %s1598_s0 }
   0x2   :  { %s1179_s18 = smov 0   ;;  %s1181_s19 = smov 0  }
   0x3   :  { %s1183_s20 = smov 0   ;;  %s1185_s21 = smov 0  }
   0x4   :  { %s1187_s22 = smov 0   ;;  %s1189_s23 = smov 0  }
   0x5   :  { %s1191_s24 = smov 0  }
   0x6 LB: > { %s27_s25 = sadd.s32 1, %s1138_s22  ;;  %s34_s26 = sadd.s32 1, %s1142_s23  ;;  %s1146_s24 = sphi %s1191_s24, %s15_s24   ;;  %s1142_s23 = sphi %s1189_s23, %s1611_s23   ;;  %s1138_s22 = sphi %s1187_s22, %s1610_s22   ;;  %s1134_s21 = sphi %s1185_s21, %s1609_s21   ;;  %s1130_s20 = sphi %s1183_s20, %s1608_s20   ;;  %s1126_s19 = sphi %s1181_s19, %s1607_s19   ;;  %s1122_s18 = sphi %s1179_s18, %s1606_s18  }
   0x7   : > { %p28_p0 = scmp.ge.s32.totalorder %s27_s25, 2  ;;  %s121_s27 = sadd.s32 1, %s1126_s19 }
   0x8   : > { %p128_p1 = scmp.ne.s32.totalorder %s1126_s19, %s1122_s18  ;;  %p129_p2 = scmp.eq.s32.totalorder %s1146_s24, 0 }
   0x9   : > { %s1613_s25 = smov (%p28_p0, %s27_s25), 0  ;;  %s1615_s26 = smov (!%p28_p0, %s34_s26), %s1142_s23 }
   0xa   : > { %s118_s28 = ssub.s32 %s1138_s22, %s1613_s25  ;;  %p130_p3 = por %p129_p2, %p128_p1 }
   0xb   : > { %p36_p4 = scmp.ge.s32.totalorder %s1615_s26, 2  ;;  %p119_p5 = scmp.eq.s32.totalorder %s118_s28, 0 }
   0xc   : > { %p1015_p6 = scmp.ge.s32.totalorder %s1146_s24, 4 }
   0xd   : > { %s1617_s26 = smov (%p36_p4, %s1615_s26), 0 }
   0xe   : > { %s1228_s29 = scalar_select %p119_p5, %s1126_s19, %s121_s27  }
   0xf   : > { %210 = sbr.rel (%p1015_p6) target bundleno = 121 (0x79), region = 16 }
  0x14   : > { %239 = sbr.rel (!%p130_p3) target bundleno = 121 (0x79), region = 32  ;;  %s241_s30 = sand.u32 (%p130_p3), 1, %s1126_s19  }
  0x15   : > { %s1026_s6 = smul.u32 (%p130_p3), 24, %s1138_s22 }
  0x16   : > { %s1028_s7 = smul.u32 (%p130_p3), 768, %s241_s30 }
  0x17   : > { %s1236_s10 = scalar_lea.vmem (%p130_p3), %s1601_s3, %s1026_s6 }
  0x18   : > { %v259_v0 = vld [vmem:[%s1236_s10] sm:$0xff] (%p130_p3)  ;;  %v261_v1 = vld [vmem:[%s1236_s10 + $0x8] sm:$0xff] (%p130_p3)  ;;  %v263_v2 = vld [vmem:[%s1236_s10 + $0x10] sm:$0xff] (%p130_p3)  ;;  %s1241_s11 = scalar_lea.vmem (%p130_p3), [#allocation3], %s1028_s7 }
  0x19   : > { %260 = vst [vmem:[%s1241_s11] sm:$0xff] %v259_v0  ;;  %v265_v3 = vld [vmem:[%s1236_s10 + $0x30] sm:$0xff]  ;;  %v267_v4 = vld [vmem:[%s1236_s10 + $0x38] sm:$0xff]  ;;  %v269_v5 = vld [vmem:[%s1236_s10 + $0x40] sm:$0xff] }
  0x1a   : > { %262 = vst [vmem:[%s1241_s11 + $0x8] sm:$0xff] %v261_v1  ;;  %v271_v6 = vld [vmem:[%s1236_s10 + $0x60] sm:$0xff]  ;;  %v273_v7 = vld [vmem:[%s1236_s10 + $0x68] sm:$0xff]  ;;  %v275_v8 = vld [vmem:[%s1236_s10 + $0x70] sm:$0xff] }
  0x1b   : > { %264 = vst [vmem:[%s1241_s11 + $0x10] sm:$0xff] %v263_v2  ;;  %v277_v9 = vld [vmem:[%s1236_s10 + $0x90] sm:$0xff]  ;;  %v279_v10 = vld [vmem:[%s1236_s10 + $0x98] sm:$0xff]  ;;  %v281_v11 = vld [vmem:[%s1236_s10 + $0xa0] sm:$0xff] }
  0x1c   : > { %266 = vst [vmem:[%s1241_s11 + $0x18] sm:$0xff] %v265_v3  ;;  %v283_v12 = vld [vmem:[%s1236_s10 + $0xc0] sm:$0xff]  ;;  %v285_v13 = vld [vmem:[%s1236_s10 + $0xc8] sm:$0xff]  ;;  %v287_v14 = vld [vmem:[%s1236_s10 + $0xd0] sm:$0xff] }
  0x1d   : > { %268 = vst [vmem:[%s1241_s11 + $0x20] sm:$0xff] %v267_v4  ;;  %v289_v15 = vld [vmem:[%s1236_s10 + $0xf0] sm:$0xff]  ;;  %v291_v16 = vld [vmem:[%s1236_s10 + $0xf8] sm:$0xff]  ;;  %v293_v17 = vld [vmem:[%s1236_s10 + $0x100] sm:$0xff] }
  0x1e   : > { %270 = vst [vmem:[%s1241_s11 + $0x28] sm:$0xff] %v269_v5  ;;  %v295_v18 = vld [vmem:[%s1236_s10 + $0x120] sm:$0xff]  ;;  %v297_v19 = vld [vmem:[%s1236_s10 + $0x128] sm:$0xff]  ;;  %v299_v20 = vld [vmem:[%s1236_s10 + $0x130] sm:$0xff] }
  0x1f   : > { %272 = vst [vmem:[%s1241_s11 + $0x30] sm:$0xff] %v271_v6  ;;  %v301_v21 = vld [vmem:[%s1236_s10 + $0x150] sm:$0xff]  ;;  %v303_v22 = vld [vmem:[%s1236_s10 + $0x158] sm:$0xff]  ;;  %v305_v23 = vld [vmem:[%s1236_s10 + $0x160] sm:$0xff] }
  0x20   : > { %274 = vst [vmem:[%s1241_s11 + $0x38] sm:$0xff] %v273_v7  ;;  %v307_v24 = vld [vmem:[%s1236_s10 + $0x180] sm:$0xff]  ;;  %v309_v25 = vld [vmem:[%s1236_s10 + $0x188] sm:$0xff]  ;;  %v311_v26 = vld [vmem:[%s1236_s10 + $0x190] sm:$0xff] }
  0x21   : > { %276 = vst [vmem:[%s1241_s11 + $0x40] sm:$0xff] %v275_v8  ;;  %v313_v27 = vld [vmem:[%s1236_s10 + $0x1b0] sm:$0xff]  ;;  %v315_v28 = vld [vmem:[%s1236_s10 + $0x1b8] sm:$0xff]  ;;  %v317_v29 = vld [vmem:[%s1236_s10 + $0x1c0] sm:$0xff] }
  0x22   : > { %278 = vst [vmem:[%s1241_s11 + $0x48] sm:$0xff] %v277_v9  ;;  %v319_v30 = vld [vmem:[%s1236_s10 + $0x1e0] sm:$0xff]  ;;  %v321_v31 = vld [vmem:[%s1236_s10 + $0x1e8] sm:$0xff]  ;;  %v323_v32 = vld [vmem:[%s1236_s10 + $0x1f0] sm:$0xff] }
  0x23   : > { %280 = vst [vmem:[%s1241_s11 + $0x50] sm:$0xff] %v279_v10  ;;  %v325_v33 = vld [vmem:[%s1236_s10 + $0x210] sm:$0xff]  ;;  %v327_v34 = vld [vmem:[%s1236_s10 + $0x218] sm:$0xff]  ;;  %v329_v35 = vld [vmem:[%s1236_s10 + $0x220] sm:$0xff] }
  0x24   : > { %282 = vst [vmem:[%s1241_s11 + $0x58] sm:$0xff] %v281_v11  ;;  %v331_v36 = vld [vmem:[%s1236_s10 + $0x240] sm:$0xff]  ;;  %v333_v37 = vld [vmem:[%s1236_s10 + $0x248] sm:$0xff]  ;;  %v335_v38 = vld [vmem:[%s1236_s10 + $0x250] sm:$0xff] }
  0x25   : > { %284 = vst [vmem:[%s1241_s11 + $0x60] sm:$0xff] %v283_v12  ;;  %v337_v39 = vld [vmem:[%s1236_s10 + $0x270] sm:$0xff]  ;;  %v339_v40 = vld [vmem:[%s1236_s10 + $0x278] sm:$0xff]  ;;  %v341_v41 = vld [vmem:[%s1236_s10 + $0x280] sm:$0xff] }
  0x26   : > { %286 = vst [vmem:[%s1241_s11 + $0x68] sm:$0xff] %v285_v13  ;;  %v343_v42 = vld [vmem:[%s1236_s10 + $0x2a0] sm:$0xff]  ;;  %v345_v43 = vld [vmem:[%s1236_s10 + $0x2a8] sm:$0xff]  ;;  %v347_v44 = vld [vmem:[%s1236_s10 + $0x2b0] sm:$0xff] }
  0x27   : > { %288 = vst [vmem:[%s1241_s11 + $0x70] sm:$0xff] %v287_v14  ;;  %v349_v45 = vld [vmem:[%s1236_s10 + $0x2d0] sm:$0xff]  ;;  %v351_v46 = vld [vmem:[%s1236_s10 + $0x2d8] sm:$0xff]  ;;  %v353_v47 = vld [vmem:[%s1236_s10 + $0x2e0] sm:$0xff] }
  0x28   : > { %290 = vst [vmem:[%s1241_s11 + $0x78] sm:$0xff] %v289_v15  ;;  %v355_v48 = vld [vmem:[%s1236_s10 + $0x300] sm:$0xff]  ;;  %v357_v49 = vld [vmem:[%s1236_s10 + $0x308] sm:$0xff]  ;;  %v359_v50 = vld [vmem:[%s1236_s10 + $0x310] sm:$0xff] }
  0x29   : > { %292 = vst [vmem:[%s1241_s11 + $0x80] sm:$0xff] %v291_v16  ;;  %v361_v51 = vld [vmem:[%s1236_s10 + $0x330] sm:$0xff]  ;;  %v363_v52 = vld [vmem:[%s1236_s10 + $0x338] sm:$0xff]  ;;  %v365_v53 = vld [vmem:[%s1236_s10 + $0x340] sm:$0xff] }
  0x2a   : > { %294 = vst [vmem:[%s1241_s11 + $0x88] sm:$0xff] %v293_v17  ;;  %v367_v54 = vld [vmem:[%s1236_s10 + $0x360] sm:$0xff]  ;;  %v369_v55 = vld [vmem:[%s1236_s10 + $0x368] sm:$0xff]  ;;  %v371_v56 = vld [vmem:[%s1236_s10 + $0x370] sm:$0xff] }
  0x2b   : > { %296 = vst [vmem:[%s1241_s11 + $0x90] sm:$0xff] %v295_v18  ;;  %v373_v57 = vld [vmem:[%s1236_s10 + $0x390] sm:$0xff]  ;;  %v375_v58 = vld [vmem:[%s1236_s10 + $0x398] sm:$0xff]  ;;  %v377_v59 = vld [vmem:[%s1236_s10 + $0x3a0] sm:$0xff] }
  0x2c   : > { %298 = vst [vmem:[%s1241_s11 + $0x98] sm:$0xff] %v297_v19  ;;  %v379_v60 = vld [vmem:[%s1236_s10 + $0x3c0] sm:$0xff]  ;;  %v381_v61 = vld [vmem:[%s1236_s10 + $0x3c8] sm:$0xff]  ;;  %v383_v62 = vld [vmem:[%s1236_s10 + $0x3d0] sm:$0xff] }
  0x2d   : > { %300 = vst [vmem:[%s1241_s11 + $0xa0] sm:$0xff] %v299_v20  ;;  %v385_v63 = vld [vmem:[%s1236_s10 + $0x3f0] sm:$0xff]  ;;  %v387_v0 = vld [vmem:[%s1236_s10 + $0x3f8] sm:$0xff]  ;;  %v389_v1 = vld [vmem:[%s1236_s10 + $0x400] sm:$0xff] }
  0x2e   : > { %302 = vst [vmem:[%s1241_s11 + $0xa8] sm:$0xff] %v301_v21  ;;  %v391_v2 = vld [vmem:[%s1236_s10 + $0x420] sm:$0xff]  ;;  %v393_v3 = vld [vmem:[%s1236_s10 + $0x428] sm:$0xff]  ;;  %v395_v4 = vld [vmem:[%s1236_s10 + $0x430] sm:$0xff] }
  0x2f   : > { %304 = vst [vmem:[%s1241_s11 + $0xb0] sm:$0xff] %v303_v22  ;;  %v397_v5 = vld [vmem:[%s1236_s10 + $0x450] sm:$0xff]  ;;  %v399_v6 = vld [vmem:[%s1236_s10 + $0x458] sm:$0xff]  ;;  %v401_v7 = vld [vmem:[%s1236_s10 + $0x460] sm:$0xff] }
  0x30   : > { %306 = vst [vmem:[%s1241_s11 + $0xb8] sm:$0xff] %v305_v23  ;;  %v403_v8 = vld [vmem:[%s1236_s10 + $0x480] sm:$0xff]  ;;  %v405_v9 = vld [vmem:[%s1236_s10 + $0x488] sm:$0xff]  ;;  %v407_v10 = vld [vmem:[%s1236_s10 + $0x490] sm:$0xff] }
  0x31   : > { %308 = vst [vmem:[%s1241_s11 + $0xc0] sm:$0xff] %v307_v24  ;;  %v409_v11 = vld [vmem:[%s1236_s10 + $0x4b0] sm:$0xff]  ;;  %v411_v12 = vld [vmem:[%s1236_s10 + $0x4b8] sm:$0xff]  ;;  %v413_v13 = vld [vmem:[%s1236_s10 + $0x4c0] sm:$0xff] }
  0x32   : > { %310 = vst [vmem:[%s1241_s11 + $0xc8] sm:$0xff] %v309_v25  ;;  %v415_v14 = vld [vmem:[%s1236_s10 + $0x4e0] sm:$0xff]  ;;  %v417_v15 = vld [vmem:[%s1236_s10 + $0x4e8] sm:$0xff]  ;;  %v419_v16 = vld [vmem:[%s1236_s10 + $0x4f0] sm:$0xff] }
  0x33   : > { %312 = vst [vmem:[%s1241_s11 + $0xd0] sm:$0xff] %v311_v26  ;;  %v421_v17 = vld [vmem:[%s1236_s10 + $0x510] sm:$0xff]  ;;  %v423_v18 = vld [vmem:[%s1236_s10 + $0x518] sm:$0xff]  ;;  %v425_v19 = vld [vmem:[%s1236_s10 + $0x520] sm:$0xff] }
  0x34   : > { %314 = vst [vmem:[%s1241_s11 + $0xd8] sm:$0xff] %v313_v27  ;;  %v427_v20 = vld [vmem:[%s1236_s10 + $0x540] sm:$0xff]  ;;  %v429_v21 = vld [vmem:[%s1236_s10 + $0x548] sm:$0xff]  ;;  %v431_v22 = vld [vmem:[%s1236_s10 + $0x550] sm:$0xff] }
  0x35   : > { %316 = vst [vmem:[%s1241_s11 + $0xe0] sm:$0xff] %v315_v28  ;;  %v433_v23 = vld [vmem:[%s1236_s10 + $0x570] sm:$0xff]  ;;  %v435_v24 = vld [vmem:[%s1236_s10 + $0x578] sm:$0xff]  ;;  %v437_v25 = vld [vmem:[%s1236_s10 + $0x580] sm:$0xff] }
  0x36   : > { %318 = vst [vmem:[%s1241_s11 + $0xe8] sm:$0xff] %v317_v29  ;;  %v439_v26 = vld [vmem:[%s1236_s10 + $0x5a0] sm:$0xff]  ;;  %v441_v27 = vld [vmem:[%s1236_s10 + $0x5a8] sm:$0xff]  ;;  %v443_v28 = vld [vmem:[%s1236_s10 + $0x5b0] sm:$0xff] }
  0x37   : > { %320 = vst [vmem:[%s1241_s11 + $0xf0] sm:$0xff] %v319_v30  ;;  %v445_v29 = vld [vmem:[%s1236_s10 + $0x5d0] sm:$0xff]  ;;  %v447_v30 = vld [vmem:[%s1236_s10 + $0x5d8] sm:$0xff] }
  0x38   : > { %322 = vst [vmem:[%s1241_s11 + $0xf8] sm:$0xff] %v321_v31  ;;  %v449_v31 = vld [vmem:[%s1236_s10 + $0x5e0] sm:$0xff] }
  0x39   : > { %324 = vst [vmem:[%s1241_s11 + $0x100] sm:$0xff] %v323_v32 }
  0x3a   : > { %326 = vst [vmem:[%s1241_s11 + $0x108] sm:$0xff] %v325_v33 }
  0x3b   : > { %328 = vst [vmem:[%s1241_s11 + $0x110] sm:$0xff] %v327_v34 }
  0x3c   : > { %330 = vst [vmem:[%s1241_s11 + $0x118] sm:$0xff] %v329_v35 }
  0x3d   : > { %332 = vst [vmem:[%s1241_s11 + $0x120] sm:$0xff] %v331_v36 }
  0x3e   : > { %334 = vst [vmem:[%s1241_s11 + $0x128] sm:$0xff] %v333_v37 }
  0x3f   : > { %336 = vst [vmem:[%s1241_s11 + $0x130] sm:$0xff] %v335_v38 }
  0x40   : > { %338 = vst [vmem:[%s1241_s11 + $0x138] sm:$0xff] %v337_v39 }
  0x41   : > { %340 = vst [vmem:[%s1241_s11 + $0x140] sm:$0xff] %v339_v40 }
  0x42   : > { %342 = vst [vmem:[%s1241_s11 + $0x148] sm:$0xff] %v341_v41 }
  0x43   : > { %344 = vst [vmem:[%s1241_s11 + $0x150] sm:$0xff] %v343_v42 }
  0x44   : > { %346 = vst [vmem:[%s1241_s11 + $0x158] sm:$0xff] %v345_v43 }
  0x45   : > { %348 = vst [vmem:[%s1241_s11 + $0x160] sm:$0xff] %v347_v44 }
  0x46   : > { %350 = vst [vmem:[%s1241_s11 + $0x168] sm:$0xff] %v349_v45 }
  0x47   : > { %352 = vst [vmem:[%s1241_s11 + $0x170] sm:$0xff] %v351_v46 }
  0x48   : > { %354 = vst [vmem:[%s1241_s11 + $0x178] sm:$0xff] %v353_v47 }
  0x49   : > { %356 = vst [vmem:[%s1241_s11 + $0x180] sm:$0xff] %v355_v48 }
  0x4a   : > { %358 = vst [vmem:[%s1241_s11 + $0x188] sm:$0xff] %v357_v49 }
  0x4b   : > { %360 = vst [vmem:[%s1241_s11 + $0x190] sm:$0xff] %v359_v50 }
  0x4c   : > { %362 = vst [vmem:[%s1241_s11 + $0x198] sm:$0xff] %v361_v51 }
  0x4d   : > { %364 = vst [vmem:[%s1241_s11 + $0x1a0] sm:$0xff] %v363_v52 }
  0x4e   : > { %366 = vst [vmem:[%s1241_s11 + $0x1a8] sm:$0xff] %v365_v53 }
  0x4f   : > { %368 = vst [vmem:[%s1241_s11 + $0x1b0] sm:$0xff] %v367_v54 }
  0x50   : > { %370 = vst [vmem:[%s1241_s11 + $0x1b8] sm:$0xff] %v369_v55 }
  0x51   : > { %372 = vst [vmem:[%s1241_s11 + $0x1c0] sm:$0xff] %v371_v56 }
  0x52   : > { %374 = vst [vmem:[%s1241_s11 + $0x1c8] sm:$0xff] %v373_v57 }
  0x53   : > { %376 = vst [vmem:[%s1241_s11 + $0x1d0] sm:$0xff] %v375_v58 }
  0x54   : > { %378 = vst [vmem:[%s1241_s11 + $0x1d8] sm:$0xff] %v377_v59 }
  0x55   : > { %380 = vst [vmem:[%s1241_s11 + $0x1e0] sm:$0xff] %v379_v60 }
  0x56   : > { %382 = vst [vmem:[%s1241_s11 + $0x1e8] sm:$0xff] %v381_v61 }
  0x57   : > { %384 = vst [vmem:[%s1241_s11 + $0x1f0] sm:$0xff] %v383_v62 }
  0x58   : > { %386 = vst [vmem:[%s1241_s11 + $0x1f8] sm:$0xff] %v385_v63 }
  0x59   : > { %388 = vst [vmem:[%s1241_s11 + $0x200] sm:$0xff] %v387_v0 }
  0x5a   : > { %390 = vst [vmem:[%s1241_s11 + $0x208] sm:$0xff] %v389_v1 }
  0x5b   : > { %392 = vst [vmem:[%s1241_s11 + $0x210] sm:$0xff] %v391_v2 }
  0x5c   : > { %394 = vst [vmem:[%s1241_s11 + $0x218] sm:$0xff] %v393_v3 }
  0x5d   : > { %396 = vst [vmem:[%s1241_s11 + $0x220] sm:$0xff] %v395_v4 }
  0x5e   : > { %398 = vst [vmem:[%s1241_s11 + $0x228] sm:$0xff] %v397_v5 }
  0x5f   : > { %400 = vst [vmem:[%s1241_s11 + $0x230] sm:$0xff] %v399_v6 }
  0x60   : > { %402 = vst [vmem:[%s1241_s11 + $0x238] sm:$0xff] %v401_v7 }
  0x61   : > { %404 = vst [vmem:[%s1241_s11 + $0x240] sm:$0xff] %v403_v8 }
  0x62   : > { %406 = vst [vmem:[%s1241_s11 + $0x248] sm:$0xff] %v405_v9 }
  0x63   : > { %408 = vst [vmem:[%s1241_s11 + $0x250] sm:$0xff] %v407_v10 }
  0x64   : > { %410 = vst [vmem:[%s1241_s11 + $0x258] sm:$0xff] %v409_v11 }
  0x65   : > { %412 = vst [vmem:[%s1241_s11 + $0x260] sm:$0xff] %v411_v12 }
  0x66   : > { %414 = vst [vmem:[%s1241_s11 + $0x268] sm:$0xff] %v413_v13 }
  0x67   : > { %416 = vst [vmem:[%s1241_s11 + $0x270] sm:$0xff] %v415_v14 }
  0x68   : > { %418 = vst [vmem:[%s1241_s11 + $0x278] sm:$0xff] %v417_v15 }
  0x69   : > { %420 = vst [vmem:[%s1241_s11 + $0x280] sm:$0xff] %v419_v16 }
  0x6a   : > { %422 = vst [vmem:[%s1241_s11 + $0x288] sm:$0xff] %v421_v17 }
  0x6b   : > { %424 = vst [vmem:[%s1241_s11 + $0x290] sm:$0xff] %v423_v18 }
  0x6c   : > { %426 = vst [vmem:[%s1241_s11 + $0x298] sm:$0xff] %v425_v19 }
  0x6d   : > { %428 = vst [vmem:[%s1241_s11 + $0x2a0] sm:$0xff] %v427_v20 }
  0x6e   : > { %430 = vst [vmem:[%s1241_s11 + $0x2a8] sm:$0xff] %v429_v21 }
  0x6f   : > { %432 = vst [vmem:[%s1241_s11 + $0x2b0] sm:$0xff] %v431_v22 }
  0x70   : > { %434 = vst [vmem:[%s1241_s11 + $0x2b8] sm:$0xff] %v433_v23 }
  0x71   : > { %436 = vst [vmem:[%s1241_s11 + $0x2c0] sm:$0xff] %v435_v24 }
  0x72   : > { %438 = vst [vmem:[%s1241_s11 + $0x2c8] sm:$0xff] %v437_v25 }
  0x73   : > { %440 = vst [vmem:[%s1241_s11 + $0x2d0] sm:$0xff] %v439_v26 }
  0x74   : > { %442 = vst [vmem:[%s1241_s11 + $0x2d8] sm:$0xff] %v441_v27 }
  0x75   : > { %444 = vst [vmem:[%s1241_s11 + $0x2e0] sm:$0xff] %v443_v28 }
  0x76   : > { %446 = vst [vmem:[%s1241_s11 + $0x2e8] sm:$0xff] %v445_v29 }
  0x77   : > { %448 = vst [vmem:[%s1241_s11 + $0x2f0] sm:$0xff] %v447_v30 }
  0x78   : > { %450 = vst [vmem:[%s1241_s11 + $0x2f8] sm:$0xff] %v449_v31 }
  0x79 PF: > { %p1017_p7 = scmp.ge.s32.totalorder %s1146_s24, 1  ;;  %p463_p8 = scmp.lt.s32.totalorder %s1146_s24, 5 }
  0x7b   : > { %p464_p9 = pnand %p1017_p7, %p463_p8 }
  0x7c   : > { %s470_s12 = sand.u32 (!%p464_p9), 1, %s1122_s18   ;;  %p526_p10 = scmp.lt.s32.totalorder (!%p464_p9), %s1134_s21, 1 }
  0x7d   : > { %467 = sbr.rel (%p464_p9) target bundleno = 607 (0x25f), region = 59  ;;  %s1605_s0 = sld [smem:[#allocation4_spill]] (!%p464_p9) }
  0x7e   : > { %s1029_s13 = smul.u32 (!%p464_p9), 768, %s470_s12  ;;  %p1023_p12 = scmp.ne.s32.totalorder (!%p464_p9), %s1130_s20, 0 }
  0x7f   : > { %s544_s14 = smul.u32 (!%p464_p9), 3, %s1130_s20 }
  0x80   : > { %s1463_s8 = scalar_lea.vmem (!%p464_p9), [#allocation3], %s1029_s13 }
  0x81   : > { %p545_p11 = scmp.lt.s32.totalorder (!%p464_p9), %s544_s14, 5 }
  0x82   : > { %s1619_s21 = smov (!%p526_p10, %s1134_s21), 1 }
  0x83   : > { %s1027_s15 = sshll.u32 %s1619_s21, 4  ;;  %s1020_s16 = sshll.u32 %s1619_s21, 1 }
  0x84   : > { %s534_s28 = scalar_lea.vmem %s1605_s0, %s1027_s15  ;;  %s1444_s7 = scalar_lea.vmem %s1599_s1, %s1020_s16 }
  0x85   : > { %s1449_s10 = scalar_lea.vmem %s1600_s2, %s1020_s16  ;;  %s1030_s18 = smul.u32 6, %s1619_s21 }
  0x86   : > { %s1621_s14 = smov (!%p545_p11, %s544_s14), 5  ;;  %566 = sbr.rel (%p1023_p12) target bundleno = 412 (0x19c), region = 67 }
  0x87   : > { %s547_s15 = scalar_lea.vmem %s1602_s4, %s1621_s14  ;;  %s559_s17 = sadd.s32 %s1030_s18, %s1621_s14 }
  0x88   : > { %s1022_s27 = sshll.u32 %s559_s17, 3 }
  0x89   : > { %s1461_s0 = scalar_lea.vmem %s1603_s5, %s1022_s27 }
  0x8b   : > { %v567_v32 = vld [vmem:[%s534_s28] sm:$0xff]  ;;  %v568_v33 = vld [vmem:[%s534_s28 + $0x8] sm:$0xff]  ;;  %v1148_v35 = vmov 256.0  }
  0x8c   : > { %v569_v34 = vadd.f32 %v568_v33, %v567_v32  ;;  %1088 = vrcp.f32 %v1148_v35  ;;  %v601_v54 = vld [vmem:[%s1444_s7] sm:$0x3] }
  0x8d   : > { %v602_v57 = vadd.f32 1.0, %v601_v54  ;;  %v610_v59 = vld [vmem:[%s1449_s10] sm:$0x3] }
  0x8e   : > { %570 = vadd.xlane.f32.xlu0 %v569_v34  ;;  %v612_v0 = vperm.slane %v610_v59, 0  ;;  %v613_v1 = vperm.slane %v610_v59, 1 }
  0x8f   : > { %v604_v61 = vperm.slane %v602_v57, 0  ;;  %v605_v62 = vperm.slane %v602_v57, 1 }
  0x92   : > { %v1089_v36 = vpop.eup %1088 }
  0x93   : > { %v573_v37 = vmul.f32 256.0, %v1089_v36  ;;  %vm577_vm0 = vweird.f32 %v1089_v36 }
  0x95   : > { %v574_v38 = vsub.f32 1.0, %v573_v37 }
  0x97   : > { %v575_v39 = vmul.f32 %v1089_v36, %v574_v38 }
  0x99   : > { %v576_v40 = vadd.f32 %v1089_v36, %v575_v39 }
  0x9b   : > { %v578_v41 = vsel %vm577_vm0, %v1089_v36, %v576_v40 }
 0x101   : > { %v571_v42 = vpop.xlane.xlu0 %570 }
 0x102   : > { %v579_v43 = vmul.f32 %v578_v41, %v571_v42 }
 0x104   : > { %v580_v44 = vsub.f32 %v567_v32, %v579_v43  ;;  %v581_v45 = vsub.f32 %v568_v33, %v579_v43 }
 0x106   : > { %v582_v46 = vmul.f32 %v580_v44, %v580_v44  ;;  %v583_v47 = vmul.f32 %v581_v45, %v581_v45 }
 0x108   : > { %v584_v48 = vadd.f32 %v583_v47, %v582_v46 }
 0x10a   : > { %585 = vadd.xlane.f32.xlu0 %v584_v48 }
 0x17d   : > { %v586_v49 = vpop.xlane.xlu0 %585 }
 0x17e   : > { %v587_v50 = vmul.f32 %v586_v49, %v578_v41 }
 0x180   : > { %v588_v51 = vadd.f32 1e-06, %v587_v50 }
 0x182   : > { %1090 = vrsqrt.f32 %v588_v51  ;;  %vm595_vm2 = vweird.f32 %v588_v51 }
 0x188   : > { %v1091_v52 = vpop.eup %1090 }
 0x189   : > { %v590_v53 = vmul.f32 %v1091_v52, %v588_v51  ;;  %vm596_vm1 = vweird.f32 %v1091_v52 }
 0x18a   : > { %vm597_vm3 = vmor %vm595_vm2, %vm596_vm1 }
 0x18b   : > { %v591_v55 = vmul.f32 %v1091_v52, %v590_v53 }
 0x18d   : > { %v592_v56 = vmul.f32 0.5, %v591_v55 }
 0x18f   : > { %v593_v58 = vsub.f32 1.5, %v592_v56 }
 0x191   : > { %v594_v60 = vmul.f32 %v1091_v52, %v593_v58 }
 0x193   : > { %v598_v63 = vsel %vm597_vm3, %v1091_v52, %v594_v60 }
 0x194   : > { %v599_v2 = vmul.f32 %v598_v63, %v580_v44  ;;  %v600_v3 = vmul.f32 %v598_v63, %v581_v45 }
 0x196   : > { %v608_v4 = vmul.f32 %v604_v61, %v599_v2  ;;  %v609_v5 = vmul.f32 %v605_v62, %v600_v3 }
 0x198   : > { %v616_v6 = vadd.f32 %v612_v0, %v608_v4  ;;  %v617_v7 = vadd.f32 %v613_v1, %v609_v5 }
 0x19a   : > { %618 = vst [vmem:[#allocation2] sm:$0xff] %v616_v6 }
 0x19b   : > { %619 = vst [vmem:[#allocation2 + $0x8] sm:$0xff] %v617_v7 }
 0x19c PF: > { %v667_v8 = vld [vmem:[%s1463_s8 + $0x168] sm:$0xff]  ;;  %v664_v9 = vld [vmem:[%s1463_s8 + $0x150] sm:$0xff]  ;;  %v661_v12 = vld [vmem:[%s1463_s8 + $0x138] sm:$0xff] }
 0x19d   : > { %v715_v10 = vld [vmem:[%s1463_s8 + $0x2e8] sm:$0xff]  ;;  %726 = vmatpush.msra.mxu0 %v667_v8  ;;  %v712_v11 = vld [vmem:[%s1463_s8 + $0x2d0] sm:$0xff]  ;;  %v709_v13 = vld [vmem:[%s1463_s8 + $0x2b8] sm:$0xff] }
 0x19e   : > { %746 = vmatpush.msra.mxu1 %v715_v10  ;;  %v658_v14 = vld [vmem:[%s1463_s8 + $0x120] sm:$0xff]  ;;  %v655_v16 = vld [vmem:[%s1463_s8 + $0x108] sm:$0xff]  ;;  %v652_v18 = vld [vmem:[%s1463_s8 + $0xf0] sm:$0xff] }
 0x19f   : > { %727 = vmatpush.msra.mxu0 %v664_v9  ;;  %v706_v15 = vld [vmem:[%s1463_s8 + $0x2a0] sm:$0xff]  ;;  %v703_v17 = vld [vmem:[%s1463_s8 + $0x288] sm:$0xff]  ;;  %v700_v19 = vld [vmem:[%s1463_s8 + $0x270] sm:$0xff] }
 0x1a0   : > { %747 = vmatpush.msra.mxu1 %v712_v11  ;;  %v668_v20 = vld [vmem:[%s1463_s8 + $0x170] sm:$0xff]  ;;  %v665_v21 = vld [vmem:[%s1463_s8 + $0x158] sm:$0xff]  ;;  %v662_v25 = vld [vmem:[%s1463_s8 + $0x140] sm:$0xff] }
 0x1a1   : > { %728 = vmatpush.msra.mxu0 %v661_v12  ;;  %v716_v22 = vld [vmem:[%s1463_s8 + $0x2f0] sm:$0xff]  ;;  %v649_v23 = vld [vmem:[%s1463_s8 + $0xd8] sm:$0xff]  ;;  %766 = vmatpush.msra.mxu2 %v668_v20  ;;  %v646_v27 = vld [vmem:[%s1463_s8 + $0xc0] sm:$0xff] }
 0x1a2   : > { %748 = vmatpush.msra.mxu1 %v709_v13  ;;  %v697_v24 = vld [vmem:[%s1463_s8 + $0x258] sm:$0xff]  ;;  %786 = vmatpush.msra.mxu3 %v716_v22  ;;  %v694_v28 = vld [vmem:[%s1463_s8 + $0x240] sm:$0xff]  ;;  %v659_v30 = vld [vmem:[%s1463_s8 + $0x128] sm:$0xff] }
 0x1a3   : > { %729 = vmatpush.msra.mxu0 %v658_v14  ;;  %v713_v26 = vld [vmem:[%s1463_s8 + $0x2d8] sm:$0xff]  ;;  %767 = vmatpush.msra.mxu2 %v665_v21  ;;  %v710_v29 = vld [vmem:[%s1463_s8 + $0x2c0] sm:$0xff]  ;;  %v707_v31 = vld [vmem:[%s1463_s8 + $0x2a8] sm:$0xff] }
 0x1a4   : > { %749 = vmatpush.msra.mxu1 %v706_v15  ;;  %787 = vmatpush.msra.mxu3 %v713_v26  ;;  %v643_v32 = vld [vmem:[%s1463_s8 + $0xa8] sm:$0xff]  ;;  %v656_v34 = vld [vmem:[%s1463_s8 + $0x110] sm:$0xff]  ;;  %v653_v38 = vld [vmem:[%s1463_s8 + $0xf8] sm:$0xff] }
 0x1a5   : > { %730 = vmatpush.msra.mxu0 %v655_v16  ;;  %v691_v33 = vld [vmem:[%s1463_s8 + $0x228] sm:$0xff]  ;;  %768 = vmatpush.msra.mxu2 %v662_v25  ;;  %v704_v35 = vld [vmem:[%s1463_s8 + $0x290] sm:$0xff]  ;;  %v701_v39 = vld [vmem:[%s1463_s8 + $0x278] sm:$0xff] }
 0x1a6   : > { %750 = vmatpush.msra.mxu1 %v703_v17  ;;  %788 = vmatpush.msra.mxu3 %v710_v29  ;;  %v640_v36 = vld [vmem:[%s1463_s8 + $0x90] sm:$0xff]  ;;  %v637_v40 = vld [vmem:[%s1463_s8 + $0x78] sm:$0xff]  ;;  %v650_v42 = vld [vmem:[%s1463_s8 + $0xe0] sm:$0xff] }
 0x1a7   : > { %731 = vmatpush.msra.mxu0 %v652_v18  ;;  %v688_v37 = vld [vmem:[%s1463_s8 + $0x210] sm:$0xff]  ;;  %769 = vmatpush.msra.mxu2 %v659_v30  ;;  %v685_v41 = vld [vmem:[%s1463_s8 + $0x1f8] sm:$0xff]  ;;  %v698_v43 = vld [vmem:[%s1463_s8 + $0x260] sm:$0xff] }
 0x1a8   : > { %751 = vmatpush.msra.mxu1 %v700_v19  ;;  %789 = vmatpush.msra.mxu3 %v707_v31  ;;  %v634_v44 = vld [vmem:[%s1463_s8 + $0x60] sm:$0xff]  ;;  %v647_v46 = vld [vmem:[%s1463_s8 + $0xc8] sm:$0xff]  ;;  %v644_v50 = vld [vmem:[%s1463_s8 + $0xb0] sm:$0xff] }
 0x1a9   : > { %732 = vmatpush.msra.mxu0 %v649_v23  ;;  %770 = vmatpush.msra.mxu2 %v656_v34  ;;  %v682_v45 = vld [vmem:[%s1463_s8 + $0x1e0] sm:$0xff]  ;;  %v695_v47 = vld [vmem:[%s1463_s8 + $0x248] sm:$0xff]  ;;  %v692_v51 = vld [vmem:[%s1463_s8 + $0x230] sm:$0xff] }
 0x1aa   : > { %752 = vmatpush.msra.mxu1 %v697_v24  ;;  %790 = vmatpush.msra.mxu3 %v704_v35  ;;  %v631_v48 = vld [vmem:[%s1463_s8 + $0x48] sm:$0xff]  ;;  %v628_v52 = vld [vmem:[%s1463_s8 + $0x30] sm:$0xff]  ;;  %v641_v54 = vld [vmem:[%s1463_s8 + $0x98] sm:$0xff] }
 0x1ab   : > { %733 = vmatpush.msra.mxu0 %v646_v27  ;;  %771 = vmatpush.msra.mxu2 %v653_v38  ;;  %v679_v49 = vld [vmem:[%s1463_s8 + $0x1c8] sm:$0xff]  ;;  %v676_v53 = vld [vmem:[%s1463_s8 + $0x1b0] sm:$0xff]  ;;  %v689_v55 = vld [vmem:[%s1463_s8 + $0x218] sm:$0xff] }
 0x1ac   : > { %753 = vmatpush.msra.mxu1 %v694_v28  ;;  %791 = vmatpush.msra.mxu3 %v701_v39  ;;  %v625_v56 = vld [vmem:[%s1463_s8 + $0x18] sm:$0xff]  ;;  %v638_v58 = vld [vmem:[%s1463_s8 + $0x80] sm:$0xff]  ;;  %v635_v0 = vld [vmem:[%s1463_s8 + $0x68] sm:$0xff] }
 0x1ad   : > { %734 = vmatpush.msra.mxu0 %v643_v32  ;;  %772 = vmatpush.msra.mxu2 %v650_v42  ;;  %v673_v57 = vld [vmem:[%s1463_s8 + $0x198] sm:$0xff]  ;;  %v686_v59 = vld [vmem:[%s1463_s8 + $0x200] sm:$0xff]  ;;  %v683_v1 = vld [vmem:[%s1463_s8 + $0x1e8] sm:$0xff] }
 0x1ae   : > { %754 = vmatpush.msra.mxu1 %v691_v33  ;;  %792 = vmatpush.msra.mxu3 %v698_v43  ;;  %v622_v60 = vld [vmem:[%s1463_s8] sm:$0xff]  ;;  %v669_v62 = vld [vmem:[%s1463_s8 + $0x178] sm:$0xff]  ;;  %v632_v4 = vld [vmem:[%s1463_s8 + $0x50] sm:$0xff] }
 0x1af   : > { %735 = vmatpush.msra.mxu0 %v640_v36  ;;  %773 = vmatpush.msra.mxu2 %v647_v46  ;;  %v670_v61 = vld [vmem:[%s1463_s8 + $0x180] sm:$0xff]  ;;  %v717_v63 = vld [vmem:[%s1463_s8 + $0x2f8] sm:$0xff]  ;;  %v680_v5 = vld [vmem:[%s1463_s8 + $0x1d0] sm:$0xff] }
 0x1b0   : > { %755 = vmatpush.msra.mxu1 %v688_v37  ;;  %793 = vmatpush.msra.mxu3 %v695_v47  ;;  %v666_v2 = vld [vmem:[%s1463_s8 + $0x160] sm:$0xff]  ;;  %v663_v6 = vld [vmem:[%s1463_s8 + $0x148] sm:$0xff]  ;;  %v629_v8 = vld [vmem:[%s1463_s8 + $0x38] sm:$0xff] }
 0x1b1   : > { %736 = vmatpush.msra.mxu0 %v637_v40  ;;  %774 = vmatpush.msra.mxu2 %v644_v50  ;;  %v714_v3 = vld [vmem:[%s1463_s8 + $0x2e0] sm:$0xff]  ;;  %v711_v7 = vld [vmem:[%s1463_s8 + $0x2c8] sm:$0xff]  ;;  %v677_v9 = vld [vmem:[%s1463_s8 + $0x1b8] sm:$0xff] }
 0x1b2   : > { %756 = vmatpush.msra.mxu1 %v685_v41  ;;  %794 = vmatpush.msra.mxu3 %v692_v51  ;;  %v660_v10 = vld [vmem:[%s1463_s8 + $0x130] sm:$0xff]  ;;  %v626_v12 = vld [vmem:[%s1463_s8 + $0x20] sm:$0xff]  ;;  %v657_v14 = vld [vmem:[%s1463_s8 + $0x118] sm:$0xff] }
 0x1b3   : > { %737 = vmatpush.msra.mxu0 %v634_v44  ;;  %775 = vmatpush.msra.mxu2 %v641_v54  ;;  %v708_v11 = vld [vmem:[%s1463_s8 + $0x2b0] sm:$0xff]  ;;  %v705_v15 = vld [vmem:[%s1463_s8 + $0x298] sm:$0xff]  ;;  %v623_v16 = vld [vmem:[%s1463_s8 + $0x8] sm:$0xff] }
 0x1b4   : > { %757 = vmatpush.msra.mxu1 %v682_v45  ;;  %795 = vmatpush.msra.mxu3 %v689_v55  ;;  %v1537_v13 = vld [vmem:[#allocation2] sm:$0xff]  ;;  %v674_v17 = vld [vmem:[%s1463_s8 + $0x1a0] sm:$0xff]  ;;  %v621_v20 = vld [vmem:[#allocation2 + $0x8] sm:$0xff] }
 0x1b5   : > { %738 = vmatpush.msra.mxu0 %v631_v48  ;;  %776 = vmatpush.msra.mxu2 %v638_v58  ;;  %v654_v18 = vld [vmem:[%s1463_s8 + $0x100] sm:$0xff]  ;;  %v651_v21 = vld [vmem:[%s1463_s8 + $0xe8] sm:$0xff]  ;;  %v648_v24 = vld [vmem:[%s1463_s8 + $0xd0] sm:$0xff] }
 0x1b6   : > { %758 = vmatpush.msra.mxu1 %v679_v49  ;;  %796 = vmatpush.msra.mxu3 %v686_v59  ;;  %v702_v19 = vld [vmem:[%s1463_s8 + $0x280] sm:$0xff]  ;;  %v699_v22 = vld [vmem:[%s1463_s8 + $0x268] sm:$0xff]  ;;  %v696_v25 = vld [vmem:[%s1463_s8 + $0x250] sm:$0xff] }
 0x1b7   : > { %739 = vmatpush.msra.mxu0 %v628_v52  ;;  %777 = vmatpush.msra.mxu2 %v635_v0  ;;  %v671_v23 = vld [vmem:[%s1463_s8 + $0x188] sm:$0xff]  ;;  %v645_v26 = vld [vmem:[%s1463_s8 + $0xb8] sm:$0xff]  ;;  %v642_v28 = vld [vmem:[%s1463_s8 + $0xa0] sm:$0xff] }
 0x1b8   : > { %759 = vmatpush.msra.mxu1 %v676_v53  ;;  %797 = vmatpush.msra.mxu3 %v683_v1  ;;  %v693_v27 = vld [vmem:[%s1463_s8 + $0x238] sm:$0xff]  ;;  %v690_v29 = vld [vmem:[%s1463_s8 + $0x220] sm:$0xff]  ;;  %v639_v30 = vld [vmem:[%s1463_s8 + $0x88] sm:$0xff] }
 0x1b9   : > { %740 = vmatpush.msra.mxu0 %v625_v56  ;;  %778 = vmatpush.msra.mxu2 %v632_v4  ;;  %v687_v31 = vld [vmem:[%s1463_s8 + $0x208] sm:$0xff]  ;;  %v636_v32 = vld [vmem:[%s1463_s8 + $0x70] sm:$0xff]  ;;  %v633_v34 = vld [vmem:[%s1463_s8 + $0x58] sm:$0xff] }
 0x1ba   : > { %760 = vmatpush.msra.mxu1 %v673_v57  ;;  %798 = vmatpush.msra.mxu3 %v680_v5  ;;  %v684_v33 = vld [vmem:[%s1463_s8 + $0x1f0] sm:$0xff]  ;;  %v681_v35 = vld [vmem:[%s1463_s8 + $0x1d8] sm:$0xff]  ;;  %v630_v36 = vld [vmem:[%s1463_s8 + $0x40] sm:$0xff] }
 0x1bb   : > { %741 = vmatpush.msra.mxu0 %v622_v60  ;;  %779 = vmatpush.msra.mxu2 %v629_v8  ;;  %v678_v37 = vld [vmem:[%s1463_s8 + $0x1c0] sm:$0xff]  ;;  %v627_v38 = vld [vmem:[%s1463_s8 + $0x28] sm:$0xff]  ;;  %v624_v40 = vld [vmem:[%s1463_s8 + $0x10] sm:$0xff] }
 0x1bc   : > { %761 = vmatpush.msra.mxu1 %v670_v61  ;;  %799 = vmatpush.msra.mxu3 %v677_v9  ;;  %v675_v39 = vld [vmem:[%s1463_s8 + $0x1a8] sm:$0xff]  ;;  %v672_v41 = vld [vmem:[%s1463_s8 + $0x190] sm:$0xff] }
 0x1bd   : > { %806 = vmatpush.msrb.mxu0 %v669_v62  ;;  %780 = vmatpush.msra.mxu2 %v626_v12  ;;  %v718_v42 = vld [vmem:[%s547_s15] sm:$0x7] }
 0x1be   : > { %826 = vmatpush.msrb.mxu1 %v717_v63  ;;  %742 = vmatmul.f32.vlgmr.msra.gmra.mxu0 %v1537_v13  ;;  %v720_v43 = vperm.slane %v718_v42, 0  ;;  %v721_v48 = vperm.slane %v718_v42, 1  ;;  %v722_v53 = vperm.slane %v718_v42, 2 }
 0x1bf   : > { %807 = vmatpush.msrb.mxu0 %v666_v2  ;;  %781 = vmatpush.msra.mxu2 %v623_v16 }
 0x1c0   : > { %827 = vmatpush.msrb.mxu1 %v714_v3  ;;  %800 = vmatpush.msra.mxu3 %v674_v17 }
 0x1c1   : > { %808 = vmatpush.msrb.mxu0 %v663_v6  ;;  %762 = vmatmul.f32.vlgmr.msra.gmra.mxu1 %v621_v20 }
 0x1c2   : > { %828 = vmatpush.msrb.mxu1 %v711_v7  ;;  %782 = vmatmul.f32.vlgmr.msra.gmra.mxu2 %v1537_v13 }
 0x1c3   : > { %809 = vmatpush.msrb.mxu0 %v660_v10  ;;  %801 = vmatpush.msra.mxu3 %v671_v23 }
 0x1c4   : > { %829 = vmatpush.msrb.mxu1 %v708_v11  ;;  %802 = vmatmul.f32.vlgmr.msra.gmra.mxu3 %v621_v20 }
 0x1c5   : > { %810 = vmatpush.msrb.mxu0 %v657_v14 }
 0x1c6   : > { %830 = vmatpush.msrb.mxu1 %v705_v15 }
 0x1c7   : > { %811 = vmatpush.msrb.mxu0 %v654_v18 }
 0x1c8   : > { %831 = vmatpush.msrb.mxu1 %v702_v19 }
 0x1c9   : > { %812 = vmatpush.msrb.mxu0 %v651_v21 }
 0x1ca   : > { %832 = vmatpush.msrb.mxu1 %v699_v22 }
 0x1cb   : > { %813 = vmatpush.msrb.mxu0 %v648_v24 }
 0x1cc   : > { %833 = vmatpush.msrb.mxu1 %v696_v25 }
 0x1cd   : > { %814 = vmatpush.msrb.mxu0 %v645_v26 }
 0x1ce   : > { %834 = vmatpush.msrb.mxu1 %v693_v27 }
 0x1cf   : > { %815 = vmatpush.msrb.mxu0 %v642_v28 }
 0x1d0   : > { %835 = vmatpush.msrb.mxu1 %v690_v29 }
 0x1d1   : > { %816 = vmatpush.msrb.mxu0 %v639_v30 }
 0x1d2   : > { %836 = vmatpush.msrb.mxu1 %v687_v31 }
 0x1d3   : > { %817 = vmatpush.msrb.mxu0 %v636_v32 }
 0x1d4   : > { %837 = vmatpush.msrb.mxu1 %v684_v33 }
 0x1d5   : > { %818 = vmatpush.msrb.mxu0 %v633_v34 }
 0x1d6   : > { %838 = vmatpush.msrb.mxu1 %v681_v35 }
 0x1d7   : > { %819 = vmatpush.msrb.mxu0 %v630_v36 }
 0x1d8   : > { %839 = vmatpush.msrb.mxu1 %v678_v37 }
 0x1d9   : > { %820 = vmatpush.msrb.mxu0 %v627_v38 }
 0x1da   : > { %840 = vmatpush.msrb.mxu1 %v675_v39 }
 0x1db   : > { %821 = vmatpush.msrb.mxu0 %v624_v40 }
 0x1dc   : > { %841 = vmatpush.msrb.mxu1 %v672_v41  ;;  %822 = vmatmul.f32.vlgmr.msrb.gmra.mxu0 %v1537_v13 }
 0x1dd   : > { %842 = vmatmul.f32.vlgmr.msrb.gmra.mxu1 %v621_v20 }
 0x23b   : > { %v743_v44 = vpop.f32.mrf.mxu0 }
 0x23c   : > { %v744_v45 = vadd.f32 %v743_v44, %v720_v43 }
 0x23e   : > { %v763_v46 = vpop.f32.mrf.mxu1 }
 0x23f   : > { %v764_v47 = vadd.f32 %v763_v46, %v744_v45 }
 0x241   : > { %846 = vst [vmem:[%s1461_s0] sm:$0xff] %v764_v47 }
 0x245   : > { %v783_v49 = vpop.f32.mrf.mxu2 }
 0x246   : > { %v784_v50 = vadd.f32 %v783_v49, %v721_v48 }
 0x247   : > { %v803_v51 = vpop.f32.mrf.mxu3 }
 0x248   : > { %v804_v52 = vadd.f32 %v803_v51, %v784_v50 }
 0x24a   : > { %847 = vst [vmem:[%s1461_s0 + $0x8] sm:$0xff] %v804_v52 }
 0x259   : > { %v823_v54 = vpop.f32.mrf.mxu0 }
 0x25a   : > { %v843_v55 = vpop.f32.mrf.mxu1  ;;  %v824_v56 = vadd.f32 %v823_v54, %v722_v53 }
 0x25c   : > { %v844_v57 = vadd.f32 %v843_v55, %v824_v56 }
 0x25e   : > { %848 = vst [vmem:[%s1461_s0 + $0x10] sm:$0xff] %v844_v57 }
 0x25f PF: > { %s15_s24 = sadd.s32 1, %s1146_s24   ;;  %s1606_s18 = smov %s1126_s19 }
 0x260   : > { %p12_p13 = scmp.ge.s32.totalorder %s15_s24, 6   ;;  %s1607_s19 = smov %s1228_s29 }
 0x261   : > { %s1608_s20 = smov %s1138_s22  ;;  %s1609_s21 = smov %s1142_s23 }
 0x262   : > { %s1610_s22 = smov %s1613_s25  ;;  %s1611_s23 = smov %s1617_s26 }
 0x263   :  { %14 = sbr.rel (!%p12_p13) target bundleno = 6 (0x6), region = 114 }

// kernel: image_stream_block_pallas.12
= control target key start
LH: loop header
LB: loop body
LE: loop exit
PB: predicated region body
PF: predicated region fallthrough
CT: control target
= control target key end

     0   :  { %s879_s18 = smov 0   ;;  %s881_s19 = smov 0   ;;  %s1134_s0 = inlined_call_operand.vmem [shape: f32[2,16,256], index: 0, kind: input, shape index: {}]   ;;  %s1135_s1 = inlined_call_operand.vmem [shape: f32[256,256], index: 1, kind: input, shape index: {}]   ;;  %s1136_s2 = inlined_call_operand.vmem [shape: f32[1,256], index: 2, kind: input, shape index: {}]   ;;  %s1137_s3 = inlined_call_operand.vmem [shape: f32[2,1,256], index: 3, kind: input, shape index: {}]   ;;  %s1138_s4 = inlined_call_operand.vmem [shape: f32[2,16,256], index: 4, kind: input, shape index: {}]   ;;  %s1139_s5 = inlined_call_operand.vmem [shape: f32[2,16,256], index: 5, kind: output, shape index: {}]  }
   0x1   :  { %s883_s20 = smov 0  }
   0x2 LB: > { %s34_s21 = sadd.s32 1, %s843_s19  ;;  %p788_p0 = scmp.ge.s32.totalorder %s847_s20, 1  ;;  %s847_s20 = sphi %s883_s20, %s15_s20   ;;  %s843_s19 = sphi %s881_s19, %s1141_s19   ;;  %s839_s18 = sphi %s879_s18, %s1140_s18  }
   0x3   : > { %p36_p1 = scmp.ge.s32.totalorder %s34_s21, 2  ;;  %p280_p2 = scmp.lt.s32.totalorder %s847_s20, 3 }
   0x5   : > { %s1143_s21 = smov (%p36_p1, %s34_s21), 0  ;;  %p281_p3 = pnand %p788_p0, %p280_p2 }
   0x6   : > { %p354_p4 = scmp.lt.s32.totalorder (!%p281_p3), %s839_s18, 1 }
   0x7   : > { %284 = sbr.rel (%p281_p3) target bundleno = 193 (0xc1), region = 40 }
   0xc   : > { %v451_v0 = vld [vmem:[%s1135_s1 + $0xf8] sm:$0xff]  ;;  %v449_v1 = vld [vmem:[%s1135_s1 + $0xe8] sm:$0xff]  ;;  %v450_v4 = vld [vmem:[%s1135_s1 + $0xf0] sm:$0xff]  ;;  %s1145_s18 = smov (!%p354_p4, %s839_s18), 1 }
   0xd   : > { %v483_v2 = vld [vmem:[%s1135_s1 + $0x1f8] sm:$0xff]  ;;  %536 = vmatpush.msra.mxu2 %v451_v0  ;;  %v481_v3 = vld [vmem:[%s1135_s1 + $0x1e8] sm:$0xff]  ;;  %490 = vmatpush.msra.mxu0 %v450_v4  ;;  %v448_v7 = vld [vmem:[%s1135_s1 + $0xe0] sm:$0xff]  ;;  %s1059_s15 = sshll.u32 %s1145_s18, 5  ;;  %s791_s29 = sshll.u32 %s1145_s18, 1 }
   0xe   : > { %559 = vmatpush.msra.mxu3 %v483_v2  ;;  %v447_v5 = vld [vmem:[%s1135_s1 + $0xd8] sm:$0xff]  ;;  %v445_v8 = vld [vmem:[%s1135_s1 + $0xc8] sm:$0xff]  ;;  %v482_v9 = vld [vmem:[%s1135_s1 + $0x1f0] sm:$0xff]  ;;  %s362_s9 = scalar_lea.vmem %s1134_s0, %s1059_s15  ;;  %s382_s10 = scalar_lea.vmem %s1137_s3, %s791_s29 }
   0xf   : > { %v479_v6 = vld [vmem:[%s1135_s1 + $0x1d8] sm:$0xff]  ;;  %537 = vmatpush.msra.mxu2 %v449_v1  ;;  %491 = vmatpush.msra.mxu0 %v448_v7  ;;  %v477_v10 = vld [vmem:[%s1135_s1 + $0x1c8] sm:$0xff]  ;;  %v446_v11 = vld [vmem:[%s1135_s1 + $0xd0] sm:$0xff]  ;;  %s413_s14 = scalar_lea.vmem %s1139_s5, %s1059_s15 }
  0x10   : > { %560 = vmatpush.msra.mxu3 %v481_v3  ;;  %513 = vmatpush.msra.mxu1 %v482_v9  ;;  %v480_v12 = vld [vmem:[%s1135_s1 + $0x1e0] sm:$0xff]  ;;  %v478_v14 = vld [vmem:[%s1135_s1 + $0x1d0] sm:$0xff]  ;;  %v443_v15 = vld [vmem:[%s1135_s1 + $0xb8] sm:$0xff] }
  0x11   : > { %538 = vmatpush.msra.mxu2 %v447_v5  ;;  %v444_v13 = vld [vmem:[%s1135_s1 + $0xc0] sm:$0xff]  ;;  %492 = vmatpush.msra.mxu0 %v446_v11  ;;  %v475_v16 = vld [vmem:[%s1135_s1 + $0x1b8] sm:$0xff]  ;;  %v442_v17 = vld [vmem:[%s1135_s1 + $0xb0] sm:$0xff] }
  0x12   : > { %561 = vmatpush.msra.mxu3 %v479_v6  ;;  %514 = vmatpush.msra.mxu1 %v480_v12  ;;  %v476_v18 = vld [vmem:[%s1135_s1 + $0x1c0] sm:$0xff]  ;;  %v441_v19 = vld [vmem:[%s1135_s1 + $0xa8] sm:$0xff]  ;;  %v474_v22 = vld [vmem:[%s1135_s1 + $0x1b0] sm:$0xff] }
  0x13   : > { %539 = vmatpush.msra.mxu2 %v445_v8  ;;  %493 = vmatpush.msra.mxu0 %v444_v13  ;;  %v473_v20 = vld [vmem:[%s1135_s1 + $0x1a8] sm:$0xff]  ;;  %v440_v21 = vld [vmem:[%s1135_s1 + $0xa0] sm:$0xff]  ;;  %v439_v23 = vld [vmem:[%s1135_s1 + $0x98] sm:$0xff] }
  0x14   : > { %562 = vmatpush.msra.mxu3 %v477_v10  ;;  %515 = vmatpush.msra.mxu1 %v478_v14  ;;  %v471_v24 = vld [vmem:[%s1135_s1 + $0x198] sm:$0xff]  ;;  %v438_v25 = vld [vmem:[%s1135_s1 + $0x90] sm:$0xff]  ;;  %v472_v26 = vld [vmem:[%s1135_s1 + $0x1a0] sm:$0xff] }
  0x15   : > { %540 = vmatpush.msra.mxu2 %v443_v15  ;;  %494 = vmatpush.msra.mxu0 %v442_v17  ;;  %v437_v27 = vld [vmem:[%s1135_s1 + $0x88] sm:$0xff]  ;;  %v436_v29 = vld [vmem:[%s1135_s1 + $0x80] sm:$0xff]  ;;  %v470_v30 = vld [vmem:[%s1135_s1 + $0x190] sm:$0xff] }
  0x16   : > { %563 = vmatpush.msra.mxu3 %v475_v16  ;;  %516 = vmatpush.msra.mxu1 %v476_v18  ;;  %v469_v28 = vld [vmem:[%s1135_s1 + $0x188] sm:$0xff]  ;;  %v435_v31 = vld [vmem:[%s1135_s1 + $0x78] sm:$0xff]  ;;  %v434_v33 = vld [vmem:[%s1135_s1 + $0x70] sm:$0xff] }
  0x17   : > { %541 = vmatpush.msra.mxu2 %v441_v19  ;;  %495 = vmatpush.msra.mxu0 %v440_v21  ;;  %v467_v32 = vld [vmem:[%s1135_s1 + $0x178] sm:$0xff]  ;;  %v468_v34 = vld [vmem:[%s1135_s1 + $0x180] sm:$0xff]  ;;  %v433_v35 = vld [vmem:[%s1135_s1 + $0x68] sm:$0xff] }
  0x18   : > { %564 = vmatpush.msra.mxu3 %v473_v20  ;;  %517 = vmatpush.msra.mxu1 %v474_v22  ;;  %v465_v36 = vld [vmem:[%s1135_s1 + $0x168] sm:$0xff]  ;;  %v432_v37 = vld [vmem:[%s1135_s1 + $0x60] sm:$0xff]  ;;  %v466_v38 = vld [vmem:[%s1135_s1 + $0x170] sm:$0xff] }
  0x19   : > { %542 = vmatpush.msra.mxu2 %v439_v23  ;;  %496 = vmatpush.msra.mxu0 %v438_v25  ;;  %v431_v39 = vld [vmem:[%s1135_s1 + $0x58] sm:$0xff]  ;;  %v430_v41 = vld [vmem:[%s1135_s1 + $0x50] sm:$0xff]  ;;  %v464_v42 = vld [vmem:[%s1135_s1 + $0x160] sm:$0xff] }
  0x1a   : > { %565 = vmatpush.msra.mxu3 %v471_v24  ;;  %518 = vmatpush.msra.mxu1 %v472_v26  ;;  %v463_v40 = vld [vmem:[%s1135_s1 + $0x158] sm:$0xff]  ;;  %v429_v43 = vld [vmem:[%s1135_s1 + $0x48] sm:$0xff]  ;;  %v428_v45 = vld [vmem:[%s1135_s1 + $0x40] sm:$0xff] }
  0x1b   : > { %543 = vmatpush.msra.mxu2 %v437_v27  ;;  %497 = vmatpush.msra.mxu0 %v436_v29  ;;  %v461_v44 = vld [vmem:[%s1135_s1 + $0x148] sm:$0xff]  ;;  %v462_v46 = vld [vmem:[%s1135_s1 + $0x150] sm:$0xff]  ;;  %v427_v47 = vld [vmem:[%s1135_s1 + $0x38] sm:$0xff] }
  0x1c   : > { %566 = vmatpush.msra.mxu3 %v469_v28  ;;  %519 = vmatpush.msra.mxu1 %v470_v30  ;;  %v459_v48 = vld [vmem:[%s1135_s1 + $0x138] sm:$0xff]  ;;  %v426_v49 = vld [vmem:[%s1135_s1 + $0x30] sm:$0xff]  ;;  %v460_v50 = vld [vmem:[%s1135_s1 + $0x140] sm:$0xff] }
  0x1d   : > { %544 = vmatpush.msra.mxu2 %v435_v31  ;;  %498 = vmatpush.msra.mxu0 %v434_v33  ;;  %v425_v51 = vld [vmem:[%s1135_s1 + $0x28] sm:$0xff]  ;;  %v424_v53 = vld [vmem:[%s1135_s1 + $0x20] sm:$0xff]  ;;  %v458_v54 = vld [vmem:[%s1135_s1 + $0x130] sm:$0xff] }
  0x1e   : > { %567 = vmatpush.msra.mxu3 %v467_v32  ;;  %520 = vmatpush.msra.mxu1 %v468_v34  ;;  %v457_v52 = vld [vmem:[%s1135_s1 + $0x128] sm:$0xff]  ;;  %v423_v55 = vld [vmem:[%s1135_s1 + $0x18] sm:$0xff]  ;;  %v422_v57 = vld [vmem:[%s1135_s1 + $0x10] sm:$0xff] }
  0x1f   : > { %545 = vmatpush.msra.mxu2 %v433_v35  ;;  %499 = vmatpush.msra.mxu0 %v432_v37  ;;  %v455_v56 = vld [vmem:[%s1135_s1 + $0x118] sm:$0xff]  ;;  %v456_v58 = vld [vmem:[%s1135_s1 + $0x120] sm:$0xff]  ;;  %v421_v59 = vld [vmem:[%s1135_s1 + $0x8] sm:$0xff] }
  0x20   : > { %568 = vmatpush.msra.mxu3 %v465_v36  ;;  %521 = vmatpush.msra.mxu1 %v466_v38  ;;  %v453_v60 = vld [vmem:[%s1135_s1 + $0x108] sm:$0xff]  ;;  %v416_v61 = vld [vmem:[%s362_s9] sm:$0xff]  ;;  %v454_v0 = vld [vmem:[%s1135_s1 + $0x110] sm:$0xff] }
  0x21   : > { %546 = vmatpush.msra.mxu2 %v431_v39  ;;  %500 = vmatpush.msra.mxu0 %v430_v41  ;;  %v417_v62 = vld [vmem:[%s362_s9 + $0x8] sm:$0xff]  ;;  %v420_v63 = vld [vmem:[%s1135_s1] sm:$0xff]  ;;  %v418_v2 = vld [vmem:[%s362_s9 + $0x10] sm:$0xff] }
  0x22   : > { %569 = vmatpush.msra.mxu3 %v463_v40  ;;  %522 = vmatpush.msra.mxu1 %v464_v42  ;;  %v452_v1 = vld [vmem:[%s1135_s1 + $0x100] sm:$0xff]  ;;  %v419_v3 = vld [vmem:[%s362_s9 + $0x18] sm:$0xff]  ;;  %s1115_s9 = scalar_lea.vmem %s1138_s4, %s1059_s15 }
  0x23   : > { %547 = vmatpush.msra.mxu2 %v429_v43  ;;  %501 = vmatpush.msra.mxu0 %v428_v45  ;;  %v484_v4 = vld [vmem:[%s1136_s2] sm:$0x3]  ;;  %v583_v21 = vld [vmem:[%s1115_s9 + $0x8] sm:$0xff]  ;;  %v584_v29 = vld [vmem:[%s1115_s9 + $0x10] sm:$0xff] }
  0x24   : > { %570 = vmatpush.msra.mxu3 %v461_v44  ;;  %523 = vmatpush.msra.mxu1 %v462_v46  ;;  %v486_v5 = vperm.slane %v484_v4, 0  ;;  %v586_v6 = vld [vmem:[%s382_s10] sm:$0x3]  ;;  %v487_v9 = vperm.slane %v484_v4, 1  ;;  %v585_v35 = vld [vmem:[%s1115_s9 + $0x18] sm:$0xff] }
  0x25   : > { %548 = vmatpush.msra.mxu2 %v427_v47  ;;  %502 = vmatpush.msra.mxu0 %v426_v49  ;;  %v588_v10 = vperm.slane %v586_v6, 0  ;;  %v582_v14 = vld [vmem:[%s1115_s9] sm:$0xff]  ;;  %v589_v18 = vperm.slane %v586_v6, 1 }
  0x26   : > { %571 = vmatpush.msra.mxu3 %v459_v48  ;;  %524 = vmatpush.msra.mxu1 %v460_v50 }
  0x27   : > { %549 = vmatpush.msra.mxu2 %v425_v51  ;;  %503 = vmatpush.msra.mxu0 %v424_v53 }
  0x28   : > { %572 = vmatpush.msra.mxu3 %v457_v52  ;;  %525 = vmatpush.msra.mxu1 %v458_v54 }
  0x29   : > { %550 = vmatpush.msra.mxu2 %v423_v55  ;;  %504 = vmatpush.msra.mxu0 %v422_v57 }
  0x2a   : > { %573 = vmatpush.msra.mxu3 %v455_v56  ;;  %526 = vmatpush.msra.mxu1 %v456_v58 }
  0x2b   : > { %551 = vmatpush.msra.mxu2 %v421_v59  ;;  %505 = vmatpush.msra.mxu0 %v420_v63 }
  0x2c   : > { %574 = vmatpush.msra.mxu3 %v453_v60  ;;  %552 = vmatmul.f32.vlgmr.msra.gmra.mxu2 %v416_v61 }
  0x2d   : > { %575 = vmatmul.f32.vlgmr.msra.gmra.mxu3 %v417_v62  ;;  %527 = vmatpush.msra.mxu1 %v454_v0 }
  0x2e   : > { %506 = vmatmul.f32.vlgmr.msra.gmra.mxu0 %v416_v61 }
  0x2f   : > { %528 = vmatpush.msra.mxu1 %v452_v1 }
  0x30   : > { %529 = vmatmul.f32.vlgmr.msra.gmra.mxu1 %v417_v62 }
  0x34   : > { %555 = vmatmul.f32.gmra.mxu2 %v418_v2 }
  0x35   : > { %578 = vmatmul.f32.gmra.mxu3 %v419_v3 }
  0x36   : > { %509 = vmatmul.f32.gmra.mxu0 %v418_v2 }
  0x38   : > { %532 = vmatmul.f32.gmra.mxu1 %v419_v3 }
  0xab   : > { %v507_v7 = vpop.f32.mrf.mxu0 }
  0xac   : > { %v508_v8 = vadd.f32 %v507_v7, %v486_v5 }
  0xad   : > { %v530_v11 = vpop.f32.mrf.mxu1 }
  0xae   : > { %v531_v12 = vadd.f32 %v530_v11, %v508_v8 }
  0xaf   : > { %v553_v13 = vpop.f32.mrf.mxu2 }
  0xb0   : > { %v576_v15 = vpop.f32.mrf.mxu3  ;;  %v554_v16 = vadd.f32 %v553_v13, %v487_v9  ;;  %v592_v17 = vmul.f32 %v588_v10, %v531_v12 }
  0xb2   : > { %v596_v19 = vadd.f32 %v592_v17, %v582_v14  ;;  %v577_v20 = vadd.f32 %v576_v15, %v554_v16 }
  0xb3   : > { %v510_v22 = vpop.f32.mrf.mxu0 }
  0xb4   : > { %600 = vst [vmem:[%s413_s14] sm:$0xff] %v596_v19  ;;  %v593_v23 = vmul.f32 %v589_v18, %v577_v20  ;;  %v511_v24 = vadd.f32 %v510_v22, %v486_v5 }
  0xb5   : > { %v533_v25 = vpop.f32.mrf.mxu1 }
  0xb6   : > { %v597_v26 = vadd.f32 %v593_v23, %v583_v21  ;;  %v534_v27 = vadd.f32 %v533_v25, %v511_v24 }
  0xb7   : > { %v556_v28 = vpop.f32.mrf.mxu2 }
  0xb8   : > { %v579_v30 = vpop.f32.mrf.mxu3  ;;  %601 = vst [vmem:[%s413_s14 + $0x8] sm:$0xff] %v597_v26  ;;  %v557_v31 = vadd.f32 %v556_v28, %v487_v9  ;;  %v594_v32 = vmul.f32 %v588_v10, %v534_v27 }
  0xba   : > { %v598_v33 = vadd.f32 %v594_v32, %v584_v29  ;;  %v580_v34 = vadd.f32 %v579_v30, %v557_v31 }
  0xbc   : > { %602 = vst [vmem:[%s413_s14 + $0x10] sm:$0xff] %v598_v33  ;;  %v595_v36 = vmul.f32 %v589_v18, %v580_v34 }
  0xbe   : > { %v599_v37 = vadd.f32 %v595_v36, %v585_v35 }
  0xc0   : > { %603 = vst [vmem:[%s413_s14 + $0x18] sm:$0xff] %v599_v37 }
  0xc1 PF: > { %s15_s20 = sadd.s32 1, %s847_s20   ;;  %s1140_s18 = smov %s843_s19 }
  0xc2   : > { %p12_p5 = scmp.ge.s32.totalorder %s15_s20, 4   ;;  %s1141_s19 = smov %s1143_s21 }
  0xc4   :  { %14 = sbr.rel (!%p12_p5) target bundleno = 2 (0x2), region = 82 }

// kernel: image_stream_block_pallas.11
= control target key start
LH: loop header
LB: loop body
LE: loop exit
PB: predicated region body
PF: predicated region fallthrough
CT: control target
= control target key end

     0   :  { %s1861_s0 = inlined_call_operand.vmem [shape: f32[2,24,768], index: 0, kind: input, shape index: {}, may-alias: {0,1,2}]   ;;  %s1862_s1 = inlined_call_operand.vmem [shape: f32[2,24,768], index: 1, kind: input, shape index: {}, may-alias: {0,1,2}]   ;;  %s1863_s2 = inlined_call_operand.vmem [shape: f32[2,24,768], index: 2, kind: input, shape index: {}, may-alias: {0,1,2}]   ;;  %s1864_s3 = inlined_call_operand.vmem [shape: f32[2,24,128], index: 3, kind: input, shape index: {}]   ;;  %s1865_s4 = inlined_call_operand.vmem [shape: f32[2,24,128], index: 4, kind: input, shape index: {}]   ;;  %s1866_s5 = inlined_call_operand.vmem [shape: f32[2,24,128], index: 5, kind: input, shape index: {}]   ;;  %s1867_s6 = inlined_call_operand.vmem [shape: f32[2,24,128], index: 6, kind: input, shape index: {}]   ;;  %s1868_s7 = inlined_call_operand.vmem [shape: f32[2,24,256], index: 7, kind: output, shape index: {}]  }
   0x1   :  { %1870 = sst [smem:[#allocation12_spill]] %s1864_s3 }
   0x2   :  { %1871 = sst [smem:[#allocation13_spill]] %s1865_s4 }
   0x3   :  { %1872 = sst [smem:[#allocation14_spill]] %s1867_s6 }
   0x4   :  { %1873 = sst [smem:[#allocation15_spill]] %s1868_s7 }
   0x5   :  { %s1586_s24 = smov 0   ;;  %s1588_s25 = smov 0  }
   0x6   :  { %s1590_s26 = smov 0   ;;  %s1592_s27 = smov 0  }
   0x7   :  { %s1594_s28 = smov 0   ;;  %s1596_s29 = smov 0  }
   0x8   :  { %s1598_s30 = smov 0   ;;  %s1600_s8 = smov 0  }
   0x9   :  { %s1602_s9 = smov 0   ;;  %s1604_s10 = smov 0  }
   0xa   :  { %s1606_s11 = smov 0  }
   0xb LB: > { %1874 = sst [smem:[#allocation10_spill]] %s1523_s30  ;;  %s39_s13 = sadd.s32 1, %s1531_s9  ;;  %s1539_s11 = sphi %s1606_s11, %s17_s11   ;;  %s1535_s10 = sphi %s1604_s10, %s1898_s10   ;;  %s1531_s9 = sphi %s1602_s9, %s1897_s9   ;;  %s1527_s8 = sphi %s1600_s8, %s1896_s8   ;;  %s1523_s30 = sphi %s1598_s30, %s1895_s30   ;;  %s1519_s29 = sphi %s1596_s29, %s1894_s29   ;;  %s1515_s28 = sphi %s1594_s28, %s1893_s28   ;;  %s1511_s27 = sphi %s1592_s27, %s1892_s27   ;;  %s1507_s26 = sphi %s1590_s26, %s1891_s26   ;;  %s1503_s25 = sphi %s1588_s25, %s1890_s25   ;;  %s1499_s24 = sphi %s1586_s24, %s1889_s24  }
   0xc   : > { %p41_p0 = scmp.ge.s32.totalorder %s39_s13, 2  ;;  %s43_s14 = sadd.s32 1, %s1535_s10 }
   0xd   : > { %s54_s15 = sadd.s32 1, %s1519_s29  ;;  %p61_p1 = scmp.ne.s32.totalorder %s1519_s29, %s1515_s28 }
   0xe   : > { %s1900_s13 = smov (%p41_p0, %s39_s13), 0  ;;  %s1902_s14 = smov (!%p41_p0, %s43_s14), %s1535_s10 }
   0xf   : > { %s50_s16 = ssub.s32 %s1531_s9, %s1900_s13  ;;  %p62_p2 = scmp.eq.s32.totalorder %s1539_s11, 0 }
  0x10   : > { %p45_p3 = scmp.ge.s32.totalorder %s1902_s14, 2  ;;  %s77_s17 = sadd.s32 2, %s1531_s9 }
  0x11   : > { %p1659_p4 = por %p62_p2, %p61_p1  ;;  %s78_s19 = sadd.s32 2, %s1900_s13 }
  0x12   : > { %s1904_s14 = smov (%p45_p3, %s1902_s14), 0  ;;  %s82_s20 = ssub.s32 %s77_s17, %s78_s19 }
  0x13   : > { %1876 = sst [smem:[#allocation11_spill]] %s1904_s14  ;;  %s86_s21 = sadd.s32 1, %s1511_s27 }
  0x14   : > { %s47_s22 = ssub.s32 %s1535_s10, %s1904_s14  ;;  %p93_p5 = scmp.ne.s32.totalorder %s1511_s27, %s1507_s26 }
  0x15   : > { %s51_s23 = sor.u32 %s50_s16, %s47_s22  ;;  %s83_s12 = sor.u32 %s82_s20, %s47_s22 }
  0x16   : > { %p52_p6 = scmp.eq.s32.totalorder %s51_s23, 0  ;;  %p84_p7 = scmp.eq.s32.totalorder %s83_s12, 0 }
  0x17   : > { %p1673_p8 = por %p93_p5, %p62_p2  ;;  %s109_s30 = sadd.s32 4, %s1531_s9 }
  0x18   : > { %s1679_s3 = scalar_select %p52_p6, %s1519_s29, %s54_s15  }
  0x19   : > { %s1682_s17 = scalar_select %p84_p7, %s1511_s27, %s86_s21  }
  0x1a   : > { %s110_s19 = sadd.s32 4, %s1900_s13  ;;  %s118_s14 = sadd.s32 1, %s1503_s25 }
  0x1b   : > { %s114_s4 = ssub.s32 %s109_s30, %s110_s19  ;;  %p125_p9 = scmp.ne.s32.totalorder %s1503_s25, %s1499_s24 }
  0x1c   : > { %s115_s16 = sor.u32 %s114_s4, %s47_s22  ;;  %s1878_s6 = sadd.s32 4294967295, %s1539_s11  }
  0x1d   : > { %p271_p10 = scmp.eq.s32.totalorder %s1878_s6, 3  ;;  %p116_p11 = scmp.eq.s32.totalorder %s115_s16, 0 }
  0x1e   : > { %p1692_p12 = por %p125_p9, %p62_p2  ;;  %p1289_p0 = scmp.ge.s32.totalorder %s1539_s11, 4 }
  0x1f   : > { %p1699_p13 = por %p271_p10, %p61_p1 }
  0x20   : > { %s1704_s15 = scalar_select %p116_p11, %s1503_s25, %s118_s14  }
  0x21   : > { %293 = sbr.rel (%p1289_p0) target bundleno = 68 (0x44), region = 16 }
  0x26   : > { %296 = sbr.rel (!%p1659_p4) target bundleno = 48 (0x30), region = 20  ;;  %s298_s4 = sand.u32 (%p1659_p4), 1, %s1519_s29  }
  0x27   : > { %s1317_s6 = smul.u32 (%p1659_p4), 18, %s1535_s10 }
  0x28   : > { %s1316_s30 = smul.u32 (%p1659_p4), 24, %s298_s4 }
  0x29   : > { %s305_s21 = sadd.s32 (%p1659_p4), %s1531_s9, %s1317_s6 }
  0x2a   : > { %s1290_s22 = sshll.u32 (%p1659_p4), %s305_s21, 3  ;;  %s300_s14 = scalar_lea.vmem (%p1659_p4), [#allocation6], %s1316_s30 }
  0x2b   : > { %s307_s16 = scalar_lea.vmem %s1861_s0, %s1290_s22 }
  0x2c   : > { %v340_v0 = vld [vmem:[%s307_s16] sm:$0xff]  ;;  %v342_v1 = vld [vmem:[%s307_s16 + $0x30] sm:$0xff] }
  0x2d   : > { %v344_v2 = vld [vmem:[%s307_s16 + $0x60] sm:$0xff]  ;;  %341 = vst [vmem:[%s300_s14] sm:$0xff] %v340_v0 }
  0x2e   : > { %343 = vst [vmem:[%s300_s14 + $0x8] sm:$0xff] %v342_v1 }
  0x2f   : > { %345 = vst [vmem:[%s300_s14 + $0x10] sm:$0xff] %v344_v2 }
  0x30 PF: > { %351 = sbr.rel (!%p1673_p8) target bundleno = 58 (0x3a), region = 58  ;;  %s353_s18 = sand.u32 (%p1673_p8), 1, %s1511_s27  }
  0x31   : > { %s1110_s4 = smul.u32 (%p1673_p8), 18, %s1535_s10 }
  0x32   : > { %s1318_s6 = smul.u32 (%p1673_p8), 24, %s353_s18 }
  0x33   : > { %s1111_s21 = sadd.s32 (%p1673_p8), %s1531_s9, %s1110_s4 }
  0x34   : > { %s1291_s23 = sshll.u32 (%p1673_p8), %s1111_s21, 3  ;;  %s355_s30 = scalar_lea.vmem (%p1673_p8), [#allocation7], %s1318_s6 }
  0x35   : > { %s1113_s16 = scalar_lea.vmem %s1862_s1, %s1291_s23 }
  0x36   : > { %v1292_v3 = vld [vmem:[%s1113_s16 + $0x10] sm:$0xff]  ;;  %v1293_v4 = vld [vmem:[%s1113_s16 + $0x40] sm:$0xff] }
  0x37   : > { %v1294_v5 = vld [vmem:[%s1113_s16 + $0x70] sm:$0xff]  ;;  %397 = vst [vmem:[%s355_s30] sm:$0xff] %v1292_v3 }
  0x38   : > { %399 = vst [vmem:[%s355_s30 + $0x8] sm:$0xff] %v1293_v4 }
  0x39   : > { %401 = vst [vmem:[%s355_s30 + $0x10] sm:$0xff] %v1294_v5 }
  0x3a PF: > { %407 = sbr.rel (!%p1692_p12) target bundleno = 68 (0x44), region = 96  ;;  %s409_s7 = sand.u32 (%p1692_p12), 1, %s1503_s25  }
  0x3b   : > { %s1119_s14 = smul.u32 (%p1692_p12), 18, %s1535_s10 }
  0x3c   : > { %s1319_s18 = smul.u32 (%p1692_p12), 24, %s409_s7 }
  0x3d   : > { %s1120_s4 = sadd.s32 (%p1692_p12), %s1531_s9, %s1119_s14 }
  0x3e   : > { %s1295_s21 = sshll.u32 (%p1692_p12), %s1120_s4, 3  ;;  %s411_s6 = scalar_lea.vmem (%p1692_p12), [#allocation8], %s1319_s18 }
  0x3f   : > { %s1122_s19 = scalar_lea.vmem %s1863_s2, %s1295_s21 }
  0x40   : > { %v1296_v6 = vld [vmem:[%s1122_s19 + $0x20] sm:$0xff]  ;;  %v1297_v7 = vld [vmem:[%s1122_s19 + $0x50] sm:$0xff] }
  0x41   : > { %v1298_v8 = vld [vmem:[%s1122_s19 + $0x80] sm:$0xff]  ;;  %453 = vst [vmem:[%s411_s6] sm:$0xff] %v1296_v6 }
  0x42   : > { %455 = vst [vmem:[%s411_s6 + $0x8] sm:$0xff] %v1297_v7 }
  0x43   : > { %457 = vst [vmem:[%s411_s6 + $0x10] sm:$0xff] %v1298_v8 }
  0x44 PF: > { %p1299_p1 = scmp.ge.s32.totalorder %s1539_s11, 1  ;;  %p514_p2 = scmp.lt.s32.totalorder %s1539_s11, 5 }
  0x46   : > { %p515_p3 = pnand %p1299_p1, %p514_p2 }
  0x47   : > { %s528_s12 = sand.u32 (!%p515_p3), 1, %s1507_s26   ;;  %s521_s16 = sand.u32 (!%p515_p3), 1, %s1515_s28  }
  0x48   : > { %518 = sbr.rel (%p515_p3) target bundleno = 991 (0x3df), region = 150  ;;  %s1542_s26 = smov (!%p515_p3), 64  }
  0x49   : > { %s1321_s30 = smul.u32 (!%p515_p3), 24, %s528_s12  ;;  %p615_p4 = scmp.lt.s32.totalorder (!%p515_p3), %s1527_s8, 1 }
  0x4a   : > { %s1735_s7 = smul.u32 (!%p515_p3), 24, %s521_s16  ;;  %s1883_s12 = sld [smem:[#allocation14_spill]] (!%p515_p3) }
  0x4b   : > { %s530_s14 = scalar_lea.vmem (!%p515_p3), [#allocation7], %s1321_s30  ;;  %s1885_s23 = sld [smem:[#allocation12_spill]] (!%p515_p3) }
  0x4c   : > { %s523_s18 = scalar_lea.vmem (!%p515_p3), [#allocation6], %s1735_s7 }
  0x4d   : > { %v1737_v9 = vld [vmem:[%s530_s14 + $0x10] sm:$0xff]  ;;  %v1739_v10 = vld [vmem:[%s530_s14] sm:$0xff]  ;;  %v1750_v15 = vld [vmem:[%s530_s14 + $0x8] sm:$0xff]  ;;  %v1541_v21 = vmov 128.0   ;;  %s616_s28 = scalar_select %p615_p4, %s1527_s8, 1 }
  0x4e   : > { %v756_v11 = vmul.f32 %v1737_v9, %v1737_v9  ;;  %v754_v12 = vmul.f32 %v1739_v10, %v1739_v10  ;;  %v1746_v13 = vld [vmem:[%s523_s18 + $0x10] sm:$0xff]  ;;  %v1752_v16 = vld [vmem:[%s523_s18 + $0x8] sm:$0xff]  ;;  %v1754_v17 = vld [vmem:[%s523_s18] sm:$0xff]  ;;  %v755_v18 = vmul.f32 %v1750_v15, %v1750_v15  ;;  %1421 = vrcp.f32 %v1541_v21  ;;  %s1884_s18 = sld [smem:[#allocation13_spill]] }
  0x4f   : > { %v664_v14 = vmul.f32 %v1746_v13, %v1746_v13  ;;  %v663_v19 = vmul.f32 %v1752_v16, %v1752_v16  ;;  %v662_v20 = vmul.f32 %v1754_v17, %v1754_v17  ;;  %s1323_s4 = smul.u32 24, %s616_s28 }
  0x50   : > { %761 = vadd.xlane.f32.xlu0 %v756_v11  ;;  %757 = vadd.xlane.f32.xlu1 %v754_v12 }
  0x51   : > { %669 = vadd.xlane.f32.xlu2 %v664_v14  ;;  %s642_s22 = scalar_lea.vmem %s1866_s5, %s1323_s4  ;;  %s652_s16 = scalar_lea.vmem %s1883_s12, %s1323_s4 }
  0x52   : > { %s622_s19 = scalar_lea.vmem %s1885_s23, %s1323_s4  ;;  %s1886_s12 = sld [smem:[#allocation10_spill]] (%p1699_p13) }
  0x54   : > { %v1422_v22 = vpop.eup %1421 }
  0x55   : > { %v672_v23 = vmul.f32 128.0, %v1422_v22  ;;  %vm676_vm0 = vweird.f32 %v1422_v22 }
  0x57   : > { %v673_v24 = vsub.f32 1.0, %v672_v23 }
  0x58   : > { %759 = vadd.xlane.f32.xlu0 %v755_v18  ;;  %667 = vadd.xlane.f32.xlu1 %v663_v19 }
  0x59   : > { %665 = vadd.xlane.f32.xlu2 %v662_v20  ;;  %v674_v25 = vmul.f32 %v1422_v22, %v673_v24 }
  0x5b   : > { %v675_v26 = vadd.f32 %v1422_v22, %v674_v25 }
  0x5d   : > { %v677_v27 = vsel %vm676_vm0, %v1422_v22, %v675_v26 }
  0xc3   : > { %v762_v28 = vpop.xlane.xlu0 %761  ;;  %v758_v29 = vpop.xlane.xlu1 %757 }
  0xc4   : > { %v772_v30 = vmul.f32 %v762_v28, %v677_v27  ;;  %v770_v31 = vmul.f32 %v758_v29, %v677_v27  ;;  %v670_v32 = vpop.xlane.xlu2 %669 }
  0xc5   : > { %v680_v33 = vmul.f32 %v677_v27, %v670_v32 }
  0xc6   : > { %v775_v34 = vadd.f32 1e-06, %v772_v30  ;;  %v773_v35 = vadd.f32 1e-06, %v770_v31 }
  0xc7   : > { %v683_v36 = vadd.f32 1e-06, %v680_v33 }
  0xc8   : > { %1423 = vrsqrt.f32 %v775_v34  ;;  %vm782_vm2 = vweird.f32 %v773_v35  ;;  %vm802_vm4 = vweird.f32 %v775_v34 }
  0xc9   : > { %1425 = vrsqrt.f32 %v773_v35  ;;  %vm710_vm6 = vweird.f32 %v683_v36 }
  0xca   : > { %1427 = vrsqrt.f32 %v683_v36 }
  0xcb   : > { %v760_v37 = vpop.xlane.xlu0 %759  ;;  %v668_v38 = vpop.xlane.xlu1 %667 }
  0xcc   : > { %v771_v39 = vmul.f32 %v760_v37, %v677_v27  ;;  %v679_v40 = vmul.f32 %v677_v27, %v668_v38  ;;  %v666_v41 = vpop.xlane.xlu2 %665  ;;  %v810_v38 = vld [vmem:[%s642_s22 + $0x8] sm:$0xff] }
  0xcd   : > { %v678_v42 = vmul.f32 %v677_v27, %v666_v41 }
  0xce   : > { %v1424_v43 = vpop.eup %1423  ;;  %v774_v44 = vadd.f32 1e-06, %v771_v39  ;;  %v1762_v45 = vadd.f32 1e-06, %v679_v40  ;;  %v815_v39 = vld [vmem:[%s652_s16] sm:$0xff] }
  0xcf   : > { %v1426_v46 = vpop.eup %1425  ;;  %v797_v47 = vmul.f32 %v1424_v43, %v775_v34  ;;  %v1764_v48 = vadd.f32 1e-06, %v678_v42  ;;  %vm803_vm1 = vweird.f32 %v1424_v43 }
  0xd0   : > { %v1428_v49 = vpop.eup %1427  ;;  %v777_v50 = vmul.f32 %v1426_v46, %v773_v35  ;;  %1429 = vrsqrt.f32 %v774_v44  ;;  %vm783_vm3 = vweird.f32 %v1426_v46  ;;  %vm804_vm5 = vmor %vm802_vm4, %vm803_vm1  ;;  %vm792_vm10 = vweird.f32 %v774_v44 }
  0xd1   : > { %v798_v51 = vmul.f32 %v1424_v43, %v797_v47  ;;  %v705_v52 = vmul.f32 %v1428_v49, %v683_v36  ;;  %1431 = vrsqrt.f32 %v1762_v45  ;;  %vm711_vm7 = vweird.f32 %v1428_v49  ;;  %vm784_vm8 = vmor %vm782_vm2, %vm783_vm3 }
  0xd2   : > { %v778_v53 = vmul.f32 %v1426_v46, %v777_v50  ;;  %1433 = vrsqrt.f32 %v1764_v48  ;;  %vm1771_vm9 = vmor %vm710_vm6, %vm711_vm7  ;;  %vm700_vm12 = vweird.f32 %v1762_v45  ;;  %vm690_vm14 = vweird.f32 %v1764_v48  ;;  %v718_v50 = vld [vmem:[%s622_s19 + $0x8] sm:$0xff] }
  0xd3   : > { %v799_v54 = vmul.f32 0.5, %v798_v51  ;;  %v706_v55 = vmul.f32 %v1428_v49, %v705_v52  ;;  %vm741_vm3 = vcmask 7168   ;;  %vm862_vm4 = vcmask 195584  }
  0xd4   : > { %v779_v56 = vmul.f32 0.5, %v778_v53  ;;  %v717_v53 = vld [vmem:[%s622_s19] sm:$0xff] }
  0xd5   : > { %v800_v57 = vsub.f32 1.5, %v799_v54  ;;  %v707_v58 = vmul.f32 0.5, %v706_v55 }
  0xd6   : > { %v1430_v59 = vpop.eup %1429  ;;  %v780_v60 = vsub.f32 1.5, %v779_v56 }
  0xd7   : > { %v1432_v61 = vpop.eup %1431  ;;  %v787_v62 = vmul.f32 %v1430_v59, %v774_v44  ;;  %v708_v63 = vsub.f32 1.5, %v707_v58  ;;  %v801_v0 = vmul.f32 %v1424_v43, %v800_v57  ;;  %vm793_vm11 = vweird.f32 %v1430_v59  ;;  %v809_v44 = vld [vmem:[%s642_s22] sm:$0xff] }
  0xd8   : > { %v1434_v1 = vpop.eup %1433  ;;  %v695_v2 = vmul.f32 %v1432_v61, %v1762_v45  ;;  %v781_v3 = vmul.f32 %v1426_v46, %v780_v60  ;;  %vm701_vm13 = vweird.f32 %v1432_v61  ;;  %vm794_vm0 = vmor %vm792_vm10, %vm793_vm11 }
  0xd9   : > { %v788_v4 = vmul.f32 %v1430_v59, %v787_v62  ;;  %v685_v5 = vmul.f32 %v1434_v1, %v1764_v48  ;;  %v805_v6 = vsel %vm804_vm5, %v1424_v43, %v801_v0  ;;  %v709_v12 = vmul.f32 %v1428_v49, %v708_v63  ;;  %vm702_vm1 = vmor %vm700_vm12, %vm701_vm13  ;;  %v719_v63 = vld [vmem:[%s622_s19 + $0x10] sm:$0xff] }
  0xda   : > { %v696_v7 = vmul.f32 %v1432_v61, %v695_v2  ;;  %v808_v8 = vmul.f32 %v805_v6, %v1737_v9  ;;  %v785_v11 = vsel %vm784_vm8, %v1426_v46, %v781_v3  ;;  %vm691_vm15 = vweird.f32 %v1434_v1 }
  0xdb   : > { %v789_v14 = vmul.f32 0.5, %v788_v4  ;;  %v686_v19 = vmul.f32 %v1434_v1, %v685_v5  ;;  %v806_v20 = vmul.f32 %v785_v11, %v1739_v10  ;;  %v713_v9 = vsel %vm1771_vm9, %v1428_v49, %v709_v12  ;;  %vm692_vm2 = vmor %vm690_vm14, %vm691_vm15 }
  0xdc   : > { %v697_v21 = vmul.f32 0.5, %v696_v7  ;;  %822 = vrot.lane.b32.xlu0 %v808_v8, %s1542_s26  ;;  %v716_v28 = vmul.f32 %v713_v9, %v1746_v13  ;;  %v817_v13 = vld [vmem:[%s652_s16 + $0x10] sm:$0xff]  ;;  %v1543_v3 = vmov -inf   ;;  %v1544_v12 = vmov 0  }
  0xdd   : > { %v790_v22 = vsub.f32 1.5, %v789_v14  ;;  %v687_v23 = vmul.f32 0.5, %v686_v19  ;;  %818 = vrot.lane.b32.xlu2 %v806_v20, %s1542_s26  ;;  %v812_v49 = vmul.f32 %v809_v44, %v806_v20  ;;  %742 = vst.msk [vmem:[#allocation3] sm:$0xff] %vm741_vm3, %v1543_v3  ;;  %1420 = vset.pattern.permute.xlu1 %v1544_v12  ;;  %v1545_v14 = vmov 0.0  }
  0xde   : > { %v698_v24 = vsub.f32 1.5, %v697_v21  ;;  %743 = vst.msk [vmem:[#allocation3 + $0x8] sm:$0xff] %vm741_vm3, %v1543_v3  ;;  %1418 = vset.pattern.permute.xlu0 %v1544_v12  ;;  %1419 = vset.pattern.permute.xlu2 %v1544_v12 }
  0xdf   : > { %v688_v25 = vsub.f32 1.5, %v687_v23  ;;  %v791_v10 = vmul.f32 %v1430_v59, %v790_v22  ;;  %744 = vst.msk [vmem:[#allocation3 + $0x10] sm:$0xff] %vm741_vm3, %v1543_v3 }
  0xe0   : > { %v699_v26 = vmul.f32 %v1432_v61, %v698_v24  ;;  %747 = vst.msk [vmem:[#allocation4 + $0x10] sm:$0xff] %vm741_vm3, %v1545_v14 }
  0xe1   : > { %v795_v27 = vsel %vm794_vm0, %v1430_v59, %v791_v10  ;;  %v689_v29 = vmul.f32 %v1434_v1, %v688_v25  ;;  %745 = vst.msk [vmem:[#allocation4] sm:$0xff] %vm741_vm3, %v1545_v14 }
  0xe2   : > { %v807_v30 = vmul.f32 %v795_v27, %v1750_v15  ;;  %v703_v31 = vsel %vm702_vm1, %v1432_v61, %v699_v26  ;;  %v811_v15 = vld [vmem:[%s642_s22 + $0x10] sm:$0xff]  ;;  %746 = vst.msk [vmem:[#allocation4 + $0x8] sm:$0xff] %vm741_vm3, %v1545_v14 }
  0xe3   : > { %v715_v32 = vmul.f32 %v703_v31, %v1752_v16  ;;  %v693_v33 = vsel %vm692_vm2, %v1434_v1, %v689_v29  ;;  %v814_v36 = vmul.f32 %v811_v15, %v808_v8  ;;  %v722_v1 = vmul.f32 %v719_v63, %v716_v28 }
  0xe4   : > { %820 = vrot.lane.b32.xlu1 %v807_v30, %s1542_s26  ;;  %v714_v34 = vmul.f32 %v693_v33, %v1754_v17  ;;  %v816_v17 = vld [vmem:[%s652_s16 + $0x8] sm:$0xff]  ;;  %v813_v43 = vmul.f32 %v810_v38, %v807_v30  ;;  %v859_v18 = vld [vmem:[#allocation3] sm:$0xff]  ;;  %s1324_s16 = smul.u32 (%p1699_p13), 6, %s1527_s8 }
  0xe5   : > { %728 = vrot.lane.b32.xlu0 %v715_v32, %s1542_s26  ;;  %730 = vrot.lane.b32.xlu2 %v716_v28, %s1542_s26  ;;  %v721_v56 = vmul.f32 %v718_v50, %v715_v32  ;;  %v860_v22 = vld [vmem:[#allocation3 + $0x8] sm:$0xff] }
  0xe6   : > { %v720_v58 = vmul.f32 %v717_v53, %v714_v34  ;;  %v861_v25 = vld [vmem:[#allocation3 + $0x10] sm:$0xff] }
  0xec   : > { %726 = vrot.lane.b32.xlu1 %v714_v34, %s1542_s26  ;;  %s632_s26 = scalar_lea.vmem %s1884_s18, %s1323_s4  ;;  %s535_s4 = sand.u32 1, %s1499_s24  }
  0xed   : > { %v724_v46 = vld [vmem:[%s632_s26 + $0x8] sm:$0xff]  ;;  %v723_v52 = vld [vmem:[%s632_s26] sm:$0xff]  ;;  %v725_v60 = vld [vmem:[%s632_s26 + $0x10] sm:$0xff]  ;;  %s1322_s22 = smul.u32 24, %s535_s4  ;;  %s608_s24 = scalar_lea.vmem [#allocation9], %s1735_s7 }
  0xee   : > { %s1042_s7 = sadd.s32 (%p1699_p13), %s1886_s12, %s1324_s16  ;;  %s1887_s26 = sld [smem:[#allocation15_spill]] (%p1699_p13) }
  0xef   : > { %s537_s6 = scalar_lea.vmem [#allocation8], %s1322_s22  ;;  %s1307_s30 = sshll.u32 (%p1699_p13), %s1042_s7, 3 }
  0xf0   : > { %v953_v28 = vld [vmem:[%s537_s6 + $0x10] sm:$0xff]  ;;  %v952_v29 = vld [vmem:[%s537_s6 + $0x8] sm:$0xff]  ;;  %v951_v30 = vld [vmem:[%s537_s6] sm:$0xff] }
  0xf1   : > { %976 = vmatpush.msra.mxu1 %v953_v28  ;;  %1313 = vmatpush.msra.mxu3 %v953_v28 }
  0xf3   : > { %977 = vmatpush.msra.mxu1 %v952_v29  ;;  %1314 = vmatpush.msra.mxu3 %v952_v29 }
  0xf4   : > { %s1044_s28 = scalar_lea.vmem (%p1699_p13), %s1887_s26, %s1307_s30 }
  0xf5   : > { %978 = vmatpush.msra.mxu1 %v951_v30  ;;  %1315 = vmatpush.msra.mxu3 %v951_v30 }
 0x137   : > { %v819_v40 = vpop.permute.xlu2 %818 }
 0x138   : > { %v824_v45 = vmul.f32 %v819_v40, %v815_v39 }
 0x13a   : > { %v827_v54 = vadd.f32 %v824_v45, %v812_v49 }
 0x13f   : > { %v731_v61 = vpop.permute.xlu2 %730 }
 0x140   : > { %v734_v0 = vmul.f32 %v731_v61, %v725_v60 }
 0x142   : > { %v737_v2 = vadd.f32 %v734_v0, %v722_v1 }
 0x14e   : > { %v823_v16 = vpop.permute.xlu0 %822 }
 0x14f   : > { %v826_v35 = vmul.f32 %v823_v16, %v817_v13 }
 0x151   : > { %v829_v37 = vadd.f32 %v826_v35, %v814_v36 }
 0x153   : > { %846 = vmatpush.xpose.msra.mxu0 %v829_v37  ;;  %1310 = vmatpush.xpose.msra.mxu2 %v829_v37 }
 0x156   : > { %v821_v41 = vpop.permute.xlu1 %820 }
 0x157   : > { %v825_v42 = vmul.f32 %v821_v41, %v816_v17  ;;  %v729_v47 = vpop.permute.xlu0 %728 }
 0x158   : > { %v733_v51 = vmul.f32 %v729_v47, %v724_v46 }
 0x159   : > { %v828_v48 = vadd.f32 %v825_v42, %v813_v43 }
 0x15a   : > { %v736_v59 = vadd.f32 %v733_v51, %v721_v56  ;;  %v909_v56 = vld [vmem:[#allocation4 + $0x8] sm:$0xff] }
 0x15b   : > { %847 = vmatpush.xpose.msra.mxu0 %v828_v48  ;;  %1311 = vmatpush.xpose.msra.mxu2 %v828_v48  ;;  %v910_v48 = vld [vmem:[#allocation4 + $0x10] sm:$0xff] }
 0x15e   : > { %v727_v55 = vpop.permute.xlu1 %726 }
 0x15f   : > { %v732_v57 = vmul.f32 %v727_v55, %v723_v52  ;;  %848 = vmatpush.xpose.msra.mxu0 %v827_v54  ;;  %1312 = vmatpush.xpose.msra.mxu2 %v827_v54  ;;  %v908_v52 = vld [vmem:[#allocation4] sm:$0xff] }
 0x161   : > { %v735_v62 = vadd.f32 %v732_v57, %v720_v58 }
 0x162   : > { %852 = vmatmul.f32.vlgmr.msra.gmra.mxu2 %v736_v59 }
 0x163   : > { %849 = vmatmul.f32.vlgmr.msra.gmra.mxu0 %v735_v62 }
 0x16a   : > { %855 = vmatmul.f32.gmra.mxu2 %v737_v2 }
 0x1e0   : > { %v850_v4 = vpop.f32.mrf.mxu0 }
 0x1e1   : > { %v863_v5 = vsel %vm862_vm4, %v850_v4, -inf }
 0x1e2   : > { %864 = vmax.xlane.f32.xlu1 %v863_v5 }
 0x1e5   : > { %v853_v6 = vpop.f32.mrf.mxu2 }
 0x1e6   : > { %v866_v7 = vsel %vm862_vm4, %v853_v6, -inf }
 0x1e7   : > { %867 = vmax.xlane.f32.xlu0 %v866_v7 }
 0x1ed   : > { %v856_v8 = vpop.f32.mrf.mxu2 }
 0x1ee   : > { %v869_v11 = vsel %vm862_vm4, %v856_v8, -inf }
 0x1ef   : > { %870 = vmax.xlane.f32.xlu2 %v869_v11 }
 0x255   : > { %v865_v19 = vpop.xlane.xlu1 %864 }
 0x256   : > { %v872_v20 = vmax.f32 %v859_v18, %v865_v19 }
 0x258   : > { %v875_v21 = vsub.f32 %v859_v18, %v872_v20  ;;  %995 = vst.msk [vmem:[#allocation3] sm:$0xff] %vm741_vm3, %v872_v20  ;;  %886 = vperm.xlu1 %1420, %v872_v20  }
 0x25a   : > { %v868_v23 = vpop.xlane.xlu0 %867  ;;  %v878_v44 = vmul.f32 1.442695, %v875_v21 }
 0x25b   : > { %v873_v24 = vmax.f32 %v860_v22, %v868_v23 }
 0x25d   : > { %v876_v9 = vsub.f32 %v860_v22, %v873_v24  ;;  %996 = vst.msk [vmem:[#allocation3 + $0x8] sm:$0xff] %vm741_vm3, %v873_v24  ;;  %891 = vperm.xlu0 %1418, %v873_v24  }
 0x25f   : > { %v880_v45 = vmul.f32 1.442695, %v876_v9 }
 0x262   : > { %v871_v10 = vpop.xlane.xlu2 %870 }
 0x263   : > { %v874_v26 = vmax.f32 %v861_v25, %v871_v10 }
 0x265   : > { %v877_v27 = vsub.f32 %v861_v25, %v874_v26  ;;  %997 = vst.msk [vmem:[#allocation3 + $0x10] sm:$0xff] %vm741_vm3, %v874_v26  ;;  %896 = vperm.xlu2 %1419, %v874_v26  }
 0x267   : > { %v882_v39 = vmul.f32 1.442695, %v877_v27 }
 0x2bf   : > { %v897_v31 = vpop.permute.xlu2 %896 }
 0x2c0   : > { %v901_v32 = vsub.f32 %v856_v8, %v897_v31 }
 0x2c2   : > { %v906_v33 = vmul.f32 1.442695, %v901_v32 }
 0x2c4   : > { %1435 = vpow2.f32 %v906_v33 }
 0x2ca   : > { %v1436_v34 = vpop.eup %1435  ;;  %v887_v13 = vpop.permute.xlu1 %886 }
 0x2cb   : > { %v899_v15 = vsub.f32 %v850_v4, %v887_v13  ;;  %v920_v16 = vsel %vm862_vm4, %v1436_v34, 0.0 }
 0x2cc   : > { %921 = vadd.xlane.f32.xlu0 %v920_v16 }
 0x2cd   : > { %v902_v35 = vmul.f32 1.442695, %v899_v15 }
 0x2cf   : > { %1437 = vpow2.f32 %v902_v35  ;;  %v892_v36 = vpop.permute.xlu0 %891 }
 0x2d0   : > { %v900_v37 = vsub.f32 %v853_v6, %v892_v36 }
 0x2d2   : > { %v904_v17 = vmul.f32 1.442695, %v900_v37 }
 0x2d4   : > { %1439 = vpow2.f32 %v904_v17 }
 0x2d5   : > { %v1438_v38 = vpop.eup %1437  ;;  %1441 = vpow2.f32 %v882_v39 }
 0x2d6   : > { %1304 = vmatmul.msk.f32.vlgmr.msra.gmra.mxu1 %vm862_vm4, %v1438_v38  ;;  %v914_v40 = vsel %vm862_vm4, %v1438_v38, 0.0  ;;  %1443 = vpow2.f32 %v878_v44 }
 0x2d7   : > { %915 = vadd.xlane.f32.xlu2 %v914_v40  ;;  %1445 = vpow2.f32 %v880_v45 }
 0x2da   : > { %v1440_v41 = vpop.eup %1439 }
 0x2db   : > { %1305 = vmatmul.msk.f32.vlgmr.msra.gmra.mxu3 %vm862_vm4, %v1440_v41  ;;  %v917_v42 = vsel %vm862_vm4, %v1440_v41, 0.0  ;;  %v1442_v43 = vpop.eup %1441 }
 0x2dc   : > { %918 = vadd.xlane.f32.xlu1 %v917_v42  ;;  %v1444_v46 = vpop.eup %1443  ;;  %v913_v49 = vmul.f32 %v1442_v43, %v910_v48 }
 0x2dd   : > { %v1446_v47 = vpop.eup %1445  ;;  %v911_v53 = vmul.f32 %v1444_v46, %v908_v52 }
 0x2de   : > { %v912_v57 = vmul.f32 %v1446_v47, %v909_v56 }
 0x2e0   : > { %945 = vperm.xlu0 %1418, %v1442_v43  }
 0x2e3   : > { %1306 = vmatmul.msk.f32.gmra.mxu3 %vm862_vm4, %v1436_v34 }
 0x2ef   : > { %935 = vperm.xlu2 %1419, %v1444_v46  }
 0x2f5   : > { %940 = vperm.xlu1 %1420, %v1446_v47  }
 0x33f   : > { %v922_v50 = vpop.xlane.xlu0 %921 }
 0x340   : > { %v925_v51 = vadd.f32 %v922_v50, %v913_v49 }
 0x342   : > { %929 = vst.msk [vmem:[#allocation4 + $0x10] sm:$0xff] %vm741_vm3, %v925_v51 }
 0x349   : > { %v1006_v62 = vld [vmem:[#allocation4 + $0x10] sm:$0xff] }
 0x34a   : > { %v916_v54 = vpop.xlane.xlu2 %915 }
 0x34b   : > { %v923_v55 = vadd.f32 %v916_v54, %v911_v53 }
 0x34d   : > { %927 = vst.msk [vmem:[#allocation4] sm:$0xff] %vm741_vm3, %v923_v55 }
 0x34f   : > { %v919_v58 = vpop.xlane.xlu1 %918 }
 0x350   : > { %v924_v59 = vadd.f32 %v919_v58, %v912_v57 }
 0x352   : > { %928 = vst.msk [vmem:[#allocation4 + $0x8] sm:$0xff] %vm741_vm3, %v924_v59  ;;  %v936_v2 = vpop.permute.xlu2 %935  ;;  %v946_v11 = vpop.permute.xlu0 %945 }
 0x353   : > { %v948_v4 = vmul.f32 0.0, %v936_v2  ;;  %v980_v5 = vpop.f32.mrf.mxu1  ;;  %v950_v14 = vmul.f32 0.0, %v946_v11 }
 0x354   : > { %v1004_v60 = vld [vmem:[#allocation4] sm:$0xff] }
 0x355   : > { %1447 = vrcp.f32 %v1004_v60  ;;  %v989_v6 = vadd.f32 %v980_v5, %v948_v4 }
 0x359   : > { %v1005_v61 = vld [vmem:[#allocation4 + $0x8] sm:$0xff] }
 0x35a   : > { %1449 = vrcp.f32 %v1005_v61 }
 0x35b   : > { %v1448_v63 = vpop.eup %1447  ;;  %1451 = vrcp.f32 %v1006_v62 }
 0x35c   : > { %1012 = vperm.xlu2 %1419, %v1448_v63  }
 0x35e   : > { %v983_v3 = vpop.f32.mrf.mxu3 }
 0x360   : > { %v1450_v0 = vpop.eup %1449 }
 0x361   : > { %1017 = vperm.xlu1 %1420, %v1450_v0   ;;  %v1452_v1 = vpop.eup %1451 }
 0x364   : > { %1022 = vperm.xlu2 %1419, %v1452_v1  }
 0x366   : > { %v986_v12 = vpop.f32.mrf.mxu3 }
 0x367   : > { %v991_v18 = vadd.f32 %v986_v12, %v950_v14  ;;  %v941_v21 = vpop.permute.xlu1 %940 }
 0x368   : > { %v949_v22 = vmul.f32 0.0, %v941_v21 }
 0x36a   : > { %v990_v23 = vadd.f32 %v983_v3, %v949_v22 }
 0x3b6   : > { %v1013_v7 = vpop.permute.xlu2 %1012 }
 0x3b7   : > { %v1025_v8 = vmul.f32 %v1013_v7, %v989_v6 }
 0x3b9   : > { %1028 = vst [vmem:[%s608_s24] sm:$0xff] %v1025_v8 }
 0x3be   : > { %v1023_v19 = vpop.permute.xlu2 %1022 }
 0x3bf   : > { %v1027_v20 = vmul.f32 %v1023_v19, %v991_v18 }
 0x3c0   : > { %v1077_v25 = vld [vmem:[%s608_s24] sm:$0xff] (%p1699_p13) }
 0x3c1   : > { %1030 = vst [vmem:[%s608_s24 + $0x10] sm:$0xff] %v1027_v20 }
 0x3c2   : > { %1078 = vst [vmem:[%s1044_s28] sm:$0xff] (%p1699_p13), %v1077_v25 }
 0x3c8   : > { %v1081_v26 = vld [vmem:[%s608_s24 + $0x10] sm:$0xff] (%p1699_p13) }
 0x3c9   : > { %1082 = vst [vmem:[%s1044_s28 + $0x20] sm:$0xff] (%p1699_p13), %v1081_v26 }
 0x3d2   : > { %1037 = sbr.rel (!%p1699_p13) target bundleno = 991 (0x3df), region = 174 }
 0x3d3   : > { %v1018_v24 = vpop.permute.xlu1 %1017 }
 0x3d4   : > { %v1026_v9 = vmul.f32 %v1018_v24, %v990_v23 }
 0x3d6   : > { %1029 = vst [vmem:[%s608_s24 + $0x8] sm:$0xff] %v1026_v9 }
 0x3dd   : > { %v1079_v10 = vld [vmem:[%s608_s24 + $0x8] sm:$0xff] }
 0x3de   : > { %1080 = vst [vmem:[%s1044_s28 + $0x10] sm:$0xff] %v1079_v10 }
 0x3df PF: > { %s17_s11 = sadd.s32 1, %s1539_s11   ;;  %s1888_s20 = sld [smem:[#allocation11_spill]] }
 0x3e0   : > { %p14_p5 = scmp.ge.s32.totalorder %s17_s11, 6   ;;  %s1889_s24 = smov %s1503_s25 }
 0x3e1   : > { %s1890_s25 = smov %s1704_s15  ;;  %s1891_s26 = smov %s1511_s27 }
 0x3e2   : > { %s1892_s27 = smov %s1682_s17  ;;  %s1893_s28 = smov %s1519_s29 }
 0x3e3   : > { %s1894_s29 = smov %s1679_s3  ;;  %s1895_s30 = smov %s1531_s9 }
 0x3e4   : > { %s1896_s8 = smov %s1535_s10  ;;  %s1897_s9 = smov %s1900_s13 }
 0x3e5   : > { %s1898_s10 = smov %s1888_s20  ;;  %16 = sbr.rel (!%p14_p5) target bundleno = 11 (0xb), region = 271 }

// kernel: image_stream_block_pallas.13
= control target key start
LH: loop header
LB: loop body
LE: loop exit
PB: predicated region body
PF: predicated region fallthrough
CT: control target
= control target key end

     0   :  { %s2901_s0 = inlined_call_operand.vmem [shape: f32[2,16,256], index: 0, kind: input, shape index: {}]   ;;  %s2902_s1 = inlined_call_operand.vmem [shape: f32[2,1,256], index: 1, kind: input, shape index: {}]   ;;  %s2903_s2 = inlined_call_operand.vmem [shape: f32[2,1,256], index: 2, kind: input, shape index: {}]   ;;  %s2904_s3 = inlined_call_operand.vmem [shape: f32[2,1,256], index: 3, kind: input, shape index: {}]   ;;  %s2905_s4 = inlined_call_operand.vmem [shape: f32[256,1024], index: 4, kind: input, shape index: {}]   ;;  %s2906_s5 = inlined_call_operand.vmem [shape: f32[1,1024], index: 5, kind: input, shape index: {}]   ;;  %s2907_s6 = inlined_call_operand.vmem [shape: f32[1024,256], index: 6, kind: input, shape index: {}]   ;;  %s2908_s7 = inlined_call_operand.vmem [shape: f32[1,256], index: 7, kind: input, shape index: {}]   ;;  %s2909_s8 = inlined_call_operand.hbm [shape: f32[2,16,256], index: 8, kind: output, shape index: {}]  }
   0x1   :  { %2922 = sst [smem:[#allocation19_spill]] %s2901_s0 }
   0x2   :  { %2923 = sst [smem:[#allocation20_spill]] %s2905_s4 }
   0x3   :  { %2924 = sst [smem:[#allocation21_spill]] %s2909_s8 }
   0x4   :  { %13 = vsyncpa [#allocation6], 0 }
   0x5   :  { %15 = vsyncpa [#allocation6 + $0x1], 0  ;;  %s2077_s27 = smov 0   ;;  %s2079_s28 = smov 0  }
   0x6   :  { %s2081_s29 = smov 0   ;;  %s2083_s30 = smov 0  }
   0x7   :  { %s2085_s9 = smov 0   ;;  %s2087_s10 = smov 0  }
   0x8   :  { %s2089_s11 = smov 0   ;;  %s2091_s12 = smov 0  }
   0x9   :  { %s2093_s13 = smov 0   ;;  %s2095_s14 = smov 0  }
   0xa LB: > { %2925 = sst [smem:[#allocation8_spill]] %s1990_s27  ;;  %s1773_s15 = sadd.s32 4294967295, %s2026_s14   ;;  %s2026_s14 = sphi %s2095_s14, %s21_s14   ;;  %s2022_s13 = sphi %s2093_s13, %s2953_s13   ;;  %s2018_s12 = sphi %s2091_s12, %s2952_s12   ;;  %s2014_s11 = sphi %s2089_s11, %s2951_s11   ;;  %s2010_s10 = sphi %s2087_s10, %s2950_s10   ;;  %s2006_s9 = sphi %s2085_s9, %s2949_s9   ;;  %s2002_s30 = sphi %s2083_s30, %s2948_s30   ;;  %s1998_s29 = sphi %s2081_s29, %s2947_s29   ;;  %s1994_s28 = sphi %s2079_s28, %s2955_s28   ;;  %s1990_s27 = sphi %s2077_s27, %s2954_s27  }
   0xb   : > { %2926 = sst [smem:[#allocation9_spill]] %s1998_s29  ;;  %s1774_s16 = sadd.s32 4294967294, %s2026_s14  }
   0xc   : > { %2927 = sst [smem:[#allocation10_spill]] %s2006_s9  ;;  %s33_s17 = sadd.s32 1, %s2018_s12 }
   0xd   : > { %2928 = sst [smem:[#allocation11_spill]] %s2018_s12  ;;  %s40_s18 = sadd.s32 1, %s2022_s13 }
   0xe   : > { %2929 = sst [smem:[#allocation12_spill]] %s2022_s13  ;;  %p34_p0 = scmp.ge.s32.totalorder %s33_s17, 2 }
   0xf   : > { %2930 = sst [smem:[#allocation13_spill]] %s2026_s14  ;;  %s153_s19 = sadd.s32 1, %s2006_s9 }
  0x10   : > { %p160_p1 = scmp.ne.s32.totalorder %s2006_s9, %s2002_s30  ;;  %p161_p2 = scmp.eq.s32.totalorder %s2026_s14, 0 }
  0x11   : > { %s2957_s17 = smov (%p34_p0, %s33_s17), 0  ;;  %s2959_s18 = smov (!%p34_p0, %s40_s18), %s2022_s13 }
  0x12   : > { %2931 = sst [smem:[#allocation14_spill]] %s2957_s17  ;;  %s150_s20 = ssub.s32 %s2018_s12, %s2957_s17 }
  0x13   : > { %p2140_p3 = por %p161_p2, %p160_p1  ;;  %p42_p4 = scmp.ge.s32.totalorder %s2959_s18, 2 }
  0x14   : > { %p151_p5 = scmp.eq.s32.totalorder %s150_s20, 0  ;;  %s254_s22 = sadd.s32 1, %s1998_s29 }
  0x15   : > { %p264_p6 = scmp.ne.s32.totalorder %s1998_s29, %s1994_s28  ;;  %s2961_s18 = smov (%p42_p4, %s2959_s18), 0 }
  0x16   : > { %2933 = sst [smem:[#allocation15_spill]] %s2961_s18  ;;  %s249_s24 = ssub.s32 %s2022_s13, %s2961_s18 }
  0x17   : > { %s2150_s23 = scalar_select %p151_p5, %s2006_s9, %s153_s19  }
  0x18   : > { %p265_p7 = scmp.eq.s32.totalorder %s1773_s15, 3  ;;  %p252_p8 = scmp.eq.s32.totalorder %s249_s24, 0 }
  0x19   : > { %2934 = sst [smem:[#allocation16_spill]] %s2150_s23  ;;  %p270_p9 = scmp.ne.s32.totalorder %s1994_s28, %s1990_s27 }
  0x1a   : > { %p2156_p10 = por %p265_p7, %p264_p6  ;;  %p271_p11 = scmp.eq.s32.totalorder %s1774_s16, 3 }
  0x1b   : > { %s2161_s26 = scalar_select %p252_p8, %s1998_s29, %s254_s22  }
  0x1c   : > { %p2163_p12 = por %p271_p11, %p270_p9  ;;  %p1776_p13 = scmp.ge.s32.totalorder %s2026_s14, 4 }
  0x1d   : > { %2936 = sst [smem:[#allocation17_spill]] %s2161_s26 }
  0x1e   : > { %s2937_s20 = scalar_select %p2163_p12, 1, 0 }
  0x1f   : > { %290 = sbr.rel (%p1776_p13) target bundleno = 174 (0xae), region = 20 }
  0x20   : > { %2938 = sst [smem:[#allocation18_spill]] %s2937_s20 }
  0x24   : > { %328 = sbr.rel (!%p2140_p3) target bundleno = 174 (0xae), region = 40  ;;  %s330_s15 = sand.u32 (%p2140_p3), 1, %s2006_s9  }
  0x25   : > { %s1799_s19 = sshll.u32 (%p2140_p3), %s2018_s12, 5  ;;  %s1777_s24 = sshll.u32 (%p2140_p3), %s330_s15, 10 }
  0x26   : > { %s2939_s4 = sld [smem:[#allocation20_spill]] (%p2140_p3)  ;;  %s2180_s21 = scalar_lea.vmem (%p2140_p3), [#allocation4], %s1777_s24 }
  0x2c   : > { %s2175_s16 = scalar_lea.vmem %s2939_s4, %s1799_s19 }
  0x2d   : > { %v348_v0 = vld [vmem:[%s2175_s16] sm:$0xff]  ;;  %v350_v1 = vld [vmem:[%s2175_s16 + $0x8] sm:$0xff]  ;;  %v352_v2 = vld [vmem:[%s2175_s16 + $0x10] sm:$0xff] }
  0x2e   : > { %349 = vst [vmem:[%s2180_s21] sm:$0xff] %v348_v0  ;;  %v354_v3 = vld [vmem:[%s2175_s16 + $0x18] sm:$0xff]  ;;  %v356_v4 = vld [vmem:[%s2175_s16 + $0x40] sm:$0xff]  ;;  %v358_v5 = vld [vmem:[%s2175_s16 + $0x48] sm:$0xff] }
  0x2f   : > { %351 = vst [vmem:[%s2180_s21 + $0x8] sm:$0xff] %v350_v1  ;;  %v360_v6 = vld [vmem:[%s2175_s16 + $0x50] sm:$0xff]  ;;  %v362_v7 = vld [vmem:[%s2175_s16 + $0x58] sm:$0xff]  ;;  %v364_v8 = vld [vmem:[%s2175_s16 + $0x80] sm:$0xff] }
  0x30   : > { %353 = vst [vmem:[%s2180_s21 + $0x10] sm:$0xff] %v352_v2  ;;  %v366_v9 = vld [vmem:[%s2175_s16 + $0x88] sm:$0xff]  ;;  %v368_v10 = vld [vmem:[%s2175_s16 + $0x90] sm:$0xff]  ;;  %v370_v11 = vld [vmem:[%s2175_s16 + $0x98] sm:$0xff] }
  0x31   : > { %355 = vst [vmem:[%s2180_s21 + $0x18] sm:$0xff] %v354_v3  ;;  %v372_v12 = vld [vmem:[%s2175_s16 + $0xc0] sm:$0xff]  ;;  %v374_v13 = vld [vmem:[%s2175_s16 + $0xc8] sm:$0xff]  ;;  %v376_v14 = vld [vmem:[%s2175_s16 + $0xd0] sm:$0xff] }
  0x32   : > { %357 = vst [vmem:[%s2180_s21 + $0x20] sm:$0xff] %v356_v4  ;;  %v378_v15 = vld [vmem:[%s2175_s16 + $0xd8] sm:$0xff]  ;;  %v380_v16 = vld [vmem:[%s2175_s16 + $0x100] sm:$0xff]  ;;  %v382_v17 = vld [vmem:[%s2175_s16 + $0x108] sm:$0xff] }
  0x33   : > { %359 = vst [vmem:[%s2180_s21 + $0x28] sm:$0xff] %v358_v5  ;;  %v384_v18 = vld [vmem:[%s2175_s16 + $0x110] sm:$0xff]  ;;  %v386_v19 = vld [vmem:[%s2175_s16 + $0x118] sm:$0xff]  ;;  %v388_v20 = vld [vmem:[%s2175_s16 + $0x140] sm:$0xff] }
  0x34   : > { %361 = vst [vmem:[%s2180_s21 + $0x30] sm:$0xff] %v360_v6  ;;  %v390_v21 = vld [vmem:[%s2175_s16 + $0x148] sm:$0xff]  ;;  %v392_v22 = vld [vmem:[%s2175_s16 + $0x150] sm:$0xff]  ;;  %v394_v23 = vld [vmem:[%s2175_s16 + $0x158] sm:$0xff] }
  0x35   : > { %363 = vst [vmem:[%s2180_s21 + $0x38] sm:$0xff] %v362_v7  ;;  %v396_v24 = vld [vmem:[%s2175_s16 + $0x180] sm:$0xff]  ;;  %v398_v25 = vld [vmem:[%s2175_s16 + $0x188] sm:$0xff]  ;;  %v400_v26 = vld [vmem:[%s2175_s16 + $0x190] sm:$0xff] }
  0x36   : > { %365 = vst [vmem:[%s2180_s21 + $0x40] sm:$0xff] %v364_v8  ;;  %v402_v27 = vld [vmem:[%s2175_s16 + $0x198] sm:$0xff]  ;;  %v404_v28 = vld [vmem:[%s2175_s16 + $0x1c0] sm:$0xff]  ;;  %v406_v29 = vld [vmem:[%s2175_s16 + $0x1c8] sm:$0xff] }
  0x37   : > { %367 = vst [vmem:[%s2180_s21 + $0x48] sm:$0xff] %v366_v9  ;;  %v408_v30 = vld [vmem:[%s2175_s16 + $0x1d0] sm:$0xff]  ;;  %v410_v31 = vld [vmem:[%s2175_s16 + $0x1d8] sm:$0xff]  ;;  %v412_v32 = vld [vmem:[%s2175_s16 + $0x200] sm:$0xff] }
  0x38   : > { %369 = vst [vmem:[%s2180_s21 + $0x50] sm:$0xff] %v368_v10  ;;  %v414_v33 = vld [vmem:[%s2175_s16 + $0x208] sm:$0xff]  ;;  %v416_v34 = vld [vmem:[%s2175_s16 + $0x210] sm:$0xff]  ;;  %v418_v35 = vld [vmem:[%s2175_s16 + $0x218] sm:$0xff] }
  0x39   : > { %371 = vst [vmem:[%s2180_s21 + $0x58] sm:$0xff] %v370_v11  ;;  %v420_v36 = vld [vmem:[%s2175_s16 + $0x240] sm:$0xff]  ;;  %v422_v37 = vld [vmem:[%s2175_s16 + $0x248] sm:$0xff]  ;;  %v424_v38 = vld [vmem:[%s2175_s16 + $0x250] sm:$0xff] }
  0x3a   : > { %373 = vst [vmem:[%s2180_s21 + $0x60] sm:$0xff] %v372_v12  ;;  %v426_v39 = vld [vmem:[%s2175_s16 + $0x258] sm:$0xff]  ;;  %v428_v40 = vld [vmem:[%s2175_s16 + $0x280] sm:$0xff]  ;;  %v430_v41 = vld [vmem:[%s2175_s16 + $0x288] sm:$0xff] }
  0x3b   : > { %375 = vst [vmem:[%s2180_s21 + $0x68] sm:$0xff] %v374_v13  ;;  %v432_v42 = vld [vmem:[%s2175_s16 + $0x290] sm:$0xff]  ;;  %v434_v43 = vld [vmem:[%s2175_s16 + $0x298] sm:$0xff]  ;;  %v436_v44 = vld [vmem:[%s2175_s16 + $0x2c0] sm:$0xff] }
  0x3c   : > { %377 = vst [vmem:[%s2180_s21 + $0x70] sm:$0xff] %v376_v14  ;;  %v438_v45 = vld [vmem:[%s2175_s16 + $0x2c8] sm:$0xff]  ;;  %v440_v46 = vld [vmem:[%s2175_s16 + $0x2d0] sm:$0xff]  ;;  %v442_v47 = vld [vmem:[%s2175_s16 + $0x2d8] sm:$0xff] }
  0x3d   : > { %379 = vst [vmem:[%s2180_s21 + $0x78] sm:$0xff] %v378_v15  ;;  %v444_v48 = vld [vmem:[%s2175_s16 + $0x300] sm:$0xff]  ;;  %v446_v49 = vld [vmem:[%s2175_s16 + $0x308] sm:$0xff]  ;;  %v448_v50 = vld [vmem:[%s2175_s16 + $0x310] sm:$0xff] }
  0x3e   : > { %381 = vst [vmem:[%s2180_s21 + $0x80] sm:$0xff] %v380_v16  ;;  %v450_v51 = vld [vmem:[%s2175_s16 + $0x318] sm:$0xff]  ;;  %v452_v52 = vld [vmem:[%s2175_s16 + $0x340] sm:$0xff]  ;;  %v454_v53 = vld [vmem:[%s2175_s16 + $0x348] sm:$0xff] }
  0x3f   : > { %383 = vst [vmem:[%s2180_s21 + $0x88] sm:$0xff] %v382_v17  ;;  %v456_v54 = vld [vmem:[%s2175_s16 + $0x350] sm:$0xff]  ;;  %v458_v55 = vld [vmem:[%s2175_s16 + $0x358] sm:$0xff]  ;;  %v460_v56 = vld [vmem:[%s2175_s16 + $0x380] sm:$0xff] }
  0x40   : > { %385 = vst [vmem:[%s2180_s21 + $0x90] sm:$0xff] %v384_v18  ;;  %v462_v57 = vld [vmem:[%s2175_s16 + $0x388] sm:$0xff]  ;;  %v464_v58 = vld [vmem:[%s2175_s16 + $0x390] sm:$0xff]  ;;  %v466_v59 = vld [vmem:[%s2175_s16 + $0x398] sm:$0xff] }
  0x41   : > { %387 = vst [vmem:[%s2180_s21 + $0x98] sm:$0xff] %v386_v19  ;;  %v468_v60 = vld [vmem:[%s2175_s16 + $0x3c0] sm:$0xff]  ;;  %v470_v61 = vld [vmem:[%s2175_s16 + $0x3c8] sm:$0xff]  ;;  %v472_v62 = vld [vmem:[%s2175_s16 + $0x3d0] sm:$0xff] }
  0x42   : > { %389 = vst [vmem:[%s2180_s21 + $0xa0] sm:$0xff] %v388_v20  ;;  %v474_v63 = vld [vmem:[%s2175_s16 + $0x3d8] sm:$0xff]  ;;  %v476_v0 = vld [vmem:[%s2175_s16 + $0x400] sm:$0xff]  ;;  %v478_v1 = vld [vmem:[%s2175_s16 + $0x408] sm:$0xff] }
  0x43   : > { %391 = vst [vmem:[%s2180_s21 + $0xa8] sm:$0xff] %v390_v21  ;;  %v480_v2 = vld [vmem:[%s2175_s16 + $0x410] sm:$0xff]  ;;  %v482_v3 = vld [vmem:[%s2175_s16 + $0x418] sm:$0xff]  ;;  %v484_v4 = vld [vmem:[%s2175_s16 + $0x440] sm:$0xff] }
  0x44   : > { %393 = vst [vmem:[%s2180_s21 + $0xb0] sm:$0xff] %v392_v22  ;;  %v486_v5 = vld [vmem:[%s2175_s16 + $0x448] sm:$0xff]  ;;  %v488_v6 = vld [vmem:[%s2175_s16 + $0x450] sm:$0xff]  ;;  %v490_v7 = vld [vmem:[%s2175_s16 + $0x458] sm:$0xff] }
  0x45   : > { %395 = vst [vmem:[%s2180_s21 + $0xb8] sm:$0xff] %v394_v23  ;;  %v492_v8 = vld [vmem:[%s2175_s16 + $0x480] sm:$0xff]  ;;  %v494_v9 = vld [vmem:[%s2175_s16 + $0x488] sm:$0xff]  ;;  %v496_v10 = vld [vmem:[%s2175_s16 + $0x490] sm:$0xff] }
  0x46   : > { %397 = vst [vmem:[%s2180_s21 + $0xc0] sm:$0xff] %v396_v24  ;;  %v498_v11 = vld [vmem:[%s2175_s16 + $0x498] sm:$0xff]  ;;  %v500_v12 = vld [vmem:[%s2175_s16 + $0x4c0] sm:$0xff]  ;;  %v502_v13 = vld [vmem:[%s2175_s16 + $0x4c8] sm:$0xff] }
  0x47   : > { %399 = vst [vmem:[%s2180_s21 + $0xc8] sm:$0xff] %v398_v25  ;;  %v504_v14 = vld [vmem:[%s2175_s16 + $0x4d0] sm:$0xff]  ;;  %v506_v15 = vld [vmem:[%s2175_s16 + $0x4d8] sm:$0xff]  ;;  %v508_v16 = vld [vmem:[%s2175_s16 + $0x500] sm:$0xff] }
  0x48   : > { %401 = vst [vmem:[%s2180_s21 + $0xd0] sm:$0xff] %v400_v26  ;;  %v510_v17 = vld [vmem:[%s2175_s16 + $0x508] sm:$0xff]  ;;  %v512_v18 = vld [vmem:[%s2175_s16 + $0x510] sm:$0xff]  ;;  %v514_v19 = vld [vmem:[%s2175_s16 + $0x518] sm:$0xff] }
  0x49   : > { %403 = vst [vmem:[%s2180_s21 + $0xd8] sm:$0xff] %v402_v27  ;;  %v516_v20 = vld [vmem:[%s2175_s16 + $0x540] sm:$0xff]  ;;  %v518_v21 = vld [vmem:[%s2175_s16 + $0x548] sm:$0xff]  ;;  %v520_v22 = vld [vmem:[%s2175_s16 + $0x550] sm:$0xff] }
  0x4a   : > { %405 = vst [vmem:[%s2180_s21 + $0xe0] sm:$0xff] %v404_v28  ;;  %v522_v23 = vld [vmem:[%s2175_s16 + $0x558] sm:$0xff]  ;;  %v524_v24 = vld [vmem:[%s2175_s16 + $0x580] sm:$0xff]  ;;  %v526_v25 = vld [vmem:[%s2175_s16 + $0x588] sm:$0xff] }
  0x4b   : > { %407 = vst [vmem:[%s2180_s21 + $0xe8] sm:$0xff] %v406_v29  ;;  %v528_v26 = vld [vmem:[%s2175_s16 + $0x590] sm:$0xff]  ;;  %v530_v27 = vld [vmem:[%s2175_s16 + $0x598] sm:$0xff]  ;;  %v532_v28 = vld [vmem:[%s2175_s16 + $0x5c0] sm:$0xff] }
  0x4c   : > { %409 = vst [vmem:[%s2180_s21 + $0xf0] sm:$0xff] %v408_v30  ;;  %v534_v29 = vld [vmem:[%s2175_s16 + $0x5c8] sm:$0xff]  ;;  %v536_v30 = vld [vmem:[%s2175_s16 + $0x5d0] sm:$0xff] }
  0x4d   : > { %411 = vst [vmem:[%s2180_s21 + $0xf8] sm:$0xff] %v410_v31  ;;  %v538_v31 = vld [vmem:[%s2175_s16 + $0x5d8] sm:$0xff] }
  0x4e   : > { %413 = vst [vmem:[%s2180_s21 + $0x100] sm:$0xff] %v412_v32  ;;  %v540_v32 = vld [vmem:[%s2175_s16 + $0x600] sm:$0xff] }
  0x4f   : > { %415 = vst [vmem:[%s2180_s21 + $0x108] sm:$0xff] %v414_v33  ;;  %v542_v33 = vld [vmem:[%s2175_s16 + $0x608] sm:$0xff] }
  0x50   : > { %417 = vst [vmem:[%s2180_s21 + $0x110] sm:$0xff] %v416_v34  ;;  %v544_v34 = vld [vmem:[%s2175_s16 + $0x610] sm:$0xff] }
  0x51   : > { %419 = vst [vmem:[%s2180_s21 + $0x118] sm:$0xff] %v418_v35  ;;  %v546_v35 = vld [vmem:[%s2175_s16 + $0x618] sm:$0xff] }
  0x52   : > { %421 = vst [vmem:[%s2180_s21 + $0x120] sm:$0xff] %v420_v36  ;;  %v548_v36 = vld [vmem:[%s2175_s16 + $0x640] sm:$0xff] }
  0x53   : > { %423 = vst [vmem:[%s2180_s21 + $0x128] sm:$0xff] %v422_v37  ;;  %v550_v37 = vld [vmem:[%s2175_s16 + $0x648] sm:$0xff] }
  0x54   : > { %425 = vst [vmem:[%s2180_s21 + $0x130] sm:$0xff] %v424_v38  ;;  %v552_v38 = vld [vmem:[%s2175_s16 + $0x650] sm:$0xff] }
  0x55   : > { %427 = vst [vmem:[%s2180_s21 + $0x138] sm:$0xff] %v426_v39  ;;  %v554_v39 = vld [vmem:[%s2175_s16 + $0x658] sm:$0xff] }
  0x56   : > { %429 = vst [vmem:[%s2180_s21 + $0x140] sm:$0xff] %v428_v40  ;;  %v556_v40 = vld [vmem:[%s2175_s16 + $0x680] sm:$0xff] }
  0x57   : > { %431 = vst [vmem:[%s2180_s21 + $0x148] sm:$0xff] %v430_v41  ;;  %v558_v41 = vld [vmem:[%s2175_s16 + $0x688] sm:$0xff] }
  0x58   : > { %433 = vst [vmem:[%s2180_s21 + $0x150] sm:$0xff] %v432_v42  ;;  %v560_v42 = vld [vmem:[%s2175_s16 + $0x690] sm:$0xff] }
  0x59   : > { %435 = vst [vmem:[%s2180_s21 + $0x158] sm:$0xff] %v434_v43  ;;  %v562_v43 = vld [vmem:[%s2175_s16 + $0x698] sm:$0xff] }
  0x5a   : > { %437 = vst [vmem:[%s2180_s21 + $0x160] sm:$0xff] %v436_v44  ;;  %v564_v44 = vld [vmem:[%s2175_s16 + $0x6c0] sm:$0xff] }
  0x5b   : > { %439 = vst [vmem:[%s2180_s21 + $0x168] sm:$0xff] %v438_v45  ;;  %v566_v45 = vld [vmem:[%s2175_s16 + $0x6c8] sm:$0xff] }
  0x5c   : > { %441 = vst [vmem:[%s2180_s21 + $0x170] sm:$0xff] %v440_v46  ;;  %v568_v46 = vld [vmem:[%s2175_s16 + $0x6d0] sm:$0xff] }
  0x5d   : > { %443 = vst [vmem:[%s2180_s21 + $0x178] sm:$0xff] %v442_v47  ;;  %v570_v47 = vld [vmem:[%s2175_s16 + $0x6d8] sm:$0xff] }
  0x5e   : > { %445 = vst [vmem:[%s2180_s21 + $0x180] sm:$0xff] %v444_v48  ;;  %v572_v48 = vld [vmem:[%s2175_s16 + $0x700] sm:$0xff] }
  0x5f   : > { %447 = vst [vmem:[%s2180_s21 + $0x188] sm:$0xff] %v446_v49  ;;  %v574_v49 = vld [vmem:[%s2175_s16 + $0x708] sm:$0xff] }
  0x60   : > { %449 = vst [vmem:[%s2180_s21 + $0x190] sm:$0xff] %v448_v50  ;;  %v576_v50 = vld [vmem:[%s2175_s16 + $0x710] sm:$0xff] }
  0x61   : > { %451 = vst [vmem:[%s2180_s21 + $0x198] sm:$0xff] %v450_v51  ;;  %v578_v51 = vld [vmem:[%s2175_s16 + $0x718] sm:$0xff] }
  0x62   : > { %453 = vst [vmem:[%s2180_s21 + $0x1a0] sm:$0xff] %v452_v52  ;;  %v580_v52 = vld [vmem:[%s2175_s16 + $0x740] sm:$0xff] }
  0x63   : > { %455 = vst [vmem:[%s2180_s21 + $0x1a8] sm:$0xff] %v454_v53  ;;  %v582_v53 = vld [vmem:[%s2175_s16 + $0x748] sm:$0xff] }
  0x64   : > { %457 = vst [vmem:[%s2180_s21 + $0x1b0] sm:$0xff] %v456_v54  ;;  %v584_v54 = vld [vmem:[%s2175_s16 + $0x750] sm:$0xff] }
  0x65   : > { %459 = vst [vmem:[%s2180_s21 + $0x1b8] sm:$0xff] %v458_v55  ;;  %v586_v55 = vld [vmem:[%s2175_s16 + $0x758] sm:$0xff] }
  0x66   : > { %461 = vst [vmem:[%s2180_s21 + $0x1c0] sm:$0xff] %v460_v56  ;;  %v588_v56 = vld [vmem:[%s2175_s16 + $0x780] sm:$0xff] }
  0x67   : > { %463 = vst [vmem:[%s2180_s21 + $0x1c8] sm:$0xff] %v462_v57  ;;  %v590_v57 = vld [vmem:[%s2175_s16 + $0x788] sm:$0xff] }
  0x68   : > { %465 = vst [vmem:[%s2180_s21 + $0x1d0] sm:$0xff] %v464_v58  ;;  %v592_v58 = vld [vmem:[%s2175_s16 + $0x790] sm:$0xff] }
  0x69   : > { %467 = vst [vmem:[%s2180_s21 + $0x1d8] sm:$0xff] %v466_v59  ;;  %v594_v59 = vld [vmem:[%s2175_s16 + $0x798] sm:$0xff] }
  0x6a   : > { %469 = vst [vmem:[%s2180_s21 + $0x1e0] sm:$0xff] %v468_v60  ;;  %v596_v60 = vld [vmem:[%s2175_s16 + $0x7c0] sm:$0xff] }
  0x6b   : > { %471 = vst [vmem:[%s2180_s21 + $0x1e8] sm:$0xff] %v470_v61  ;;  %v598_v61 = vld [vmem:[%s2175_s16 + $0x7c8] sm:$0xff] }
  0x6c   : > { %473 = vst [vmem:[%s2180_s21 + $0x1f0] sm:$0xff] %v472_v62  ;;  %v600_v62 = vld [vmem:[%s2175_s16 + $0x7d0] sm:$0xff] }
  0x6d   : > { %475 = vst [vmem:[%s2180_s21 + $0x1f8] sm:$0xff] %v474_v63  ;;  %v602_v63 = vld [vmem:[%s2175_s16 + $0x7d8] sm:$0xff] }
  0x6e   : > { %477 = vst [vmem:[%s2180_s21 + $0x200] sm:$0xff] %v476_v0 }
  0x6f   : > { %479 = vst [vmem:[%s2180_s21 + $0x208] sm:$0xff] %v478_v1 }
  0x70   : > { %481 = vst [vmem:[%s2180_s21 + $0x210] sm:$0xff] %v480_v2 }
  0x71   : > { %483 = vst [vmem:[%s2180_s21 + $0x218] sm:$0xff] %v482_v3 }
  0x72   : > { %485 = vst [vmem:[%s2180_s21 + $0x220] sm:$0xff] %v484_v4 }
  0x73   : > { %487 = vst [vmem:[%s2180_s21 + $0x228] sm:$0xff] %v486_v5 }
  0x74   : > { %489 = vst [vmem:[%s2180_s21 + $0x230] sm:$0xff] %v488_v6 }
  0x75   : > { %491 = vst [vmem:[%s2180_s21 + $0x238] sm:$0xff] %v490_v7 }
  0x76   : > { %493 = vst [vmem:[%s2180_s21 + $0x240] sm:$0xff] %v492_v8 }
  0x77   : > { %495 = vst [vmem:[%s2180_s21 + $0x248] sm:$0xff] %v494_v9 }
  0x78   : > { %497 = vst [vmem:[%s2180_s21 + $0x250] sm:$0xff] %v496_v10 }
  0x79   : > { %499 = vst [vmem:[%s2180_s21 + $0x258] sm:$0xff] %v498_v11 }
  0x7a   : > { %501 = vst [vmem:[%s2180_s21 + $0x260] sm:$0xff] %v500_v12 }
  0x7b   : > { %503 = vst [vmem:[%s2180_s21 + $0x268] sm:$0xff] %v502_v13 }
  0x7c   : > { %505 = vst [vmem:[%s2180_s21 + $0x270] sm:$0xff] %v504_v14 }
  0x7d   : > { %507 = vst [vmem:[%s2180_s21 + $0x278] sm:$0xff] %v506_v15 }
  0x7e   : > { %509 = vst [vmem:[%s2180_s21 + $0x280] sm:$0xff] %v508_v16 }
  0x7f   : > { %511 = vst [vmem:[%s2180_s21 + $0x288] sm:$0xff] %v510_v17 }
  0x80   : > { %513 = vst [vmem:[%s2180_s21 + $0x290] sm:$0xff] %v512_v18 }
  0x81   : > { %515 = vst [vmem:[%s2180_s21 + $0x298] sm:$0xff] %v514_v19 }
  0x82   : > { %517 = vst [vmem:[%s2180_s21 + $0x2a0] sm:$0xff] %v516_v20 }
  0x83   : > { %519 = vst [vmem:[%s2180_s21 + $0x2a8] sm:$0xff] %v518_v21 }
  0x84   : > { %521 = vst [vmem:[%s2180_s21 + $0x2b0] sm:$0xff] %v520_v22 }
  0x85   : > { %523 = vst [vmem:[%s2180_s21 + $0x2b8] sm:$0xff] %v522_v23 }
  0x86   : > { %525 = vst [vmem:[%s2180_s21 + $0x2c0] sm:$0xff] %v524_v24 }
  0x87   : > { %527 = vst [vmem:[%s2180_s21 + $0x2c8] sm:$0xff] %v526_v25 }
  0x88   : > { %529 = vst [vmem:[%s2180_s21 + $0x2d0] sm:$0xff] %v528_v26 }
  0x89   : > { %531 = vst [vmem:[%s2180_s21 + $0x2d8] sm:$0xff] %v530_v27 }
  0x8a   : > { %533 = vst [vmem:[%s2180_s21 + $0x2e0] sm:$0xff] %v532_v28 }
  0x8b   : > { %535 = vst [vmem:[%s2180_s21 + $0x2e8] sm:$0xff] %v534_v29 }
  0x8c   : > { %537 = vst [vmem:[%s2180_s21 + $0x2f0] sm:$0xff] %v536_v30 }
  0x8d   : > { %539 = vst [vmem:[%s2180_s21 + $0x2f8] sm:$0xff] %v538_v31 }
  0x8e   : > { %541 = vst [vmem:[%s2180_s21 + $0x300] sm:$0xff] %v540_v32 }
  0x8f   : > { %543 = vst [vmem:[%s2180_s21 + $0x308] sm:$0xff] %v542_v33 }
  0x90   : > { %545 = vst [vmem:[%s2180_s21 + $0x310] sm:$0xff] %v544_v34 }
  0x91   : > { %547 = vst [vmem:[%s2180_s21 + $0x318] sm:$0xff] %v546_v35 }
  0x92   : > { %549 = vst [vmem:[%s2180_s21 + $0x320] sm:$0xff] %v548_v36 }
  0x93   : > { %551 = vst [vmem:[%s2180_s21 + $0x328] sm:$0xff] %v550_v37 }
  0x94   : > { %553 = vst [vmem:[%s2180_s21 + $0x330] sm:$0xff] %v552_v38 }
  0x95   : > { %555 = vst [vmem:[%s2180_s21 + $0x338] sm:$0xff] %v554_v39 }
  0x96   : > { %557 = vst [vmem:[%s2180_s21 + $0x340] sm:$0xff] %v556_v40 }
  0x97   : > { %559 = vst [vmem:[%s2180_s21 + $0x348] sm:$0xff] %v558_v41 }
  0x98   : > { %561 = vst [vmem:[%s2180_s21 + $0x350] sm:$0xff] %v560_v42 }
  0x99   : > { %563 = vst [vmem:[%s2180_s21 + $0x358] sm:$0xff] %v562_v43 }
  0x9a   : > { %565 = vst [vmem:[%s2180_s21 + $0x360] sm:$0xff] %v564_v44 }
  0x9b   : > { %567 = vst [vmem:[%s2180_s21 + $0x368] sm:$0xff] %v566_v45 }
  0x9c   : > { %569 = vst [vmem:[%s2180_s21 + $0x370] sm:$0xff] %v568_v46 }
  0x9d   : > { %571 = vst [vmem:[%s2180_s21 + $0x378] sm:$0xff] %v570_v47 }
  0x9e   : > { %573 = vst [vmem:[%s2180_s21 + $0x380] sm:$0xff] %v572_v48 }
  0x9f   : > { %575 = vst [vmem:[%s2180_s21 + $0x388] sm:$0xff] %v574_v49 }
  0xa0   : > { %577 = vst [vmem:[%s2180_s21 + $0x390] sm:$0xff] %v576_v50 }
  0xa1   : > { %579 = vst [vmem:[%s2180_s21 + $0x398] sm:$0xff] %v578_v51 }
  0xa2   : > { %581 = vst [vmem:[%s2180_s21 + $0x3a0] sm:$0xff] %v580_v52 }
  0xa3   : > { %583 = vst [vmem:[%s2180_s21 + $0x3a8] sm:$0xff] %v582_v53 }
  0xa4   : > { %585 = vst [vmem:[%s2180_s21 + $0x3b0] sm:$0xff] %v584_v54 }
  0xa5   : > { %587 = vst [vmem:[%s2180_s21 + $0x3b8] sm:$0xff] %v586_v55 }
  0xa6   : > { %589 = vst [vmem:[%s2180_s21 + $0x3c0] sm:$0xff] %v588_v56 }
  0xa7   : > { %591 = vst [vmem:[%s2180_s21 + $0x3c8] sm:$0xff] %v590_v57 }
  0xa8   : > { %593 = vst [vmem:[%s2180_s21 + $0x3d0] sm:$0xff] %v592_v58 }
  0xa9   : > { %595 = vst [vmem:[%s2180_s21 + $0x3d8] sm:$0xff] %v594_v59 }
  0xaa   : > { %597 = vst [vmem:[%s2180_s21 + $0x3e0] sm:$0xff] %v596_v60 }
  0xab   : > { %599 = vst [vmem:[%s2180_s21 + $0x3e8] sm:$0xff] %v598_v61 }
  0xac   : > { %601 = vst [vmem:[%s2180_s21 + $0x3f0] sm:$0xff] %v600_v62 }
  0xad   : > { %603 = vst [vmem:[%s2180_s21 + $0x3f8] sm:$0xff] %v602_v63 }
  0xae PF: > { %p1780_p0 = scmp.ge.s32.totalorder %s2026_s14, 1  ;;  %p626_p1 = scmp.lt.s32.totalorder %s2026_s14, 5 }
  0xb0   : > { %p627_p2 = pnand %p1780_p0, %p626_p1 }
  0xb1   : > { %s633_s17 = sand.u32 (!%p627_p2), 1, %s2002_s30   ;;  %s2914_s18 = sand.u32 (!%p627_p2), 1, %s1994_s28  }
  0xb2   : > { %630 = sbr.rel (%p627_p2) target bundleno = 900 (0x384), region = 71  ;;  %s1781_s22 = sshll.u32 (!%p627_p2), %s633_s17, 10 }
  0xb3   : > { %s1782_s15 = sshll.u32 (!%p627_p2), %s2914_s18, 5  ;;  %p699_p3 = scmp.lt.s32.totalorder (!%p627_p2), %s2014_s11, 1 }
  0xb4   : > { %s1788_s19 = sshll.u32 (!%p627_p2), %s2010_s10, 2  ;;  %s1789_s24 = sshll.u32 (!%p627_p2), %s2010_s10, 6 }
  0xb5   : > { %p723_p4 = scmp.lt.s32.totalorder (!%p627_p2), %s1788_s19, 7  ;;  %s2940_s0 = sld [smem:[#allocation19_spill]] (!%p627_p2) }
  0xb6   : > { %p728_p5 = scmp.lt.s32.totalorder (!%p627_p2), %s1789_s24, 127  ;;  %s2475_s17 = scalar_lea.vmem (!%p627_p2), [#allocation4], %s1781_s22 }
  0xb7   : > { %s700_s16 = scalar_select %p699_p3, %s2014_s11, 1 }
  0xb8   : > { %s2963_s19 = smov (!%p723_p4, %s1788_s19), 7  ;;  %s2965_s24 = smov (!%p728_p5, %s1789_s24), 127 }
  0xb9   : > { %s1800_s21 = sshll.u32 %s700_s16, 5  ;;  %s2447_s4 = sshll.u32 %s700_s16, 1 }
  0xba   : > { %s712_s23 = scalar_lea.vmem %s2902_s1, %s2447_s4  ;;  %s716_s29 = scalar_lea.vmem %s2903_s2, %s2447_s4 }
  0xbb   : > { %s2452_s30 = scalar_lea.vmem %s2940_s0, %s1800_s21  ;;  %s720_s16 = scalar_lea.vmem %s2904_s3, %s2447_s4 }
  0xbc   : > { %s725_s12 = scalar_lea.vmem %s2906_s5, %s2963_s19  ;;  %s1801_s13 = sshll.u32 %s2965_s24, 4 }
  0xbd   : > { %s2473_s18 = scalar_lea.vmem %s2907_s6, %s1801_s13  ;;  %s2477_s9 = scalar_lea.vmem [#allocation5], %s1782_s15 }
  0xbe   : > { %p1792_p6 = scmp.ne.s32.totalorder %s2010_s10, 0 }
  0xc0   : > { %738 = sbr.rel (%p1792_p6) target bundleno = 478 (0x1de), region = 79 }
  0xc5   : > { %v739_v0 = vld [vmem:[%s2452_s30] sm:$0xff]  ;;  %v740_v1 = vld [vmem:[%s2452_s30 + $0x8] sm:$0xff]  ;;  %v741_v3 = vld [vmem:[%s2452_s30 + $0x10] sm:$0xff]  ;;  %v2028_v6 = vmov 256.0   ;;  %v2029_v30 = vmov 0.0  }
  0xc6   : > { %v743_v2 = vadd.f32 %v740_v1, %v739_v0  ;;  %v742_v4 = vld [vmem:[%s2452_s30 + $0x18] sm:$0xff]  ;;  %1894 = vrcp.f32 %v2028_v6  ;;  %825 = vst [vmem:[#allocation3] sm:$0xff] %v2029_v30  ;;  %v800_v36 = vld [vmem:[%s712_s23] sm:$0x3] }
  0xc7   : > { %v746_v5 = vadd.f32 %v742_v4, %v741_v3  ;;  %826 = vst [vmem:[#allocation3 + $0x18] sm:$0xff] %v2029_v30  ;;  %v801_v39 = vadd.f32 1.0, %v800_v36  ;;  %v811_v42 = vld [vmem:[%s716_s29] sm:$0x3] }
  0xc8   : > { %744 = vadd.xlane.f32.xlu0 %v743_v2  ;;  %827 = vst [vmem:[#allocation3 + $0x8] sm:$0xff] %v2029_v30  ;;  %v813_v49 = vperm.slane %v811_v42, 0  ;;  %v814_v50 = vperm.slane %v811_v42, 1 }
  0xc9   : > { %828 = vst [vmem:[#allocation3 + $0x10] sm:$0xff] %v2029_v30  ;;  %v803_v45 = vperm.slane %v801_v39, 0  ;;  %v804_v46 = vperm.slane %v801_v39, 1 }
  0xcc   : > { %v1895_v7 = vpop.eup %1894 }
  0xcd   : > { %v750_v8 = vmul.f32 256.0, %v1895_v7  ;;  %vm754_vm0 = vweird.f32 %v1895_v7 }
  0xcf   : > { %v751_v9 = vsub.f32 1.0, %v750_v8 }
  0xd0   : > { %747 = vadd.xlane.f32.xlu0 %v746_v5 }
  0xd1   : > { %v752_v10 = vmul.f32 %v1895_v7, %v751_v9 }
  0xd3   : > { %v753_v11 = vadd.f32 %v1895_v7, %v752_v10 }
  0xd5   : > { %v755_v12 = vsel %vm754_vm0, %v1895_v7, %v753_v11 }
 0x13b   : > { %v745_v13 = vpop.xlane.xlu0 %744 }
 0x13c   : > { %v756_v14 = vmul.f32 %v755_v12, %v745_v13 }
 0x13e   : > { %v758_v15 = vsub.f32 %v739_v0, %v756_v14  ;;  %v759_v16 = vsub.f32 %v740_v1, %v756_v14 }
 0x140   : > { %v762_v17 = vmul.f32 %v758_v15, %v758_v15  ;;  %v763_v18 = vmul.f32 %v759_v16, %v759_v16 }
 0x142   : > { %v766_v19 = vadd.f32 %v763_v18, %v762_v17 }
 0x143   : > { %v748_v20 = vpop.xlane.xlu0 %747 }
 0x144   : > { %v757_v21 = vmul.f32 %v755_v12, %v748_v20  ;;  %767 = vadd.xlane.f32.xlu1 %v766_v19 }
 0x146   : > { %v760_v22 = vsub.f32 %v741_v3, %v757_v21  ;;  %v761_v23 = vsub.f32 %v742_v4, %v757_v21 }
 0x148   : > { %v764_v24 = vmul.f32 %v760_v22, %v760_v22  ;;  %v765_v25 = vmul.f32 %v761_v23, %v761_v23 }
 0x14a   : > { %v769_v26 = vadd.f32 %v765_v25, %v764_v24 }
 0x14c   : > { %770 = vadd.xlane.f32.xlu1 %v769_v26 }
 0x1b7   : > { %v768_v27 = vpop.xlane.xlu1 %767 }
 0x1b8   : > { %v772_v28 = vmul.f32 %v768_v27, %v755_v12 }
 0x1ba   : > { %v774_v29 = vadd.f32 1e-06, %v772_v28 }
 0x1bc   : > { %1896 = vrsqrt.f32 %v774_v29  ;;  %vm782_vm2 = vweird.f32 %v774_v29 }
 0x1bf   : > { %v771_v31 = vpop.xlane.xlu1 %770 }
 0x1c0   : > { %v773_v32 = vmul.f32 %v771_v31, %v755_v12 }
 0x1c2   : > { %v1897_v33 = vpop.eup %1896  ;;  %v775_v34 = vadd.f32 1e-06, %v773_v32 }
 0x1c3   : > { %v777_v35 = vmul.f32 %v1897_v33, %v774_v29  ;;  %vm783_vm1 = vweird.f32 %v1897_v33 }
 0x1c4   : > { %1898 = vrsqrt.f32 %v775_v34  ;;  %vm784_vm3 = vmor %vm782_vm2, %vm783_vm1  ;;  %vm792_vm5 = vweird.f32 %v775_v34 }
 0x1c5   : > { %v778_v37 = vmul.f32 %v1897_v33, %v777_v35 }
 0x1c7   : > { %v779_v38 = vmul.f32 0.5, %v778_v37 }
 0x1c9   : > { %v780_v40 = vsub.f32 1.5, %v779_v38 }
 0x1ca   : > { %v1899_v41 = vpop.eup %1898 }
 0x1cb   : > { %v781_v43 = vmul.f32 %v1897_v33, %v780_v40  ;;  %v787_v44 = vmul.f32 %v1899_v41, %v775_v34  ;;  %vm793_vm4 = vweird.f32 %v1899_v41 }
 0x1cc   : > { %vm794_vm6 = vmor %vm792_vm5, %vm793_vm4 }
 0x1cd   : > { %v785_v47 = vsel %vm784_vm3, %v1897_v33, %v781_v43  ;;  %v788_v48 = vmul.f32 %v1899_v41, %v787_v44 }
 0x1ce   : > { %v796_v51 = vmul.f32 %v785_v47, %v758_v15  ;;  %v797_v52 = vmul.f32 %v785_v47, %v759_v16 }
 0x1cf   : > { %v789_v53 = vmul.f32 0.5, %v788_v48 }
 0x1d0   : > { %v807_v54 = vmul.f32 %v803_v45, %v796_v51  ;;  %v808_v55 = vmul.f32 %v804_v46, %v797_v52 }
 0x1d1   : > { %v790_v56 = vsub.f32 1.5, %v789_v53 }
 0x1d2   : > { %v817_v57 = vadd.f32 %v813_v49, %v807_v54  ;;  %v818_v58 = vadd.f32 %v814_v50, %v808_v55 }
 0x1d3   : > { %v791_v59 = vmul.f32 %v1899_v41, %v790_v56 }
 0x1d4   : > { %821 = vst [vmem:[#allocation2 + $0x10] sm:$0xff] %v817_v57 }
 0x1d5   : > { %822 = vst [vmem:[#allocation2] sm:$0xff] %v818_v58  ;;  %v795_v60 = vsel %vm794_vm6, %v1899_v41, %v791_v59 }
 0x1d6   : > { %v798_v61 = vmul.f32 %v795_v60, %v760_v22  ;;  %v799_v62 = vmul.f32 %v795_v60, %v761_v23 }
 0x1d8   : > { %v809_v63 = vmul.f32 %v803_v45, %v798_v61  ;;  %v810_v0 = vmul.f32 %v804_v46, %v799_v62 }
 0x1da   : > { %v819_v1 = vadd.f32 %v813_v49, %v809_v63  ;;  %v820_v2 = vadd.f32 %v814_v50, %v810_v0 }
 0x1dc   : > { %823 = vst [vmem:[#allocation2 + $0x18] sm:$0xff] %v819_v1 }
 0x1dd   : > { %824 = vst [vmem:[#allocation2 + $0x8] sm:$0xff] %v820_v2 }
 0x1de PF: > { %v893_v3 = vld [vmem:[%s2475_s17 + $0x1e0] sm:$0xff]  ;;  %v894_v4 = vld [vmem:[%s2475_s17 + $0x1e8] sm:$0xff]  ;;  %v2556_v1 = vld [vmem:[#allocation2 + $0x10] sm:$0xff]  ;;  %p1793_p7 = scmp.ne.s32.totalorder %s2010_s10, 1 }
 0x1df   : > { %v889_v5 = vld [vmem:[%s2475_s17 + $0x1c0] sm:$0xff]  ;;  %971 = vmatpush.msra.mxu0 %v893_v3  ;;  %1017 = vmatpush.msra.mxu2 %v894_v4  ;;  %v890_v7 = vld [vmem:[%s2475_s17 + $0x1c8] sm:$0xff]  ;;  %v895_v2 = vld [vmem:[%s2475_s17 + $0x1f0] sm:$0xff] }
 0x1e0   : > { %v957_v6 = vld [vmem:[%s2475_s17 + $0x3e0] sm:$0xff]  ;;  %v958_v8 = vld [vmem:[%s2475_s17 + $0x3e8] sm:$0xff]  ;;  %v896_v3 = vld [vmem:[%s2475_s17 + $0x1f8] sm:$0xff] }
 0x1e1   : > { %994 = vmatpush.msra.mxu1 %v957_v6  ;;  %1040 = vmatpush.msra.mxu3 %v958_v8  ;;  %v885_v9 = vld [vmem:[%s2475_s17 + $0x1a0] sm:$0xff]  ;;  %v886_v11 = vld [vmem:[%s2475_s17 + $0x1a8] sm:$0xff]  ;;  %v959_v8 = vld [vmem:[%s2475_s17 + $0x3f0] sm:$0xff] }
 0x1e2   : > { %v953_v10 = vld [vmem:[%s2475_s17 + $0x3c0] sm:$0xff]  ;;  %972 = vmatpush.msra.mxu0 %v889_v5  ;;  %1018 = vmatpush.msra.mxu2 %v890_v7  ;;  %v954_v12 = vld [vmem:[%s2475_s17 + $0x3c8] sm:$0xff]  ;;  %v891_v7 = vld [vmem:[%s2475_s17 + $0x1d0] sm:$0xff] }
 0x1e3   : > { %v949_v13 = vld [vmem:[%s2475_s17 + $0x3a0] sm:$0xff]  ;;  %995 = vmatpush.msra.mxu1 %v953_v10  ;;  %1041 = vmatpush.msra.mxu3 %v954_v12  ;;  %v882_v15 = vld [vmem:[%s2475_s17 + $0x188] sm:$0xff]  ;;  %v960_v10 = vld [vmem:[%s2475_s17 + $0x3f8] sm:$0xff] }
 0x1e4   : > { %v881_v14 = vld [vmem:[%s2475_s17 + $0x180] sm:$0xff]  ;;  %v950_v16 = vld [vmem:[%s2475_s17 + $0x3a8] sm:$0xff]  ;;  %973 = vmatpush.msra.mxu0 %v885_v9  ;;  %1019 = vmatpush.msra.mxu2 %v886_v11  ;;  %v892_v9 = vld [vmem:[%s2475_s17 + $0x1d8] sm:$0xff] }
 0x1e5   : > { %v945_v17 = vld [vmem:[%s2475_s17 + $0x380] sm:$0xff]  ;;  %v946_v18 = vld [vmem:[%s2475_s17 + $0x388] sm:$0xff]  ;;  %996 = vmatpush.msra.mxu1 %v949_v13  ;;  %1042 = vmatpush.msra.mxu3 %v950_v16  ;;  %v887_v11 = vld [vmem:[%s2475_s17 + $0x1b0] sm:$0xff] }
 0x1e6   : > { %v877_v19 = vld [vmem:[%s2475_s17 + $0x160] sm:$0xff]  ;;  %v878_v20 = vld [vmem:[%s2475_s17 + $0x168] sm:$0xff]  ;;  %974 = vmatpush.msra.mxu0 %v881_v14  ;;  %1020 = vmatpush.msra.mxu2 %v882_v15  ;;  %v955_v12 = vld [vmem:[%s2475_s17 + $0x3d0] sm:$0xff] }
 0x1e7   : > { %v941_v21 = vld [vmem:[%s2475_s17 + $0x360] sm:$0xff]  ;;  %v942_v22 = vld [vmem:[%s2475_s17 + $0x368] sm:$0xff]  ;;  %997 = vmatpush.msra.mxu1 %v945_v17  ;;  %1043 = vmatpush.msra.mxu3 %v946_v18  ;;  %v888_v13 = vld [vmem:[%s2475_s17 + $0x1b8] sm:$0xff] }
 0x1e8   : > { %v873_v23 = vld [vmem:[%s2475_s17 + $0x140] sm:$0xff]  ;;  %v874_v24 = vld [vmem:[%s2475_s17 + $0x148] sm:$0xff]  ;;  %975 = vmatpush.msra.mxu0 %v877_v19  ;;  %1021 = vmatpush.msra.mxu2 %v878_v20  ;;  %v956_v14 = vld [vmem:[%s2475_s17 + $0x3d8] sm:$0xff] }
 0x1e9   : > { %v937_v25 = vld [vmem:[%s2475_s17 + $0x340] sm:$0xff]  ;;  %v938_v26 = vld [vmem:[%s2475_s17 + $0x348] sm:$0xff]  ;;  %998 = vmatpush.msra.mxu1 %v941_v21  ;;  %1044 = vmatpush.msra.mxu3 %v942_v22  ;;  %v883_v15 = vld [vmem:[%s2475_s17 + $0x190] sm:$0xff] }
 0x1ea   : > { %v869_v27 = vld [vmem:[%s2475_s17 + $0x120] sm:$0xff]  ;;  %v870_v28 = vld [vmem:[%s2475_s17 + $0x128] sm:$0xff]  ;;  %976 = vmatpush.msra.mxu0 %v873_v23  ;;  %1022 = vmatpush.msra.mxu2 %v874_v24  ;;  %v951_v16 = vld [vmem:[%s2475_s17 + $0x3b0] sm:$0xff] }
 0x1eb   : > { %v933_v29 = vld [vmem:[%s2475_s17 + $0x320] sm:$0xff]  ;;  %v934_v30 = vld [vmem:[%s2475_s17 + $0x328] sm:$0xff]  ;;  %999 = vmatpush.msra.mxu1 %v937_v25  ;;  %1045 = vmatpush.msra.mxu3 %v938_v26  ;;  %v884_v17 = vld [vmem:[%s2475_s17 + $0x198] sm:$0xff] }
 0x1ec   : > { %v865_v31 = vld [vmem:[%s2475_s17 + $0x100] sm:$0xff]  ;;  %v866_v32 = vld [vmem:[%s2475_s17 + $0x108] sm:$0xff]  ;;  %977 = vmatpush.msra.mxu0 %v869_v27  ;;  %1023 = vmatpush.msra.mxu2 %v870_v28  ;;  %v952_v18 = vld [vmem:[%s2475_s17 + $0x3b8] sm:$0xff] }
 0x1ed   : > { %v929_v33 = vld [vmem:[%s2475_s17 + $0x300] sm:$0xff]  ;;  %v930_v34 = vld [vmem:[%s2475_s17 + $0x308] sm:$0xff]  ;;  %1000 = vmatpush.msra.mxu1 %v933_v29  ;;  %1046 = vmatpush.msra.mxu3 %v934_v30  ;;  %v2580_v19 = vld [vmem:[#allocation2 + $0x18] sm:$0xff] }
 0x1ee   : > { %v861_v35 = vld [vmem:[%s2475_s17 + $0xe0] sm:$0xff]  ;;  %v862_v36 = vld [vmem:[%s2475_s17 + $0xe8] sm:$0xff]  ;;  %978 = vmatpush.msra.mxu0 %v865_v31  ;;  %1024 = vmatpush.msra.mxu2 %v866_v32  ;;  %v879_v20 = vld [vmem:[%s2475_s17 + $0x170] sm:$0xff] }
 0x1ef   : > { %v925_v37 = vld [vmem:[%s2475_s17 + $0x2e0] sm:$0xff]  ;;  %v926_v38 = vld [vmem:[%s2475_s17 + $0x2e8] sm:$0xff]  ;;  %1001 = vmatpush.msra.mxu1 %v929_v33  ;;  %1047 = vmatpush.msra.mxu3 %v930_v34  ;;  %v947_v21 = vld [vmem:[%s2475_s17 + $0x390] sm:$0xff] }
 0x1f0   : > { %v857_v39 = vld [vmem:[%s2475_s17 + $0xc0] sm:$0xff]  ;;  %v858_v40 = vld [vmem:[%s2475_s17 + $0xc8] sm:$0xff]  ;;  %979 = vmatpush.msra.mxu0 %v861_v35  ;;  %1025 = vmatpush.msra.mxu2 %v862_v36  ;;  %v880_v22 = vld [vmem:[%s2475_s17 + $0x178] sm:$0xff] }
 0x1f1   : > { %v921_v41 = vld [vmem:[%s2475_s17 + $0x2c0] sm:$0xff]  ;;  %v922_v42 = vld [vmem:[%s2475_s17 + $0x2c8] sm:$0xff]  ;;  %1002 = vmatpush.msra.mxu1 %v925_v37  ;;  %1048 = vmatpush.msra.mxu3 %v926_v38  ;;  %v948_v23 = vld [vmem:[%s2475_s17 + $0x398] sm:$0xff] }
 0x1f2   : > { %v853_v43 = vld [vmem:[%s2475_s17 + $0xa0] sm:$0xff]  ;;  %v854_v44 = vld [vmem:[%s2475_s17 + $0xa8] sm:$0xff]  ;;  %980 = vmatpush.msra.mxu0 %v857_v39  ;;  %1026 = vmatpush.msra.mxu2 %v858_v40  ;;  %v875_v25 = vld [vmem:[%s2475_s17 + $0x150] sm:$0xff] }
 0x1f3   : > { %v917_v45 = vld [vmem:[%s2475_s17 + $0x2a0] sm:$0xff]  ;;  %v918_v46 = vld [vmem:[%s2475_s17 + $0x2a8] sm:$0xff]  ;;  %1003 = vmatpush.msra.mxu1 %v921_v41  ;;  %1049 = vmatpush.msra.mxu3 %v922_v42  ;;  %v943_v26 = vld [vmem:[%s2475_s17 + $0x370] sm:$0xff] }
 0x1f4   : > { %v849_v47 = vld [vmem:[%s2475_s17 + $0x80] sm:$0xff]  ;;  %v850_v48 = vld [vmem:[%s2475_s17 + $0x88] sm:$0xff]  ;;  %981 = vmatpush.msra.mxu0 %v853_v43  ;;  %1027 = vmatpush.msra.mxu2 %v854_v44  ;;  %v876_v27 = vld [vmem:[%s2475_s17 + $0x158] sm:$0xff] }
 0x1f5   : > { %v913_v49 = vld [vmem:[%s2475_s17 + $0x280] sm:$0xff]  ;;  %v914_v50 = vld [vmem:[%s2475_s17 + $0x288] sm:$0xff]  ;;  %1004 = vmatpush.msra.mxu1 %v917_v45  ;;  %1050 = vmatpush.msra.mxu3 %v918_v46  ;;  %v944_v28 = vld [vmem:[%s2475_s17 + $0x378] sm:$0xff] }
 0x1f6   : > { %v845_v51 = vld [vmem:[%s2475_s17 + $0x60] sm:$0xff]  ;;  %v846_v52 = vld [vmem:[%s2475_s17 + $0x68] sm:$0xff]  ;;  %982 = vmatpush.msra.mxu0 %v849_v47  ;;  %1028 = vmatpush.msra.mxu2 %v850_v48  ;;  %v871_v29 = vld [vmem:[%s2475_s17 + $0x130] sm:$0xff] }
 0x1f7   : > { %v909_v53 = vld [vmem:[%s2475_s17 + $0x260] sm:$0xff]  ;;  %v910_v54 = vld [vmem:[%s2475_s17 + $0x268] sm:$0xff]  ;;  %1005 = vmatpush.msra.mxu1 %v913_v49  ;;  %1051 = vmatpush.msra.mxu3 %v914_v50  ;;  %v939_v30 = vld [vmem:[%s2475_s17 + $0x350] sm:$0xff] }
 0x1f8   : > { %v841_v55 = vld [vmem:[%s2475_s17 + $0x40] sm:$0xff]  ;;  %v842_v56 = vld [vmem:[%s2475_s17 + $0x48] sm:$0xff]  ;;  %983 = vmatpush.msra.mxu0 %v845_v51  ;;  %1029 = vmatpush.msra.mxu2 %v846_v52  ;;  %v872_v31 = vld [vmem:[%s2475_s17 + $0x138] sm:$0xff] }
 0x1f9   : > { %v905_v57 = vld [vmem:[%s2475_s17 + $0x240] sm:$0xff]  ;;  %v906_v58 = vld [vmem:[%s2475_s17 + $0x248] sm:$0xff]  ;;  %1006 = vmatpush.msra.mxu1 %v909_v53  ;;  %1052 = vmatpush.msra.mxu3 %v910_v54  ;;  %v940_v32 = vld [vmem:[%s2475_s17 + $0x358] sm:$0xff] }
 0x1fa   : > { %v837_v59 = vld [vmem:[%s2475_s17 + $0x20] sm:$0xff]  ;;  %v838_v60 = vld [vmem:[%s2475_s17 + $0x28] sm:$0xff]  ;;  %984 = vmatpush.msra.mxu0 %v841_v55  ;;  %1030 = vmatpush.msra.mxu2 %v842_v56  ;;  %v867_v33 = vld [vmem:[%s2475_s17 + $0x110] sm:$0xff] }
 0x1fb   : > { %v901_v61 = vld [vmem:[%s2475_s17 + $0x220] sm:$0xff]  ;;  %v902_v62 = vld [vmem:[%s2475_s17 + $0x228] sm:$0xff]  ;;  %1007 = vmatpush.msra.mxu1 %v905_v57  ;;  %1053 = vmatpush.msra.mxu3 %v906_v58  ;;  %v935_v34 = vld [vmem:[%s2475_s17 + $0x330] sm:$0xff] }
 0x1fc   : > { %v833_v63 = vld [vmem:[%s2475_s17] sm:$0xff]  ;;  %v834_v0 = vld [vmem:[%s2475_s17 + $0x8] sm:$0xff]  ;;  %985 = vmatpush.msra.mxu0 %v837_v59  ;;  %1031 = vmatpush.msra.mxu2 %v838_v60  ;;  %v868_v35 = vld [vmem:[%s2475_s17 + $0x118] sm:$0xff] }
 0x1fd   : > { %1008 = vmatpush.msra.mxu1 %v901_v61  ;;  %1054 = vmatpush.msra.mxu3 %v902_v62  ;;  %v897_v4 = vld [vmem:[%s2475_s17 + $0x200] sm:$0xff]  ;;  %v898_v5 = vld [vmem:[%s2475_s17 + $0x208] sm:$0xff]  ;;  %v936_v36 = vld [vmem:[%s2475_s17 + $0x338] sm:$0xff] }
 0x1fe   : > { %986 = vmatpush.msra.mxu0 %v833_v63  ;;  %1032 = vmatpush.msra.mxu2 %v834_v0  ;;  %v2564_v6 = vld [vmem:[#allocation2] sm:$0xff]  ;;  %v2588_v24 = vld [vmem:[#allocation2 + $0x8] sm:$0xff]  ;;  %v863_v37 = vld [vmem:[%s2475_s17 + $0xf0] sm:$0xff] }
 0x1ff   : > { %987 = vmatmul.f32.vlgmr.msra.gmra.mxu0 %v2556_v1  ;;  %1033 = vmatmul.f32.vlgmr.msra.gmra.mxu2 %v2556_v1  ;;  %v931_v38 = vld [vmem:[%s2475_s17 + $0x310] sm:$0xff]  ;;  %v864_v39 = vld [vmem:[%s2475_s17 + $0xf8] sm:$0xff] }
 0x200   : > { %1063 = vmatpush.msrb.mxu0 %v895_v2  ;;  %1109 = vmatpush.msrb.mxu2 %v896_v3  ;;  %v932_v40 = vld [vmem:[%s2475_s17 + $0x318] sm:$0xff]  ;;  %v859_v41 = vld [vmem:[%s2475_s17 + $0xd0] sm:$0xff] }
 0x201   : > { %1009 = vmatpush.msra.mxu1 %v897_v4  ;;  %1055 = vmatpush.msra.mxu3 %v898_v5  ;;  %v927_v42 = vld [vmem:[%s2475_s17 + $0x2f0] sm:$0xff]  ;;  %v860_v43 = vld [vmem:[%s2475_s17 + $0xd8] sm:$0xff] }
 0x202   : > { %1010 = vmatmul.f32.vlgmr.msra.gmra.mxu1 %v2564_v6  ;;  %1056 = vmatmul.f32.vlgmr.msra.gmra.mxu3 %v2564_v6  ;;  %v928_v44 = vld [vmem:[%s2475_s17 + $0x2f8] sm:$0xff]  ;;  %v855_v45 = vld [vmem:[%s2475_s17 + $0xb0] sm:$0xff] }
 0x203   : > { %1064 = vmatpush.msrb.mxu0 %v891_v7  ;;  %1086 = vmatpush.msrb.mxu1 %v959_v8  ;;  %v923_v46 = vld [vmem:[%s2475_s17 + $0x2d0] sm:$0xff]  ;;  %v856_v47 = vld [vmem:[%s2475_s17 + $0xb8] sm:$0xff] }
 0x204   : > { %1110 = vmatpush.msrb.mxu2 %v892_v9  ;;  %1132 = vmatpush.msrb.mxu3 %v960_v10  ;;  %v924_v48 = vld [vmem:[%s2475_s17 + $0x2d8] sm:$0xff]  ;;  %v851_v49 = vld [vmem:[%s2475_s17 + $0x90] sm:$0xff] }
 0x205   : > { %1065 = vmatpush.msrb.mxu0 %v887_v11  ;;  %1087 = vmatpush.msrb.mxu1 %v955_v12  ;;  %v919_v50 = vld [vmem:[%s2475_s17 + $0x2b0] sm:$0xff]  ;;  %v852_v51 = vld [vmem:[%s2475_s17 + $0x98] sm:$0xff]  ;;  %v1259_v11 = vld [vmem:[%s2473_s18 + $0xe0] sm:$0xff] }
 0x206   : > { %1111 = vmatpush.msrb.mxu2 %v888_v13  ;;  %1133 = vmatpush.msrb.mxu3 %v956_v14  ;;  %v920_v52 = vld [vmem:[%s2475_s17 + $0x2b8] sm:$0xff]  ;;  %v847_v53 = vld [vmem:[%s2475_s17 + $0x70] sm:$0xff]  ;;  %v1291_v12 = vld [vmem:[%s2473_s18 + $0x1e0] sm:$0xff] }
 0x207   : > { %1066 = vmatpush.msrb.mxu0 %v883_v15  ;;  %1088 = vmatpush.msrb.mxu1 %v951_v16  ;;  %v915_v54 = vld [vmem:[%s2475_s17 + $0x290] sm:$0xff]  ;;  %v848_v55 = vld [vmem:[%s2475_s17 + $0x78] sm:$0xff]  ;;  %v1287_v15 = vld [vmem:[%s2473_s18 + $0x1c0] sm:$0xff] }
 0x208   : > { %1112 = vmatpush.msrb.mxu2 %v884_v17  ;;  %1134 = vmatpush.msrb.mxu3 %v952_v18  ;;  %v916_v56 = vld [vmem:[%s2475_s17 + $0x298] sm:$0xff]  ;;  %v843_v57 = vld [vmem:[%s2475_s17 + $0x50] sm:$0xff]  ;;  %v1251_v17 = vld [vmem:[%s2473_s18 + $0xa0] sm:$0xff] }
 0x209   : > { %990 = vmatmul.f32.gmra.mxu0 %v2580_v19  ;;  %1036 = vmatmul.f32.gmra.mxu2 %v2580_v19  ;;  %v911_v58 = vld [vmem:[%s2475_s17 + $0x270] sm:$0xff]  ;;  %v844_v59 = vld [vmem:[%s2475_s17 + $0x58] sm:$0xff]  ;;  %v1283_v18 = vld [vmem:[%s2473_s18 + $0x1a0] sm:$0xff] }
 0x20a   : > { %1067 = vmatpush.msrb.mxu0 %v879_v20  ;;  %1089 = vmatpush.msrb.mxu1 %v947_v21  ;;  %v912_v60 = vld [vmem:[%s2475_s17 + $0x278] sm:$0xff]  ;;  %v839_v61 = vld [vmem:[%s2475_s17 + $0x30] sm:$0xff] }
 0x20b   : > { %1113 = vmatpush.msrb.mxu2 %v880_v22  ;;  %1135 = vmatpush.msrb.mxu3 %v948_v23  ;;  %v907_v62 = vld [vmem:[%s2475_s17 + $0x250] sm:$0xff]  ;;  %v840_v63 = vld [vmem:[%s2475_s17 + $0x38] sm:$0xff]  ;;  %v1243_v23 = vld [vmem:[%s2473_s18 + $0x60] sm:$0xff] }
 0x20c   : > { %1013 = vmatmul.f32.gmra.mxu1 %v2588_v24  ;;  %1059 = vmatmul.f32.gmra.mxu3 %v2588_v24  ;;  %v908_v0 = vld [vmem:[%s2475_s17 + $0x258] sm:$0xff]  ;;  %v835_v2 = vld [vmem:[%s2475_s17 + $0x10] sm:$0xff] }
 0x20d   : > { %1068 = vmatpush.msrb.mxu0 %v875_v25  ;;  %1090 = vmatpush.msrb.mxu1 %v943_v26  ;;  %v903_v3 = vld [vmem:[%s2475_s17 + $0x230] sm:$0xff]  ;;  %v836_v4 = vld [vmem:[%s2475_s17 + $0x18] sm:$0xff]  ;;  %v1279_v25 = vld [vmem:[%s2473_s18 + $0x180] sm:$0xff] }
 0x20e   : > { %1114 = vmatpush.msrb.mxu2 %v876_v27  ;;  %1136 = vmatpush.msrb.mxu3 %v944_v28  ;;  %v904_v5 = vld [vmem:[%s2475_s17 + $0x238] sm:$0xff]  ;;  %v899_v7 = vld [vmem:[%s2475_s17 + $0x210] sm:$0xff]  ;;  %v1239_v26 = vld [vmem:[%s2473_s18 + $0x40] sm:$0xff] }
 0x20f   : > { %1069 = vmatpush.msrb.mxu0 %v871_v29  ;;  %1091 = vmatpush.msrb.mxu1 %v939_v30  ;;  %v900_v8 = vld [vmem:[%s2475_s17 + $0x218] sm:$0xff]  ;;  %v1261_v9 = vld [vmem:[%s2473_s18 + $0xf0] sm:$0xff]  ;;  %v1275_v29 = vld [vmem:[%s2473_s18 + $0x160] sm:$0xff] }
 0x210   : > { %1115 = vmatpush.msrb.mxu2 %v872_v31  ;;  %1137 = vmatpush.msrb.mxu3 %v940_v32  ;;  %v1293_v10 = vld [vmem:[%s2473_s18 + $0x1f0] sm:$0xff]  ;;  %v1235_v30 = vld [vmem:[%s2473_s18 + $0x20] sm:$0xff] }
 0x211   : > { %1070 = vmatpush.msrb.mxu0 %v867_v33  ;;  %1092 = vmatpush.msrb.mxu1 %v935_v34  ;;  %v1257_v13 = vld [vmem:[%s2473_s18 + $0xd0] sm:$0xff]  ;;  %v1271_v33 = vld [vmem:[%s2473_s18 + $0x140] sm:$0xff] }
 0x212   : > { %1116 = vmatpush.msrb.mxu2 %v868_v35  ;;  %1138 = vmatpush.msrb.mxu3 %v936_v36  ;;  %v1289_v14 = vld [vmem:[%s2473_s18 + $0x1d0] sm:$0xff]  ;;  %v1231_v34 = vld [vmem:[%s2473_s18] sm:$0xff] }
 0x213   : > { %1071 = vmatpush.msrb.mxu0 %v863_v37  ;;  %1093 = vmatpush.msrb.mxu1 %v931_v38  ;;  %v1285_v16 = vld [vmem:[%s2473_s18 + $0x1b0] sm:$0xff]  ;;  %v1262_v37 = vld [vmem:[%s2473_s18 + $0xf8] sm:$0xff]  ;;  %v1267_v38 = vld [vmem:[%s2473_s18 + $0x120] sm:$0xff] }
 0x214   : > { %1117 = vmatpush.msrb.mxu2 %v864_v39  ;;  %1139 = vmatpush.msrb.mxu3 %v932_v40  ;;  %v1249_v20 = vld [vmem:[%s2473_s18 + $0x90] sm:$0xff]  ;;  %v1323_v39 = vld [vmem:[%s2473_s18 + $0x2e0] sm:$0xff]  ;;  %v1260_v40 = vld [vmem:[%s2473_s18 + $0xe8] sm:$0xff] }
 0x215   : > { %1072 = vmatpush.msrb.mxu0 %v859_v41  ;;  %1094 = vmatpush.msrb.mxu1 %v927_v42  ;;  %v1281_v21 = vld [vmem:[%s2473_s18 + $0x190] sm:$0xff] }
 0x216   : > { %1118 = vmatpush.msrb.mxu2 %v860_v43  ;;  %1140 = vmatpush.msrb.mxu3 %v928_v44  ;;  %v1245_v22 = vld [vmem:[%s2473_s18 + $0x70] sm:$0xff]  ;;  %v1258_v43 = vld [vmem:[%s2473_s18 + $0xd8] sm:$0xff]  ;;  %v1263_v44 = vld [vmem:[%s2473_s18 + $0x100] sm:$0xff] }
 0x217   : > { %1073 = vmatpush.msrb.mxu0 %v855_v45  ;;  %1095 = vmatpush.msrb.mxu1 %v923_v46  ;;  %v1277_v27 = vld [vmem:[%s2473_s18 + $0x170] sm:$0xff]  ;;  %v1319_v45 = vld [vmem:[%s2473_s18 + $0x2c0] sm:$0xff] }
 0x218   : > { %1119 = vmatpush.msrb.mxu2 %v856_v47  ;;  %1141 = vmatpush.msrb.mxu3 %v924_v48  ;;  %v1237_v28 = vld [vmem:[%s2473_s18 + $0x30] sm:$0xff]  ;;  %v1256_v47 = vld [vmem:[%s2473_s18 + $0xc8] sm:$0xff]  ;;  %v1294_v48 = vld [vmem:[%s2473_s18 + $0x1f8] sm:$0xff] }
 0x219   : > { %1074 = vmatpush.msrb.mxu0 %v851_v49  ;;  %1096 = vmatpush.msrb.mxu1 %v919_v50  ;;  %v1273_v31 = vld [vmem:[%s2473_s18 + $0x150] sm:$0xff]  ;;  %v1355_v50 = vld [vmem:[%s2473_s18 + $0x3e0] sm:$0xff] }
 0x21a   : > { %1120 = vmatpush.msrb.mxu2 %v852_v51  ;;  %1142 = vmatpush.msrb.mxu3 %v920_v52  ;;  %v1233_v32 = vld [vmem:[%s2473_s18 + $0x10] sm:$0xff]  ;;  %v1254_v51 = vld [vmem:[%s2473_s18 + $0xb8] sm:$0xff]  ;;  %v1292_v52 = vld [vmem:[%s2473_s18 + $0x1e8] sm:$0xff] }
 0x21b   : > { %1075 = vmatpush.msrb.mxu0 %v847_v53  ;;  %1097 = vmatpush.msrb.mxu1 %v915_v54  ;;  %v1269_v35 = vld [vmem:[%s2473_s18 + $0x130] sm:$0xff]  ;;  %v1315_v53 = vld [vmem:[%s2473_s18 + $0x2a0] sm:$0xff] }
 0x21c   : > { %1121 = vmatpush.msrb.mxu2 %v848_v55  ;;  %1143 = vmatpush.msrb.mxu3 %v916_v56  ;;  %v1325_v36 = vld [vmem:[%s2473_s18 + $0x2f0] sm:$0xff]  ;;  %v1252_v55 = vld [vmem:[%s2473_s18 + $0xa8] sm:$0xff]  ;;  %v1290_v56 = vld [vmem:[%s2473_s18 + $0x1d8] sm:$0xff] }
 0x21d   : > { %1076 = vmatpush.msrb.mxu0 %v843_v57  ;;  %1098 = vmatpush.msrb.mxu1 %v911_v58  ;;  %v1265_v41 = vld [vmem:[%s2473_s18 + $0x110] sm:$0xff]  ;;  %v1351_v57 = vld [vmem:[%s2473_s18 + $0x3c0] sm:$0xff] }
 0x21e   : > { %1122 = vmatpush.msrb.mxu2 %v844_v59  ;;  %1144 = vmatpush.msrb.mxu3 %v912_v60  ;;  %v1321_v42 = vld [vmem:[%s2473_s18 + $0x2d0] sm:$0xff]  ;;  %v1250_v59 = vld [vmem:[%s2473_s18 + $0x98] sm:$0xff]  ;;  %v2704_v60 = vld [vmem:[%s725_s12] sm:$0xf] }
 0x21f   : > { %1077 = vmatpush.msrb.mxu0 %v839_v61  ;;  %1099 = vmatpush.msrb.mxu1 %v907_v62  ;;  %v1357_v46 = vld [vmem:[%s2473_s18 + $0x3f0] sm:$0xff]  ;;  %v1288_v61 = vld [vmem:[%s2473_s18 + $0x1c8] sm:$0xff] }
 0x220   : > { %1123 = vmatpush.msrb.mxu2 %v840_v63  ;;  %1145 = vmatpush.msrb.mxu3 %v908_v0  ;;  %v1317_v49 = vld [vmem:[%s2473_s18 + $0x2b0] sm:$0xff]  ;;  %v1311_v63 = vld [vmem:[%s2473_s18 + $0x280] sm:$0xff]  ;;  %v1248_v0 = vld [vmem:[%s2473_s18 + $0x88] sm:$0xff] }
 0x221   : > { %1078 = vmatpush.msrb.mxu0 %v835_v2  ;;  %1100 = vmatpush.msrb.mxu1 %v903_v3  ;;  %v1353_v54 = vld [vmem:[%s2473_s18 + $0x3d0] sm:$0xff]  ;;  %v1286_v2 = vld [vmem:[%s2473_s18 + $0x1b8] sm:$0xff]  ;;  %v1347_v3 = vld [vmem:[%s2473_s18 + $0x3a0] sm:$0xff] }
 0x222   : > { %1124 = vmatpush.msrb.mxu2 %v836_v4  ;;  %1146 = vmatpush.msrb.mxu3 %v904_v5  ;;  %v1313_v58 = vld [vmem:[%s2473_s18 + $0x290] sm:$0xff]  ;;  %v963_v4 = vperm.slane %v2704_v60, 0 }
 0x223   : > { %1079 = vmatmul.f32.vlgmr.msrb.gmra.mxu0 %v2556_v1  ;;  %1125 = vmatmul.f32.vlgmr.msrb.gmra.mxu2 %v2556_v1  ;;  %v1255_v1 = vld [vmem:[%s2473_s18 + $0xc0] sm:$0xff]  ;;  %v1349_v62 = vld [vmem:[%s2473_s18 + $0x3b0] sm:$0xff] }
 0x224   : > { %1101 = vmatpush.msrb.mxu1 %v899_v7  ;;  %1147 = vmatpush.msrb.mxu3 %v900_v8  ;;  %v1309_v5 = vld [vmem:[%s2473_s18 + $0x270] sm:$0xff]  ;;  %v1246_v7 = vld [vmem:[%s2473_s18 + $0x78] sm:$0xff]  ;;  %v1284_v8 = vld [vmem:[%s2473_s18 + $0x1a8] sm:$0xff] }
 0x225   : > { %1102 = vmatmul.f32.vlgmr.msrb.gmra.mxu1 %v2564_v6  ;;  %1148 = vmatmul.f32.vlgmr.msrb.gmra.mxu3 %v2564_v6  ;;  %v1253_v6 = vld [vmem:[%s2473_s18 + $0xb0] sm:$0xff] }
 0x226   : > { %1359 = vmatpush.msra.mxu0 %v1261_v9  ;;  %1382 = vmatpush.msra.mxu1 %v1293_v10  ;;  %v1345_v9 = vld [vmem:[%s2473_s18 + $0x390] sm:$0xff]  ;;  %v1307_v10 = vld [vmem:[%s2473_s18 + $0x260] sm:$0xff] }
 0x227   : > { %1405 = vmatpush.msra.mxu2 %v1325_v36  ;;  %1428 = vmatpush.msra.mxu3 %v1357_v46  ;;  %v1272_v46 = vld [vmem:[%s2473_s18 + $0x148] sm:$0xff] }
 0x228   : > { %1360 = vmatpush.msra.mxu0 %v1259_v11  ;;  %1383 = vmatpush.msra.mxu1 %v1291_v12  ;;  %v1244_v11 = vld [vmem:[%s2473_s18 + $0x68] sm:$0xff] }
 0x229   : > { %1406 = vmatpush.msra.mxu2 %v1323_v39  ;;  %1429 = vmatpush.msra.mxu3 %v1355_v50  ;;  %v1274_v39 = vld [vmem:[%s2473_s18 + $0x158] sm:$0xff]  ;;  %v1232_v50 = vld [vmem:[%s2473_s18 + $0x8] sm:$0xff] }
 0x22a   : > { %1361 = vmatpush.msra.mxu0 %v1257_v13  ;;  %1384 = vmatpush.msra.mxu1 %v1289_v14  ;;  %v1282_v13 = vld [vmem:[%s2473_s18 + $0x198] sm:$0xff] }
 0x22b   : > { %1082 = vmatmul.f32.gmra.mxu0 %v2580_v19  ;;  %1128 = vmatmul.f32.gmra.mxu2 %v2580_v19  ;;  %v1247_v19 = vld [vmem:[%s2473_s18 + $0x80] sm:$0xff] }
 0x22c   : > { %1362 = vmatpush.msra.mxu0 %v1255_v1  ;;  %1385 = vmatpush.msra.mxu1 %v1287_v15  ;;  %v964_v15 = vperm.slane %v2704_v60, 1 }
 0x22d   : > { %1105 = vmatmul.f32.gmra.mxu1 %v2588_v24  ;;  %1151 = vmatmul.f32.gmra.mxu3 %v2588_v24  ;;  %v1241_v24 = vld [vmem:[%s2473_s18 + $0x50] sm:$0xff] }
 0x22e   : > { %1363 = vmatpush.msra.mxu0 %v1253_v6  ;;  %1386 = vmatpush.msra.mxu1 %v1285_v16  ;;  %v1305_v6 = vld [vmem:[%s2473_s18 + $0x250] sm:$0xff]  ;;  %v1343_v16 = vld [vmem:[%s2473_s18 + $0x380] sm:$0xff] }
 0x22f   : > { %1407 = vmatpush.msra.mxu2 %v1321_v42  ;;  %1430 = vmatpush.msra.mxu3 %v1353_v54  ;;  %v1335_v42 = vld [vmem:[%s2473_s18 + $0x340] sm:$0xff]  ;;  %v1270_v54 = vld [vmem:[%s2473_s18 + $0x138] sm:$0xff] }
 0x230   : > { %1364 = vmatpush.msra.mxu0 %v1251_v17  ;;  %1387 = vmatpush.msra.mxu1 %v1283_v18  ;;  %v1242_v17 = vld [vmem:[%s2473_s18 + $0x58] sm:$0xff] }
 0x231   : > { %1408 = vmatpush.msra.mxu2 %v1319_v45  ;;  %1431 = vmatpush.msra.mxu3 %v1351_v57  ;;  %v1268_v57 = vld [vmem:[%s2473_s18 + $0x128] sm:$0xff] }
 0x232   : > { %1365 = vmatpush.msra.mxu0 %v1249_v20  ;;  %1388 = vmatpush.msra.mxu1 %v1281_v21  ;;  %v1280_v20 = vld [vmem:[%s2473_s18 + $0x188] sm:$0xff]  ;;  %v1303_v21 = vld [vmem:[%s2473_s18 + $0x240] sm:$0xff] }
 0x233   : > { %1409 = vmatpush.msra.mxu2 %v1317_v49  ;;  %1432 = vmatpush.msra.mxu3 %v1349_v62  ;;  %v1333_v49 = vld [vmem:[%s2473_s18 + $0x330] sm:$0xff]  ;;  %v1324_v62 = vld [vmem:[%s2473_s18 + $0x2e8] sm:$0xff] }
 0x234   : > { %1366 = vmatpush.msra.mxu0 %v1247_v19  ;;  %1389 = vmatpush.msra.mxu1 %v1279_v25  ;;  %v1341_v19 = vld [vmem:[%s2473_s18 + $0x370] sm:$0xff]  ;;  %v1278_v25 = vld [vmem:[%s2473_s18 + $0x178] sm:$0xff] }
 0x235   : > { %1410 = vmatpush.msra.mxu2 %v1315_v53  ;;  %1433 = vmatpush.msra.mxu3 %v1347_v3 }
 0x236   : > { %1367 = vmatpush.msra.mxu0 %v1245_v22  ;;  %1390 = vmatpush.msra.mxu1 %v1277_v27  ;;  %v1240_v22 = vld [vmem:[%s2473_s18 + $0x48] sm:$0xff]  ;;  %v1301_v27 = vld [vmem:[%s2473_s18 + $0x230] sm:$0xff] }
 0x237   : > { %1411 = vmatpush.msra.mxu2 %v1313_v58  ;;  %1434 = vmatpush.msra.mxu3 %v1345_v9  ;;  %v1264_v9 = vld [vmem:[%s2473_s18 + $0x108] sm:$0xff] }
 0x238   : > { %1368 = vmatpush.msra.mxu0 %v1243_v23  ;;  %1391 = vmatpush.msra.mxu1 %v1275_v29  ;;  %v1238_v29 = vld [vmem:[%s2473_s18 + $0x38] sm:$0xff] }
 0x239   : > { %1412 = vmatpush.msra.mxu2 %v1311_v63  ;;  %1435 = vmatpush.msra.mxu3 %v1343_v16 }
 0x23a   : > { %1369 = vmatpush.msra.mxu0 %v1241_v24  ;;  %1392 = vmatpush.msra.mxu1 %v1273_v31  ;;  %v1276_v31 = vld [vmem:[%s2473_s18 + $0x168] sm:$0xff] }
 0x23b   : > { %1413 = vmatpush.msra.mxu2 %v1309_v5  ;;  %1436 = vmatpush.msra.mxu3 %v1341_v19  ;;  %v1322_v5 = vld [vmem:[%s2473_s18 + $0x2d8] sm:$0xff] }
 0x23c   : > { %1370 = vmatpush.msra.mxu0 %v1239_v26  ;;  %1393 = vmatpush.msra.mxu1 %v1271_v33  ;;  %v1299_v33 = vld [vmem:[%s2473_s18 + $0x220] sm:$0xff] }
 0x23d   : > { %1414 = vmatpush.msra.mxu2 %v1307_v10 }
 0x23e   : > { %1371 = vmatpush.msra.mxu0 %v1237_v28  ;;  %1394 = vmatpush.msra.mxu1 %v1269_v35  ;;  %v1339_v28 = vld [vmem:[%s2473_s18 + $0x360] sm:$0xff]  ;;  %v1236_v35 = vld [vmem:[%s2473_s18 + $0x28] sm:$0xff] }
 0x23f   : > { %1415 = vmatpush.msra.mxu2 %v1305_v6  ;;  %1437 = vmatpush.msra.mxu3 %v1339_v28  ;;  %v1356_v6 = vld [vmem:[%s2473_s18 + $0x3e8] sm:$0xff] }
 0x240   : > { %1372 = vmatpush.msra.mxu0 %v1235_v30  ;;  %1395 = vmatpush.msra.mxu1 %v1267_v38  ;;  %v1312_v28 = vld [vmem:[%s2473_s18 + $0x288] sm:$0xff] }
 0x241   : > { %1416 = vmatpush.msra.mxu2 %v1303_v21  ;;  %v1354_v21 = vld [vmem:[%s2473_s18 + $0x3d8] sm:$0xff] }
 0x242   : > { %1373 = vmatpush.msra.mxu0 %v1233_v32  ;;  %1396 = vmatpush.msra.mxu1 %v1265_v41  ;;  %v1297_v41 = vld [vmem:[%s2473_s18 + $0x210] sm:$0xff] }
 0x243   : > { %1417 = vmatpush.msra.mxu2 %v1301_v27 }
 0x244   : > { %1374 = vmatpush.msra.mxu0 %v1231_v34  ;;  %1397 = vmatpush.msra.mxu1 %v1263_v44  ;;  %v1337_v34 = vld [vmem:[%s2473_s18 + $0x350] sm:$0xff] }
 0x245   : > { %1418 = vmatpush.msra.mxu2 %v1299_v33  ;;  %1438 = vmatpush.msra.mxu3 %v1337_v34 }
 0x246   : > { %1451 = vmatpush.msrb.mxu0 %v1262_v37  ;;  %1474 = vmatpush.msrb.mxu1 %v1294_v48  ;;  %v1295_v48 = vld [vmem:[%s2473_s18 + $0x200] sm:$0xff] }
 0x247   : > { %1419 = vmatpush.msra.mxu2 %v1297_v41  ;;  %1439 = vmatpush.msra.mxu3 %v1335_v42  ;;  %v1346_v41 = vld [vmem:[%s2473_s18 + $0x398] sm:$0xff] }
 0x248   : > { %1452 = vmatpush.msrb.mxu0 %v1260_v40  ;;  %1475 = vmatpush.msrb.mxu1 %v1292_v52 }
 0x249   : > { %1420 = vmatpush.msra.mxu2 %v1295_v48  ;;  %1440 = vmatpush.msra.mxu3 %v1333_v49  ;;  %v1304_v48 = vld [vmem:[%s2473_s18 + $0x248] sm:$0xff]  ;;  %v1342_v49 = vld [vmem:[%s2473_s18 + $0x378] sm:$0xff] }
 0x24a   : > { %1453 = vmatpush.msrb.mxu0 %v1258_v43  ;;  %1476 = vmatpush.msrb.mxu1 %v1290_v56  ;;  %v1234_v43 = vld [vmem:[%s2473_s18 + $0x18] sm:$0xff]  ;;  %v1331_v56 = vld [vmem:[%s2473_s18 + $0x320] sm:$0xff] }
 0x24b   : > { %1441 = vmatpush.msra.mxu3 %v1331_v56  ;;  %v966_v56 = vperm.slane %v2704_v60, 3 }
 0x24c   : > { %1454 = vmatpush.msrb.mxu0 %v1256_v47  ;;  %1477 = vmatpush.msrb.mxu1 %v1288_v61 }
 0x24e   : > { %1455 = vmatpush.msrb.mxu0 %v1254_v51  ;;  %1478 = vmatpush.msrb.mxu1 %v1286_v2  ;;  %v1266_v2 = vld [vmem:[%s2473_s18 + $0x118] sm:$0xff] }
 0x250   : > { %1456 = vmatpush.msrb.mxu0 %v1252_v55  ;;  %1479 = vmatpush.msrb.mxu1 %v1284_v8  ;;  %v1326_v55 = vld [vmem:[%s2473_s18 + $0x2f8] sm:$0xff]  ;;  %v1327_v8 = vld [vmem:[%s2473_s18 + $0x300] sm:$0xff] }
 0x251   : > { %1497 = vmatpush.msrb.mxu2 %v1326_v55 }
 0x252   : > { %1457 = vmatpush.msrb.mxu0 %v1250_v59  ;;  %1480 = vmatpush.msrb.mxu1 %v1282_v13  ;;  %v1320_v13 = vld [vmem:[%s2473_s18 + $0x2c8] sm:$0xff] }
 0x253   : > { %1498 = vmatpush.msrb.mxu2 %v1324_v62  ;;  %v1336_v62 = vld [vmem:[%s2473_s18 + $0x348] sm:$0xff] }
 0x254   : > { %1458 = vmatpush.msrb.mxu0 %v1248_v0  ;;  %1481 = vmatpush.msrb.mxu1 %v1280_v20  ;;  %v1329_v0 = vld [vmem:[%s2473_s18 + $0x310] sm:$0xff] }
 0x255   : > { %1442 = vmatpush.msra.mxu3 %v1329_v0  ;;  %1499 = vmatpush.msrb.mxu2 %v1322_v5 }
 0x256   : > { %1459 = vmatpush.msrb.mxu0 %v1246_v7  ;;  %1482 = vmatpush.msrb.mxu1 %v1278_v25 }
 0x257   : > { %1443 = vmatpush.msra.mxu3 %v1327_v8  ;;  %1500 = vmatpush.msrb.mxu2 %v1320_v13  ;;  %v1296_v8 = vld [vmem:[%s2473_s18 + $0x208] sm:$0xff] }
 0x258   : > { %1460 = vmatpush.msrb.mxu0 %v1244_v11  ;;  %1483 = vmatpush.msrb.mxu1 %v1276_v31 }
 0x25a   : > { %1461 = vmatpush.msrb.mxu0 %v1242_v17  ;;  %1484 = vmatpush.msrb.mxu1 %v1274_v39 }
 0x25c   : > { %1462 = vmatpush.msrb.mxu0 %v1240_v22  ;;  %1485 = vmatpush.msrb.mxu1 %v1272_v46  ;;  %v1316_v22 = vld [vmem:[%s2473_s18 + $0x2a8] sm:$0xff] }
 0x25e   : > { %1463 = vmatpush.msrb.mxu0 %v1238_v29  ;;  %1486 = vmatpush.msrb.mxu1 %v1270_v54  ;;  %v1350_v29 = vld [vmem:[%s2473_s18 + $0x3b8] sm:$0xff]  ;;  %v1340_v54 = vld [vmem:[%s2473_s18 + $0x368] sm:$0xff] }
 0x260   : > { %1464 = vmatpush.msrb.mxu0 %v1236_v35  ;;  %1487 = vmatpush.msrb.mxu1 %v1268_v57  ;;  %v1310_v35 = vld [vmem:[%s2473_s18 + $0x278] sm:$0xff] }
 0x262   : > { %1465 = vmatpush.msrb.mxu0 %v1234_v43  ;;  %1488 = vmatpush.msrb.mxu1 %v1266_v2  ;;  %v965_v43 = vperm.slane %v2704_v60, 2  ;;  %v1298_v2 = vld [vmem:[%s2473_s18 + $0x218] sm:$0xff] }
 0x264   : > { %1466 = vmatpush.msrb.mxu0 %v1232_v50  ;;  %1489 = vmatpush.msrb.mxu1 %v1264_v9  ;;  %v1334_v9 = vld [vmem:[%s2473_s18 + $0x338] sm:$0xff] }
 0x27c   : > { %v988_v12 = vpop.f32.mrf.mxu0 }
 0x27d   : > { %v989_v14 = vadd.f32 %v988_v12, %v963_v4 }
 0x27f   : > { %v1011_v1 = vpop.f32.mrf.mxu1 }
 0x280   : > { %v2726_v18 = vadd.f32 %v1011_v1, %v989_v14  ;;  %v1358_v14 = vld [vmem:[%s2473_s18 + $0x3f8] sm:$0xff] }
 0x281   : > { %1520 = vmatpush.msrb.mxu3 %v1358_v14  ;;  %v1332_v14 = vld [vmem:[%s2473_s18 + $0x328] sm:$0xff] }
 0x282   : > { %v1163_v23 = vmul.f32 0.044715, %v2726_v18  ;;  %v1034_v24 = vpop.f32.mrf.mxu2  ;;  %v1155_v1 = vmul.f32 0.5, %v2726_v18 }
 0x283   : > { %v1035_v26 = vadd.f32 %v1034_v24, %v964_v15  ;;  %1521 = vmatpush.msrb.mxu3 %v1356_v6  ;;  %v1352_v24 = vld [vmem:[%s2473_s18 + $0x3c8] sm:$0xff] }
 0x284   : > { %v1171_v30 = vmul.f32 %v1163_v23, %v2726_v18 }
 0x285   : > { %v1057_v32 = vpop.f32.mrf.mxu3  ;;  %1522 = vmatpush.msrb.mxu3 %v1354_v21 }
 0x286   : > { %v1179_v36 = vmul.f32 %v1171_v30, %v2726_v18  ;;  %v991_v37 = vpop.f32.mrf.mxu0  ;;  %v2745_v38 = vadd.f32 %v1057_v32, %v1035_v26  ;;  %v1314_v26 = vld [vmem:[%s2473_s18 + $0x298] sm:$0xff] }
 0x287   : > { %v992_v40 = vadd.f32 %v991_v37, %v963_v4  ;;  %1523 = vmatpush.msrb.mxu3 %v1352_v24 }
 0x288   : > { %v1164_v44 = vmul.f32 0.044715, %v2745_v38  ;;  %v1187_v45 = vadd.f32 %v1179_v36, %v2726_v18  ;;  %v1156_v32 = vmul.f32 0.5, %v2745_v38  ;;  %v1348_v36 = vld [vmem:[%s2473_s18 + $0x3a8] sm:$0xff] }
 0x289   : > { %v1014_v47 = vpop.f32.mrf.mxu1  ;;  %1524 = vmatpush.msrb.mxu3 %v1350_v29 }
 0x28a   : > { %v1172_v51 = vmul.f32 %v1164_v44, %v2745_v38  ;;  %v2760_v52 = vadd.f32 %v1014_v47, %v992_v40  ;;  %v1195_v53 = vmul.f32 0.7978846, %v1187_v45  ;;  %v1308_v40 = vld [vmem:[%s2473_s18 + $0x268] sm:$0xff]  ;;  %v1306_v45 = vld [vmem:[%s2473_s18 + $0x258] sm:$0xff] }
 0x28b   : > { %1525 = vmatpush.msrb.mxu3 %v1348_v36 }
 0x28c   : > { %v1180_v58 = vmul.f32 %v1172_v51, %v2745_v38  ;;  %v1037_v59 = vpop.f32.mrf.mxu2  ;;  %1900 = vtanh.f32 %v1195_v53  ;;  %v1167_v61 = vmul.f32 0.044715, %v2760_v52  ;;  %v1159_v39 = vmul.f32 0.5, %v2760_v52  ;;  %v1302_v53 = vld [vmem:[%s2473_s18 + $0x238] sm:$0xff] }
 0x28d   : > { %v1038_v63 = vadd.f32 %v1037_v59, %v964_v15  ;;  %v1318_v15 = vld [vmem:[%s2473_s18 + $0x2b8] sm:$0xff]  ;;  %1526 = vmatpush.msrb.mxu3 %v1346_v41  ;;  %v1300_v59 = vld [vmem:[%s2473_s18 + $0x228] sm:$0xff] }
 0x28e   : > { %v1188_v3 = vadd.f32 %v1180_v58, %v2745_v38  ;;  %v1175_v4 = vmul.f32 %v1167_v61, %v2760_v52  ;;  %1501 = vmatpush.msrb.mxu2 %v1318_v15  ;;  %v1344_v38 = vld [vmem:[%s2473_s18 + $0x388] sm:$0xff]  ;;  %v1338_v61 = vld [vmem:[%s2473_s18 + $0x358] sm:$0xff] }
 0x28f   : > { %v1060_v7 = vpop.f32.mrf.mxu3  ;;  %1527 = vmatpush.msrb.mxu3 %v1344_v38 }
 0x290   : > { %v2778_v10 = vadd.f32 %v1060_v7, %v1038_v63  ;;  %v1196_v11 = vmul.f32 0.7978846, %v1188_v3  ;;  %v1183_v12 = vmul.f32 %v1175_v4, %v2760_v52  ;;  %1502 = vmatpush.msrb.mxu2 %v1316_v22 }
 0x291   : > { %1528 = vmatpush.msrb.mxu3 %v1342_v49 }
 0x292   : > { %v1901_v16 = vpop.eup %1900  ;;  %1902 = vtanh.f32 %v1196_v11  ;;  %v1191_v17 = vadd.f32 %v1183_v12, %v2760_v52  ;;  %v1168_v20 = vmul.f32 0.044715, %v2778_v10  ;;  %1503 = vmatpush.msrb.mxu2 %v1314_v26  ;;  %v1160_v57 = vmul.f32 0.5, %v2778_v10 }
 0x293   : > { %v1211_v19 = vadd.f32 1.0, %v1901_v16  ;;  %1529 = vmatpush.msrb.mxu3 %v1340_v54 }
 0x294   : > { %v1199_v18 = vmul.f32 0.7978846, %v1191_v17  ;;  %v1176_v23 = vmul.f32 %v1168_v20, %v2778_v10  ;;  %1504 = vmatpush.msrb.mxu2 %v1312_v28  ;;  %v1328_v17 = vld [vmem:[%s2473_s18 + $0x308] sm:$0xff] }
 0x295   : > { %v2792_v25 = vmul.f32 %v1211_v19, %v1155_v1  ;;  %1530 = vmatpush.msrb.mxu3 %v1338_v61  ;;  %v1330_v1 = vld [vmem:[%s2473_s18 + $0x318] sm:$0xff]  ;;  %v1227_v61 = vld [vmem:[#allocation3] sm:$0xff] }
 0x296   : > { %1904 = vtanh.f32 %v1199_v18  ;;  %v1184_v27 = vmul.f32 %v1176_v23, %v2778_v10  ;;  %1505 = vmatpush.msrb.mxu2 %v1310_v35 }
 0x297   : > { %1375 = vmatmul.f32.vlgmr.msra.gmra.mxu0 %v2792_v25  ;;  %1531 = vmatpush.msrb.mxu3 %v1336_v62 }
 0x298   : > { %v1903_v30 = vpop.eup %1902  ;;  %v1192_v31 = vadd.f32 %v1184_v27, %v2778_v10  ;;  %1506 = vmatpush.msrb.mxu2 %v1308_v40 }
 0x299   : > { %v1212_v33 = vadd.f32 1.0, %v1903_v30  ;;  %1532 = vmatpush.msrb.mxu3 %v1334_v9 }
 0x29a   : > { %v1200_v34 = vmul.f32 0.7978846, %v1192_v31  ;;  %1507 = vmatpush.msrb.mxu2 %v1306_v45 }
 0x29b   : > { %v2803_v37 = vmul.f32 %v1212_v33, %v1156_v32  ;;  %1533 = vmatpush.msrb.mxu3 %v1332_v14  ;;  %v1228_v14 = vld [vmem:[#allocation3 + $0x18] sm:$0xff] }
 0x29c   : > { %v1905_v42 = vpop.eup %1904  ;;  %1906 = vtanh.f32 %v1200_v34  ;;  %1508 = vmatpush.msrb.mxu2 %v1304_v48 }
 0x29d   : > { %1398 = vmatmul.f32.vlgmr.msra.gmra.mxu1 %v2803_v37  ;;  %v1215_v44 = vadd.f32 1.0, %v1905_v42  ;;  %1534 = vmatpush.msrb.mxu3 %v1330_v1 }
 0x29e   : > { %1509 = vmatpush.msrb.mxu2 %v1302_v53 }
 0x29f   : > { %v2812_v46 = vmul.f32 %v1215_v44, %v1159_v39  ;;  %1535 = vmatpush.msrb.mxu3 %v1328_v17 }
 0x2a0   : > { %v1080_v47 = vpop.f32.mrf.mxu0  ;;  %1510 = vmatpush.msrb.mxu2 %v1300_v59 }
 0x2a1   : > { %v1081_v50 = vadd.f32 %v1080_v47, %v965_v43  ;;  %1378 = vmatmul.f32.gmra.mxu0 %v2812_v46 }
 0x2a2   : > { %v1907_v51 = vpop.eup %1906  ;;  %v1103_v52 = vpop.f32.mrf.mxu1  ;;  %1511 = vmatpush.msrb.mxu2 %v1298_v2 }
 0x2a3   : > { %v1104_v55 = vadd.f32 %v1103_v52, %v1081_v50  ;;  %v1216_v58 = vadd.f32 1.0, %v1907_v51 }
 0x2a4   : > { %1512 = vmatpush.msrb.mxu2 %v1296_v8 }
 0x2a5   : > { %v1165_v63 = vmul.f32 0.044715, %v1104_v55  ;;  %v1224_v0 = vmul.f32 %v1216_v58, %v1160_v57  ;;  %v1157_v35 = vmul.f32 0.5, %v1104_v55 }
 0x2a6   : > { %v1126_v3 = vpop.f32.mrf.mxu2 }
 0x2a7   : > { %v1173_v4 = vmul.f32 %v1165_v63, %v1104_v55  ;;  %v1127_v5 = vadd.f32 %v1126_v3, %v966_v56  ;;  %1401 = vmatmul.f32.gmra.mxu1 %v1224_v0 }
 0x2a8   : > { %v1083_v60 = vpop.f32.mrf.mxu0  ;;  %v1149_v7 = vpop.f32.mrf.mxu3 }
 0x2a9   : > { %v1181_v10 = vmul.f32 %v1173_v4, %v1104_v55  ;;  %v1084_v11 = vadd.f32 %v1083_v60, %v965_v43  ;;  %v1150_v12 = vadd.f32 %v1149_v7, %v1127_v5  ;;  %1467 = vmatmul.f32.vlgmr.msrb.gmra.mxu0 %v2792_v25  ;;  %v1229_v60 = vld [vmem:[#allocation3 + $0x8] sm:$0xff] }
 0x2aa   : > { %v1106_v13 = vpop.f32.mrf.mxu1 }
 0x2ab   : > { %v1166_v15 = vmul.f32 0.044715, %v1150_v12  ;;  %v1107_v6 = vadd.f32 %v1106_v13, %v1084_v11  ;;  %v1189_v16 = vadd.f32 %v1181_v10, %v1104_v55  ;;  %v1158_v38 = vmul.f32 0.5, %v1150_v12 }
 0x2ad   : > { %v1174_v20 = vmul.f32 %v1166_v15, %v1150_v12  ;;  %v1197_v21 = vmul.f32 0.7978846, %v1189_v16  ;;  %v1169_v19 = vmul.f32 0.044715, %v1107_v6 }
 0x2ae   : > { %v1129_v22 = vpop.f32.mrf.mxu2 }
 0x2af   : > { %v1182_v18 = vmul.f32 %v1174_v20, %v1150_v12  ;;  %v1130_v23 = vadd.f32 %v1129_v22, %v966_v56  ;;  %1490 = vmatmul.f32.vlgmr.msrb.gmra.mxu1 %v2803_v37  ;;  %1908 = vtanh.f32 %v1197_v21  ;;  %v1177_v24 = vmul.f32 %v1169_v19, %v1107_v6  ;;  %v1230_v22 = vld [vmem:[#allocation3 + $0x10] sm:$0xff] }
 0x2b0   : > { %v1152_v25 = vpop.f32.mrf.mxu3 }
 0x2b1   : > { %v1153_v26 = vadd.f32 %v1152_v25, %v1130_v23  ;;  %1470 = vmatmul.f32.gmra.mxu0 %v2812_v46  ;;  %v1190_v27 = vadd.f32 %v1182_v18, %v1150_v12  ;;  %v1185_v28 = vmul.f32 %v1177_v24, %v1107_v6  ;;  %v1161_v46 = vmul.f32 0.5, %v1107_v6 }
 0x2b3   : > { %v1198_v29 = vmul.f32 0.7978846, %v1190_v27  ;;  %v1193_v30 = vadd.f32 %v1185_v28, %v1107_v6  ;;  %v1170_v31 = vmul.f32 0.044715, %v1153_v26  ;;  %v1162_v50 = vmul.f32 0.5, %v1153_v26 }
 0x2b5   : > { %v1909_v32 = vpop.eup %1908  ;;  %1910 = vtanh.f32 %v1198_v29  ;;  %v1201_v33 = vmul.f32 0.7978846, %v1193_v30  ;;  %v1178_v34 = vmul.f32 %v1170_v31, %v1153_v26 }
 0x2b6   : > { %v1213_v36 = vadd.f32 1.0, %v1909_v32 }
 0x2b7   : > { %1493 = vmatmul.f32.gmra.mxu1 %v1224_v0  ;;  %1912 = vtanh.f32 %v1201_v33  ;;  %v1186_v37 = vmul.f32 %v1178_v34, %v1153_v26 }
 0x2b8   : > { %v1221_v39 = vmul.f32 %v1213_v36, %v1157_v35 }
 0x2b9   : > { %v1194_v40 = vadd.f32 %v1186_v37, %v1153_v26 }
 0x2ba   : > { %1421 = vmatmul.f32.vlgmr.msra.gmra.mxu2 %v1221_v39 }
 0x2bb   : > { %v1911_v41 = vpop.eup %1910  ;;  %v1202_v42 = vmul.f32 0.7978846, %v1194_v40 }
 0x2bc   : > { %v1214_v43 = vadd.f32 1.0, %v1911_v41 }
 0x2bd   : > { %v1913_v44 = vpop.eup %1912  ;;  %1914 = vtanh.f32 %v1202_v42 }
 0x2be   : > { %v1222_v45 = vmul.f32 %v1214_v43, %v1158_v38  ;;  %v1217_v47 = vadd.f32 1.0, %v1913_v44 }
 0x2c0   : > { %1444 = vmatmul.f32.vlgmr.msra.gmra.mxu3 %v1222_v45  ;;  %v1225_v48 = vmul.f32 %v1217_v47, %v1161_v46 }
 0x2c2   : > { %1424 = vmatmul.f32.gmra.mxu2 %v1225_v48 }
 0x2c3   : > { %v1915_v49 = vpop.eup %1914 }
 0x2c4   : > { %v1218_v51 = vadd.f32 1.0, %v1915_v49 }
 0x2c6   : > { %v1226_v52 = vmul.f32 %v1218_v51, %v1162_v50 }
 0x2c8   : > { %1447 = vmatmul.f32.gmra.mxu3 %v1226_v52 }
 0x2ca   : > { %1513 = vmatmul.f32.vlgmr.msrb.gmra.mxu2 %v1221_v39 }
 0x2d0   : > { %1536 = vmatmul.f32.vlgmr.msrb.gmra.mxu3 %v1222_v45 }
 0x2d2   : > { %1516 = vmatmul.f32.gmra.mxu2 %v1225_v48 }
 0x2d8   : > { %1539 = vmatmul.f32.gmra.mxu3 %v1226_v52 }
 0x314   : > { %v1376_v54 = vpop.f32.mrf.mxu0 }
 0x31a   : > { %v1399_v53 = vpop.f32.mrf.mxu1 }
 0x31b   : > { %v1400_v56 = vadd.f32 %v1399_v53, %v1376_v54 }
 0x31e   : > { %v1379_v59 = vpop.f32.mrf.mxu0 }
 0x324   : > { %v1402_v57 = vpop.f32.mrf.mxu1 }
 0x325   : > { %v1403_v3 = vadd.f32 %v1402_v57, %v1379_v59 }
 0x326   : > { %v1468_v9 = vpop.f32.mrf.mxu0 }
 0x32c   : > { %v1491_v5 = vpop.f32.mrf.mxu1 }
 0x32d   : > { %v1492_v12 = vadd.f32 %v1491_v5, %v1468_v9 }
 0x32e   : > { %v1471_v17 = vpop.f32.mrf.mxu0 }
 0x334   : > { %v1494_v6 = vpop.f32.mrf.mxu1 }
 0x335   : > { %v1495_v21 = vadd.f32 %v1494_v6, %v1471_v17 }
 0x33d   : > { %v1422_v55 = vpop.f32.mrf.mxu2 }
 0x33e   : > { %v1423_v58 = vadd.f32 %v1422_v55, %v1400_v56 }
 0x343   : > { %v1445_v62 = vpop.f32.mrf.mxu3 }
 0x344   : > { %v1446_v63 = vadd.f32 %v1445_v62, %v1423_v58 }
 0x345   : > { %v1425_v0 = vpop.f32.mrf.mxu2 }
 0x346   : > { %v1543_v2 = vadd.f32 %v1446_v63, %v1227_v61  ;;  %v1426_v4 = vadd.f32 %v1425_v0, %v1403_v3 }
 0x348   : > { %1547 = vst [vmem:[#allocation3] sm:$0xff] %v1543_v2 }
 0x34b   : > { %v1448_v7 = vpop.f32.mrf.mxu3 }
 0x34c   : > { %v1449_v8 = vadd.f32 %v1448_v7, %v1426_v4 }
 0x34d   : > { %v1514_v10 = vpop.f32.mrf.mxu2 }
 0x34e   : > { %v1545_v11 = vadd.f32 %v1449_v8, %v1229_v60  ;;  %v1515_v13 = vadd.f32 %v1514_v10, %v1492_v12 }
 0x350   : > { %1549 = vst [vmem:[#allocation3 + $0x8] sm:$0xff] %v1545_v11 }
 0x353   : > { %v1537_v1 = vpop.f32.mrf.mxu3 }
 0x354   : > { %v1538_v15 = vadd.f32 %v1537_v1, %v1515_v13 }
 0x355   : > { %v1517_v20 = vpop.f32.mrf.mxu2 }
 0x356   : > { %v1544_v16 = vadd.f32 %v1538_v15, %v1228_v14  ;;  %v1518_v19 = vadd.f32 %v1517_v20, %v1495_v21 }
 0x358   : > { %1548 = vst [vmem:[#allocation3 + $0x18] sm:$0xff] %v1544_v16 }
 0x35b   : > { %v1540_v18 = vpop.f32.mrf.mxu3 }
 0x35c   : > { %v1541_v23 = vadd.f32 %v1540_v18, %v1518_v19  ;;  %1554 = sbr.rel (%p1793_p7) target bundleno = 879 (0x36f), region = 83 }
 0x35e   : > { %v1546_v24 = vadd.f32 %v1541_v23, %v1230_v22 }
 0x360   : > { %1550 = vst [vmem:[#allocation3 + $0x10] sm:$0xff] %v1546_v24 }
 0x361   : > { %v1555_v25 = vld [vmem:[#allocation3] sm:$0xff]  ;;  %v1556_v29 = vld [vmem:[#allocation3 + $0x18] sm:$0xff]  ;;  %v1557_v33 = vld [vmem:[#allocation3 + $0x8] sm:$0xff] }
 0x362   : > { %v1559_v26 = vld [vmem:[%s2908_s7] sm:$0x3]  ;;  %v1570_v41 = vld [vmem:[%s2452_s30 + $0x8] sm:$0xff]  ;;  %v1571_v42 = vld [vmem:[%s2452_s30 + $0x10] sm:$0xff] }
 0x363   : > { %v1561_v27 = vperm.slane %v1559_v26, 0  ;;  %v1573_v28 = vld [vmem:[%s720_s16] sm:$0x3]  ;;  %v1562_v30 = vperm.slane %v1559_v26, 1  ;;  %v1572_v45 = vld [vmem:[%s2452_s30 + $0x18] sm:$0xff] }
 0x364   : > { %v1575_v31 = vperm.slane %v1573_v28, 0  ;;  %v1576_v32 = vperm.slane %v1573_v28, 1  ;;  %v1569_v40 = vld [vmem:[%s2452_s30] sm:$0xff] }
 0x365   : > { %v1565_v35 = vadd.f32 %v1561_v27, %v1555_v25  ;;  %v1566_v36 = vadd.f32 %v1562_v30, %v1556_v29  ;;  %v1567_v37 = vadd.f32 %v1561_v27, %v1557_v33 }
 0x367   : > { %v1558_v34 = vld [vmem:[#allocation3 + $0x10] sm:$0xff]  ;;  %v1579_v38 = vmul.f32 %v1575_v31, %v1565_v35  ;;  %v1580_v43 = vmul.f32 %v1576_v32, %v1566_v36  ;;  %v1581_v44 = vmul.f32 %v1575_v31, %v1567_v37 }
 0x368   : > { %v1568_v39 = vadd.f32 %v1562_v30, %v1558_v34 }
 0x369   : > { %v1583_v47 = vadd.f32 %v1579_v38, %v1569_v40  ;;  %v1584_v48 = vadd.f32 %v1580_v43, %v1570_v41  ;;  %v1585_v49 = vadd.f32 %v1581_v44, %v1571_v42 }
 0x36a   : > { %v1582_v46 = vmul.f32 %v1576_v32, %v1568_v39 }
 0x36b   : > { %1587 = vst [vmem:[%s2477_s9] sm:$0xff] %v1583_v47 }
 0x36c   : > { %v1586_v50 = vadd.f32 %v1582_v46, %v1572_v45  ;;  %1588 = vst [vmem:[%s2477_s9 + $0x8] sm:$0xff] %v1584_v48 }
 0x36d   : > { %1589 = vst [vmem:[%s2477_s9 + $0x10] sm:$0xff] %v1585_v49 }
 0x36e   : > { %1590 = vst [vmem:[%s2477_s9 + $0x18] sm:$0xff] %v1586_v50 }
 0x36f PF: > { %s1802_s4 = sshll.u32 %s2014_s11, 5  ;;  %s2941_s24 = sld [smem:[#allocation21_spill]] }
 0x370   : > { %s1607_s30 = sshll.u32 %s2477_s9, 4  ;;  %s2942_s13 = sand.u32 1, %s1994_s28   ;;  %s1608_s30 = int_to_ptr.vmem [resolvable:$true] %s1607_s30 }
 0x371   : > { %s1592_s21 = scalar_lea.sflag [#allocation6], %s2942_s13 }
 0x375   : > { %s1606_s16 = scalar_lea.hbm %s2941_s24, %s1802_s4  ;;  %s1936_s11 = scalar_lea.hbm %s2941_s24, 64 }
 0x376   : > { %s1609_s12 = sshll.u32 %s1606_s16, 4  ;;  %s1610_s12 = int_to_ptr.hbm [resolvable:$true] %s1609_s12 }
 0x377   : > { %s1930_s18 = sshra.s32 %s1610_s12, 4  ;;  %s1931_s18 = int_to_ptr.hbm [resolvable:$true] %s1930_s18 }
 0x378   : > { %s1932_s17 = scalar_lea.hbm %s1931_s18, 32  ;;  %p1937_p13 = scmp.lt.s32.totalorder %s1931_s18, %s2941_s24 }
 0x379   : > { %p1933_p8 = scmp.ne.s32.totalorder %s1931_s18, %s1932_s17  ;;  %p1938_p0 = scmp.lt.s32.totalorder %s1936_s11, %s1932_s17 }
 0x37b   : > { %p1934_p9 = pnand %p1933_p8, %p2156_p10  ;;  %p1939_p1 = por %p1938_p0, %p1937_p13 }
 0x37d   : > { %p1935_p11 = pneg %p1934_p9 }
 0x37f   : > { %p1940_p2 = pnand %p1939_p1, %p1935_p11 }
 0x381   : > { %1943 = shalt.err (!%p1940_p2)
}
 0x382   : > { %s2030_s9 = smov 256   ;;  %s2031_s29 = smov 16  }
 0x383   : > { %1803 = dma.vmem_to_hbm [thread:$0]  (%p2156_p10), %s1608_s30, 512, %s1610_s12, %s1592_s21, %s2030_s9, %s2030_s9, %s2031_s29  }
 0x384 PF: > { %s2943_s23 = sld [smem:[#allocation13_spill]] }
 0x385   : > { %s2944_s26 = sld [smem:[#allocation8_spill]] }
 0x38a   : > { %p1809_p3 = scmp.ge.s32.totalorder %s2943_s23, 2 }
 0x38b   : > { %s1624_s22 = sand.u32 1, %s2944_s26  }
 0x38c   : > { %p1806_p4 = pnand %p1809_p3, %p2163_p12  ;;  %s1625_s15 = scalar_lea.sflag [#allocation6], %s1624_s22 }
 0x38e   : > { %p1807_p5 = pneg %p1806_p4 }
 0x390   : > { %1985 = dma.done.wait (%p1807_p5), %s1625_s15, 512  }
 0x391   : > { %1987 = vsyncadd (%p1807_p5), %s1625_s15, 4294966784  ;;  %s21_s14 = sadd.s32 1, %s2943_s23   ;;  %s2946_s4 = sld [smem:[#allocation9_spill]] }
 0x392   : > { %p18_p6 = scmp.ge.s32.totalorder %s21_s14, 6   ;;  %s2947_s29 = sld [smem:[#allocation17_spill]] }
 0x393   : > { %s2948_s30 = sld [smem:[#allocation10_spill]]  ;;  %s2954_s27 = smov %s1994_s28 }
 0x394   : > { %s2949_s9 = sld [smem:[#allocation16_spill]]  ;;  %20 = sbr.rel (!%p18_p6) target bundleno = 10 (0xa), region = 141 }
 0x395   : > { %s2950_s10 = sld [smem:[#allocation11_spill]] }
 0x396   : > { %s2951_s11 = sld [smem:[#allocation12_spill]] }
 0x397   : > { %s2952_s12 = sld [smem:[#allocation14_spill]]  ;;  %s2955_s28 = smov %s2946_s4 }
 0x398   : > { %s2953_s13 = sld [smem:[#allocation15_spill]] }
 0x399   :  { %1631 = vsyncpa [#allocation6], 1 }
 0x39a   :  { %1633 = vsyncpa [#allocation6 + $0x1], 1 }

</bundles_post_ra>
